<compile_context>
chip_gen: v7x
topology: tpu7x:2x2x1
jax: 0.10.0
libtpu: 0.0.40
codegen_flags: <defaults>
</compile_context>

<pallas_src>
import jax
import jax.numpy as jnp
from jax.experimental import pallas as pl
from jax.experimental.pallas import tpu as pltpu


# ---------------- fused forward kernel ----------------

def _cnn_fused_kernel(p1_ref, w1_ref, b1_ref, w2_ref, b2_ref,
                      l1w_ref, l1b_ref, l2w_ref, l2b_ref, l3w_ref, l3b_ref,
                      o_ref):
    n_batch = o_ref.shape[0]

    # ---- conv1 as one MXU matmul on pre-built patches: [N*576, 32] x [32, 32]
    a1 = jnp.dot(p1_ref[...], w1_ref[...], preferred_element_type=jnp.float32)
    a1 = a1 + b1_ref[...]                                   # [N*576, 32]

    flats = []
    for n in range(n_batch):                                # N=2: small static loop
        a1n = a1[n * 576:(n + 1) * 576, :]                  # [576, 32], rows = (h, w)
        a1n = a1n.reshape(24, 24, 32)                       # [24, 24, 32]

        # ---- maxpool 2x2 -> [12, 12, 32]
        a1r = a1n.reshape(12, 2, 24, 32)                    # split H into (ph, dh)
        hm = jnp.maximum(a1r[:, 0], a1r[:, 1])              # [12, 24, 32]
        parts = [jnp.maximum(hm[:, 2 * p:2 * p + 1, :],
                             hm[:, 2 * p + 1:2 * p + 2, :]) for p in range(12)]
        p1n = jnp.concatenate(parts, axis=1)                # [12, 12, 32]

        # ---- conv2: in-kernel im2col, 25 accumulated [64,32]x[32,64] matmuls
        acc = jnp.zeros((64, 64), jnp.float32)
        for kh in range(5):
            for kw in range(5):
                tap = p1n[kh:kh + 8, kw:kw + 8, :].reshape(64, 32)
                acc = acc + jnp.dot(tap, w2_ref[kh * 5 + kw],
                                    preferred_element_type=jnp.float32)
        a2n = acc + b2_ref[...]                             # [64, 64], rows = (h, w)

        # ---- maxpool 2x2 fused with flatten -> [1, 1024] (columns = (h, w, c))
        pieces = []
        for ph in range(4):
            for pw in range(4):
                base = 16 * ph + 2 * pw
                m0 = jnp.maximum(a2n[base:base + 1, :], a2n[base + 1:base + 2, :])
                m1 = jnp.maximum(a2n[base + 8:base + 9, :], a2n[base + 9:base + 10, :])
                pieces.append(jnp.maximum(m0, m1))          # [1, 64]
        flats.append(jnp.concatenate(pieces, axis=-1))      # [1, 1024]
    flat = jnp.concatenate(flats, axis=0)                   # [N, 1024]

    # ---- three linear layers (bf16 weights, f32 accumulate/bias)
    h1 = jnp.dot(flat.astype(jnp.bfloat16), l1w_ref[...],
                 preferred_element_type=jnp.float32) + l1b_ref[...]      # [N, 512]
    h2 = jnp.dot(h1.astype(jnp.bfloat16), l2w_ref[...],
                 preferred_element_type=jnp.float32) + l2b_ref[...]      # [N, 256]
    logits = jnp.dot(h2.astype(jnp.bfloat16), l3w_ref[...],
                     preferred_element_type=jnp.float32) + l3b_ref[...]  # [N, 10]

    # ---- log_softmax over the class dim
    m = jnp.max(logits, axis=-1, keepdims=True)
    s = logits - m
    lse = jnp.log(jnp.sum(jnp.exp(s), axis=-1, keepdims=True))
    o_ref[...] = s - lse


def _vmem_spec():
    return pl.BlockSpec(memory_space=pltpu.MemorySpace.VMEM)


# ---------------- parameters ----------------

def init_params(key):
    ks = jax.random.split(key, 10)

    def rnd(k, shape, scale):
        return (scale * jax.random.normal(k, shape)).astype(jnp.float32)

    # PyTorch-layout parameters (exactly what CNN() would hold), random init.
    torch_params = {
        "conv1.weight": rnd(ks[0], (32, 1, 5, 5), 0.10),
        "conv1.bias":   rnd(ks[1], (32,), 0.10),
        "conv2.weight": rnd(ks[2], (64, 32, 5, 5), 0.05),
        "conv2.bias":   rnd(ks[3], (64,), 0.05),
        "fc1.weight":   rnd(ks[4], (512, 1024), 0.03),
        "fc1.bias":     rnd(ks[5], (512,), 0.03),
        "fc2.weight":   rnd(ks[6], (256, 512), 0.04),
        "fc2.bias":     rnd(ks[7], (256,), 0.04),
        "fc3.weight":   rnd(ks[8], (10, 256), 0.06),
        "fc3.bias":     rnd(ks[9], (10,), 0.06),
    }
    return pack_params(torch_params)


def pack_params(tp):
    """One-time conversion of PyTorch-layout weights into kernel layouts."""
    # conv1: [OC,1,5,5] -> [(kh,kw), OC], K padded 25 -> 32 with zeros.
    w1 = tp["conv1.weight"][:, 0].reshape(32, 25).T
    w1 = jnp.pad(w1, ((0, 7), (0, 0)))
    # conv2: [OC,IC,5,5] -> [25, IC, OC]  (tap index = kh*5+kw)
    w2 = jnp.transpose(tp["conv2.weight"], (2, 3, 1, 0)).reshape(25, 32, 64)
    # fc1 contracts torch's NCHW flatten (c,h,w); kernel flattens as (h,w,c),
    # so permute the K rows accordingly (exactly how a torch checkpoint maps).
    l1 = tp["fc1.weight"].reshape(512, 64, 4, 4)              # [out, c, h, w]
    l1 = jnp.transpose(l1, (2, 3, 1, 0)).reshape(1024, 512)   # [(h,w,c), out]
    return {
        "c1_w": w1.astype(jnp.float32),
        "c1_b": tp["conv1.bias"].reshape(1, 32),
        "c2_w": w2.astype(jnp.float32),
        "c2_b": tp["conv2.bias"].reshape(1, 64),
        "l1_w": l1.astype(jnp.bfloat16),
        "l1_b": tp["fc1.bias"].reshape(1, 512),
        "l2_w": tp["fc2.weight"].T.astype(jnp.bfloat16),
        "l2_b": tp["fc2.bias"].reshape(1, 256),
        "l3_w": tp["fc3.weight"].T.astype(jnp.bfloat16),
        "l3_b": tp["fc3.bias"].reshape(1, 10),
    }


# ---------------- forward ----------------

@jax.jit
def cnn_forward(params, x_nchw):
    x = x_nchw.astype(jnp.float32)
    n, c, h, w = x.shape
    assert (c, h, w) == (1, 28, 28)

    # conv1 im2col in XLA (tiny: [N*576, 32] ~ 144 KiB), K padded 25 -> 32.
    xs = x[:, 0, :, :]                                        # [N, 28, 28]
    cols = [xs[:, i:i + 24, j:j + 24] for i in range(5) for j in range(5)]
    patches = jnp.stack(cols, axis=-1).reshape(n * 576, 25)   # rows (n,h,w), cols (kh,kw)
    patches = jnp.pad(patches, ((0, 0), (0, 7)))              # [N*576, 32]

    args = (patches,
            params["c1_w"], params["c1_b"],
            params["c2_w"], params["c2_b"],
            params["l1_w"], params["l1_b"],
            params["l2_w"], params["l2_b"],
            params["l3_w"], params["l3_b"])

    flops = 2 * (n * 576 * 32 * 32 + 25 * n * 64 * 32 * 64
                 + n * 1024 * 512 + n * 512 * 256 + n * 256 * 10)
    bytes_accessed = sum(int(a.size) * a.dtype.itemsize for a in args) + n * 10 * 4

    return pl.pallas_call(
        _cnn_fused_kernel,
        out_shape=jax.ShapeDtypeStruct((n, 10), jnp.float32),
        in_specs=[_vmem_spec() for _ in args],
        out_specs=_vmem_spec(),
        cost_estimate=pl.CostEstimate(flops=flops,
                                      transcendentals=11 * n,
                                      bytes_accessed=bytes_accessed),
    )(*args)


if __name__ == "__main__":
    key = jax.random.PRNGKey(0)
    pkey, xkey = jax.random.split(key)
    params = init_params(pkey)
    # MNIST-style input implied by the module (28x28, 1 channel -> 64*4*4 flatten).
    x = jax.random.normal(xkey, (2, 1, 28, 28), dtype=jnp.float32)
    out = cnn_forward(params, x)
    out = jax.block_until_ready(out)
    assert out.shape == (2, 10)
    assert bool(jnp.all(jnp.isfinite(out)))
    print("KERNEL_OK")
</pallas_src>

<mosaic_0001>
module attributes {stable_mosaic.version = 11 : i64} {
  func.func @_cnn_fused_kernel(%arg0: memref<1152x32xf32, #tpu.memory_space<vmem>>, %arg1: memref<32x32xf32, #tpu.memory_space<vmem>>, %arg2: memref<1x32xf32, #tpu.memory_space<vmem>>, %arg3: memref<25x32x64xf32, #tpu.memory_space<vmem>>, %arg4: memref<1x64xf32, #tpu.memory_space<vmem>>, %arg5: memref<1024x512xbf16, #tpu.memory_space<vmem>>, %arg6: memref<1x512xf32, #tpu.memory_space<vmem>>, %arg7: memref<512x256xbf16, #tpu.memory_space<vmem>>, %arg8: memref<1x256xf32, #tpu.memory_space<vmem>>, %arg9: memref<256x10xbf16, #tpu.memory_space<vmem>>, %arg10: memref<1x10xf32, #tpu.memory_space<vmem>>, %arg11: memref<2x10xf32, #tpu.memory_space<vmem>>) attributes {dimension_semantics = [], scalar_prefetch = 0 : i64, scratch_operands = 0 : i64, tpu.core_type = #tpu.core_type<tc>} {
    %c0 = arith.constant 0 : index
    %c0_0 = arith.constant 0 : index
    %0 = vector.load %arg0[%c0, %c0_0] : memref<1152x32xf32, #tpu.memory_space<vmem>>, vector<1152x32xf32>
    %c0_1 = arith.constant 0 : index
    %c0_2 = arith.constant 0 : index
    %1 = vector.load %arg1[%c0_1, %c0_2] : memref<32x32xf32, #tpu.memory_space<vmem>>, vector<32x32xf32>
    %cst = arith.constant dense<0.000000e+00> : vector<1152x32xf32>
    %2 = tpu.matmul %0, %1, %cst {dimension_numbers = #tpu.dot_dimension_numbers<[1], [0], [0], [1], [0, 0, 1, 1], [], []>} : vector<1152x32xf32>, vector<32x32xf32>, vector<1152x32xf32> -> vector<1152x32xf32>
    %c0_3 = arith.constant 0 : index
    %c0_4 = arith.constant 0 : index
    %3 = vector.load %arg2[%c0_3, %c0_4] : memref<1x32xf32, #tpu.memory_space<vmem>>, vector<1x32xf32>
    %4 = vector.broadcast %3 : vector<1x32xf32> to vector<1152x32xf32>
    %5 = arith.addf %2, %4 : vector<1152x32xf32>
    %6 = vector.extract_strided_slice %5 {offsets = [0, 0], sizes = [576, 32], strides = [1, 1]} : vector<1152x32xf32> to vector<576x32xf32>
    %7 = vector.shape_cast %6 : vector<576x32xf32> to vector<24x24x32xf32>
    %8 = vector.shape_cast %7 : vector<24x24x32xf32> to vector<12x2x24x32xf32>
    %9 = vector.extract_strided_slice %8 {offsets = [0, 0, 0, 0], sizes = [12, 1, 24, 32], strides = [1, 1, 1, 1]} : vector<12x2x24x32xf32> to vector<12x1x24x32xf32>
    %10 = vector.shape_cast %9 : vector<12x1x24x32xf32> to vector<12x24x32xf32>
    %11 = vector.extract_strided_slice %8 {offsets = [0, 1, 0, 0], sizes = [12, 1, 24, 32], strides = [1, 1, 1, 1]} : vector<12x2x24x32xf32> to vector<12x1x24x32xf32>
    %12 = vector.shape_cast %11 : vector<12x1x24x32xf32> to vector<12x24x32xf32>
    %13 = arith.maximumf %10, %12 : vector<12x24x32xf32>
    %14 = vector.extract_strided_slice %13 {offsets = [0, 0, 0], sizes = [12, 1, 32], strides = [1, 1, 1]} : vector<12x24x32xf32> to vector<12x1x32xf32>
    %15 = vector.extract_strided_slice %13 {offsets = [0, 1, 0], sizes = [12, 1, 32], strides = [1, 1, 1]} : vector<12x24x32xf32> to vector<12x1x32xf32>
    %16 = arith.maximumf %14, %15 : vector<12x1x32xf32>
    %17 = vector.extract_strided_slice %13 {offsets = [0, 2, 0], sizes = [12, 1, 32], strides = [1, 1, 1]} : vector<12x24x32xf32> to vector<12x1x32xf32>
    %18 = vector.extract_strided_slice %13 {offsets = [0, 3, 0], sizes = [12, 1, 32], strides = [1, 1, 1]} : vector<12x24x32xf32> to vector<12x1x32xf32>
    %19 = arith.maximumf %17, %18 : vector<12x1x32xf32>
    %20 = vector.extract_strided_slice %13 {offsets = [0, 4, 0], sizes = [12, 1, 32], strides = [1, 1, 1]} : vector<12x24x32xf32> to vector<12x1x32xf32>
    %21 = vector.extract_strided_slice %13 {offsets = [0, 5, 0], sizes = [12, 1, 32], strides = [1, 1, 1]} : vector<12x24x32xf32> to vector<12x1x32xf32>
    %22 = arith.maximumf %20, %21 : vector<12x1x32xf32>
    %23 = vector.extract_strided_slice %13 {offsets = [0, 6, 0], sizes = [12, 1, 32], strides = [1, 1, 1]} : vector<12x24x32xf32> to vector<12x1x32xf32>
    %24 = vector.extract_strided_slice %13 {offsets = [0, 7, 0], sizes = [12, 1, 32], strides = [1, 1, 1]} : vector<12x24x32xf32> to vector<12x1x32xf32>
    %25 = arith.maximumf %23, %24 : vector<12x1x32xf32>
    %26 = vector.extract_strided_slice %13 {offsets = [0, 8, 0], sizes = [12, 1, 32], strides = [1, 1, 1]} : vector<12x24x32xf32> to vector<12x1x32xf32>
    %27 = vector.extract_strided_slice %13 {offsets = [0, 9, 0], sizes = [12, 1, 32], strides = [1, 1, 1]} : vector<12x24x32xf32> to vector<12x1x32xf32>
    %28 = arith.maximumf %26, %27 : vector<12x1x32xf32>
    %29 = vector.extract_strided_slice %13 {offsets = [0, 10, 0], sizes = [12, 1, 32], strides = [1, 1, 1]} : vector<12x24x32xf32> to vector<12x1x32xf32>
    %30 = vector.extract_strided_slice %13 {offsets = [0, 11, 0], sizes = [12, 1, 32], strides = [1, 1, 1]} : vector<12x24x32xf32> to vector<12x1x32xf32>
    %31 = arith.maximumf %29, %30 : vector<12x1x32xf32>
    %32 = vector.extract_strided_slice %13 {offsets = [0, 12, 0], sizes = [12, 1, 32], strides = [1, 1, 1]} : vector<12x24x32xf32> to vector<12x1x32xf32>
    %33 = vector.extract_strided_slice %13 {offsets = [0, 13, 0], sizes = [12, 1, 32], strides = [1, 1, 1]} : vector<12x24x32xf32> to vector<12x1x32xf32>
    %34 = arith.maximumf %32, %33 : vector<12x1x32xf32>
    %35 = vector.extract_strided_slice %13 {offsets = [0, 14, 0], sizes = [12, 1, 32], strides = [1, 1, 1]} : vector<12x24x32xf32> to vector<12x1x32xf32>
    %36 = vector.extract_strided_slice %13 {offsets = [0, 15, 0], sizes = [12, 1, 32], strides = [1, 1, 1]} : vector<12x24x32xf32> to vector<12x1x32xf32>
    %37 = arith.maximumf %35, %36 : vector<12x1x32xf32>
    %38 = vector.extract_strided_slice %13 {offsets = [0, 16, 0], sizes = [12, 1, 32], strides = [1, 1, 1]} : vector<12x24x32xf32> to vector<12x1x32xf32>
    %39 = vector.extract_strided_slice %13 {offsets = [0, 17, 0], sizes = [12, 1, 32], strides = [1, 1, 1]} : vector<12x24x32xf32> to vector<12x1x32xf32>
    %40 = arith.maximumf %38, %39 : vector<12x1x32xf32>
    %41 = vector.extract_strided_slice %13 {offsets = [0, 18, 0], sizes = [12, 1, 32], strides = [1, 1, 1]} : vector<12x24x32xf32> to vector<12x1x32xf32>
    %42 = vector.extract_strided_slice %13 {offsets = [0, 19, 0], sizes = [12, 1, 32], strides = [1, 1, 1]} : vector<12x24x32xf32> to vector<12x1x32xf32>
    %43 = arith.maximumf %41, %42 : vector<12x1x32xf32>
    %44 = vector.extract_strided_slice %13 {offsets = [0, 20, 0], sizes = [12, 1, 32], strides = [1, 1, 1]} : vector<12x24x32xf32> to vector<12x1x32xf32>
    %45 = vector.extract_strided_slice %13 {offsets = [0, 21, 0], sizes = [12, 1, 32], strides = [1, 1, 1]} : vector<12x24x32xf32> to vector<12x1x32xf32>
    %46 = arith.maximumf %44, %45 : vector<12x1x32xf32>
    %47 = vector.extract_strided_slice %13 {offsets = [0, 22, 0], sizes = [12, 1, 32], strides = [1, 1, 1]} : vector<12x24x32xf32> to vector<12x1x32xf32>
    %48 = vector.extract_strided_slice %13 {offsets = [0, 23, 0], sizes = [12, 1, 32], strides = [1, 1, 1]} : vector<12x24x32xf32> to vector<12x1x32xf32>
    %49 = arith.maximumf %47, %48 : vector<12x1x32xf32>
    %50 = tpu.concatenate %16, %19, %22, %25, %28, %31, %34, %37, %40, %43, %46, %49 in 1 : vector<12x1x32xf32>, vector<12x1x32xf32>, vector<12x1x32xf32>, vector<12x1x32xf32>, vector<12x1x32xf32>, vector<12x1x32xf32>, vector<12x1x32xf32>, vector<12x1x32xf32>, vector<12x1x32xf32>, vector<12x1x32xf32>, vector<12x1x32xf32>, vector<12x1x32xf32> -> vector<12x12x32xf32>
    %cst_5 = arith.constant 0.000000e+00 : f32
    %51 = vector.broadcast %cst_5 : f32 to vector<64x64xf32>
    %52 = vector.extract_strided_slice %50 {offsets = [0, 0, 0], sizes = [8, 8, 32], strides = [1, 1, 1]} : vector<12x12x32xf32> to vector<8x8x32xf32>
    %53 = vector.shape_cast %52 : vector<8x8x32xf32> to vector<64x32xf32>
    %c0_6 = arith.constant 0 : index
    %c0_7 = arith.constant 0 : index
    %c0_8 = arith.constant 0 : index
    %54 = vector.load %arg3[%c0_6, %c0_7, %c0_8] : memref<25x32x64xf32, #tpu.memory_space<vmem>>, vector<1x32x64xf32>
    %55 = vector.shape_cast %54 : vector<1x32x64xf32> to vector<32x64xf32>
    %cst_9 = arith.constant dense<0.000000e+00> : vector<64x64xf32>
    %56 = tpu.matmul %53, %55, %cst_9 {dimension_numbers = #tpu.dot_dimension_numbers<[1], [0], [0], [1], [0, 0, 1, 1], [], []>} : vector<64x32xf32>, vector<32x64xf32>, vector<64x64xf32> -> vector<64x64xf32>
    %57 = arith.addf %51, %56 : vector<64x64xf32>
    %58 = vector.extract_strided_slice %50 {offsets = [0, 1, 0], sizes = [8, 8, 32], strides = [1, 1, 1]} : vector<12x12x32xf32> to vector<8x8x32xf32>
    %59 = vector.shape_cast %58 : vector<8x8x32xf32> to vector<64x32xf32>
    %c1 = arith.constant 1 : index
    %c0_10 = arith.constant 0 : index
    %c0_11 = arith.constant 0 : index
    %60 = vector.load %arg3[%c1, %c0_10, %c0_11] : memref<25x32x64xf32, #tpu.memory_space<vmem>>, vector<1x32x64xf32>
    %61 = vector.shape_cast %60 : vector<1x32x64xf32> to vector<32x64xf32>
    %cst_12 = arith.constant dense<0.000000e+00> : vector<64x64xf32>
    %62 = tpu.matmul %59, %61, %cst_12 {dimension_numbers = #tpu.dot_dimension_numbers<[1], [0], [0], [1], [0, 0, 1, 1], [], []>} : vector<64x32xf32>, vector<32x64xf32>, vector<64x64xf32> -> vector<64x64xf32>
    %63 = arith.addf %57, %62 : vector<64x64xf32>
    %64 = vector.extract_strided_slice %50 {offsets = [0, 2, 0], sizes = [8, 8, 32], strides = [1, 1, 1]} : vector<12x12x32xf32> to vector<8x8x32xf32>
    %65 = vector.shape_cast %64 : vector<8x8x32xf32> to vector<64x32xf32>
    %c2 = arith.constant 2 : index
    %c0_13 = arith.constant 0 : index
    %c0_14 = arith.constant 0 : index
    %66 = vector.load %arg3[%c2, %c0_13, %c0_14] : memref<25x32x64xf32, #tpu.memory_space<vmem>>, vector<1x32x64xf32>
    %67 = vector.shape_cast %66 : vector<1x32x64xf32> to vector<32x64xf32>
    %cst_15 = arith.constant dense<0.000000e+00> : vector<64x64xf32>
    %68 = tpu.matmul %65, %67, %cst_15 {dimension_numbers = #tpu.dot_dimension_numbers<[1], [0], [0], [1], [0, 0, 1, 1], [], []>} : vector<64x32xf32>, vector<32x64xf32>, vector<64x64xf32> -> vector<64x64xf32>
    %69 = arith.addf %63, %68 : vector<64x64xf32>
    %70 = vector.extract_strided_slice %50 {offsets = [0, 3, 0], sizes = [8, 8, 32], strides = [1, 1, 1]} : vector<12x12x32xf32> to vector<8x8x32xf32>
    %71 = vector.shape_cast %70 : vector<8x8x32xf32> to vector<64x32xf32>
    %c3 = arith.constant 3 : index
    %c0_16 = arith.constant 0 : index
    %c0_17 = arith.constant 0 : index
    %72 = vector.load %arg3[%c3, %c0_16, %c0_17] : memref<25x32x64xf32, #tpu.memory_space<vmem>>, vector<1x32x64xf32>
    %73 = vector.shape_cast %72 : vector<1x32x64xf32> to vector<32x64xf32>
    %cst_18 = arith.constant dense<0.000000e+00> : vector<64x64xf32>
    %74 = tpu.matmul %71, %73, %cst_18 {dimension_numbers = #tpu.dot_dimension_numbers<[1], [0], [0], [1], [0, 0, 1, 1], [], []>} : vector<64x32xf32>, vector<32x64xf32>, vector<64x64xf32> -> vector<64x64xf32>
    %75 = arith.addf %69, %74 : vector<64x64xf32>
    %76 = vector.extract_strided_slice %50 {offsets = [0, 4, 0], sizes = [8, 8, 32], strides = [1, 1, 1]} : vector<12x12x32xf32> to vector<8x8x32xf32>
    %77 = vector.shape_cast %76 : vector<8x8x32xf32> to vector<64x32xf32>
    %c4 = arith.constant 4 : index
    %c0_19 = arith.constant 0 : index
    %c0_20 = arith.constant 0 : index
    %78 = vector.load %arg3[%c4, %c0_19, %c0_20] : memref<25x32x64xf32, #tpu.memory_space<vmem>>, vector<1x32x64xf32>
    %79 = vector.shape_cast %78 : vector<1x32x64xf32> to vector<32x64xf32>
    %cst_21 = arith.constant dense<0.000000e+00> : vector<64x64xf32>
    %80 = tpu.matmul %77, %79, %cst_21 {dimension_numbers = #tpu.dot_dimension_numbers<[1], [0], [0], [1], [0, 0, 1, 1], [], []>} : vector<64x32xf32>, vector<32x64xf32>, vector<64x64xf32> -> vector<64x64xf32>
    %81 = arith.addf %75, %80 : vector<64x64xf32>
    %82 = vector.extract_strided_slice %50 {offsets = [1, 0, 0], sizes = [8, 8, 32], strides = [1, 1, 1]} : vector<12x12x32xf32> to vector<8x8x32xf32>
    %83 = vector.shape_cast %82 : vector<8x8x32xf32> to vector<64x32xf32>
    %c5 = arith.constant 5 : index
    %c0_22 = arith.constant 0 : index
    %c0_23 = arith.constant 0 : index
    %84 = vector.load %arg3[%c5, %c0_22, %c0_23] : memref<25x32x64xf32, #tpu.memory_space<vmem>>, vector<1x32x64xf32>
    %85 = vector.shape_cast %84 : vector<1x32x64xf32> to vector<32x64xf32>
    %cst_24 = arith.constant dense<0.000000e+00> : vector<64x64xf32>
    %86 = tpu.matmul %83, %85, %cst_24 {dimension_numbers = #tpu.dot_dimension_numbers<[1], [0], [0], [1], [0, 0, 1, 1], [], []>} : vector<64x32xf32>, vector<32x64xf32>, vector<64x64xf32> -> vector<64x64xf32>
    %87 = arith.addf %81, %86 : vector<64x64xf32>
    %88 = vector.extract_strided_slice %50 {offsets = [1, 1, 0], sizes = [8, 8, 32], strides = [1, 1, 1]} : vector<12x12x32xf32> to vector<8x8x32xf32>
    %89 = vector.shape_cast %88 : vector<8x8x32xf32> to vector<64x32xf32>
    %c6 = arith.constant 6 : index
    %c0_25 = arith.constant 0 : index
    %c0_26 = arith.constant 0 : index
    %90 = vector.load %arg3[%c6, %c0_25, %c0_26] : memref<25x32x64xf32, #tpu.memory_space<vmem>>, vector<1x32x64xf32>
    %91 = vector.shape_cast %90 : vector<1x32x64xf32> to vector<32x64xf32>
    %cst_27 = arith.constant dense<0.000000e+00> : vector<64x64xf32>
    %92 = tpu.matmul %89, %91, %cst_27 {dimension_numbers = #tpu.dot_dimension_numbers<[1], [0], [0], [1], [0, 0, 1, 1], [], []>} : vector<64x32xf32>, vector<32x64xf32>, vector<64x64xf32> -> vector<64x64xf32>
    %93 = arith.addf %87, %92 : vector<64x64xf32>
    %94 = vector.extract_strided_slice %50 {offsets = [1, 2, 0], sizes = [8, 8, 32], strides = [1, 1, 1]} : vector<12x12x32xf32> to vector<8x8x32xf32>
    %95 = vector.shape_cast %94 : vector<8x8x32xf32> to vector<64x32xf32>
    %c7 = arith.constant 7 : index
    %c0_28 = arith.constant 0 : index
    %c0_29 = arith.constant 0 : index
    %96 = vector.load %arg3[%c7, %c0_28, %c0_29] : memref<25x32x64xf32, #tpu.memory_space<vmem>>, vector<1x32x64xf32>
    %97 = vector.shape_cast %96 : vector<1x32x64xf32> to vector<32x64xf32>
    %cst_30 = arith.constant dense<0.000000e+00> : vector<64x64xf32>
    %98 = tpu.matmul %95, %97, %cst_30 {dimension_numbers = #tpu.dot_dimension_numbers<[1], [0], [0], [1], [0, 0, 1, 1], [], []>} : vector<64x32xf32>, vector<32x64xf32>, vector<64x64xf32> -> vector<64x64xf32>
    %99 = arith.addf %93, %98 : vector<64x64xf32>
    %100 = vector.extract_strided_slice %50 {offsets = [1, 3, 0], sizes = [8, 8, 32], strides = [1, 1, 1]} : vector<12x12x32xf32> to vector<8x8x32xf32>
    %101 = vector.shape_cast %100 : vector<8x8x32xf32> to vector<64x32xf32>
    %c8 = arith.constant 8 : index
    %c0_31 = arith.constant 0 : index
    %c0_32 = arith.constant 0 : index
    %102 = vector.load %arg3[%c8, %c0_31, %c0_32] : memref<25x32x64xf32, #tpu.memory_space<vmem>>, vector<1x32x64xf32>
    %103 = vector.shape_cast %102 : vector<1x32x64xf32> to vector<32x64xf32>
    %cst_33 = arith.constant dense<0.000000e+00> : vector<64x64xf32>
    %104 = tpu.matmul %101, %103, %cst_33 {dimension_numbers = #tpu.dot_dimension_numbers<[1], [0], [0], [1], [0, 0, 1, 1], [], []>} : vector<64x32xf32>, vector<32x64xf32>, vector<64x64xf32> -> vector<64x64xf32>
    %105 = arith.addf %99, %104 : vector<64x64xf32>
    %106 = vector.extract_strided_slice %50 {offsets = [1, 4, 0], sizes = [8, 8, 32], strides = [1, 1, 1]} : vector<12x12x32xf32> to vector<8x8x32xf32>
    %107 = vector.shape_cast %106 : vector<8x8x32xf32> to vector<64x32xf32>
    %c9 = arith.constant 9 : index
    %c0_34 = arith.constant 0 : index
    %c0_35 = arith.constant 0 : index
    %108 = vector.load %arg3[%c9, %c0_34, %c0_35] : memref<25x32x64xf32, #tpu.memory_space<vmem>>, vector<1x32x64xf32>
    %109 = vector.shape_cast %108 : vector<1x32x64xf32> to vector<32x64xf32>
    %cst_36 = arith.constant dense<0.000000e+00> : vector<64x64xf32>
    %110 = tpu.matmul %107, %109, %cst_36 {dimension_numbers = #tpu.dot_dimension_numbers<[1], [0], [0], [1], [0, 0, 1, 1], [], []>} : vector<64x32xf32>, vector<32x64xf32>, vector<64x64xf32> -> vector<64x64xf32>
    %111 = arith.addf %105, %110 : vector<64x64xf32>
    %112 = vector.extract_strided_slice %50 {offsets = [2, 0, 0], sizes = [8, 8, 32], strides = [1, 1, 1]} : vector<12x12x32xf32> to vector<8x8x32xf32>
    %113 = vector.shape_cast %112 : vector<8x8x32xf32> to vector<64x32xf32>
    %c10 = arith.constant 10 : index
    %c0_37 = arith.constant 0 : index
    %c0_38 = arith.constant 0 : index
    %114 = vector.load %arg3[%c10, %c0_37, %c0_38] : memref<25x32x64xf32, #tpu.memory_space<vmem>>, vector<1x32x64xf32>
    %115 = vector.shape_cast %114 : vector<1x32x64xf32> to vector<32x64xf32>
    %cst_39 = arith.constant dense<0.000000e+00> : vector<64x64xf32>
    %116 = tpu.matmul %113, %115, %cst_39 {dimension_numbers = #tpu.dot_dimension_numbers<[1], [0], [0], [1], [0, 0, 1, 1], [], []>} : vector<64x32xf32>, vector<32x64xf32>, vector<64x64xf32> -> vector<64x64xf32>
    %117 = arith.addf %111, %116 : vector<64x64xf32>
    %118 = vector.extract_strided_slice %50 {offsets = [2, 1, 0], sizes = [8, 8, 32], strides = [1, 1, 1]} : vector<12x12x32xf32> to vector<8x8x32xf32>
    %119 = vector.shape_cast %118 : vector<8x8x32xf32> to vector<64x32xf32>
    %c11 = arith.constant 11 : index
    %c0_40 = arith.constant 0 : index
    %c0_41 = arith.constant 0 : index
    %120 = vector.load %arg3[%c11, %c0_40, %c0_41] : memref<25x32x64xf32, #tpu.memory_space<vmem>>, vector<1x32x64xf32>
    %121 = vector.shape_cast %120 : vector<1x32x64xf32> to vector<32x64xf32>
    %cst_42 = arith.constant dense<0.000000e+00> : vector<64x64xf32>
    %122 = tpu.matmul %119, %121, %cst_42 {dimension_numbers = #tpu.dot_dimension_numbers<[1], [0], [0], [1], [0, 0, 1, 1], [], []>} : vector<64x32xf32>, vector<32x64xf32>, vector<64x64xf32> -> vector<64x64xf32>
    %123 = arith.addf %117, %122 : vector<64x64xf32>
    %124 = vector.extract_strided_slice %50 {offsets = [2, 2, 0], sizes = [8, 8, 32], strides = [1, 1, 1]} : vector<12x12x32xf32> to vector<8x8x32xf32>
    %125 = vector.shape_cast %124 : vector<8x8x32xf32> to vector<64x32xf32>
    %c12 = arith.constant 12 : index
    %c0_43 = arith.constant 0 : index
    %c0_44 = arith.constant 0 : index
    %126 = vector.load %arg3[%c12, %c0_43, %c0_44] : memref<25x32x64xf32, #tpu.memory_space<vmem>>, vector<1x32x64xf32>
    %127 = vector.shape_cast %126 : vector<1x32x64xf32> to vector<32x64xf32>
    %cst_45 = arith.constant dense<0.000000e+00> : vector<64x64xf32>
    %128 = tpu.matmul %125, %127, %cst_45 {dimension_numbers = #tpu.dot_dimension_numbers<[1], [0], [0], [1], [0, 0, 1, 1], [], []>} : vector<64x32xf32>, vector<32x64xf32>, vector<64x64xf32> -> vector<64x64xf32>
    %129 = arith.addf %123, %128 : vector<64x64xf32>
    %130 = vector.extract_strided_slice %50 {offsets = [2, 3, 0], sizes = [8, 8, 32], strides = [1, 1, 1]} : vector<12x12x32xf32> to vector<8x8x32xf32>
    %131 = vector.shape_cast %130 : vector<8x8x32xf32> to vector<64x32xf32>
    %c13 = arith.constant 13 : index
    %c0_46 = arith.constant 0 : index
    %c0_47 = arith.constant 0 : index
    %132 = vector.load %arg3[%c13, %c0_46, %c0_47] : memref<25x32x64xf32, #tpu.memory_space<vmem>>, vector<1x32x64xf32>
    %133 = vector.shape_cast %132 : vector<1x32x64xf32> to vector<32x64xf32>
    %cst_48 = arith.constant dense<0.000000e+00> : vector<64x64xf32>
    %134 = tpu.matmul %131, %133, %cst_48 {dimension_numbers = #tpu.dot_dimension_numbers<[1], [0], [0], [1], [0, 0, 1, 1], [], []>} : vector<64x32xf32>, vector<32x64xf32>, vector<64x64xf32> -> vector<64x64xf32>
    %135 = arith.addf %129, %134 : vector<64x64xf32>
    %136 = vector.extract_strided_slice %50 {offsets = [2, 4, 0], sizes = [8, 8, 32], strides = [1, 1, 1]} : vector<12x12x32xf32> to vector<8x8x32xf32>
    %137 = vector.shape_cast %136 : vector<8x8x32xf32> to vector<64x32xf32>
    %c14 = arith.constant 14 : index
    %c0_49 = arith.constant 0 : index
    %c0_50 = arith.constant 0 : index
    %138 = vector.load %arg3[%c14, %c0_49, %c0_50] : memref<25x32x64xf32, #tpu.memory_space<vmem>>, vector<1x32x64xf32>
    %139 = vector.shape_cast %138 : vector<1x32x64xf32> to vector<32x64xf32>
    %cst_51 = arith.constant dense<0.000000e+00> : vector<64x64xf32>
    %140 = tpu.matmul %137, %139, %cst_51 {dimension_numbers = #tpu.dot_dimension_numbers<[1], [0], [0], [1], [0, 0, 1, 1], [], []>} : vector<64x32xf32>, vector<32x64xf32>, vector<64x64xf32> -> vector<64x64xf32>
    %141 = arith.addf %135, %140 : vector<64x64xf32>
    %142 = vector.extract_strided_slice %50 {offsets = [3, 0, 0], sizes = [8, 8, 32], strides = [1, 1, 1]} : vector<12x12x32xf32> to vector<8x8x32xf32>
    %143 = vector.shape_cast %142 : vector<8x8x32xf32> to vector<64x32xf32>
    %c15 = arith.constant 15 : index
    %c0_52 = arith.constant 0 : index
    %c0_53 = arith.constant 0 : index
    %144 = vector.load %arg3[%c15, %c0_52, %c0_53] : memref<25x32x64xf32, #tpu.memory_space<vmem>>, vector<1x32x64xf32>
    %145 = vector.shape_cast %144 : vector<1x32x64xf32> to vector<32x64xf32>
    %cst_54 = arith.constant dense<0.000000e+00> : vector<64x64xf32>
    %146 = tpu.matmul %143, %145, %cst_54 {dimension_numbers = #tpu.dot_dimension_numbers<[1], [0], [0], [1], [0, 0, 1, 1], [], []>} : vector<64x32xf32>, vector<32x64xf32>, vector<64x64xf32> -> vector<64x64xf32>
    %147 = arith.addf %141, %146 : vector<64x64xf32>
    %148 = vector.extract_strided_slice %50 {offsets = [3, 1, 0], sizes = [8, 8, 32], strides = [1, 1, 1]} : vector<12x12x32xf32> to vector<8x8x32xf32>
    %149 = vector.shape_cast %148 : vector<8x8x32xf32> to vector<64x32xf32>
    %c16 = arith.constant 16 : index
    %c0_55 = arith.constant 0 : index
    %c0_56 = arith.constant 0 : index
    %150 = vector.load %arg3[%c16, %c0_55, %c0_56] : memref<25x32x64xf32, #tpu.memory_space<vmem>>, vector<1x32x64xf32>
    %151 = vector.shape_cast %150 : vector<1x32x64xf32> to vector<32x64xf32>
    %cst_57 = arith.constant dense<0.000000e+00> : vector<64x64xf32>
    %152 = tpu.matmul %149, %151, %cst_57 {dimension_numbers = #tpu.dot_dimension_numbers<[1], [0], [0], [1], [0, 0, 1, 1], [], []>} : vector<64x32xf32>, vector<32x64xf32>, vector<64x64xf32> -> vector<64x64xf32>
    %153 = arith.addf %147, %152 : vector<64x64xf32>
    %154 = vector.extract_strided_slice %50 {offsets = [3, 2, 0], sizes = [8, 8, 32], strides = [1, 1, 1]} : vector<12x12x32xf32> to vector<8x8x32xf32>
    %155 = vector.shape_cast %154 : vector<8x8x32xf32> to vector<64x32xf32>
    %c17 = arith.constant 17 : index
    %c0_58 = arith.constant 0 : index
    %c0_59 = arith.constant 0 : index
    %156 = vector.load %arg3[%c17, %c0_58, %c0_59] : memref<25x32x64xf32, #tpu.memory_space<vmem>>, vector<1x32x64xf32>
    %157 = vector.shape_cast %156 : vector<1x32x64xf32> to vector<32x64xf32>
    %cst_60 = arith.constant dense<0.000000e+00> : vector<64x64xf32>
    %158 = tpu.matmul %155, %157, %cst_60 {dimension_numbers = #tpu.dot_dimension_numbers<[1], [0], [0], [1], [0, 0, 1, 1], [], []>} : vector<64x32xf32>, vector<32x64xf32>, vector<64x64xf32> -> vector<64x64xf32>
    %159 = arith.addf %153, %158 : vector<64x64xf32>
    %160 = vector.extract_strided_slice %50 {offsets = [3, 3, 0], sizes = [8, 8, 32], strides = [1, 1, 1]} : vector<12x12x32xf32> to vector<8x8x32xf32>
    %161 = vector.shape_cast %160 : vector<8x8x32xf32> to vector<64x32xf32>
    %c18 = arith.constant 18 : index
    %c0_61 = arith.constant 0 : index
    %c0_62 = arith.constant 0 : index
    %162 = vector.load %arg3[%c18, %c0_61, %c0_62] : memref<25x32x64xf32, #tpu.memory_space<vmem>>, vector<1x32x64xf32>
    %163 = vector.shape_cast %162 : vector<1x32x64xf32> to vector<32x64xf32>
    %cst_63 = arith.constant dense<0.000000e+00> : vector<64x64xf32>
    %164 = tpu.matmul %161, %163, %cst_63 {dimension_numbers = #tpu.dot_dimension_numbers<[1], [0], [0], [1], [0, 0, 1, 1], [], []>} : vector<64x32xf32>, vector<32x64xf32>, vector<64x64xf32> -> vector<64x64xf32>
    %165 = arith.addf %159, %164 : vector<64x64xf32>
    %166 = vector.extract_strided_slice %50 {offsets = [3, 4, 0], sizes = [8, 8, 32], strides = [1, 1, 1]} : vector<12x12x32xf32> to vector<8x8x32xf32>
    %167 = vector.shape_cast %166 : vector<8x8x32xf32> to vector<64x32xf32>
    %c19 = arith.constant 19 : index
    %c0_64 = arith.constant 0 : index
    %c0_65 = arith.constant 0 : index
    %168 = vector.load %arg3[%c19, %c0_64, %c0_65] : memref<25x32x64xf32, #tpu.memory_space<vmem>>, vector<1x32x64xf32>
    %169 = vector.shape_cast %168 : vector<1x32x64xf32> to vector<32x64xf32>
    %cst_66 = arith.constant dense<0.000000e+00> : vector<64x64xf32>
    %170 = tpu.matmul %167, %169, %cst_66 {dimension_numbers = #tpu.dot_dimension_numbers<[1], [0], [0], [1], [0, 0, 1, 1], [], []>} : vector<64x32xf32>, vector<32x64xf32>, vector<64x64xf32> -> vector<64x64xf32>
    %171 = arith.addf %165, %170 : vector<64x64xf32>
    %172 = vector.extract_strided_slice %50 {offsets = [4, 0, 0], sizes = [8, 8, 32], strides = [1, 1, 1]} : vector<12x12x32xf32> to vector<8x8x32xf32>
    %173 = vector.shape_cast %172 : vector<8x8x32xf32> to vector<64x32xf32>
    %c20 = arith.constant 20 : index
    %c0_67 = arith.constant 0 : index
    %c0_68 = arith.constant 0 : index
    %174 = vector.load %arg3[%c20, %c0_67, %c0_68] : memref<25x32x64xf32, #tpu.memory_space<vmem>>, vector<1x32x64xf32>
    %175 = vector.shape_cast %174 : vector<1x32x64xf32> to vector<32x64xf32>
    %cst_69 = arith.constant dense<0.000000e+00> : vector<64x64xf32>
    %176 = tpu.matmul %173, %175, %cst_69 {dimension_numbers = #tpu.dot_dimension_numbers<[1], [0], [0], [1], [0, 0, 1, 1], [], []>} : vector<64x32xf32>, vector<32x64xf32>, vector<64x64xf32> -> vector<64x64xf32>
    %177 = arith.addf %171, %176 : vector<64x64xf32>
    %178 = vector.extract_strided_slice %50 {offsets = [4, 1, 0], sizes = [8, 8, 32], strides = [1, 1, 1]} : vector<12x12x32xf32> to vector<8x8x32xf32>
    %179 = vector.shape_cast %178 : vector<8x8x32xf32> to vector<64x32xf32>
    %c21 = arith.constant 21 : index
    %c0_70 = arith.constant 0 : index
    %c0_71 = arith.constant 0 : index
    %180 = vector.load %arg3[%c21, %c0_70, %c0_71] : memref<25x32x64xf32, #tpu.memory_space<vmem>>, vector<1x32x64xf32>
    %181 = vector.shape_cast %180 : vector<1x32x64xf32> to vector<32x64xf32>
    %cst_72 = arith.constant dense<0.000000e+00> : vector<64x64xf32>
    %182 = tpu.matmul %179, %181, %cst_72 {dimension_numbers = #tpu.dot_dimension_numbers<[1], [0], [0], [1], [0, 0, 1, 1], [], []>} : vector<64x32xf32>, vector<32x64xf32>, vector<64x64xf32> -> vector<64x64xf32>
    %183 = arith.addf %177, %182 : vector<64x64xf32>
    %184 = vector.extract_strided_slice %50 {offsets = [4, 2, 0], sizes = [8, 8, 32], strides = [1, 1, 1]} : vector<12x12x32xf32> to vector<8x8x32xf32>
    %185 = vector.shape_cast %184 : vector<8x8x32xf32> to vector<64x32xf32>
    %c22 = arith.constant 22 : index
    %c0_73 = arith.constant 0 : index
    %c0_74 = arith.constant 0 : index
    %186 = vector.load %arg3[%c22, %c0_73, %c0_74] : memref<25x32x64xf32, #tpu.memory_space<vmem>>, vector<1x32x64xf32>
    %187 = vector.shape_cast %186 : vector<1x32x64xf32> to vector<32x64xf32>
    %cst_75 = arith.constant dense<0.000000e+00> : vector<64x64xf32>
    %188 = tpu.matmul %185, %187, %cst_75 {dimension_numbers = #tpu.dot_dimension_numbers<[1], [0], [0], [1], [0, 0, 1, 1], [], []>} : vector<64x32xf32>, vector<32x64xf32>, vector<64x64xf32> -> vector<64x64xf32>
    %189 = arith.addf %183, %188 : vector<64x64xf32>
    %190 = vector.extract_strided_slice %50 {offsets = [4, 3, 0], sizes = [8, 8, 32], strides = [1, 1, 1]} : vector<12x12x32xf32> to vector<8x8x32xf32>
    %191 = vector.shape_cast %190 : vector<8x8x32xf32> to vector<64x32xf32>
    %c23 = arith.constant 23 : index
    %c0_76 = arith.constant 0 : index
    %c0_77 = arith.constant 0 : index
    %192 = vector.load %arg3[%c23, %c0_76, %c0_77] : memref<25x32x64xf32, #tpu.memory_space<vmem>>, vector<1x32x64xf32>
    %193 = vector.shape_cast %192 : vector<1x32x64xf32> to vector<32x64xf32>
    %cst_78 = arith.constant dense<0.000000e+00> : vector<64x64xf32>
    %194 = tpu.matmul %191, %193, %cst_78 {dimension_numbers = #tpu.dot_dimension_numbers<[1], [0], [0], [1], [0, 0, 1, 1], [], []>} : vector<64x32xf32>, vector<32x64xf32>, vector<64x64xf32> -> vector<64x64xf32>
    %195 = arith.addf %189, %194 : vector<64x64xf32>
    %196 = vector.extract_strided_slice %50 {offsets = [4, 4, 0], sizes = [8, 8, 32], strides = [1, 1, 1]} : vector<12x12x32xf32> to vector<8x8x32xf32>
    %197 = vector.shape_cast %196 : vector<8x8x32xf32> to vector<64x32xf32>
    %c24 = arith.constant 24 : index
    %c0_79 = arith.constant 0 : index
    %c0_80 = arith.constant 0 : index
    %198 = vector.load %arg3[%c24, %c0_79, %c0_80] : memref<25x32x64xf32, #tpu.memory_space<vmem>>, vector<1x32x64xf32>
    %199 = vector.shape_cast %198 : vector<1x32x64xf32> to vector<32x64xf32>
    %cst_81 = arith.constant dense<0.000000e+00> : vector<64x64xf32>
    %200 = tpu.matmul %197, %199, %cst_81 {dimension_numbers = #tpu.dot_dimension_numbers<[1], [0], [0], [1], [0, 0, 1, 1], [], []>} : vector<64x32xf32>, vector<32x64xf32>, vector<64x64xf32> -> vector<64x64xf32>
    %201 = arith.addf %195, %200 : vector<64x64xf32>
    %c0_82 = arith.constant 0 : index
    %c0_83 = arith.constant 0 : index
    %202 = vector.load %arg4[%c0_82, %c0_83] : memref<1x64xf32, #tpu.memory_space<vmem>>, vector<1x64xf32>
    %203 = vector.broadcast %202 : vector<1x64xf32> to vector<64x64xf32>
    %204 = arith.addf %201, %203 : vector<64x64xf32>
    %205 = vector.extract_strided_slice %204 {offsets = [0, 0], sizes = [1, 64], strides = [1, 1]} : vector<64x64xf32> to vector<1x64xf32>
    %206 = vector.extract_strided_slice %204 {offsets = [1, 0], sizes = [1, 64], strides = [1, 1]} : vector<64x64xf32> to vector<1x64xf32>
    %207 = arith.maximumf %205, %206 : vector<1x64xf32>
    %208 = vector.extract_strided_slice %204 {offsets = [8, 0], sizes = [1, 64], strides = [1, 1]} : vector<64x64xf32> to vector<1x64xf32>
    %209 = vector.extract_strided_slice %204 {offsets = [9, 0], sizes = [1, 64], strides = [1, 1]} : vector<64x64xf32> to vector<1x64xf32>
    %210 = arith.maximumf %208, %209 : vector<1x64xf32>
    %211 = arith.maximumf %207, %210 : vector<1x64xf32>
    %212 = vector.extract_strided_slice %204 {offsets = [2, 0], sizes = [1, 64], strides = [1, 1]} : vector<64x64xf32> to vector<1x64xf32>
    %213 = vector.extract_strided_slice %204 {offsets = [3, 0], sizes = [1, 64], strides = [1, 1]} : vector<64x64xf32> to vector<1x64xf32>
    %214 = arith.maximumf %212, %213 : vector<1x64xf32>
    %215 = vector.extract_strided_slice %204 {offsets = [10, 0], sizes = [1, 64], strides = [1, 1]} : vector<64x64xf32> to vector<1x64xf32>
    %216 = vector.extract_strided_slice %204 {offsets = [11, 0], sizes = [1, 64], strides = [1, 1]} : vector<64x64xf32> to vector<1x64xf32>
    %217 = arith.maximumf %215, %216 : vector<1x64xf32>
    %218 = arith.maximumf %214, %217 : vector<1x64xf32>
    %219 = vector.extract_strided_slice %204 {offsets = [4, 0], sizes = [1, 64], strides = [1, 1]} : vector<64x64xf32> to vector<1x64xf32>
    %220 = vector.extract_strided_slice %204 {offsets = [5, 0], sizes = [1, 64], strides = [1, 1]} : vector<64x64xf32> to vector<1x64xf32>
    %221 = arith.maximumf %219, %220 : vector<1x64xf32>
    %222 = vector.extract_strided_slice %204 {offsets = [12, 0], sizes = [1, 64], strides = [1, 1]} : vector<64x64xf32> to vector<1x64xf32>
    %223 = vector.extract_strided_slice %204 {offsets = [13, 0], sizes = [1, 64], strides = [1, 1]} : vector<64x64xf32> to vector<1x64xf32>
    %224 = arith.maximumf %222, %223 : vector<1x64xf32>
    %225 = arith.maximumf %221, %224 : vector<1x64xf32>
    %226 = vector.extract_strided_slice %204 {offsets = [6, 0], sizes = [1, 64], strides = [1, 1]} : vector<64x64xf32> to vector<1x64xf32>
    %227 = vector.extract_strided_slice %204 {offsets = [7, 0], sizes = [1, 64], strides = [1, 1]} : vector<64x64xf32> to vector<1x64xf32>
    %228 = arith.maximumf %226, %227 : vector<1x64xf32>
    %229 = vector.extract_strided_slice %204 {offsets = [14, 0], sizes = [1, 64], strides = [1, 1]} : vector<64x64xf32> to vector<1x64xf32>
    %230 = vector.extract_strided_slice %204 {offsets = [15, 0], sizes = [1, 64], strides = [1, 1]} : vector<64x64xf32> to vector<1x64xf32>
    %231 = arith.maximumf %229, %230 : vector<1x64xf32>
    %232 = arith.maximumf %228, %231 : vector<1x64xf32>
    %233 = vector.extract_strided_slice %204 {offsets = [16, 0], sizes = [1, 64], strides = [1, 1]} : vector<64x64xf32> to vector<1x64xf32>
    %234 = vector.extract_strided_slice %204 {offsets = [17, 0], sizes = [1, 64], strides = [1, 1]} : vector<64x64xf32> to vector<1x64xf32>
    %235 = arith.maximumf %233, %234 : vector<1x64xf32>
    %236 = vector.extract_strided_slice %204 {offsets = [24, 0], sizes = [1, 64], strides = [1, 1]} : vector<64x64xf32> to vector<1x64xf32>
    %237 = vector.extract_strided_slice %204 {offsets = [25, 0], sizes = [1, 64], strides = [1, 1]} : vector<64x64xf32> to vector<1x64xf32>
    %238 = arith.maximumf %236, %237 : vector<1x64xf32>
    %239 = arith.maximumf %235, %238 : vector<1x64xf32>
    %240 = vector.extract_strided_slice %204 {offsets = [18, 0], sizes = [1, 64], strides = [1, 1]} : vector<64x64xf32> to vector<1x64xf32>
    %241 = vector.extract_strided_slice %204 {offsets = [19, 0], sizes = [1, 64], strides = [1, 1]} : vector<64x64xf32> to vector<1x64xf32>
    %242 = arith.maximumf %240, %241 : vector<1x64xf32>
    %243 = vector.extract_strided_slice %204 {offsets = [26, 0], sizes = [1, 64], strides = [1, 1]} : vector<64x64xf32> to vector<1x64xf32>
    %244 = vector.extract_strided_slice %204 {offsets = [27, 0], sizes = [1, 64], strides = [1, 1]} : vector<64x64xf32> to vector<1x64xf32>
    %245 = arith.maximumf %243, %244 : vector<1x64xf32>
    %246 = arith.maximumf %242, %245 : vector<1x64xf32>
    %247 = vector.extract_strided_slice %204 {offsets = [20, 0], sizes = [1, 64], strides = [1, 1]} : vector<64x64xf32> to vector<1x64xf32>
    %248 = vector.extract_strided_slice %204 {offsets = [21, 0], sizes = [1, 64], strides = [1, 1]} : vector<64x64xf32> to vector<1x64xf32>
    %249 = arith.maximumf %247, %248 : vector<1x64xf32>
    %250 = vector.extract_strided_slice %204 {offsets = [28, 0], sizes = [1, 64], strides = [1, 1]} : vector<64x64xf32> to vector<1x64xf32>
    %251 = vector.extract_strided_slice %204 {offsets = [29, 0], sizes = [1, 64], strides = [1, 1]} : vector<64x64xf32> to vector<1x64xf32>
    %252 = arith.maximumf %250, %251 : vector<1x64xf32>
    %253 = arith.maximumf %249, %252 : vector<1x64xf32>
    %254 = vector.extract_strided_slice %204 {offsets = [22, 0], sizes = [1, 64], strides = [1, 1]} : vector<64x64xf32> to vector<1x64xf32>
    %255 = vector.extract_strided_slice %204 {offsets = [23, 0], sizes = [1, 64], strides = [1, 1]} : vector<64x64xf32> to vector<1x64xf32>
    %256 = arith.maximumf %254, %255 : vector<1x64xf32>
    %257 = vector.extract_strided_slice %204 {offsets = [30, 0], sizes = [1, 64], strides = [1, 1]} : vector<64x64xf32> to vector<1x64xf32>
    %258 = vector.extract_strided_slice %204 {offsets = [31, 0], sizes = [1, 64], strides = [1, 1]} : vector<64x64xf32> to vector<1x64xf32>
    %259 = arith.maximumf %257, %258 : vector<1x64xf32>
    %260 = arith.maximumf %256, %259 : vector<1x64xf32>
    %261 = vector.extract_strided_slice %204 {offsets = [32, 0], sizes = [1, 64], strides = [1, 1]} : vector<64x64xf32> to vector<1x64xf32>
    %262 = vector.extract_strided_slice %204 {offsets = [33, 0], sizes = [1, 64], strides = [1, 1]} : vector<64x64xf32> to vector<1x64xf32>
    %263 = arith.maximumf %261, %262 : vector<1x64xf32>
    %264 = vector.extract_strided_slice %204 {offsets = [40, 0], sizes = [1, 64], strides = [1, 1]} : vector<64x64xf32> to vector<1x64xf32>
    %265 = vector.extract_strided_slice %204 {offsets = [41, 0], sizes = [1, 64], strides = [1, 1]} : vector<64x64xf32> to vector<1x64xf32>
    %266 = arith.maximumf %264, %265 : vector<1x64xf32>
    %267 = arith.maximumf %263, %266 : vector<1x64xf32>
    %268 = vector.extract_strided_slice %204 {offsets = [34, 0], sizes = [1, 64], strides = [1, 1]} : vector<64x64xf32> to vector<1x64xf32>
    %269 = vector.extract_strided_slice %204 {offsets = [35, 0], sizes = [1, 64], strides = [1, 1]} : vector<64x64xf32> to vector<1x64xf32>
    %270 = arith.maximumf %268, %269 : vector<1x64xf32>
    %271 = vector.extract_strided_slice %204 {offsets = [42, 0], sizes = [1, 64], strides = [1, 1]} : vector<64x64xf32> to vector<1x64xf32>
    %272 = vector.extract_strided_slice %204 {offsets = [43, 0], sizes = [1, 64], strides = [1, 1]} : vector<64x64xf32> to vector<1x64xf32>
    %273 = arith.maximumf %271, %272 : vector<1x64xf32>
    %274 = arith.maximumf %270, %273 : vector<1x64xf32>
    %275 = vector.extract_strided_slice %204 {offsets = [36, 0], sizes = [1, 64], strides = [1, 1]} : vector<64x64xf32> to vector<1x64xf32>
    %276 = vector.extract_strided_slice %204 {offsets = [37, 0], sizes = [1, 64], strides = [1, 1]} : vector<64x64xf32> to vector<1x64xf32>
    %277 = arith.maximumf %275, %276 : vector<1x64xf32>
    %278 = vector.extract_strided_slice %204 {offsets = [44, 0], sizes = [1, 64], strides = [1, 1]} : vector<64x64xf32> to vector<1x64xf32>
    %279 = vector.extract_strided_slice %204 {offsets = [45, 0], sizes = [1, 64], strides = [1, 1]} : vector<64x64xf32> to vector<1x64xf32>
    %280 = arith.maximumf %278, %279 : vector<1x64xf32>
    %281 = arith.maximumf %277, %280 : vector<1x64xf32>
    %282 = vector.extract_strided_slice %204 {offsets = [38, 0], sizes = [1, 64], strides = [1, 1]} : vector<64x64xf32> to vector<1x64xf32>
    %283 = vector.extract_strided_slice %204 {offsets = [39, 0], sizes = [1, 64], strides = [1, 1]} : vector<64x64xf32> to vector<1x64xf32>
    %284 = arith.maximumf %282, %283 : vector<1x64xf32>
    %285 = vector.extract_strided_slice %204 {offsets = [46, 0], sizes = [1, 64], strides = [1, 1]} : vector<64x64xf32> to vector<1x64xf32>
    %286 = vector.extract_strided_slice %204 {offsets = [47, 0], sizes = [1, 64], strides = [1, 1]} : vector<64x64xf32> to vector<1x64xf32>
    %287 = arith.maximumf %285, %286 : vector<1x64xf32>
    %288 = arith.maximumf %284, %287 : vector<1x64xf32>
    %289 = vector.extract_strided_slice %204 {offsets = [48, 0], sizes = [1, 64], strides = [1, 1]} : vector<64x64xf32> to vector<1x64xf32>
    %290 = vector.extract_strided_slice %204 {offsets = [49, 0], sizes = [1, 64], strides = [1, 1]} : vector<64x64xf32> to vector<1x64xf32>
    %291 = arith.maximumf %289, %290 : vector<1x64xf32>
    %292 = vector.extract_strided_slice %204 {offsets = [56, 0], sizes = [1, 64], strides = [1, 1]} : vector<64x64xf32> to vector<1x64xf32>
    %293 = vector.extract_strided_slice %204 {offsets = [57, 0], sizes = [1, 64], strides = [1, 1]} : vector<64x64xf32> to vector<1x64xf32>
    %294 = arith.maximumf %292, %293 : vector<1x64xf32>
    %295 = arith.maximumf %291, %294 : vector<1x64xf32>
    %296 = vector.extract_strided_slice %204 {offsets = [50, 0], sizes = [1, 64], strides = [1, 1]} : vector<64x64xf32> to vector<1x64xf32>
    %297 = vector.extract_strided_slice %204 {offsets = [51, 0], sizes = [1, 64], strides = [1, 1]} : vector<64x64xf32> to vector<1x64xf32>
    %298 = arith.maximumf %296, %297 : vector<1x64xf32>
    %299 = vector.extract_strided_slice %204 {offsets = [58, 0], sizes = [1, 64], strides = [1, 1]} : vector<64x64xf32> to vector<1x64xf32>
    %300 = vector.extract_strided_slice %204 {offsets = [59, 0], sizes = [1, 64], strides = [1, 1]} : vector<64x64xf32> to vector<1x64xf32>
    %301 = arith.maximumf %299, %300 : vector<1x64xf32>
    %302 = arith.maximumf %298, %301 : vector<1x64xf32>
    %303 = vector.extract_strided_slice %204 {offsets = [52, 0], sizes = [1, 64], strides = [1, 1]} : vector<64x64xf32> to vector<1x64xf32>
    %304 = vector.extract_strided_slice %204 {offsets = [53, 0], sizes = [1, 64], strides = [1, 1]} : vector<64x64xf32> to vector<1x64xf32>
    %305 = arith.maximumf %303, %304 : vector<1x64xf32>
    %306 = vector.extract_strided_slice %204 {offsets = [60, 0], sizes = [1, 64], strides = [1, 1]} : vector<64x64xf32> to vector<1x64xf32>
    %307 = vector.extract_strided_slice %204 {offsets = [61, 0], sizes = [1, 64], strides = [1, 1]} : vector<64x64xf32> to vector<1x64xf32>
    %308 = arith.maximumf %306, %307 : vector<1x64xf32>
    %309 = arith.maximumf %305, %308 : vector<1x64xf32>
    %310 = vector.extract_strided_slice %204 {offsets = [54, 0], sizes = [1, 64], strides = [1, 1]} : vector<64x64xf32> to vector<1x64xf32>
    %311 = vector.extract_strided_slice %204 {offsets = [55, 0], sizes = [1, 64], strides = [1, 1]} : vector<64x64xf32> to vector<1x64xf32>
    %312 = arith.maximumf %310, %311 : vector<1x64xf32>
    %313 = vector.extract_strided_slice %204 {offsets = [62, 0], sizes = [1, 64], strides = [1, 1]} : vector<64x64xf32> to vector<1x64xf32>
    %314 = vector.extract_strided_slice %204 {offsets = [63, 0], sizes = [1, 64], strides = [1, 1]} : vector<64x64xf32> to vector<1x64xf32>
    %315 = arith.maximumf %313, %314 : vector<1x64xf32>
    %316 = arith.maximumf %312, %315 : vector<1x64xf32>
    %317 = tpu.concatenate %211, %218, %225, %232, %239, %246, %253, %260, %267, %274, %281, %288, %295, %302, %309, %316 in 1 : vector<1x64xf32>, vector<1x64xf32>, vector<1x64xf32>, vector<1x64xf32>, vector<1x64xf32>, vector<1x64xf32>, vector<1x64xf32>, vector<1x64xf32>, vector<1x64xf32>, vector<1x64xf32>, vector<1x64xf32>, vector<1x64xf32>, vector<1x64xf32>, vector<1x64xf32>, vector<1x64xf32>, vector<1x64xf32> -> vector<1x1024xf32>
    %318 = vector.extract_strided_slice %5 {offsets = [576, 0], sizes = [576, 32], strides = [1, 1]} : vector<1152x32xf32> to vector<576x32xf32>
    %319 = vector.shape_cast %318 : vector<576x32xf32> to vector<24x24x32xf32>
    %320 = vector.shape_cast %319 : vector<24x24x32xf32> to vector<12x2x24x32xf32>
    %321 = vector.extract_strided_slice %320 {offsets = [0, 0, 0, 0], sizes = [12, 1, 24, 32], strides = [1, 1, 1, 1]} : vector<12x2x24x32xf32> to vector<12x1x24x32xf32>
    %322 = vector.shape_cast %321 : vector<12x1x24x32xf32> to vector<12x24x32xf32>
    %323 = vector.extract_strided_slice %320 {offsets = [0, 1, 0, 0], sizes = [12, 1, 24, 32], strides = [1, 1, 1, 1]} : vector<12x2x24x32xf32> to vector<12x1x24x32xf32>
    %324 = vector.shape_cast %323 : vector<12x1x24x32xf32> to vector<12x24x32xf32>
    %325 = arith.maximumf %322, %324 : vector<12x24x32xf32>
    %326 = vector.extract_strided_slice %325 {offsets = [0, 0, 0], sizes = [12, 1, 32], strides = [1, 1, 1]} : vector<12x24x32xf32> to vector<12x1x32xf32>
    %327 = vector.extract_strided_slice %325 {offsets = [0, 1, 0], sizes = [12, 1, 32], strides = [1, 1, 1]} : vector<12x24x32xf32> to vector<12x1x32xf32>
    %328 = arith.maximumf %326, %327 : vector<12x1x32xf32>
    %329 = vector.extract_strided_slice %325 {offsets = [0, 2, 0], sizes = [12, 1, 32], strides = [1, 1, 1]} : vector<12x24x32xf32> to vector<12x1x32xf32>
    %330 = vector.extract_strided_slice %325 {offsets = [0, 3, 0], sizes = [12, 1, 32], strides = [1, 1, 1]} : vector<12x24x32xf32> to vector<12x1x32xf32>
    %331 = arith.maximumf %329, %330 : vector<12x1x32xf32>
    %332 = vector.extract_strided_slice %325 {offsets = [0, 4, 0], sizes = [12, 1, 32], strides = [1, 1, 1]} : vector<12x24x32xf32> to vector<12x1x32xf32>
    %333 = vector.extract_strided_slice %325 {offsets = [0, 5, 0], sizes = [12, 1, 32], strides = [1, 1, 1]} : vector<12x24x32xf32> to vector<12x1x32xf32>
    %334 = arith.maximumf %332, %333 : vector<12x1x32xf32>
    %335 = vector.extract_strided_slice %325 {offsets = [0, 6, 0], sizes = [12, 1, 32], strides = [1, 1, 1]} : vector<12x24x32xf32> to vector<12x1x32xf32>
    %336 = vector.extract_strided_slice %325 {offsets = [0, 7, 0], sizes = [12, 1, 32], strides = [1, 1, 1]} : vector<12x24x32xf32> to vector<12x1x32xf32>
    %337 = arith.maximumf %335, %336 : vector<12x1x32xf32>
    %338 = vector.extract_strided_slice %325 {offsets = [0, 8, 0], sizes = [12, 1, 32], strides = [1, 1, 1]} : vector<12x24x32xf32> to vector<12x1x32xf32>
    %339 = vector.extract_strided_slice %325 {offsets = [0, 9, 0], sizes = [12, 1, 32], strides = [1, 1, 1]} : vector<12x24x32xf32> to vector<12x1x32xf32>
    %340 = arith.maximumf %338, %339 : vector<12x1x32xf32>
    %341 = vector.extract_strided_slice %325 {offsets = [0, 10, 0], sizes = [12, 1, 32], strides = [1, 1, 1]} : vector<12x24x32xf32> to vector<12x1x32xf32>
    %342 = vector.extract_strided_slice %325 {offsets = [0, 11, 0], sizes = [12, 1, 32], strides = [1, 1, 1]} : vector<12x24x32xf32> to vector<12x1x32xf32>
    %343 = arith.maximumf %341, %342 : vector<12x1x32xf32>
    %344 = vector.extract_strided_slice %325 {offsets = [0, 12, 0], sizes = [12, 1, 32], strides = [1, 1, 1]} : vector<12x24x32xf32> to vector<12x1x32xf32>
    %345 = vector.extract_strided_slice %325 {offsets = [0, 13, 0], sizes = [12, 1, 32], strides = [1, 1, 1]} : vector<12x24x32xf32> to vector<12x1x32xf32>
    %346 = arith.maximumf %344, %345 : vector<12x1x32xf32>
    %347 = vector.extract_strided_slice %325 {offsets = [0, 14, 0], sizes = [12, 1, 32], strides = [1, 1, 1]} : vector<12x24x32xf32> to vector<12x1x32xf32>
    %348 = vector.extract_strided_slice %325 {offsets = [0, 15, 0], sizes = [12, 1, 32], strides = [1, 1, 1]} : vector<12x24x32xf32> to vector<12x1x32xf32>
    %349 = arith.maximumf %347, %348 : vector<12x1x32xf32>
    %350 = vector.extract_strided_slice %325 {offsets = [0, 16, 0], sizes = [12, 1, 32], strides = [1, 1, 1]} : vector<12x24x32xf32> to vector<12x1x32xf32>
    %351 = vector.extract_strided_slice %325 {offsets = [0, 17, 0], sizes = [12, 1, 32], strides = [1, 1, 1]} : vector<12x24x32xf32> to vector<12x1x32xf32>
    %352 = arith.maximumf %350, %351 : vector<12x1x32xf32>
    %353 = vector.extract_strided_slice %325 {offsets = [0, 18, 0], sizes = [12, 1, 32], strides = [1, 1, 1]} : vector<12x24x32xf32> to vector<12x1x32xf32>
    %354 = vector.extract_strided_slice %325 {offsets = [0, 19, 0], sizes = [12, 1, 32], strides = [1, 1, 1]} : vector<12x24x32xf32> to vector<12x1x32xf32>
    %355 = arith.maximumf %353, %354 : vector<12x1x32xf32>
    %356 = vector.extract_strided_slice %325 {offsets = [0, 20, 0], sizes = [12, 1, 32], strides = [1, 1, 1]} : vector<12x24x32xf32> to vector<12x1x32xf32>
    %357 = vector.extract_strided_slice %325 {offsets = [0, 21, 0], sizes = [12, 1, 32], strides = [1, 1, 1]} : vector<12x24x32xf32> to vector<12x1x32xf32>
    %358 = arith.maximumf %356, %357 : vector<12x1x32xf32>
    %359 = vector.extract_strided_slice %325 {offsets = [0, 22, 0], sizes = [12, 1, 32], strides = [1, 1, 1]} : vector<12x24x32xf32> to vector<12x1x32xf32>
    %360 = vector.extract_strided_slice %325 {offsets = [0, 23, 0], sizes = [12, 1, 32], strides = [1, 1, 1]} : vector<12x24x32xf32> to vector<12x1x32xf32>
    %361 = arith.maximumf %359, %360 : vector<12x1x32xf32>
    %362 = tpu.concatenate %328, %331, %334, %337, %340, %343, %346, %349, %352, %355, %358, %361 in 1 : vector<12x1x32xf32>, vector<12x1x32xf32>, vector<12x1x32xf32>, vector<12x1x32xf32>, vector<12x1x32xf32>, vector<12x1x32xf32>, vector<12x1x32xf32>, vector<12x1x32xf32>, vector<12x1x32xf32>, vector<12x1x32xf32>, vector<12x1x32xf32>, vector<12x1x32xf32> -> vector<12x12x32xf32>
    %cst_84 = arith.constant 0.000000e+00 : f32
    %363 = vector.broadcast %cst_84 : f32 to vector<64x64xf32>
    %364 = vector.extract_strided_slice %362 {offsets = [0, 0, 0], sizes = [8, 8, 32], strides = [1, 1, 1]} : vector<12x12x32xf32> to vector<8x8x32xf32>
    %365 = vector.shape_cast %364 : vector<8x8x32xf32> to vector<64x32xf32>
    %c0_85 = arith.constant 0 : index
    %c0_86 = arith.constant 0 : index
    %c0_87 = arith.constant 0 : index
    %366 = vector.load %arg3[%c0_85, %c0_86, %c0_87] : memref<25x32x64xf32, #tpu.memory_space<vmem>>, vector<1x32x64xf32>
    %367 = vector.shape_cast %366 : vector<1x32x64xf32> to vector<32x64xf32>
    %cst_88 = arith.constant dense<0.000000e+00> : vector<64x64xf32>
    %368 = tpu.matmul %365, %367, %cst_88 {dimension_numbers = #tpu.dot_dimension_numbers<[1], [0], [0], [1], [0, 0, 1, 1], [], []>} : vector<64x32xf32>, vector<32x64xf32>, vector<64x64xf32> -> vector<64x64xf32>
    %369 = arith.addf %363, %368 : vector<64x64xf32>
    %370 = vector.extract_strided_slice %362 {offsets = [0, 1, 0], sizes = [8, 8, 32], strides = [1, 1, 1]} : vector<12x12x32xf32> to vector<8x8x32xf32>
    %371 = vector.shape_cast %370 : vector<8x8x32xf32> to vector<64x32xf32>
    %c1_89 = arith.constant 1 : index
    %c0_90 = arith.constant 0 : index
    %c0_91 = arith.constant 0 : index
    %372 = vector.load %arg3[%c1_89, %c0_90, %c0_91] : memref<25x32x64xf32, #tpu.memory_space<vmem>>, vector<1x32x64xf32>
    %373 = vector.shape_cast %372 : vector<1x32x64xf32> to vector<32x64xf32>
    %cst_92 = arith.constant dense<0.000000e+00> : vector<64x64xf32>
    %374 = tpu.matmul %371, %373, %cst_92 {dimension_numbers = #tpu.dot_dimension_numbers<[1], [0], [0], [1], [0, 0, 1, 1], [], []>} : vector<64x32xf32>, vector<32x64xf32>, vector<64x64xf32> -> vector<64x64xf32>
    %375 = arith.addf %369, %374 : vector<64x64xf32>
    %376 = vector.extract_strided_slice %362 {offsets = [0, 2, 0], sizes = [8, 8, 32], strides = [1, 1, 1]} : vector<12x12x32xf32> to vector<8x8x32xf32>
    %377 = vector.shape_cast %376 : vector<8x8x32xf32> to vector<64x32xf32>
    %c2_93 = arith.constant 2 : index
    %c0_94 = arith.constant 0 : index
    %c0_95 = arith.constant 0 : index
    %378 = vector.load %arg3[%c2_93, %c0_94, %c0_95] : memref<25x32x64xf32, #tpu.memory_space<vmem>>, vector<1x32x64xf32>
    %379 = vector.shape_cast %378 : vector<1x32x64xf32> to vector<32x64xf32>
    %cst_96 = arith.constant dense<0.000000e+00> : vector<64x64xf32>
    %380 = tpu.matmul %377, %379, %cst_96 {dimension_numbers = #tpu.dot_dimension_numbers<[1], [0], [0], [1], [0, 0, 1, 1], [], []>} : vector<64x32xf32>, vector<32x64xf32>, vector<64x64xf32> -> vector<64x64xf32>
    %381 = arith.addf %375, %380 : vector<64x64xf32>
    %382 = vector.extract_strided_slice %362 {offsets = [0, 3, 0], sizes = [8, 8, 32], strides = [1, 1, 1]} : vector<12x12x32xf32> to vector<8x8x32xf32>
    %383 = vector.shape_cast %382 : vector<8x8x32xf32> to vector<64x32xf32>
    %c3_97 = arith.constant 3 : index
    %c0_98 = arith.constant 0 : index
    %c0_99 = arith.constant 0 : index
    %384 = vector.load %arg3[%c3_97, %c0_98, %c0_99] : memref<25x32x64xf32, #tpu.memory_space<vmem>>, vector<1x32x64xf32>
    %385 = vector.shape_cast %384 : vector<1x32x64xf32> to vector<32x64xf32>
    %cst_100 = arith.constant dense<0.000000e+00> : vector<64x64xf32>
    %386 = tpu.matmul %383, %385, %cst_100 {dimension_numbers = #tpu.dot_dimension_numbers<[1], [0], [0], [1], [0, 0, 1, 1], [], []>} : vector<64x32xf32>, vector<32x64xf32>, vector<64x64xf32> -> vector<64x64xf32>
    %387 = arith.addf %381, %386 : vector<64x64xf32>
    %388 = vector.extract_strided_slice %362 {offsets = [0, 4, 0], sizes = [8, 8, 32], strides = [1, 1, 1]} : vector<12x12x32xf32> to vector<8x8x32xf32>
    %389 = vector.shape_cast %388 : vector<8x8x32xf32> to vector<64x32xf32>
    %c4_101 = arith.constant 4 : index
    %c0_102 = arith.constant 0 : index
    %c0_103 = arith.constant 0 : index
    %390 = vector.load %arg3[%c4_101, %c0_102, %c0_103] : memref<25x32x64xf32, #tpu.memory_space<vmem>>, vector<1x32x64xf32>
    %391 = vector.shape_cast %390 : vector<1x32x64xf32> to vector<32x64xf32>
    %cst_104 = arith.constant dense<0.000000e+00> : vector<64x64xf32>
    %392 = tpu.matmul %389, %391, %cst_104 {dimension_numbers = #tpu.dot_dimension_numbers<[1], [0], [0], [1], [0, 0, 1, 1], [], []>} : vector<64x32xf32>, vector<32x64xf32>, vector<64x64xf32> -> vector<64x64xf32>
    %393 = arith.addf %387, %392 : vector<64x64xf32>
    %394 = vector.extract_strided_slice %362 {offsets = [1, 0, 0], sizes = [8, 8, 32], strides = [1, 1, 1]} : vector<12x12x32xf32> to vector<8x8x32xf32>
    %395 = vector.shape_cast %394 : vector<8x8x32xf32> to vector<64x32xf32>
    %c5_105 = arith.constant 5 : index
    %c0_106 = arith.constant 0 : index
    %c0_107 = arith.constant 0 : index
    %396 = vector.load %arg3[%c5_105, %c0_106, %c0_107] : memref<25x32x64xf32, #tpu.memory_space<vmem>>, vector<1x32x64xf32>
    %397 = vector.shape_cast %396 : vector<1x32x64xf32> to vector<32x64xf32>
    %cst_108 = arith.constant dense<0.000000e+00> : vector<64x64xf32>
    %398 = tpu.matmul %395, %397, %cst_108 {dimension_numbers = #tpu.dot_dimension_numbers<[1], [0], [0], [1], [0, 0, 1, 1], [], []>} : vector<64x32xf32>, vector<32x64xf32>, vector<64x64xf32> -> vector<64x64xf32>
    %399 = arith.addf %393, %398 : vector<64x64xf32>
    %400 = vector.extract_strided_slice %362 {offsets = [1, 1, 0], sizes = [8, 8, 32], strides = [1, 1, 1]} : vector<12x12x32xf32> to vector<8x8x32xf32>
    %401 = vector.shape_cast %400 : vector<8x8x32xf32> to vector<64x32xf32>
    %c6_109 = arith.constant 6 : index
    %c0_110 = arith.constant 0 : index
    %c0_111 = arith.constant 0 : index
    %402 = vector.load %arg3[%c6_109, %c0_110, %c0_111] : memref<25x32x64xf32, #tpu.memory_space<vmem>>, vector<1x32x64xf32>
    %403 = vector.shape_cast %402 : vector<1x32x64xf32> to vector<32x64xf32>
    %cst_112 = arith.constant dense<0.000000e+00> : vector<64x64xf32>
    %404 = tpu.matmul %401, %403, %cst_112 {dimension_numbers = #tpu.dot_dimension_numbers<[1], [0], [0], [1], [0, 0, 1, 1], [], []>} : vector<64x32xf32>, vector<32x64xf32>, vector<64x64xf32> -> vector<64x64xf32>
    %405 = arith.addf %399, %404 : vector<64x64xf32>
    %406 = vector.extract_strided_slice %362 {offsets = [1, 2, 0], sizes = [8, 8, 32], strides = [1, 1, 1]} : vector<12x12x32xf32> to vector<8x8x32xf32>
    %407 = vector.shape_cast %406 : vector<8x8x32xf32> to vector<64x32xf32>
    %c7_113 = arith.constant 7 : index
    %c0_114 = arith.constant 0 : index
    %c0_115 = arith.constant 0 : index
    %408 = vector.load %arg3[%c7_113, %c0_114, %c0_115] : memref<25x32x64xf32, #tpu.memory_space<vmem>>, vector<1x32x64xf32>
    %409 = vector.shape_cast %408 : vector<1x32x64xf32> to vector<32x64xf32>
    %cst_116 = arith.constant dense<0.000000e+00> : vector<64x64xf32>
    %410 = tpu.matmul %407, %409, %cst_116 {dimension_numbers = #tpu.dot_dimension_numbers<[1], [0], [0], [1], [0, 0, 1, 1], [], []>} : vector<64x32xf32>, vector<32x64xf32>, vector<64x64xf32> -> vector<64x64xf32>
    %411 = arith.addf %405, %410 : vector<64x64xf32>
    %412 = vector.extract_strided_slice %362 {offsets = [1, 3, 0], sizes = [8, 8, 32], strides = [1, 1, 1]} : vector<12x12x32xf32> to vector<8x8x32xf32>
    %413 = vector.shape_cast %412 : vector<8x8x32xf32> to vector<64x32xf32>
    %c8_117 = arith.constant 8 : index
    %c0_118 = arith.constant 0 : index
    %c0_119 = arith.constant 0 : index
    %414 = vector.load %arg3[%c8_117, %c0_118, %c0_119] : memref<25x32x64xf32, #tpu.memory_space<vmem>>, vector<1x32x64xf32>
    %415 = vector.shape_cast %414 : vector<1x32x64xf32> to vector<32x64xf32>
    %cst_120 = arith.constant dense<0.000000e+00> : vector<64x64xf32>
    %416 = tpu.matmul %413, %415, %cst_120 {dimension_numbers = #tpu.dot_dimension_numbers<[1], [0], [0], [1], [0, 0, 1, 1], [], []>} : vector<64x32xf32>, vector<32x64xf32>, vector<64x64xf32> -> vector<64x64xf32>
    %417 = arith.addf %411, %416 : vector<64x64xf32>
    %418 = vector.extract_strided_slice %362 {offsets = [1, 4, 0], sizes = [8, 8, 32], strides = [1, 1, 1]} : vector<12x12x32xf32> to vector<8x8x32xf32>
    %419 = vector.shape_cast %418 : vector<8x8x32xf32> to vector<64x32xf32>
    %c9_121 = arith.constant 9 : index
    %c0_122 = arith.constant 0 : index
    %c0_123 = arith.constant 0 : index
    %420 = vector.load %arg3[%c9_121, %c0_122, %c0_123] : memref<25x32x64xf32, #tpu.memory_space<vmem>>, vector<1x32x64xf32>
    %421 = vector.shape_cast %420 : vector<1x32x64xf32> to vector<32x64xf32>
    %cst_124 = arith.constant dense<0.000000e+00> : vector<64x64xf32>
    %422 = tpu.matmul %419, %421, %cst_124 {dimension_numbers = #tpu.dot_dimension_numbers<[1], [0], [0], [1], [0, 0, 1, 1], [], []>} : vector<64x32xf32>, vector<32x64xf32>, vector<64x64xf32> -> vector<64x64xf32>
    %423 = arith.addf %417, %422 : vector<64x64xf32>
    %424 = vector.extract_strided_slice %362 {offsets = [2, 0, 0], sizes = [8, 8, 32], strides = [1, 1, 1]} : vector<12x12x32xf32> to vector<8x8x32xf32>
    %425 = vector.shape_cast %424 : vector<8x8x32xf32> to vector<64x32xf32>
    %c10_125 = arith.constant 10 : index
    %c0_126 = arith.constant 0 : index
    %c0_127 = arith.constant 0 : index
    %426 = vector.load %arg3[%c10_125, %c0_126, %c0_127] : memref<25x32x64xf32, #tpu.memory_space<vmem>>, vector<1x32x64xf32>
    %427 = vector.shape_cast %426 : vector<1x32x64xf32> to vector<32x64xf32>
    %cst_128 = arith.constant dense<0.000000e+00> : vector<64x64xf32>
    %428 = tpu.matmul %425, %427, %cst_128 {dimension_numbers = #tpu.dot_dimension_numbers<[1], [0], [0], [1], [0, 0, 1, 1], [], []>} : vector<64x32xf32>, vector<32x64xf32>, vector<64x64xf32> -> vector<64x64xf32>
    %429 = arith.addf %423, %428 : vector<64x64xf32>
    %430 = vector.extract_strided_slice %362 {offsets = [2, 1, 0], sizes = [8, 8, 32], strides = [1, 1, 1]} : vector<12x12x32xf32> to vector<8x8x32xf32>
    %431 = vector.shape_cast %430 : vector<8x8x32xf32> to vector<64x32xf32>
    %c11_129 = arith.constant 11 : index
    %c0_130 = arith.constant 0 : index
    %c0_131 = arith.constant 0 : index
    %432 = vector.load %arg3[%c11_129, %c0_130, %c0_131] : memref<25x32x64xf32, #tpu.memory_space<vmem>>, vector<1x32x64xf32>
    %433 = vector.shape_cast %432 : vector<1x32x64xf32> to vector<32x64xf32>
    %cst_132 = arith.constant dense<0.000000e+00> : vector<64x64xf32>
    %434 = tpu.matmul %431, %433, %cst_132 {dimension_numbers = #tpu.dot_dimension_numbers<[1], [0], [0], [1], [0, 0, 1, 1], [], []>} : vector<64x32xf32>, vector<32x64xf32>, vector<64x64xf32> -> vector<64x64xf32>
    %435 = arith.addf %429, %434 : vector<64x64xf32>
    %436 = vector.extract_strided_slice %362 {offsets = [2, 2, 0], sizes = [8, 8, 32], strides = [1, 1, 1]} : vector<12x12x32xf32> to vector<8x8x32xf32>
    %437 = vector.shape_cast %436 : vector<8x8x32xf32> to vector<64x32xf32>
    %c12_133 = arith.constant 12 : index
    %c0_134 = arith.constant 0 : index
    %c0_135 = arith.constant 0 : index
    %438 = vector.load %arg3[%c12_133, %c0_134, %c0_135] : memref<25x32x64xf32, #tpu.memory_space<vmem>>, vector<1x32x64xf32>
    %439 = vector.shape_cast %438 : vector<1x32x64xf32> to vector<32x64xf32>
    %cst_136 = arith.constant dense<0.000000e+00> : vector<64x64xf32>
    %440 = tpu.matmul %437, %439, %cst_136 {dimension_numbers = #tpu.dot_dimension_numbers<[1], [0], [0], [1], [0, 0, 1, 1], [], []>} : vector<64x32xf32>, vector<32x64xf32>, vector<64x64xf32> -> vector<64x64xf32>
    %441 = arith.addf %435, %440 : vector<64x64xf32>
    %442 = vector.extract_strided_slice %362 {offsets = [2, 3, 0], sizes = [8, 8, 32], strides = [1, 1, 1]} : vector<12x12x32xf32> to vector<8x8x32xf32>
    %443 = vector.shape_cast %442 : vector<8x8x32xf32> to vector<64x32xf32>
    %c13_137 = arith.constant 13 : index
    %c0_138 = arith.constant 0 : index
    %c0_139 = arith.constant 0 : index
    %444 = vector.load %arg3[%c13_137, %c0_138, %c0_139] : memref<25x32x64xf32, #tpu.memory_space<vmem>>, vector<1x32x64xf32>
    %445 = vector.shape_cast %444 : vector<1x32x64xf32> to vector<32x64xf32>
    %cst_140 = arith.constant dense<0.000000e+00> : vector<64x64xf32>
    %446 = tpu.matmul %443, %445, %cst_140 {dimension_numbers = #tpu.dot_dimension_numbers<[1], [0], [0], [1], [0, 0, 1, 1], [], []>} : vector<64x32xf32>, vector<32x64xf32>, vector<64x64xf32> -> vector<64x64xf32>
    %447 = arith.addf %441, %446 : vector<64x64xf32>
    %448 = vector.extract_strided_slice %362 {offsets = [2, 4, 0], sizes = [8, 8, 32], strides = [1, 1, 1]} : vector<12x12x32xf32> to vector<8x8x32xf32>
    %449 = vector.shape_cast %448 : vector<8x8x32xf32> to vector<64x32xf32>
    %c14_141 = arith.constant 14 : index
    %c0_142 = arith.constant 0 : index
    %c0_143 = arith.constant 0 : index
    %450 = vector.load %arg3[%c14_141, %c0_142, %c0_143] : memref<25x32x64xf32, #tpu.memory_space<vmem>>, vector<1x32x64xf32>
    %451 = vector.shape_cast %450 : vector<1x32x64xf32> to vector<32x64xf32>
    %cst_144 = arith.constant dense<0.000000e+00> : vector<64x64xf32>
    %452 = tpu.matmul %449, %451, %cst_144 {dimension_numbers = #tpu.dot_dimension_numbers<[1], [0], [0], [1], [0, 0, 1, 1], [], []>} : vector<64x32xf32>, vector<32x64xf32>, vector<64x64xf32> -> vector<64x64xf32>
    %453 = arith.addf %447, %452 : vector<64x64xf32>
    %454 = vector.extract_strided_slice %362 {offsets = [3, 0, 0], sizes = [8, 8, 32], strides = [1, 1, 1]} : vector<12x12x32xf32> to vector<8x8x32xf32>
    %455 = vector.shape_cast %454 : vector<8x8x32xf32> to vector<64x32xf32>
    %c15_145 = arith.constant 15 : index
    %c0_146 = arith.constant 0 : index
    %c0_147 = arith.constant 0 : index
    %456 = vector.load %arg3[%c15_145, %c0_146, %c0_147] : memref<25x32x64xf32, #tpu.memory_space<vmem>>, vector<1x32x64xf32>
    %457 = vector.shape_cast %456 : vector<1x32x64xf32> to vector<32x64xf32>
    %cst_148 = arith.constant dense<0.000000e+00> : vector<64x64xf32>
    %458 = tpu.matmul %455, %457, %cst_148 {dimension_numbers = #tpu.dot_dimension_numbers<[1], [0], [0], [1], [0, 0, 1, 1], [], []>} : vector<64x32xf32>, vector<32x64xf32>, vector<64x64xf32> -> vector<64x64xf32>
    %459 = arith.addf %453, %458 : vector<64x64xf32>
    %460 = vector.extract_strided_slice %362 {offsets = [3, 1, 0], sizes = [8, 8, 32], strides = [1, 1, 1]} : vector<12x12x32xf32> to vector<8x8x32xf32>
    %461 = vector.shape_cast %460 : vector<8x8x32xf32> to vector<64x32xf32>
    %c16_149 = arith.constant 16 : index
    %c0_150 = arith.constant 0 : index
    %c0_151 = arith.constant 0 : index
    %462 = vector.load %arg3[%c16_149, %c0_150, %c0_151] : memref<25x32x64xf32, #tpu.memory_space<vmem>>, vector<1x32x64xf32>
    %463 = vector.shape_cast %462 : vector<1x32x64xf32> to vector<32x64xf32>
    %cst_152 = arith.constant dense<0.000000e+00> : vector<64x64xf32>
    %464 = tpu.matmul %461, %463, %cst_152 {dimension_numbers = #tpu.dot_dimension_numbers<[1], [0], [0], [1], [0, 0, 1, 1], [], []>} : vector<64x32xf32>, vector<32x64xf32>, vector<64x64xf32> -> vector<64x64xf32>
    %465 = arith.addf %459, %464 : vector<64x64xf32>
    %466 = vector.extract_strided_slice %362 {offsets = [3, 2, 0], sizes = [8, 8, 32], strides = [1, 1, 1]} : vector<12x12x32xf32> to vector<8x8x32xf32>
    %467 = vector.shape_cast %466 : vector<8x8x32xf32> to vector<64x32xf32>
    %c17_153 = arith.constant 17 : index
    %c0_154 = arith.constant 0 : index
    %c0_155 = arith.constant 0 : index
    %468 = vector.load %arg3[%c17_153, %c0_154, %c0_155] : memref<25x32x64xf32, #tpu.memory_space<vmem>>, vector<1x32x64xf32>
    %469 = vector.shape_cast %468 : vector<1x32x64xf32> to vector<32x64xf32>
    %cst_156 = arith.constant dense<0.000000e+00> : vector<64x64xf32>
    %470 = tpu.matmul %467, %469, %cst_156 {dimension_numbers = #tpu.dot_dimension_numbers<[1], [0], [0], [1], [0, 0, 1, 1], [], []>} : vector<64x32xf32>, vector<32x64xf32>, vector<64x64xf32> -> vector<64x64xf32>
    %471 = arith.addf %465, %470 : vector<64x64xf32>
    %472 = vector.extract_strided_slice %362 {offsets = [3, 3, 0], sizes = [8, 8, 32], strides = [1, 1, 1]} : vector<12x12x32xf32> to vector<8x8x32xf32>
    %473 = vector.shape_cast %472 : vector<8x8x32xf32> to vector<64x32xf32>
    %c18_157 = arith.constant 18 : index
    %c0_158 = arith.constant 0 : index
    %c0_159 = arith.constant 0 : index
    %474 = vector.load %arg3[%c18_157, %c0_158, %c0_159] : memref<25x32x64xf32, #tpu.memory_space<vmem>>, vector<1x32x64xf32>
    %475 = vector.shape_cast %474 : vector<1x32x64xf32> to vector<32x64xf32>
    %cst_160 = arith.constant dense<0.000000e+00> : vector<64x64xf32>
    %476 = tpu.matmul %473, %475, %cst_160 {dimension_numbers = #tpu.dot_dimension_numbers<[1], [0], [0], [1], [0, 0, 1, 1], [], []>} : vector<64x32xf32>, vector<32x64xf32>, vector<64x64xf32> -> vector<64x64xf32>
    %477 = arith.addf %471, %476 : vector<64x64xf32>
    %478 = vector.extract_strided_slice %362 {offsets = [3, 4, 0], sizes = [8, 8, 32], strides = [1, 1, 1]} : vector<12x12x32xf32> to vector<8x8x32xf32>
    %479 = vector.shape_cast %478 : vector<8x8x32xf32> to vector<64x32xf32>
    %c19_161 = arith.constant 19 : index
    %c0_162 = arith.constant 0 : index
    %c0_163 = arith.constant 0 : index
    %480 = vector.load %arg3[%c19_161, %c0_162, %c0_163] : memref<25x32x64xf32, #tpu.memory_space<vmem>>, vector<1x32x64xf32>
    %481 = vector.shape_cast %480 : vector<1x32x64xf32> to vector<32x64xf32>
    %cst_164 = arith.constant dense<0.000000e+00> : vector<64x64xf32>
    %482 = tpu.matmul %479, %481, %cst_164 {dimension_numbers = #tpu.dot_dimension_numbers<[1], [0], [0], [1], [0, 0, 1, 1], [], []>} : vector<64x32xf32>, vector<32x64xf32>, vector<64x64xf32> -> vector<64x64xf32>
    %483 = arith.addf %477, %482 : vector<64x64xf32>
    %484 = vector.extract_strided_slice %362 {offsets = [4, 0, 0], sizes = [8, 8, 32], strides = [1, 1, 1]} : vector<12x12x32xf32> to vector<8x8x32xf32>
    %485 = vector.shape_cast %484 : vector<8x8x32xf32> to vector<64x32xf32>
    %c20_165 = arith.constant 20 : index
    %c0_166 = arith.constant 0 : index
    %c0_167 = arith.constant 0 : index
    %486 = vector.load %arg3[%c20_165, %c0_166, %c0_167] : memref<25x32x64xf32, #tpu.memory_space<vmem>>, vector<1x32x64xf32>
    %487 = vector.shape_cast %486 : vector<1x32x64xf32> to vector<32x64xf32>
    %cst_168 = arith.constant dense<0.000000e+00> : vector<64x64xf32>
    %488 = tpu.matmul %485, %487, %cst_168 {dimension_numbers = #tpu.dot_dimension_numbers<[1], [0], [0], [1], [0, 0, 1, 1], [], []>} : vector<64x32xf32>, vector<32x64xf32>, vector<64x64xf32> -> vector<64x64xf32>
    %489 = arith.addf %483, %488 : vector<64x64xf32>
    %490 = vector.extract_strided_slice %362 {offsets = [4, 1, 0], sizes = [8, 8, 32], strides = [1, 1, 1]} : vector<12x12x32xf32> to vector<8x8x32xf32>
    %491 = vector.shape_cast %490 : vector<8x8x32xf32> to vector<64x32xf32>
    %c21_169 = arith.constant 21 : index
    %c0_170 = arith.constant 0 : index
    %c0_171 = arith.constant 0 : index
    %492 = vector.load %arg3[%c21_169, %c0_170, %c0_171] : memref<25x32x64xf32, #tpu.memory_space<vmem>>, vector<1x32x64xf32>
    %493 = vector.shape_cast %492 : vector<1x32x64xf32> to vector<32x64xf32>
    %cst_172 = arith.constant dense<0.000000e+00> : vector<64x64xf32>
    %494 = tpu.matmul %491, %493, %cst_172 {dimension_numbers = #tpu.dot_dimension_numbers<[1], [0], [0], [1], [0, 0, 1, 1], [], []>} : vector<64x32xf32>, vector<32x64xf32>, vector<64x64xf32> -> vector<64x64xf32>
    %495 = arith.addf %489, %494 : vector<64x64xf32>
    %496 = vector.extract_strided_slice %362 {offsets = [4, 2, 0], sizes = [8, 8, 32], strides = [1, 1, 1]} : vector<12x12x32xf32> to vector<8x8x32xf32>
    %497 = vector.shape_cast %496 : vector<8x8x32xf32> to vector<64x32xf32>
    %c22_173 = arith.constant 22 : index
    %c0_174 = arith.constant 0 : index
    %c0_175 = arith.constant 0 : index
    %498 = vector.load %arg3[%c22_173, %c0_174, %c0_175] : memref<25x32x64xf32, #tpu.memory_space<vmem>>, vector<1x32x64xf32>
    %499 = vector.shape_cast %498 : vector<1x32x64xf32> to vector<32x64xf32>
    %cst_176 = arith.constant dense<0.000000e+00> : vector<64x64xf32>
    %500 = tpu.matmul %497, %499, %cst_176 {dimension_numbers = #tpu.dot_dimension_numbers<[1], [0], [0], [1], [0, 0, 1, 1], [], []>} : vector<64x32xf32>, vector<32x64xf32>, vector<64x64xf32> -> vector<64x64xf32>
    %501 = arith.addf %495, %500 : vector<64x64xf32>
    %502 = vector.extract_strided_slice %362 {offsets = [4, 3, 0], sizes = [8, 8, 32], strides = [1, 1, 1]} : vector<12x12x32xf32> to vector<8x8x32xf32>
    %503 = vector.shape_cast %502 : vector<8x8x32xf32> to vector<64x32xf32>
    %c23_177 = arith.constant 23 : index
    %c0_178 = arith.constant 0 : index
    %c0_179 = arith.constant 0 : index
    %504 = vector.load %arg3[%c23_177, %c0_178, %c0_179] : memref<25x32x64xf32, #tpu.memory_space<vmem>>, vector<1x32x64xf32>
    %505 = vector.shape_cast %504 : vector<1x32x64xf32> to vector<32x64xf32>
    %cst_180 = arith.constant dense<0.000000e+00> : vector<64x64xf32>
    %506 = tpu.matmul %503, %505, %cst_180 {dimension_numbers = #tpu.dot_dimension_numbers<[1], [0], [0], [1], [0, 0, 1, 1], [], []>} : vector<64x32xf32>, vector<32x64xf32>, vector<64x64xf32> -> vector<64x64xf32>
    %507 = arith.addf %501, %506 : vector<64x64xf32>
    %508 = vector.extract_strided_slice %362 {offsets = [4, 4, 0], sizes = [8, 8, 32], strides = [1, 1, 1]} : vector<12x12x32xf32> to vector<8x8x32xf32>
    %509 = vector.shape_cast %508 : vector<8x8x32xf32> to vector<64x32xf32>
    %c24_181 = arith.constant 24 : index
    %c0_182 = arith.constant 0 : index
    %c0_183 = arith.constant 0 : index
    %510 = vector.load %arg3[%c24_181, %c0_182, %c0_183] : memref<25x32x64xf32, #tpu.memory_space<vmem>>, vector<1x32x64xf32>
    %511 = vector.shape_cast %510 : vector<1x32x64xf32> to vector<32x64xf32>
    %cst_184 = arith.constant dense<0.000000e+00> : vector<64x64xf32>
    %512 = tpu.matmul %509, %511, %cst_184 {dimension_numbers = #tpu.dot_dimension_numbers<[1], [0], [0], [1], [0, 0, 1, 1], [], []>} : vector<64x32xf32>, vector<32x64xf32>, vector<64x64xf32> -> vector<64x64xf32>
    %513 = arith.addf %507, %512 : vector<64x64xf32>
    %c0_185 = arith.constant 0 : index
    %c0_186 = arith.constant 0 : index
    %514 = vector.load %arg4[%c0_185, %c0_186] : memref<1x64xf32, #tpu.memory_space<vmem>>, vector<1x64xf32>
    %515 = vector.broadcast %514 : vector<1x64xf32> to vector<64x64xf32>
    %516 = arith.addf %513, %515 : vector<64x64xf32>
    %517 = vector.extract_strided_slice %516 {offsets = [0, 0], sizes = [1, 64], strides = [1, 1]} : vector<64x64xf32> to vector<1x64xf32>
    %518 = vector.extract_strided_slice %516 {offsets = [1, 0], sizes = [1, 64], strides = [1, 1]} : vector<64x64xf32> to vector<1x64xf32>
    %519 = arith.maximumf %517, %518 : vector<1x64xf32>
    %520 = vector.extract_strided_slice %516 {offsets = [8, 0], sizes = [1, 64], strides = [1, 1]} : vector<64x64xf32> to vector<1x64xf32>
    %521 = vector.extract_strided_slice %516 {offsets = [9, 0], sizes = [1, 64], strides = [1, 1]} : vector<64x64xf32> to vector<1x64xf32>
    %522 = arith.maximumf %520, %521 : vector<1x64xf32>
    %523 = arith.maximumf %519, %522 : vector<1x64xf32>
    %524 = vector.extract_strided_slice %516 {offsets = [2, 0], sizes = [1, 64], strides = [1, 1]} : vector<64x64xf32> to vector<1x64xf32>
    %525 = vector.extract_strided_slice %516 {offsets = [3, 0], sizes = [1, 64], strides = [1, 1]} : vector<64x64xf32> to vector<1x64xf32>
    %526 = arith.maximumf %524, %525 : vector<1x64xf32>
    %527 = vector.extract_strided_slice %516 {offsets = [10, 0], sizes = [1, 64], strides = [1, 1]} : vector<64x64xf32> to vector<1x64xf32>
    %528 = vector.extract_strided_slice %516 {offsets = [11, 0], sizes = [1, 64], strides = [1, 1]} : vector<64x64xf32> to vector<1x64xf32>
    %529 = arith.maximumf %527, %528 : vector<1x64xf32>
    %530 = arith.maximumf %526, %529 : vector<1x64xf32>
    %531 = vector.extract_strided_slice %516 {offsets = [4, 0], sizes = [1, 64], strides = [1, 1]} : vector<64x64xf32> to vector<1x64xf32>
    %532 = vector.extract_strided_slice %516 {offsets = [5, 0], sizes = [1, 64], strides = [1, 1]} : vector<64x64xf32> to vector<1x64xf32>
    %533 = arith.maximumf %531, %532 : vector<1x64xf32>
    %534 = vector.extract_strided_slice %516 {offsets = [12, 0], sizes = [1, 64], strides = [1, 1]} : vector<64x64xf32> to vector<1x64xf32>
    %535 = vector.extract_strided_slice %516 {offsets = [13, 0], sizes = [1, 64], strides = [1, 1]} : vector<64x64xf32> to vector<1x64xf32>
    %536 = arith.maximumf %534, %535 : vector<1x64xf32>
    %537 = arith.maximumf %533, %536 : vector<1x64xf32>
    %538 = vector.extract_strided_slice %516 {offsets = [6, 0], sizes = [1, 64], strides = [1, 1]} : vector<64x64xf32> to vector<1x64xf32>
    %539 = vector.extract_strided_slice %516 {offsets = [7, 0], sizes = [1, 64], strides = [1, 1]} : vector<64x64xf32> to vector<1x64xf32>
    %540 = arith.maximumf %538, %539 : vector<1x64xf32>
    %541 = vector.extract_strided_slice %516 {offsets = [14, 0], sizes = [1, 64], strides = [1, 1]} : vector<64x64xf32> to vector<1x64xf32>
    %542 = vector.extract_strided_slice %516 {offsets = [15, 0], sizes = [1, 64], strides = [1, 1]} : vector<64x64xf32> to vector<1x64xf32>
    %543 = arith.maximumf %541, %542 : vector<1x64xf32>
    %544 = arith.maximumf %540, %543 : vector<1x64xf32>
    %545 = vector.extract_strided_slice %516 {offsets = [16, 0], sizes = [1, 64], strides = [1, 1]} : vector<64x64xf32> to vector<1x64xf32>
    %546 = vector.extract_strided_slice %516 {offsets = [17, 0], sizes = [1, 64], strides = [1, 1]} : vector<64x64xf32> to vector<1x64xf32>
    %547 = arith.maximumf %545, %546 : vector<1x64xf32>
    %548 = vector.extract_strided_slice %516 {offsets = [24, 0], sizes = [1, 64], strides = [1, 1]} : vector<64x64xf32> to vector<1x64xf32>
    %549 = vector.extract_strided_slice %516 {offsets = [25, 0], sizes = [1, 64], strides = [1, 1]} : vector<64x64xf32> to vector<1x64xf32>
    %550 = arith.maximumf %548, %549 : vector<1x64xf32>
    %551 = arith.maximumf %547, %550 : vector<1x64xf32>
    %552 = vector.extract_strided_slice %516 {offsets = [18, 0], sizes = [1, 64], strides = [1, 1]} : vector<64x64xf32> to vector<1x64xf32>
    %553 = vector.extract_strided_slice %516 {offsets = [19, 0], sizes = [1, 64], strides = [1, 1]} : vector<64x64xf32> to vector<1x64xf32>
    %554 = arith.maximumf %552, %553 : vector<1x64xf32>
    %555 = vector.extract_strided_slice %516 {offsets = [26, 0], sizes = [1, 64], strides = [1, 1]} : vector<64x64xf32> to vector<1x64xf32>
    %556 = vector.extract_strided_slice %516 {offsets = [27, 0], sizes = [1, 64], strides = [1, 1]} : vector<64x64xf32> to vector<1x64xf32>
    %557 = arith.maximumf %555, %556 : vector<1x64xf32>
    %558 = arith.maximumf %554, %557 : vector<1x64xf32>
    %559 = vector.extract_strided_slice %516 {offsets = [20, 0], sizes = [1, 64], strides = [1, 1]} : vector<64x64xf32> to vector<1x64xf32>
    %560 = vector.extract_strided_slice %516 {offsets = [21, 0], sizes = [1, 64], strides = [1, 1]} : vector<64x64xf32> to vector<1x64xf32>
    %561 = arith.maximumf %559, %560 : vector<1x64xf32>
    %562 = vector.extract_strided_slice %516 {offsets = [28, 0], sizes = [1, 64], strides = [1, 1]} : vector<64x64xf32> to vector<1x64xf32>
    %563 = vector.extract_strided_slice %516 {offsets = [29, 0], sizes = [1, 64], strides = [1, 1]} : vector<64x64xf32> to vector<1x64xf32>
    %564 = arith.maximumf %562, %563 : vector<1x64xf32>
    %565 = arith.maximumf %561, %564 : vector<1x64xf32>
    %566 = vector.extract_strided_slice %516 {offsets = [22, 0], sizes = [1, 64], strides = [1, 1]} : vector<64x64xf32> to vector<1x64xf32>
    %567 = vector.extract_strided_slice %516 {offsets = [23, 0], sizes = [1, 64], strides = [1, 1]} : vector<64x64xf32> to vector<1x64xf32>
    %568 = arith.maximumf %566, %567 : vector<1x64xf32>
    %569 = vector.extract_strided_slice %516 {offsets = [30, 0], sizes = [1, 64], strides = [1, 1]} : vector<64x64xf32> to vector<1x64xf32>
    %570 = vector.extract_strided_slice %516 {offsets = [31, 0], sizes = [1, 64], strides = [1, 1]} : vector<64x64xf32> to vector<1x64xf32>
    %571 = arith.maximumf %569, %570 : vector<1x64xf32>
    %572 = arith.maximumf %568, %571 : vector<1x64xf32>
    %573 = vector.extract_strided_slice %516 {offsets = [32, 0], sizes = [1, 64], strides = [1, 1]} : vector<64x64xf32> to vector<1x64xf32>
    %574 = vector.extract_strided_slice %516 {offsets = [33, 0], sizes = [1, 64], strides = [1, 1]} : vector<64x64xf32> to vector<1x64xf32>
    %575 = arith.maximumf %573, %574 : vector<1x64xf32>
    %576 = vector.extract_strided_slice %516 {offsets = [40, 0], sizes = [1, 64], strides = [1, 1]} : vector<64x64xf32> to vector<1x64xf32>
    %577 = vector.extract_strided_slice %516 {offsets = [41, 0], sizes = [1, 64], strides = [1, 1]} : vector<64x64xf32> to vector<1x64xf32>
    %578 = arith.maximumf %576, %577 : vector<1x64xf32>
    %579 = arith.maximumf %575, %578 : vector<1x64xf32>
    %580 = vector.extract_strided_slice %516 {offsets = [34, 0], sizes = [1, 64], strides = [1, 1]} : vector<64x64xf32> to vector<1x64xf32>
    %581 = vector.extract_strided_slice %516 {offsets = [35, 0], sizes = [1, 64], strides = [1, 1]} : vector<64x64xf32> to vector<1x64xf32>
    %582 = arith.maximumf %580, %581 : vector<1x64xf32>
    %583 = vector.extract_strided_slice %516 {offsets = [42, 0], sizes = [1, 64], strides = [1, 1]} : vector<64x64xf32> to vector<1x64xf32>
    %584 = vector.extract_strided_slice %516 {offsets = [43, 0], sizes = [1, 64], strides = [1, 1]} : vector<64x64xf32> to vector<1x64xf32>
    %585 = arith.maximumf %583, %584 : vector<1x64xf32>
    %586 = arith.maximumf %582, %585 : vector<1x64xf32>
    %587 = vector.extract_strided_slice %516 {offsets = [36, 0], sizes = [1, 64], strides = [1, 1]} : vector<64x64xf32> to vector<1x64xf32>
    %588 = vector.extract_strided_slice %516 {offsets = [37, 0], sizes = [1, 64], strides = [1, 1]} : vector<64x64xf32> to vector<1x64xf32>
    %589 = arith.maximumf %587, %588 : vector<1x64xf32>
    %590 = vector.extract_strided_slice %516 {offsets = [44, 0], sizes = [1, 64], strides = [1, 1]} : vector<64x64xf32> to vector<1x64xf32>
    %591 = vector.extract_strided_slice %516 {offsets = [45, 0], sizes = [1, 64], strides = [1, 1]} : vector<64x64xf32> to vector<1x64xf32>
    %592 = arith.maximumf %590, %591 : vector<1x64xf32>
    %593 = arith.maximumf %589, %592 : vector<1x64xf32>
    %594 = vector.extract_strided_slice %516 {offsets = [38, 0], sizes = [1, 64], strides = [1, 1]} : vector<64x64xf32> to vector<1x64xf32>
    %595 = vector.extract_strided_slice %516 {offsets = [39, 0], sizes = [1, 64], strides = [1, 1]} : vector<64x64xf32> to vector<1x64xf32>
    %596 = arith.maximumf %594, %595 : vector<1x64xf32>
    %597 = vector.extract_strided_slice %516 {offsets = [46, 0], sizes = [1, 64], strides = [1, 1]} : vector<64x64xf32> to vector<1x64xf32>
    %598 = vector.extract_strided_slice %516 {offsets = [47, 0], sizes = [1, 64], strides = [1, 1]} : vector<64x64xf32> to vector<1x64xf32>
    %599 = arith.maximumf %597, %598 : vector<1x64xf32>
    %600 = arith.maximumf %596, %599 : vector<1x64xf32>
    %601 = vector.extract_strided_slice %516 {offsets = [48, 0], sizes = [1, 64], strides = [1, 1]} : vector<64x64xf32> to vector<1x64xf32>
    %602 = vector.extract_strided_slice %516 {offsets = [49, 0], sizes = [1, 64], strides = [1, 1]} : vector<64x64xf32> to vector<1x64xf32>
    %603 = arith.maximumf %601, %602 : vector<1x64xf32>
    %604 = vector.extract_strided_slice %516 {offsets = [56, 0], sizes = [1, 64], strides = [1, 1]} : vector<64x64xf32> to vector<1x64xf32>
    %605 = vector.extract_strided_slice %516 {offsets = [57, 0], sizes = [1, 64], strides = [1, 1]} : vector<64x64xf32> to vector<1x64xf32>
    %606 = arith.maximumf %604, %605 : vector<1x64xf32>
    %607 = arith.maximumf %603, %606 : vector<1x64xf32>
    %608 = vector.extract_strided_slice %516 {offsets = [50, 0], sizes = [1, 64], strides = [1, 1]} : vector<64x64xf32> to vector<1x64xf32>
    %609 = vector.extract_strided_slice %516 {offsets = [51, 0], sizes = [1, 64], strides = [1, 1]} : vector<64x64xf32> to vector<1x64xf32>
    %610 = arith.maximumf %608, %609 : vector<1x64xf32>
    %611 = vector.extract_strided_slice %516 {offsets = [58, 0], sizes = [1, 64], strides = [1, 1]} : vector<64x64xf32> to vector<1x64xf32>
    %612 = vector.extract_strided_slice %516 {offsets = [59, 0], sizes = [1, 64], strides = [1, 1]} : vector<64x64xf32> to vector<1x64xf32>
    %613 = arith.maximumf %611, %612 : vector<1x64xf32>
    %614 = arith.maximumf %610, %613 : vector<1x64xf32>
    %615 = vector.extract_strided_slice %516 {offsets = [52, 0], sizes = [1, 64], strides = [1, 1]} : vector<64x64xf32> to vector<1x64xf32>
    %616 = vector.extract_strided_slice %516 {offsets = [53, 0], sizes = [1, 64], strides = [1, 1]} : vector<64x64xf32> to vector<1x64xf32>
    %617 = arith.maximumf %615, %616 : vector<1x64xf32>
    %618 = vector.extract_strided_slice %516 {offsets = [60, 0], sizes = [1, 64], strides = [1, 1]} : vector<64x64xf32> to vector<1x64xf32>
    %619 = vector.extract_strided_slice %516 {offsets = [61, 0], sizes = [1, 64], strides = [1, 1]} : vector<64x64xf32> to vector<1x64xf32>
    %620 = arith.maximumf %618, %619 : vector<1x64xf32>
    %621 = arith.maximumf %617, %620 : vector<1x64xf32>
    %622 = vector.extract_strided_slice %516 {offsets = [54, 0], sizes = [1, 64], strides = [1, 1]} : vector<64x64xf32> to vector<1x64xf32>
    %623 = vector.extract_strided_slice %516 {offsets = [55, 0], sizes = [1, 64], strides = [1, 1]} : vector<64x64xf32> to vector<1x64xf32>
    %624 = arith.maximumf %622, %623 : vector<1x64xf32>
    %625 = vector.extract_strided_slice %516 {offsets = [62, 0], sizes = [1, 64], strides = [1, 1]} : vector<64x64xf32> to vector<1x64xf32>
    %626 = vector.extract_strided_slice %516 {offsets = [63, 0], sizes = [1, 64], strides = [1, 1]} : vector<64x64xf32> to vector<1x64xf32>
    %627 = arith.maximumf %625, %626 : vector<1x64xf32>
    %628 = arith.maximumf %624, %627 : vector<1x64xf32>
    %629 = tpu.concatenate %523, %530, %537, %544, %551, %558, %565, %572, %579, %586, %593, %600, %607, %614, %621, %628 in 1 : vector<1x64xf32>, vector<1x64xf32>, vector<1x64xf32>, vector<1x64xf32>, vector<1x64xf32>, vector<1x64xf32>, vector<1x64xf32>, vector<1x64xf32>, vector<1x64xf32>, vector<1x64xf32>, vector<1x64xf32>, vector<1x64xf32>, vector<1x64xf32>, vector<1x64xf32>, vector<1x64xf32>, vector<1x64xf32> -> vector<1x1024xf32>
    %630 = tpu.concatenate %317, %629 in 0 : vector<1x1024xf32>, vector<1x1024xf32> -> vector<2x1024xf32>
    %631 = arith.truncf %630 : vector<2x1024xf32> to vector<2x1024xbf16>
    %c0_187 = arith.constant 0 : index
    %c0_188 = arith.constant 0 : index
    %632 = vector.load %arg5[%c0_187, %c0_188] : memref<1024x512xbf16, #tpu.memory_space<vmem>>, vector<1024x512xbf16>
    %cst_189 = arith.constant dense<0.000000e+00> : vector<2x512xf32>
    %633 = tpu.matmul %631, %632, %cst_189 {dimension_numbers = #tpu.dot_dimension_numbers<[1], [0], [0], [1], [0, 0, 1, 1], [], []>} : vector<2x1024xbf16>, vector<1024x512xbf16>, vector<2x512xf32> -> vector<2x512xf32>
    %c0_190 = arith.constant 0 : index
    %c0_191 = arith.constant 0 : index
    %634 = vector.load %arg6[%c0_190, %c0_191] : memref<1x512xf32, #tpu.memory_space<vmem>>, vector<1x512xf32>
    %635 = vector.broadcast %634 : vector<1x512xf32> to vector<2x512xf32>
    %636 = arith.addf %633, %635 : vector<2x512xf32>
    %637 = arith.truncf %636 : vector<2x512xf32> to vector<2x512xbf16>
    %c0_192 = arith.constant 0 : index
    %c0_193 = arith.constant 0 : index
    %638 = vector.load %arg7[%c0_192, %c0_193] : memref<512x256xbf16, #tpu.memory_space<vmem>>, vector<512x256xbf16>
    %cst_194 = arith.constant dense<0.000000e+00> : vector<2x256xf32>
    %639 = tpu.matmul %637, %638, %cst_194 {dimension_numbers = #tpu.dot_dimension_numbers<[1], [0], [0], [1], [0, 0, 1, 1], [], []>} : vector<2x512xbf16>, vector<512x256xbf16>, vector<2x256xf32> -> vector<2x256xf32>
    %c0_195 = arith.constant 0 : index
    %c0_196 = arith.constant 0 : index
    %640 = vector.load %arg8[%c0_195, %c0_196] : memref<1x256xf32, #tpu.memory_space<vmem>>, vector<1x256xf32>
    %641 = vector.broadcast %640 : vector<1x256xf32> to vector<2x256xf32>
    %642 = arith.addf %639, %641 : vector<2x256xf32>
    %643 = arith.truncf %642 : vector<2x256xf32> to vector<2x256xbf16>
    %c0_197 = arith.constant 0 : index
    %c0_198 = arith.constant 0 : index
    %644 = vector.load %arg9[%c0_197, %c0_198] : memref<256x10xbf16, #tpu.memory_space<vmem>>, vector<256x10xbf16>
    %cst_199 = arith.constant dense<0.000000e+00> : vector<2x10xf32>
    %645 = tpu.matmul %643, %644, %cst_199 {dimension_numbers = #tpu.dot_dimension_numbers<[1], [0], [0], [1], [0, 0, 1, 1], [], []>} : vector<2x256xbf16>, vector<256x10xbf16>, vector<2x10xf32> -> vector<2x10xf32>
    %c0_200 = arith.constant 0 : index
    %c0_201 = arith.constant 0 : index
    %646 = vector.load %arg10[%c0_200, %c0_201] : memref<1x10xf32, #tpu.memory_space<vmem>>, vector<1x10xf32>
    %647 = vector.broadcast %646 : vector<1x10xf32> to vector<2x10xf32>
    %648 = arith.addf %645, %647 : vector<2x10xf32>
    %cst_202 = arith.constant dense<0xFF800000> : vector<2xf32>
    %649 = vector.multi_reduction <maximumf>, %648, %cst_202 [1] : vector<2x10xf32> to vector<2xf32>
    %650 = vector.shape_cast %649 : vector<2xf32> to vector<2x1xf32>
    %651 = vector.broadcast %650 : vector<2x1xf32> to vector<2x10xf32>
    %652 = arith.subf %648, %651 : vector<2x10xf32>
    %653 = math.exp %652 : vector<2x10xf32>
    %cst_203 = arith.constant dense<0.000000e+00> : vector<2xf32>
    %654 = vector.multi_reduction <add>, %653, %cst_203 [1] : vector<2x10xf32> to vector<2xf32>
    %655 = vector.shape_cast %654 : vector<2xf32> to vector<2x1xf32>
    %656 = math.log %655 : vector<2x1xf32>
    %657 = vector.broadcast %656 : vector<2x1xf32> to vector<2x10xf32>
    %658 = arith.subf %652, %657 : vector<2x10xf32>
    %c0_204 = arith.constant 0 : index
    %c0_205 = arith.constant 0 : index
    %659 = vector.load %arg11[%c0_204, %c0_205] : memref<2x10xf32, #tpu.memory_space<vmem>>, vector<2x10xf32>
    tpu.vector_store %arg11[%c0_204, %c0_205], %658 {strides = array<i32>} : memref<2x10xf32, #tpu.memory_space<vmem>>, vector<2x10xf32>,
    return
  }
}

</mosaic_0001>

<bundles_post_ra>
// kernel: cnn_forward.1
= control target key start
LH: loop header
LB: loop body
LE: loop exit
PB: predicated region body
PF: predicated region fallthrough
CT: control target
= control target key end

     0   :  { %vm195_vm0 = vcmask 261120   ;;  %s20359_s0 = inlined_call_operand.vmem [shape: f32[1152,32], index: 0, kind: input, shape index: {}]   ;;  %s20360_s1 = inlined_call_operand.vmem [shape: f32[32,32], index: 1, kind: input, shape index: {}]   ;;  %s20361_s2 = inlined_call_operand.vmem [shape: f32[1,32], index: 2, kind: input, shape index: {}]   ;;  %s20362_s3 = inlined_call_operand.vmem [shape: f32[25,32,64], index: 3, kind: input, shape index: {}]   ;;  %s20363_s4 = inlined_call_operand.vmem [shape: f32[1,64], index: 4, kind: input, shape index: {}]   ;;  %s20364_s5 = inlined_call_operand.vmem [shape: bf16[1024,512], index: 5, kind: input, shape index: {}]   ;;  %s20365_s6 = inlined_call_operand.vmem [shape: f32[1,512], index: 6, kind: input, shape index: {}]   ;;  %s20366_s7 = inlined_call_operand.vmem [shape: bf16[512,256], index: 7, kind: input, shape index: {}]   ;;  %s20367_s8 = inlined_call_operand.vmem [shape: f32[1,256], index: 8, kind: input, shape index: {}]   ;;  %s20368_s9 = inlined_call_operand.vmem [shape: bf16[256,10], index: 9, kind: input, shape index: {}]   ;;  %s20369_s10 = inlined_call_operand.vmem [shape: f32[1,10], index: 10, kind: input, shape index: {}]   ;;  %s20370_s11 = inlined_call_operand.hbm [shape: f32[2,10], index: 11, kind: output, shape index: {}]  }
   0x1   :  { %v184_v0 = vld [vmem:[%s20360_s1] sm:$0xff]  ;;  %v185_v1 = vld [vmem:[%s20360_s1 + $0x8] sm:$0xff]  ;;  %v186_v2 = vld [vmem:[%s20360_s1 + $0x10] sm:$0xff] }
   0x2   :  { %v14676_v3 = vpack.c.bf16 %v185_v1, %v184_v0  ;;  %v187_v4 = vld [vmem:[%s20360_s1 + $0x18] sm:$0xff]  ;;  %v40_v5 = vld [vmem:[%s20359_s0] sm:$0xff]  ;;  %v41_v7 = vld [vmem:[%s20359_s0 + $0x8] sm:$0xff] }
   0x3   :  { %v14680_v6 = vpack.c.bf16 %v187_v4, %v186_v2  ;;  %13460 = vmatprep.mubr.msk.f32.mxu0 %vm195_vm0, %v40_v5  ;;  %v42_v8 = vld [vmem:[%s20359_s0 + $0x10] sm:$0xff]  ;;  %v43_v9 = vld [vmem:[%s20359_s0 + $0x18] sm:$0xff]  ;;  %v44_v10 = vld [vmem:[%s20359_s0 + $0x20] sm:$0xff] }
   0x4   :  { %14677 = vmatprep.subr.bf16.mxu0 %v14676_v3  ;;  %v45_v11 = vld [vmem:[%s20359_s0 + $0x28] sm:$0xff]  ;;  %v46_v12 = vld [vmem:[%s20359_s0 + $0x30] sm:$0xff]  ;;  %v47_v13 = vld [vmem:[%s20359_s0 + $0x38] sm:$0xff] }
   0x5   :  { %14679 = vmatpush3.bf16.msra.mxu0 %v14676_v3  ;;  %v48_v14 = vld [vmem:[%s20359_s0 + $0x40] sm:$0xff]  ;;  %v49_v15 = vld [vmem:[%s20359_s0 + $0x48] sm:$0xff]  ;;  %v50_v18 = vld [vmem:[%s20359_s0 + $0x50] sm:$0xff] }
   0x6   :  { %14681 = vmatprep.subr.bf16.mxu0 %v14680_v6  ;;  %v11848_v16 = vld [vmem:[%s20362_s3 + $0x20] sm:$0xff]  ;;  %v11849_v17 = vld [vmem:[%s20362_s3 + $0x28] sm:$0xff]  ;;  %v51_v20 = vld [vmem:[%s20359_s0 + $0x58] sm:$0xff] }
   0x7   :  { %v16192_v19 = vpack.c.bf16 %v11849_v17, %v11848_v16  ;;  %v52_v21 = vld [vmem:[%s20359_s0 + $0x60] sm:$0xff]  ;;  %v53_v22 = vld [vmem:[%s20359_s0 + $0x68] sm:$0xff]  ;;  %v54_v23 = vld [vmem:[%s20359_s0 + $0x70] sm:$0xff] }
   0x8   :  { %v55_v24 = vld [vmem:[%s20359_s0 + $0x78] sm:$0xff]  ;;  %v56_v25 = vld [vmem:[%s20359_s0 + $0x80] sm:$0xff]  ;;  %v57_v26 = vld [vmem:[%s20359_s0 + $0x88] sm:$0xff] }
   0x9   :  { %14683 = vmatpush3.bf16.msra.mxu0 %v14680_v6  ;;  %v58_v27 = vld [vmem:[%s20359_s0 + $0x90] sm:$0xff]  ;;  %v59_v28 = vld [vmem:[%s20359_s0 + $0x98] sm:$0xff]  ;;  %v60_v29 = vld [vmem:[%s20359_s0 + $0xa0] sm:$0xff] }
   0xa   :  { %14685 = vmatprep.subr.bf16.mxu0 %v16192_v19  ;;  %v61_v30 = vld [vmem:[%s20359_s0 + $0xa8] sm:$0xff]  ;;  %v62_v31 = vld [vmem:[%s20359_s0 + $0xb0] sm:$0xff]  ;;  %v63_v32 = vld [vmem:[%s20359_s0 + $0xb8] sm:$0xff] }
   0xb   :  { %v64_v33 = vld [vmem:[%s20359_s0 + $0xc0] sm:$0xff]  ;;  %v65_v34 = vld [vmem:[%s20359_s0 + $0xc8] sm:$0xff]  ;;  %v66_v35 = vld [vmem:[%s20359_s0 + $0xd0] sm:$0xff] }
   0xc   :  { %13461 = vmatmul.mubr.msk.f32.vlgmr.msra.gmra.mrb[0].mxu0 %vm195_vm0, %v41_v7  ;;  %v67_v36 = vld [vmem:[%s20359_s0 + $0xd8] sm:$0xff]  ;;  %v68_v37 = vld [vmem:[%s20359_s0 + $0xe0] sm:$0xff]  ;;  %v69_v38 = vld [vmem:[%s20359_s0 + $0xe8] sm:$0xff] }
   0xd   :  { %13463 = vmatprep.mubr.msk.f32.mxu0 %vm195_vm0, %v42_v8  ;;  %14687 = vmatpush3.bf16.msra.mxu0 %v16192_v19  ;;  %v70_v39 = vld [vmem:[%s20359_s0 + $0xf0] sm:$0xff]  ;;  %v71_v40 = vld [vmem:[%s20359_s0 + $0xf8] sm:$0xff]  ;;  %v72_v41 = vld [vmem:[%s20359_s0 + $0x100] sm:$0xff] }
   0xe   :  { %v73_v42 = vld [vmem:[%s20359_s0 + $0x108] sm:$0xff]  ;;  %v74_v43 = vld [vmem:[%s20359_s0 + $0x110] sm:$0xff]  ;;  %v75_v44 = vld [vmem:[%s20359_s0 + $0x118] sm:$0xff] }
   0xf   :  { %v76_v45 = vld [vmem:[%s20359_s0 + $0x120] sm:$0xff]  ;;  %v77_v46 = vld [vmem:[%s20359_s0 + $0x128] sm:$0xff]  ;;  %v78_v47 = vld [vmem:[%s20359_s0 + $0x130] sm:$0xff] }
  0x10   :  { %13464 = vmatmul.mubr.msk.f32.gmra.mrb[2].mxu0 %vm195_vm0, %v43_v9  ;;  %v79_v48 = vld [vmem:[%s20359_s0 + $0x138] sm:$0xff]  ;;  %v80_v49 = vld [vmem:[%s20359_s0 + $0x140] sm:$0xff]  ;;  %v81_v50 = vld [vmem:[%s20359_s0 + $0x148] sm:$0xff] }
  0x11   :  { %13466 = vmatprep.mubr.msk.f32.mxu0 %vm195_vm0, %v44_v10  ;;  %v82_v51 = vld [vmem:[%s20359_s0 + $0x150] sm:$0xff]  ;;  %v83_v52 = vld [vmem:[%s20359_s0 + $0x158] sm:$0xff]  ;;  %v84_v53 = vld [vmem:[%s20359_s0 + $0x160] sm:$0xff] }
  0x12   :  { %v85_v54 = vld [vmem:[%s20359_s0 + $0x168] sm:$0xff]  ;;  %v86_v55 = vld [vmem:[%s20359_s0 + $0x170] sm:$0xff]  ;;  %v87_v56 = vld [vmem:[%s20359_s0 + $0x178] sm:$0xff] }
  0x13   :  { %v88_v57 = vld [vmem:[%s20359_s0 + $0x180] sm:$0xff]  ;;  %v89_v58 = vld [vmem:[%s20359_s0 + $0x188] sm:$0xff]  ;;  %v90_v59 = vld [vmem:[%s20359_s0 + $0x190] sm:$0xff] }
  0x14   :  { %13467 = vmatmul.mubr.msk.f32.gmra.mrb[4].mxu0 %vm195_vm0, %v45_v11  ;;  %v91_v60 = vld [vmem:[%s20359_s0 + $0x198] sm:$0xff]  ;;  %v92_v61 = vld [vmem:[%s20359_s0 + $0x1a0] sm:$0xff]  ;;  %v93_v62 = vld [vmem:[%s20359_s0 + $0x1a8] sm:$0xff] }
  0x15   :  { %13469 = vmatprep.mubr.msk.f32.mxu0 %vm195_vm0, %v46_v12  ;;  %v94_v63 = vld [vmem:[%s20359_s0 + $0x1b0] sm:$0xff]  ;;  %v95_v0 = vld [vmem:[%s20359_s0 + $0x1b8] sm:$0xff]  ;;  %v96_v1 = vld [vmem:[%s20359_s0 + $0x1c0] sm:$0xff] }
  0x16   :  { %v97_v2 = vld [vmem:[%s20359_s0 + $0x1c8] sm:$0xff]  ;;  %v98_v3 = vld [vmem:[%s20359_s0 + $0x1d0] sm:$0xff]  ;;  %v99_v4 = vld [vmem:[%s20359_s0 + $0x1d8] sm:$0xff] }
  0x17   :  { %v100_v5 = vld [vmem:[%s20359_s0 + $0x1e0] sm:$0xff]  ;;  %v11869_v7 = vld [vmem:[%s20362_s3 + $0x48] sm:$0xff]  ;;  %v102_v10 = vld [vmem:[%s20359_s0 + $0x1f0] sm:$0xff] }
  0x18   :  { %13470 = vmatmul.mubr.msk.f32.gmra.mrb[6].mxu0 %vm195_vm0, %v47_v13  ;;  %v11868_v6 = vld [vmem:[%s20362_s3 + $0x40] sm:$0xff]  ;;  %v101_v9 = vld [vmem:[%s20359_s0 + $0x1e8] sm:$0xff]  ;;  %v11870_v11 = vld [vmem:[%s20362_s3 + $0x50] sm:$0xff] }
  0x19   :  { %13472 = vmatprep.mubr.msk.f32.mxu0 %vm195_vm0, %v48_v14  ;;  %v16402_v8 = vpack.c.bf16 %v11869_v7, %v11868_v6  ;;  %v11871_v12 = vld [vmem:[%s20362_s3 + $0x58] sm:$0xff]  ;;  %v105_v16 = vld [vmem:[%s20359_s0 + $0x208] sm:$0xff]  ;;  %v106_v17 = vld [vmem:[%s20359_s0 + $0x210] sm:$0xff] }
  0x1a   :  { %v16420_v13 = vpack.c.bf16 %v11871_v12, %v11870_v11  ;;  %v103_v14 = vld [vmem:[%s20359_s0 + $0x1f8] sm:$0xff] }
  0x1b   :  { %14701 = vmatprep.subr.bf16.mxu1 %v16402_v8 }
  0x1c   :  { %13473 = vmatmul.mubr.msk.f32.gmra.mrb[8].mxu0 %vm195_vm0, %v49_v15  ;;  %14703 = vmatpush3.bf16.msra.mxu1 %v16402_v8  ;;  %20523 = vst [vmem:[#allocation5_spill] sm:$0xff] %v16420_v13  ;;  %v104_v15 = vld [vmem:[%s20359_s0 + $0x200] sm:$0xff] }
  0x1d   :  { %13475 = vmatprep.mubr.msk.f32.mxu0 %vm195_vm0, %v50_v18  ;;  %14705 = vmatprep.subr.bf16.mxu1 %v16420_v13  ;;  %v107_v18 = vld [vmem:[%s20359_s0 + $0x218] sm:$0xff] }
  0x20   :  { %13476 = vmatmul.mubr.msk.f32.gmra.mrb[10].mxu0 %vm195_vm0, %v51_v20  ;;  %14707 = vmatpush3.bf16.msra.mxu1 %v16420_v13  ;;  %v108_v20 = vld [vmem:[%s20359_s0 + $0x220] sm:$0xff] }
  0x21   :  { %13478 = vmatprep.mubr.msk.f32.mxu0 %vm195_vm0, %v52_v21  ;;  %v109_v21 = vld [vmem:[%s20359_s0 + $0x228] sm:$0xff] }
  0x24   :  { %13479 = vmatmul.mubr.msk.f32.gmra.mrb[12].mxu0 %vm195_vm0, %v53_v22  ;;  %v110_v22 = vld [vmem:[%s20359_s0 + $0x230] sm:$0xff] }
  0x25   :  { %13481 = vmatprep.mubr.msk.f32.mxu0 %vm195_vm0, %v54_v23  ;;  %v111_v23 = vld [vmem:[%s20359_s0 + $0x238] sm:$0xff] }
  0x28   :  { %13482 = vmatmul.mubr.msk.f32.gmra.mrb[14].mxu0 %vm195_vm0, %v55_v24  ;;  %v112_v24 = vld [vmem:[%s20359_s0 + $0x240] sm:$0xff] }
  0x29   :  { %13484 = vmatprep.mubr.msk.f32.mxu0 %vm195_vm0, %v56_v25  ;;  %v113_v25 = vld [vmem:[%s20359_s0 + $0x248] sm:$0xff] }
  0x2c   :  { %13485 = vmatmul.mubr.msk.f32.gmra.mrb[16].mxu0 %vm195_vm0, %v57_v26  ;;  %v114_v26 = vld [vmem:[%s20359_s0 + $0x250] sm:$0xff] }
  0x2d   :  { %13487 = vmatprep.mubr.msk.f32.mxu0 %vm195_vm0, %v58_v27  ;;  %v115_v27 = vld [vmem:[%s20359_s0 + $0x258] sm:$0xff] }
  0x30   :  { %13488 = vmatmul.mubr.msk.f32.gmra.mrb[18].mxu0 %vm195_vm0, %v59_v28  ;;  %v116_v28 = vld [vmem:[%s20359_s0 + $0x260] sm:$0xff] }
  0x31   :  { %13490 = vmatprep.mubr.msk.f32.mxu0 %vm195_vm0, %v60_v29  ;;  %v117_v29 = vld [vmem:[%s20359_s0 + $0x268] sm:$0xff] }
  0x34   :  { %13491 = vmatmul.mubr.msk.f32.gmra.mrb[20].mxu0 %vm195_vm0, %v61_v30  ;;  %v118_v30 = vld [vmem:[%s20359_s0 + $0x270] sm:$0xff] }
  0x35   :  { %13493 = vmatprep.mubr.msk.f32.mxu0 %vm195_vm0, %v62_v31  ;;  %v119_v31 = vld [vmem:[%s20359_s0 + $0x278] sm:$0xff] }
  0x38   :  { %13494 = vmatmul.mubr.msk.f32.gmra.mrb[22].mxu0 %vm195_vm0, %v63_v32  ;;  %v120_v32 = vld [vmem:[%s20359_s0 + $0x280] sm:$0xff] }
  0x39   :  { %13496 = vmatprep.mubr.msk.f32.mxu0 %vm195_vm0, %v64_v33  ;;  %v11850_v33 = vld [vmem:[%s20362_s3 + $0x30] sm:$0xff] }
  0x3c   :  { %13497 = vmatmul.mubr.msk.f32.gmra.mrb[24].mxu0 %vm195_vm0, %v65_v34  ;;  %v11851_v34 = vld [vmem:[%s20362_s3 + $0x38] sm:$0xff] }
  0x3d   :  { %13499 = vmatprep.mubr.msk.f32.mxu0 %vm195_vm0, %v66_v35  ;;  %v121_v35 = vld [vmem:[%s20359_s0 + $0x288] sm:$0xff] }
  0x40   :  { %13500 = vmatmul.mubr.msk.f32.gmra.mrb[26].mxu0 %vm195_vm0, %v67_v36  ;;  %v16506_v36 = vpack.c.bf16 %v11851_v34, %v11850_v33 }
  0x41   :  { %13502 = vmatprep.mubr.msk.f32.mxu0 %vm195_vm0, %v68_v37  ;;  %v122_v37 = vld [vmem:[%s20359_s0 + $0x290] sm:$0xff] }
  0x42   :  { %14689 = vmatprep.subr.bf16.mxu0 %v16506_v36 }
  0x44   :  { %13503 = vmatmul.mubr.msk.f32.gmra.mrb[28].mxu0 %vm195_vm0, %v69_v38 }
  0x45   :  { %13505 = vmatprep.mubr.msk.f32.mxu0 %vm195_vm0, %v70_v39 }
  0x48   :  { %13506 = vmatmul.mubr.msk.f32.gmra.mrb[30].mxu0 %vm195_vm0, %v71_v40 }
  0x49   :  { %13508 = vmatprep.mubr.msk.f32.mxu0 %vm195_vm0, %v72_v41 }
  0x4c   :  { %13509 = vmatmul.mubr.msk.f32.gmra.mrb[32].mxu0 %vm195_vm0, %v73_v42 }
  0x4d   :  { %13511 = vmatprep.mubr.msk.f32.mxu0 %vm195_vm0, %v74_v43 }
  0x50   :  { %13512 = vmatmul.mubr.msk.f32.gmra.mrb[34].mxu0 %vm195_vm0, %v75_v44 }
  0x51   :  { %13514 = vmatprep.mubr.msk.f32.mxu0 %vm195_vm0, %v76_v45 }
  0x54   :  { %13515 = vmatmul.mubr.msk.f32.gmra.mrb[36].mxu0 %vm195_vm0, %v77_v46 }
  0x55   :  { %13517 = vmatprep.mubr.msk.f32.mxu0 %vm195_vm0, %v78_v47 }
  0x58   :  { %13518 = vmatmul.mubr.msk.f32.gmra.mrb[38].mxu0 %vm195_vm0, %v79_v48 }
  0x59   :  { %13520 = vmatprep.mubr.msk.f32.mxu0 %vm195_vm0, %v80_v49 }
  0x5c   :  { %13521 = vmatmul.mubr.msk.f32.gmra.mrb[40].mxu0 %vm195_vm0, %v81_v50 }
  0x5d   :  { %13523 = vmatprep.mubr.msk.f32.mxu0 %vm195_vm0, %v82_v51 }
  0x60   :  { %13524 = vmatmul.mubr.msk.f32.gmra.mrb[42].mxu0 %vm195_vm0, %v83_v52 }
  0x61   :  { %13526 = vmatprep.mubr.msk.f32.mxu0 %vm195_vm0, %v84_v53 }
  0x64   :  { %13527 = vmatmul.mubr.msk.f32.gmra.mrb[44].mxu0 %vm195_vm0, %v85_v54 }
  0x65   :  { %13529 = vmatprep.mubr.msk.f32.mxu0 %vm195_vm0, %v86_v55 }
  0x68   :  { %13530 = vmatmul.mubr.msk.f32.gmra.mrb[46].mxu0 %vm195_vm0, %v87_v56 }
  0x69   :  { %13532 = vmatprep.mubr.msk.f32.mxu0 %vm195_vm0, %v88_v57 }
  0x6c   :  { %13533 = vmatmul.mubr.msk.f32.gmra.mrb[48].mxu0 %vm195_vm0, %v89_v58 }
  0x6d   :  { %13535 = vmatprep.mubr.msk.f32.mxu0 %vm195_vm0, %v90_v59 }
  0x70   :  { %13536 = vmatmul.mubr.msk.f32.gmra.mrb[50].mxu0 %vm195_vm0, %v91_v60 }
  0x71   :  { %13538 = vmatprep.mubr.msk.f32.mxu0 %vm195_vm0, %v92_v61 }
  0x74   :  { %13539 = vmatmul.mubr.msk.f32.gmra.mrb[52].mxu0 %vm195_vm0, %v93_v62 }
  0x75   :  { %13541 = vmatprep.mubr.msk.f32.mxu0 %vm195_vm0, %v94_v63 }
  0x78   :  { %13542 = vmatmul.mubr.msk.f32.gmra.mrb[54].mxu0 %vm195_vm0, %v95_v0 }
  0x79   :  { %13544 = vmatprep.mubr.msk.f32.mxu0 %vm195_vm0, %v96_v1 }
  0x7c   :  { %13545 = vmatmul.mubr.msk.f32.gmra.mrb[56].mxu0 %vm195_vm0, %v97_v2 }
  0x7d   :  { %13547 = vmatprep.mubr.msk.f32.mxu0 %vm195_vm0, %v98_v3 }
  0x80   :  { %13548 = vmatmul.mubr.msk.f32.gmra.mrb[58].mxu0 %vm195_vm0, %v99_v4 }
  0x81   :  { %13550 = vmatprep.mubr.msk.f32.mxu0 %vm195_vm0, %v100_v5 }
  0x84   :  { %13551 = vmatmul.mubr.msk.f32.gmra.mrb[60].mxu0 %vm195_vm0, %v101_v9 }
  0x85   :  { %13553 = vmatprep.mubr.msk.f32.mxu0 %vm195_vm0, %v102_v10 }
  0x88   :  { %13554 = vmatmul.mubr.msk.f32.gmra.mrb[62].mxu0 %vm195_vm0, %v103_v14 }
  0x89   :  { %13556 = vmatprep.mubr.msk.f32.mxu0 %vm195_vm0, %v104_v15 }
  0x8c   :  { %13557 = vmatmul.mubr.msk.f32.gmra.mrb[64].mxu0 %vm195_vm0, %v105_v16 }
  0x8d   :  { %13559 = vmatprep.mubr.msk.f32.mxu0 %vm195_vm0, %v106_v17 }
  0x90   :  { %13560 = vmatmul.mubr.msk.f32.gmra.mrb[66].mxu0 %vm195_vm0, %v107_v18 }
  0x91   :  { %13562 = vmatprep.mubr.msk.f32.mxu0 %vm195_vm0, %v108_v20 }
  0x94   :  { %13563 = vmatmul.mubr.msk.f32.gmra.mrb[68].mxu0 %vm195_vm0, %v109_v21 }
  0x95   :  { %13565 = vmatprep.mubr.msk.f32.mxu0 %vm195_vm0, %v110_v22 }
  0x98   :  { %13566 = vmatmul.mubr.msk.f32.gmra.mrb[70].mxu0 %vm195_vm0, %v111_v23 }
  0x99   :  { %13568 = vmatprep.mubr.msk.f32.mxu0 %vm195_vm0, %v112_v24 }
  0x9c   :  { %13569 = vmatmul.mubr.msk.f32.gmra.mrb[72].mxu0 %vm195_vm0, %v113_v25 }
  0x9d   :  { %13571 = vmatprep.mubr.msk.f32.mxu0 %vm195_vm0, %v114_v26 }
  0xa0   :  { %13572 = vmatmul.mubr.msk.f32.gmra.mrb[74].mxu0 %vm195_vm0, %v115_v27 }
  0xa1   :  { %13574 = vmatprep.mubr.msk.f32.mxu0 %vm195_vm0, %v116_v28 }
  0xa4   :  { %13575 = vmatmul.mubr.msk.f32.gmra.mrb[76].mxu0 %vm195_vm0, %v117_v29 }
  0xa5   :  { %13577 = vmatprep.mubr.msk.f32.mxu0 %vm195_vm0, %v118_v30 }
  0xa8   :  { %13578 = vmatmul.mubr.msk.f32.gmra.mrb[78].mxu0 %vm195_vm0, %v119_v31 }
  0xa9   :  { %13580 = vmatprep.mubr.msk.f32.mxu0 %vm195_vm0, %v120_v32 }
  0xaa   :  { %16 = vsyncpa [#allocation3], 0  ;;  %14691 = vmatpush3.bf16.msra.mxu0 %v16506_v36  ;;  %v123_v38 = vld [vmem:[%s20359_s0 + $0x298] sm:$0xff]  ;;  %v124_v39 = vld [vmem:[%s20359_s0 + $0x2a0] sm:$0xff]  ;;  %vm1869_vm1 = vcmask 1040384   ;;  %vm1882_vm2 = vcmask 1041408  }
  0xab   :  { %v125_v40 = vld [vmem:[%s20359_s0 + $0x2a8] sm:$0xff]  ;;  %v126_v41 = vld [vmem:[%s20359_s0 + $0x2b0] sm:$0xff]  ;;  %v127_v42 = vld [vmem:[%s20359_s0 + $0x2b8] sm:$0xff]  ;;  %vm1895_vm3 = vcmask 1042432   ;;  %vm1908_vm4 = vcmask 1043456   ;;  %vm1921_vm5 = vcmask 1044480  }
  0xac   :  { %13581 = vmatmul.mubr.msk.f32.gmra.mrb[80].mxu0 %vm195_vm0, %v121_v35  ;;  %v128_v43 = vld [vmem:[%s20359_s0 + $0x2c0] sm:$0xff]  ;;  %v129_v44 = vld [vmem:[%s20359_s0 + $0x2c8] sm:$0xff]  ;;  %v130_v45 = vld [vmem:[%s20359_s0 + $0x2d0] sm:$0xff]  ;;  %vm1934_vm6 = vcmask 1045504   ;;  %vm1947_vm7 = vcmask 1046528   ;;  %s16070_s22 = smov 64  }
  0xad   :  { %13583 = vmatprep.mubr.msk.f32.mxu0 %vm195_vm0, %v122_v37  ;;  %v131_v46 = vld [vmem:[%s20359_s0 + $0x2d8] sm:$0xff]  ;;  %v132_v47 = vld [vmem:[%s20359_s0 + $0x2e0] sm:$0xff]  ;;  %v133_v48 = vld [vmem:[%s20359_s0 + $0x2e8] sm:$0xff]  ;;  %vm5312_vm8 = vcmask 523264   ;;  %vm11675_vm9 = vcmask 74752  }
  0xae   :  { %v134_v49 = vld [vmem:[%s20359_s0 + $0x2f0] sm:$0xff]  ;;  %v135_v50 = vld [vmem:[%s20359_s0 + $0x2f8] sm:$0xff]  ;;  %v136_v51 = vld [vmem:[%s20359_s0 + $0x300] sm:$0xff] }
  0xaf   :  { %v137_v52 = vld [vmem:[%s20359_s0 + $0x308] sm:$0xff]  ;;  %v1996_v53 = vld [vmem:[%s20362_s3] sm:$0xff]  ;;  %v138_v56 = vld [vmem:[%s20359_s0 + $0x310] sm:$0xff] }
  0xb0   :  { %13584 = vmatmul.mubr.msk.f32.gmra.mrb[82].mxu0 %vm195_vm0, %v123_v38  ;;  %v1997_v54 = vld [vmem:[%s20362_s3 + $0x8] sm:$0xff]  ;;  %v11880_v55 = vld [vmem:[%s20362_s3 + $0x60] sm:$0xff]  ;;  %v139_v60 = vld [vmem:[%s20359_s0 + $0x318] sm:$0xff] }
  0xb1   :  { %13586 = vmatprep.mubr.msk.f32.mxu0 %vm195_vm0, %v124_v39  ;;  %v16587_v57 = vpack.c.bf16 %v1997_v54, %v1996_v53  ;;  %v11881_v58 = vld [vmem:[%s20362_s3 + $0x68] sm:$0xff]  ;;  %v140_v61 = vld [vmem:[%s20359_s0 + $0x320] sm:$0xff]  ;;  %v142_v63 = vld [vmem:[%s20359_s0 + $0x330] sm:$0xff] }
  0xb2   :  { %v16592_v59 = vpack.c.bf16 %v11881_v58, %v11880_v55  ;;  %v141_v62 = vld [vmem:[%s20359_s0 + $0x328] sm:$0xff]  ;;  %v143_v0 = vld [vmem:[%s20359_s0 + $0x338] sm:$0xff]  ;;  %v144_v1 = vld [vmem:[%s20359_s0 + $0x340] sm:$0xff] }
  0xb3   :  { %14693 = vmatprep.subr.bf16.mxu0 %v16587_v57  ;;  %v145_v2 = vld [vmem:[%s20359_s0 + $0x348] sm:$0xff]  ;;  %v146_v3 = vld [vmem:[%s20359_s0 + $0x350] sm:$0xff]  ;;  %v147_v4 = vld [vmem:[%s20359_s0 + $0x358] sm:$0xff] }
  0xb4   :  { %13587 = vmatmul.mubr.msk.f32.gmra.mrb[84].mxu0 %vm195_vm0, %v125_v40  ;;  %20524 = vst [vmem:[#allocation6_spill] sm:$0xff] %v16592_v59  ;;  %14709 = vmatprep.subr.bf16.mxu1 %v16592_v59  ;;  %v148_v5 = vld [vmem:[%s20359_s0 + $0x360] sm:$0xff]  ;;  %v149_v10 = vld [vmem:[%s20359_s0 + $0x368] sm:$0xff]  ;;  %v150_v11 = vld [vmem:[%s20359_s0 + $0x370] sm:$0xff] }
  0xb5   :  { %13589 = vmatprep.mubr.msk.f32.mxu0 %vm195_vm0, %v126_v41  ;;  %v16640_v9 = vld [vmem:[%s20361_s2] ss:$0 sm:$0xff]  ;;  %v151_v17 = vld [vmem:[%s20359_s0 + $0x378] sm:$0xff]  ;;  %v153_v28 = vld [vmem:[%s20359_s0 + $0x388] sm:$0xff] }
  0xb6   :  { %v152_v20 = vld [vmem:[%s20359_s0 + $0x380] sm:$0xff]  ;;  %v154_v31 = vld [vmem:[%s20359_s0 + $0x390] sm:$0xff]  ;;  %v155_v40 = vld [vmem:[%s20359_s0 + $0x398] sm:$0xff] }
  0xb7   :  { %v157_v55 = vld [vmem:[%s20359_s0 + $0x3a8] sm:$0xff] }
  0xb8   :  { %13590 = vmatmul.mubr.msk.f32.gmra.mrb[86].mxu0 %vm195_vm0, %v127_v42 }
  0xb9   :  { %13592 = vmatprep.mubr.msk.f32.mxu0 %vm195_vm0, %v128_v43  ;;  %v156_v43 = vld [vmem:[%s20359_s0 + $0x3a0] sm:$0xff] }
  0xbc   :  { %13593 = vmatmul.mubr.msk.f32.gmra.mrb[88].mxu0 %vm195_vm0, %v129_v44 }
  0xbd   :  { %13595 = vmatprep.mubr.msk.f32.mxu0 %vm195_vm0, %v130_v45 }
  0xc0   :  { %13596 = vmatmul.mubr.msk.f32.gmra.mrb[90].mxu0 %vm195_vm0, %v131_v46 }
  0xc1   :  { %13598 = vmatprep.mubr.msk.f32.mxu0 %vm195_vm0, %v132_v47 }
  0xc4   :  { %13599 = vmatmul.mubr.msk.f32.gmra.mrb[92].mxu0 %vm195_vm0, %v133_v48 }
  0xc5   :  { %13601 = vmatprep.mubr.msk.f32.mxu0 %vm195_vm0, %v134_v49 }
  0xc8   :  { %13602 = vmatmul.mubr.msk.f32.gmra.mrb[94].mxu0 %vm195_vm0, %v135_v50 }
  0xc9   :  { %13604 = vmatprep.mubr.msk.f32.mxu0 %vm195_vm0, %v136_v51 }
  0xcc   :  { %13605 = vmatmul.mubr.msk.f32.gmra.mrb[96].mxu0 %vm195_vm0, %v137_v52 }
  0xcd   :  { %13607 = vmatprep.mubr.msk.f32.mxu0 %vm195_vm0, %v138_v56 }
  0xd0   :  { %13608 = vmatmul.mubr.msk.f32.gmra.mrb[98].mxu0 %vm195_vm0, %v139_v60 }
  0xd1   :  { %13610 = vmatprep.mubr.msk.f32.mxu0 %vm195_vm0, %v140_v61 }
  0xd4   :  { %13611 = vmatmul.mubr.msk.f32.gmra.mrb[100].mxu0 %vm195_vm0, %v141_v62  ;;  %v158_v62 = vld [vmem:[%s20359_s0 + $0x3b0] sm:$0xff] }
  0xd5   :  { %13613 = vmatprep.mubr.msk.f32.mxu0 %vm195_vm0, %v142_v63 }
  0xd8   :  { %13614 = vmatmul.mubr.msk.f32.gmra.mrb[102].mxu0 %vm195_vm0, %v143_v0 }
  0xd9   :  { %13616 = vmatprep.mubr.msk.f32.mxu0 %vm195_vm0, %v144_v1 }
  0xdc   :  { %13617 = vmatmul.mubr.msk.f32.gmra.mrb[104].mxu0 %vm195_vm0, %v145_v2 }
  0xdd   :  { %13619 = vmatprep.mubr.msk.f32.mxu0 %vm195_vm0, %v146_v3 }
  0xdf   :  { %v13462_v6 = vpop.f32.mrb[0].mxu0 }
  0xe0   :  { %v694_v7 = vpop.f32.mrb[1].mxu0  ;;  %13620 = vmatmul.mubr.msk.f32.gmra.mrb[106].mxu0 %vm195_vm0, %v147_v4  ;;  %v700_v26 = vadd.f32 %v13462_v6, %v16640_v9 }
  0xe1   :  { %13622 = vmatprep.mubr.msk.f32.mxu0 %vm195_vm0, %v148_v5  ;;  %v695_v14 = vadd.f32 %v16640_v9, %v694_v7 }
  0xe3   :  { %v13465_v12 = vpop.f32.mrb[2].mxu0 }
  0xe4   :  { %v710_v15 = vadd.f32 %v13465_v12, %v16640_v9  ;;  %v704_v16 = vpop.f32.mrb[3].mxu0  ;;  %13623 = vmatmul.mubr.msk.f32.gmra.mrb[108].mxu0 %vm195_vm0, %v149_v10 }
  0xe5   :  { %13625 = vmatprep.mubr.msk.f32.mxu0 %vm195_vm0, %v150_v11  ;;  %v705_v23 = vadd.f32 %v16640_v9, %v704_v16 }
  0xe6   :  { %v1413_v18 = vmax.f32 %v695_v14, %v710_v15  ;;  %v159_v14 = vld [vmem:[%s20359_s0 + $0x3b8] sm:$0xff] }
  0xe7   :  { %v13468_v21 = vpop.f32.mrb[4].mxu0 }
  0xe8   :  { %v1461_v22 = vrot.slane %v1413_v18, 1  ;;  %v720_v24 = vadd.f32 %v13468_v21, %v16640_v9  ;;  %v714_v25 = vpop.f32.mrb[5].mxu0  ;;  %13626 = vmatmul.mubr.msk.f32.gmra.mrb[110].mxu0 %vm195_vm0, %v151_v17 }
  0xe9   :  { %v715_v27 = vadd.f32 %v16640_v9, %v714_v25  ;;  %13628 = vmatprep.mubr.msk.f32.mxu0 %vm195_vm0, %v152_v20  ;;  %v160_v20 = vld [vmem:[%s20359_s0 + $0x3c0] sm:$0xff] }
  0xea   :  { %v1485_v29 = vmax.f32 %v1413_v18, %v1461_v22  ;;  %v1415_v30 = vmax.f32 %v705_v23, %v720_v24 }
  0xeb   :  { %v1414_v32 = vmax.f32 %v700_v26, %v715_v27  ;;  %v13471_v33 = vpop.f32.mrb[6].mxu0 }
  0xec   :  { %v1605_v34 = vrot.slane %v1485_v29, 1  ;;  %v1629_v35 = vrot.slane %v1485_v29, 2  ;;  %v1557_v37 = vrot.slane %v1415_v30, 1  ;;  %v724_v38 = vpop.f32.mrb[7].mxu0  ;;  %13629 = vmatmul.mubr.msk.f32.gmra.mrb[112].mxu0 %vm195_vm0, %v153_v28  ;;  %v1653_v44 = vrot.slane %v1485_v29, 3 }
  0xed   :  { %v1509_v39 = vrot.slane %v1414_v32, 1  ;;  %13631 = vmatprep.mubr.msk.f32.mxu0 %vm195_vm0, %v154_v31  ;;  %v725_v54 = vadd.f32 %v16640_v9, %v724_v38  ;;  %v730_v11 = vadd.f32 %v13471_v33, %v16640_v9 }
  0xee   :  { %v1870_v41 = vsel %vm1869_vm1, %v1485_v29, %v1605_v34  ;;  %v1581_v42 = vmax.f32 %v1415_v30, %v1557_v37  ;;  %v161_v30 = vld [vmem:[%s20359_s0 + $0x3c8] sm:$0xff]  ;;  %v162_v34 = vld [vmem:[%s20359_s0 + $0x3d0] sm:$0xff] }
  0xef   :  { %v1883_v45 = vsel %vm1882_vm2, %v1870_v41, %v1629_v35  ;;  %v1533_v46 = vmax.f32 %v1414_v32, %v1509_v39  ;;  %v13474_v47 = vpop.f32.mrb[8].mxu0 }
  0xf0   :  { %v1797_v48 = vrot.slane %v1581_v42, 1  ;;  %v1821_v49 = vrot.slane %v1581_v42, 2  ;;  %v734_v50 = vpop.f32.mrb[9].mxu0  ;;  %13632 = vmatmul.mubr.msk.f32.gmra.mrb[114].mxu0 %vm195_vm0, %v155_v40  ;;  %v1896_v51 = vsel %vm1895_vm3, %v1883_v45, %v1653_v44  ;;  %v1845_v56 = vrot.slane %v1581_v42, 3 }
  0xf1   :  { %v1689_v52 = vrot.slane %v1533_v46, 4  ;;  %v1713_v53 = vrot.slane %v1533_v46, 5  ;;  %13634 = vmatprep.mubr.msk.f32.mxu0 %vm195_vm0, %v156_v43  ;;  %v1737_v60 = vrot.slane %v1533_v46, 6  ;;  %v740_v61 = vadd.f32 %v13474_v47, %v16640_v9 }
  0xf2   :  { %v1960_v58 = vsel %vm1869_vm1, %v1581_v42, %v1797_v48  ;;  %v1761_v63 = vrot.slane %v1533_v46, 7  ;;  %v735_v1 = vadd.f32 %v16640_v9, %v734_v50  ;;  %v163_v48 = vld [vmem:[%s20359_s0 + $0x3d8] sm:$0xff] }
  0xf3   :  { %v1909_v0 = vsel %vm1908_vm4, %v1896_v51, %v1689_v52  ;;  %v13477_v2 = vpop.f32.mrb[10].mxu0  ;;  %v1972_v3 = vsel %vm1882_vm2, %v1960_v58, %v1821_v49  ;;  %v1416_v4 = vmax.f32 %v725_v54, %v740_v61 }
  0xf4   :  { %v750_v5 = vadd.f32 %v13477_v2, %v16640_v9  ;;  %v744_v6 = vpop.f32.mrb[11].mxu0  ;;  %13635 = vmatmul.mubr.msk.f32.gmra.mrb[116].mxu0 %vm195_vm0, %v157_v55  ;;  %v1922_v7 = vsel %vm1921_vm5, %v1909_v0, %v1713_v53  ;;  %v16700_v10 = vsel %vm1895_vm3, %v1972_v3, %v1845_v56  ;;  %v164_v53 = vld [vmem:[%s20359_s0 + $0x3e0] sm:$0xff] }
  0xf5   :  { %v745_v12 = vadd.f32 %v16640_v9, %v744_v6  ;;  %13637 = vmatprep.mubr.msk.f32.mxu0 %vm195_vm0, %v158_v62  ;;  %v1935_v15 = vsel %vm1934_vm6, %v1922_v7, %v1737_v60  ;;  %v1462_v16 = vrot.slane %v1416_v4, 1  ;;  %v2288_v24 = vrot.slane %v16700_v10, 2  ;;  %v11882_v6 = vld [vmem:[%s20362_s3 + $0x70] sm:$0xff]  ;;  %v11883_v7 = vld [vmem:[%s20362_s3 + $0x78] sm:$0xff] }
  0xf6   :  { %v1418_v17 = vmax.f32 %v735_v1, %v750_v5  ;;  %v16710_v18 = vsel %vm1947_vm7, %v1935_v15, %v1761_v63  ;;  %v165_v5 = vld [vmem:[%s20359_s0 + $0x3e8] sm:$0xff]  ;;  %v166_v15 = vld [vmem:[%s20359_s0 + $0x3f0] sm:$0xff] }
  0xf7   :  { %v1417_v21 = vmax.f32 %v730_v11, %v745_v12  ;;  %v13480_v22 = vpop.f32.mrb[12].mxu0  ;;  %v2287_v23 = vrot.slane %v16710_v18, 2  ;;  %v1486_v25 = vmax.f32 %v1416_v4, %v1462_v16 }
  0xf8   :  { %v1558_v26 = vrot.slane %v1418_v17, 1  ;;  %v754_v27 = vpop.f32.mrb[13].mxu0  ;;  %13638 = vmatmul.mubr.msk.f32.gmra.mrb[118].mxu0 %vm195_vm0, %v159_v14  ;;  %v760_v3 = vadd.f32 %v13480_v22, %v16640_v9 }
  0xf9   :  { %v1510_v28 = vrot.slane %v1417_v21, 1  ;;  %v2289_v29 = vsel %vm1934_vm6, %v2287_v23, %v2288_v24  ;;  %13640 = vmatprep.mubr.msk.f32.mxu0 %vm195_vm0, %v160_v20  ;;  %v1606_v31 = vrot.slane %v1486_v25, 1  ;;  %v1630_v32 = vrot.slane %v1486_v25, 2 }
  0xfa   :  { %v1582_v33 = vmax.f32 %v1418_v17, %v1558_v26  ;;  %13724 = vmatprep.mubr.msk.f32.mxu1 %vm195_vm0, %v2289_v29  ;;  %v755_v37 = vadd.f32 %v16640_v9, %v754_v27  ;;  %v1654_v39 = vrot.slane %v1486_v25, 3  ;;  %v11892_v26 = vld [vmem:[%s20362_s3 + $0x80] sm:$0xff]  ;;  %v11893_v27 = vld [vmem:[%s20362_s3 + $0x88] sm:$0xff] }
  0xfb   :  { %v1534_v35 = vmax.f32 %v1417_v21, %v1510_v28  ;;  %v13483_v38 = vpop.f32.mrb[14].mxu0  ;;  %v1871_v40 = vsel %vm1869_vm1, %v1486_v25, %v1606_v31  ;;  %v16772_v25 = vpack.c.bf16 %v11883_v7, %v11882_v6  ;;  %v171_v7 = vld [vmem:[%s20359_s0 + $0x418] sm:$0xff] }
  0xfc   :  { %v1798_v41 = vrot.slane %v1582_v33, 1  ;;  %v1822_v42 = vrot.slane %v1582_v33, 2  ;;  %v764_v43 = vpop.f32.mrb[15].mxu0  ;;  %13641 = vmatmul.mubr.msk.f32.gmra.mrb[120].mxu0 %vm195_vm0, %v161_v30  ;;  %v1884_v44 = vsel %vm1882_vm2, %v1871_v40, %v1630_v32  ;;  %v1846_v45 = vrot.slane %v1582_v33, 3  ;;  %v167_v30 = vld [vmem:[%s20359_s0 + $0x3f8] sm:$0xff] }
  0xfd   :  { %v1690_v46 = vrot.slane %v1534_v35, 4  ;;  %v1714_v47 = vrot.slane %v1534_v35, 5  ;;  %13643 = vmatprep.mubr.msk.f32.mxu0 %vm195_vm0, %v162_v34  ;;  %v1897_v49 = vsel %vm1895_vm3, %v1884_v44, %v1654_v39  ;;  %v1738_v51 = vrot.slane %v1534_v35, 6  ;;  %20525 = vst [vmem:[#allocation7_spill] sm:$0xff] %v16772_v25  ;;  %v168_v34 = vld [vmem:[%s20359_s0 + $0x400] sm:$0xff] }
  0xfe   :  { %v1961_v50 = vsel %vm1869_vm1, %v1582_v33, %v1798_v41  ;;  %v770_v52 = vadd.f32 %v13483_v38, %v16640_v9  ;;  %v1762_v54 = vrot.slane %v1534_v35, 7  ;;  %v765_v56 = vadd.f32 %v16640_v9, %v764_v43 }
  0xff   :  { %v1910_v55 = vsel %vm1908_vm4, %v1897_v49, %v1690_v46  ;;  %v13486_v58 = vpop.f32.mrb[16].mxu0  ;;  %v1973_v60 = vsel %vm1882_vm2, %v1961_v50, %v1822_v42  ;;  %v16794_v39 = vpack.c.bf16 %v11893_v27, %v11892_v26  ;;  %v169_v49 = vld [vmem:[%s20359_s0 + $0x408] sm:$0xff] }
 0x100   :  { %v1923_v61 = vsel %vm1921_vm5, %v1910_v55, %v1714_v47  ;;  %v1419_v62 = vmax.f32 %v755_v37, %v770_v52  ;;  %v780_v63 = vadd.f32 %v13486_v58, %v16640_v9  ;;  %v774_v0 = vpop.f32.mrb[17].mxu0  ;;  %13644 = vmatmul.mubr.msk.f32.gmra.mrb[122].mxu0 %vm195_vm0, %v163_v48  ;;  %v16748_v1 = vsel %vm1895_vm3, %v1973_v60, %v1846_v45 }
 0x101   :  { %v1936_v2 = vsel %vm1934_vm6, %v1923_v61, %v1738_v51  ;;  %v775_v4 = vadd.f32 %v16640_v9, %v774_v0  ;;  %13646 = vmatprep.mubr.msk.f32.mxu0 %vm195_vm0, %v164_v53  ;;  %v2291_v21 = vrot.slane %v16748_v1, 2  ;;  %20526 = vst [vmem:[#allocation8_spill] sm:$0xff] %v16794_v39 }
 0x102   :  { %v1463_v11 = vrot.slane %v1419_v62, 1  ;;  %v1421_v12 = vmax.f32 %v765_v56, %v780_v63  ;;  %v16764_v14 = vsel %vm1947_vm7, %v1936_v2, %v1762_v54  ;;  %v170_v54 = vld [vmem:[%s20359_s0 + $0x410] sm:$0xff] }
 0x103   :  { %v1420_v16 = vmax.f32 %v760_v3, %v775_v4  ;;  %v13489_v17 = vpop.f32.mrb[18].mxu0  ;;  %v2290_v20 = vrot.slane %v16764_v14, 2 }
 0x104   :  { %v1487_v22 = vmax.f32 %v1419_v62, %v1463_v11  ;;  %v1559_v23 = vrot.slane %v1421_v12, 1  ;;  %v784_v24 = vpop.f32.mrb[19].mxu0  ;;  %13647 = vmatmul.mubr.msk.f32.gmra.mrb[124].mxu0 %vm195_vm0, %v165_v5  ;;  %v790_v5 = vadd.f32 %v13489_v17, %v16640_v9 }
 0x105   :  { %v1511_v28 = vrot.slane %v1420_v16, 1  ;;  %v16781_v29 = vsel %vm1934_vm6, %v2290_v20, %v2291_v21  ;;  %13649 = vmatprep.mubr.msk.f32.mxu0 %vm195_vm0, %v166_v15  ;;  %v785_v37 = vadd.f32 %v16640_v9, %v784_v24 }
 0x106   :  { %v1607_v31 = vrot.slane %v1487_v22, 1  ;;  %v1631_v32 = vrot.slane %v1487_v22, 2  ;;  %v1583_v33 = vmax.f32 %v1421_v12, %v1559_v23  ;;  %13725 = vmatmul.mubr.msk.f32.vlgmr.msra.gmra.mrb[0].mxu1 %vm195_vm0, %v16781_v29  ;;  %v1655_v40 = vrot.slane %v1487_v22, 3 }
 0x107   :  { %v1535_v35 = vmax.f32 %v1420_v16, %v1511_v28  ;;  %v13492_v38 = vpop.f32.mrb[20].mxu0  ;;  %14711 = vmatpush3.bf16.msra.mxu1 %v16592_v59  ;;  %v172_v16 = vld [vmem:[%s20359_s0 + $0x420] sm:$0xff] }
 0x108   :  { %v1872_v41 = vsel %vm1869_vm1, %v1487_v22, %v1607_v31  ;;  %v1799_v42 = vrot.slane %v1583_v33, 1  ;;  %v1823_v43 = vrot.slane %v1583_v33, 2  ;;  %v794_v44 = vpop.f32.mrb[21].mxu0  ;;  %13650 = vmatmul.mubr.msk.f32.gmra.mrb[126].mxu0 %vm195_vm0, %v167_v30  ;;  %14713 = vmatprep.subr.bf16.mxu1 %v16772_v25  ;;  %v1847_v46 = vrot.slane %v1583_v33, 3  ;;  %v173_v30 = vld [vmem:[%s20359_s0 + $0x428] sm:$0xff] }
 0x109   :  { %v1885_v45 = vsel %vm1882_vm2, %v1872_v41, %v1631_v32  ;;  %v1691_v47 = vrot.slane %v1535_v35, 4  ;;  %v1715_v48 = vrot.slane %v1535_v35, 5  ;;  %13652 = vmatprep.mubr.msk.f32.mxu0 %vm195_vm0, %v168_v34  ;;  %v1739_v52 = vrot.slane %v1535_v35, 6  ;;  %v174_v34 = vld [vmem:[%s20359_s0 + $0x430] sm:$0xff] }
 0x10a   :  { %v1898_v50 = vsel %vm1895_vm3, %v1885_v45, %v1655_v40  ;;  %v1962_v51 = vsel %vm1869_vm1, %v1583_v33, %v1799_v42  ;;  %v800_v53 = vadd.f32 %v13492_v38, %v16640_v9  ;;  %v1763_v55 = vrot.slane %v1535_v35, 7 }
 0x10b   :  { %v1911_v56 = vsel %vm1908_vm4, %v1898_v50, %v1691_v47  ;;  %v795_v58 = vadd.f32 %v16640_v9, %v794_v44  ;;  %v13495_v60 = vpop.f32.mrb[22].mxu0  ;;  %v1974_v61 = vsel %vm1882_vm2, %v1962_v51, %v1823_v43  ;;  %14715 = vmatpush3.bf16.msra.mxu1 %v16772_v25 }
 0x10c   :  { %v1924_v62 = vsel %vm1921_vm5, %v1911_v56, %v1715_v48  ;;  %v1422_v63 = vmax.f32 %v785_v37, %v800_v53  ;;  %v810_v0 = vadd.f32 %v13495_v60, %v16640_v9  ;;  %v804_v2 = vpop.f32.mrb[23].mxu0  ;;  %13653 = vmatmul.mubr.msk.f32.gmra.mrb[128].mxu0 %vm195_vm0, %v169_v49  ;;  %v16818_v3 = vsel %vm1895_vm3, %v1974_v61, %v1847_v46  ;;  %v175_v49 = vld [vmem:[%s20359_s0 + $0x438] sm:$0xff] }
 0x10d   :  { %v1937_v4 = vsel %vm1934_vm6, %v1924_v62, %v1739_v52  ;;  %v805_v6 = vadd.f32 %v16640_v9, %v804_v2  ;;  %13655 = vmatprep.mubr.msk.f32.mxu0 %vm195_vm0, %v170_v54  ;;  %14717 = vmatprep.subr.bf16.mxu1 %v16794_v39  ;;  %v2294_v22 = vrot.slane %v16818_v3, 2  ;;  %v176_v54 = vld [vmem:[%s20359_s0 + $0x440] sm:$0xff] }
 0x10e   :  { %v16829_v11 = vsel %vm1947_vm7, %v1937_v4, %v1763_v55  ;;  %v1464_v12 = vrot.slane %v1422_v63, 1  ;;  %v1424_v15 = vmax.f32 %v795_v58, %v810_v0 }
 0x10f   :  { %v1423_v17 = vmax.f32 %v790_v5, %v805_v6  ;;  %v13498_v20 = vpop.f32.mrb[24].mxu0  ;;  %v2293_v21 = vrot.slane %v16829_v11, 2 }
 0x110   :  { %v1488_v23 = vmax.f32 %v1422_v63, %v1464_v12  ;;  %v1560_v24 = vrot.slane %v1424_v15, 1  ;;  %v814_v26 = vpop.f32.mrb[25].mxu0  ;;  %13656 = vmatmul.mubr.msk.f32.gmra.mrb[130].mxu0 %vm195_vm0, %v171_v7  ;;  %v820_v6 = vadd.f32 %v13498_v20, %v16640_v9  ;;  %v177_v12 = vld [vmem:[%s20359_s0 + $0x448] sm:$0xff]  ;;  %v1998_v20 = vld [vmem:[%s20362_s3 + $0x10] sm:$0xff] }
 0x111   :  { %v1512_v27 = vrot.slane %v1423_v17, 1  ;;  %v16838_v28 = vsel %vm1934_vm6, %v2293_v21, %v2294_v22  ;;  %13658 = vmatprep.mubr.msk.f32.mxu0 %vm195_vm0, %v172_v16  ;;  %v815_v37 = vadd.f32 %v16640_v9, %v814_v26  ;;  %v178_v21 = vld [vmem:[%s20359_s0 + $0x450] sm:$0xff]  ;;  %v2016_v22 = vrot.slane %v16710_v18, 1 }
 0x112   :  { %v1608_v31 = vrot.slane %v1488_v23, 1  ;;  %v1632_v32 = vrot.slane %v1488_v23, 2  ;;  %v1584_v33 = vmax.f32 %v1424_v15, %v1560_v24  ;;  %13727 = vmatprep.mubr.msk.f32.mxu1 %vm195_vm0, %v16838_v28  ;;  %v1656_v40 = vrot.slane %v1488_v23, 3 }
 0x113   :  { %v1536_v35 = vmax.f32 %v1423_v17, %v1512_v27  ;;  %v13501_v38 = vpop.f32.mrb[26].mxu0 }
 0x114   :  { %v1873_v41 = vsel %vm1869_vm1, %v1488_v23, %v1608_v31  ;;  %v1800_v42 = vrot.slane %v1584_v33, 1  ;;  %v1824_v43 = vrot.slane %v1584_v33, 2  ;;  %v824_v44 = vpop.f32.mrb[27].mxu0  ;;  %13659 = vmatmul.mubr.msk.f32.gmra.mrb[132].mxu0 %vm195_vm0, %v173_v30  ;;  %v1848_v46 = vrot.slane %v1584_v33, 3  ;;  %v1999_v23 = vld [vmem:[%s20362_s3 + $0x18] sm:$0xff] }
 0x115   :  { %v1886_v45 = vsel %vm1882_vm2, %v1873_v41, %v1632_v32  ;;  %v1692_v47 = vrot.slane %v1536_v35, 4  ;;  %v1716_v48 = vrot.slane %v1536_v35, 5  ;;  %13661 = vmatprep.mubr.msk.f32.mxu0 %vm195_vm0, %v174_v34  ;;  %v1740_v52 = vrot.slane %v1536_v35, 6 }
 0x116   :  { %v1899_v50 = vsel %vm1895_vm3, %v1886_v45, %v1656_v40  ;;  %v1963_v51 = vsel %vm1869_vm1, %v1584_v33, %v1800_v42  ;;  %v830_v53 = vadd.f32 %v13501_v38, %v16640_v9  ;;  %v1764_v55 = vrot.slane %v1536_v35, 7  ;;  %v179_v38 = vld [vmem:[%s20359_s0 + $0x458] sm:$0xff] }
 0x117   :  { %v1912_v56 = vsel %vm1908_vm4, %v1899_v50, %v1692_v47  ;;  %v825_v58 = vadd.f32 %v16640_v9, %v824_v44  ;;  %v13504_v60 = vpop.f32.mrb[28].mxu0  ;;  %v1975_v61 = vsel %vm1882_vm2, %v1963_v51, %v1824_v43  ;;  %v2017_v34 = vrot.slane %v16700_v10, 1  ;;  %v180_v44 = vld [vmem:[%s20359_s0 + $0x460] sm:$0xff] }
 0x118   :  { %v1925_v62 = vsel %vm1921_vm5, %v1912_v56, %v1716_v48  ;;  %v1425_v63 = vmax.f32 %v815_v37, %v830_v53  ;;  %v840_v0 = vadd.f32 %v13504_v60, %v16640_v9  ;;  %v834_v2 = vpop.f32.mrb[29].mxu0  ;;  %13662 = vmatmul.mubr.msk.f32.gmra.mrb[134].mxu0 %vm195_vm0, %v175_v49  ;;  %v16870_v4 = vsel %vm1895_vm3, %v1975_v61, %v1848_v46 }
 0x119   :  { %v1938_v5 = vsel %vm1934_vm6, %v1925_v62, %v1740_v52  ;;  %v835_v7 = vadd.f32 %v16640_v9, %v834_v2  ;;  %13664 = vmatprep.mubr.msk.f32.mxu0 %vm195_vm0, %v176_v54  ;;  %v2297_v30 = vrot.slane %v16870_v4, 2  ;;  %v16903_v40 = vpack.c.bf16 %v1999_v23, %v1998_v20  ;;  %v181_v62 = vld [vmem:[%s20359_s0 + $0x468] sm:$0xff] }
 0x11a   :  { %v16880_v15 = vsel %vm1947_vm7, %v1938_v5, %v1764_v55  ;;  %v1465_v16 = vrot.slane %v1425_v63, 1  ;;  %v1427_v17 = vmax.f32 %v825_v58, %v840_v0  ;;  %v2018_v45 = vsel %vm1947_vm7, %v2016_v22, %v2017_v34 }
 0x11b   :  { %v1426_v24 = vmax.f32 %v820_v6, %v835_v7  ;;  %v13507_v26 = vpop.f32.mrb[30].mxu0  ;;  %v2296_v27 = vrot.slane %v16880_v15, 2  ;;  %v2019_v49 = vrot.slane %v16764_v14, 1  ;;  %v2020_v50 = vrot.slane %v16748_v1, 1  ;;  %v182_v6 = vld [vmem:[%s20359_s0 + $0x470] sm:$0xff] }
 0x11c   :  { %v1489_v31 = vmax.f32 %v1425_v63, %v1465_v16  ;;  %v1561_v32 = vrot.slane %v1427_v17, 1  ;;  %v844_v33 = vpop.f32.mrb[31].mxu0  ;;  %13665 = vmatmul.mubr.msk.f32.gmra.mrb[136].mxu0 %vm195_vm0, %v177_v12  ;;  %v2022_v34 = vrot.slane %v16829_v11, 1 }
 0x11d   :  { %v1513_v35 = vrot.slane %v1426_v24, 1  ;;  %v16897_v37 = vsel %vm1934_vm6, %v2296_v27, %v2297_v30  ;;  %13667 = vmatprep.mubr.msk.f32.mxu0 %vm195_vm0, %v178_v21  ;;  %v845_v47 = vadd.f32 %v16640_v9, %v844_v33  ;;  %v183_v33 = vld [vmem:[%s20359_s0 + $0x478] sm:$0xff] }
 0x11e   :  { %v1609_v41 = vrot.slane %v1489_v31, 1  ;;  %v1633_v42 = vrot.slane %v1489_v31, 2  ;;  %v1585_v43 = vmax.f32 %v1427_v17, %v1561_v32  ;;  %13728 = vmatmul.mubr.msk.f32.gmra.mrb[2].mxu1 %vm195_vm0, %v16897_v37  ;;  %v1657_v51 = vrot.slane %v1489_v31, 3 }
 0x11f   :  { %v1537_v46 = vmax.f32 %v1426_v24, %v1513_v35  ;;  %v13510_v48 = vpop.f32.mrb[32].mxu0 }
 0x120   :  { %v1874_v52 = vsel %vm1869_vm1, %v1489_v31, %v1609_v41  ;;  %v1801_v53 = vrot.slane %v1585_v43, 1  ;;  %v1825_v54 = vrot.slane %v1585_v43, 2  ;;  %v854_v55 = vpop.f32.mrb[33].mxu0  ;;  %13668 = vmatmul.mubr.msk.f32.gmra.mrb[138].mxu0 %vm195_vm0, %v179_v38  ;;  %v1849_v58 = vrot.slane %v1585_v43, 3 }
 0x121   :  { %v1887_v56 = vsel %vm1882_vm2, %v1874_v52, %v1633_v42  ;;  %v1693_v60 = vrot.slane %v1537_v46, 4  ;;  %v1717_v61 = vrot.slane %v1537_v46, 5  ;;  %13670 = vmatprep.mubr.msk.f32.mxu0 %vm195_vm0, %v180_v44  ;;  %v1741_v2 = vrot.slane %v1537_v46, 6 }
 0x122   :  { %v1900_v63 = vsel %vm1895_vm3, %v1887_v56, %v1657_v51  ;;  %v1964_v0 = vsel %vm1869_vm1, %v1585_v43, %v1801_v53  ;;  %v860_v5 = vadd.f32 %v13510_v48, %v16640_v9  ;;  %v1765_v12 = vrot.slane %v1537_v46, 7 }
 0x123   :  { %v1976_v7 = vsel %vm1882_vm2, %v1964_v0, %v1825_v54  ;;  %v1913_v16 = vsel %vm1908_vm4, %v1900_v63, %v1693_v60  ;;  %v855_v17 = vadd.f32 %v16640_v9, %v854_v55  ;;  %v13513_v21 = vpop.f32.mrb[34].mxu0  ;;  %v850_v31 = vadd.f32 %v13507_v26, %v16640_v9 }
 0x124   :  { %v1926_v22 = vsel %vm1921_vm5, %v1913_v16, %v1717_v61  ;;  %v1428_v20 = vmax.f32 %v845_v47, %v860_v5  ;;  %v870_v23 = vadd.f32 %v13513_v21, %v16640_v9  ;;  %v864_v24 = vpop.f32.mrb[35].mxu0  ;;  %13671 = vmatmul.mubr.msk.f32.gmra.mrb[140].mxu0 %vm195_vm0, %v181_v62  ;;  %v16934_v27 = vsel %vm1895_vm3, %v1976_v7, %v1849_v58 }
 0x125   :  { %v1939_v30 = vsel %vm1934_vm6, %v1926_v22, %v1741_v2  ;;  %v865_v32 = vadd.f32 %v16640_v9, %v864_v24  ;;  %13673 = vmatprep.mubr.msk.f32.mxu0 %vm195_vm0, %v182_v6  ;;  %v2025_v42 = vrot.slane %v16880_v15, 1  ;;  %v2300_v46 = vrot.slane %v16934_v27, 2 }
 0x126   :  { %v16945_v35 = vsel %vm1947_vm7, %v1939_v30, %v1765_v12  ;;  %v1466_v38 = vrot.slane %v1428_v20, 1  ;;  %v1430_v41 = vmax.f32 %v855_v17, %v870_v23  ;;  %v16953_v53 = vsel %vm1947_vm7, %v2019_v49, %v2020_v50 }
 0x127   :  { %20527 = vst [vmem:[#allocation9_spill] sm:$0xff] %v16945_v35  ;;  %v1429_v43 = vmax.f32 %v850_v31, %v865_v32  ;;  %v13516_v44 = vpop.f32.mrb[36].mxu0  ;;  %v2299_v26 = vrot.slane %v16945_v35, 2  ;;  %v2028_v47 = vrot.slane %v16945_v35, 1  ;;  %v2023_v54 = vrot.slane %v16818_v3, 1 }
 0x128   :  { %v1490_v48 = vmax.f32 %v1428_v20, %v1466_v38  ;;  %v1562_v51 = vrot.slane %v1430_v41, 1  ;;  %v874_v52 = vpop.f32.mrb[37].mxu0  ;;  %13674 = vmatmul.mubr.msk.f32.gmra.mrb[142].mxu0 %vm195_vm0, %v183_v33  ;;  %v2026_v58 = vrot.slane %v16870_v4, 1  ;;  %v2029_v60 = vrot.slane %v16934_v27, 1 }
 0x129   :  { %v1514_v55 = vrot.slane %v1429_v43, 1  ;;  %13684 = vmatprep.mubr.msk.f32.mxu0 %vm195_vm0, %v2018_v45  ;;  %v16958_v56 = vsel %vm1934_vm6, %v2299_v26, %v2300_v46  ;;  %v16965_v49 = vsel %vm1947_vm7, %v2022_v34, %v2023_v54  ;;  %v875_v0 = vadd.f32 %v16640_v9, %v874_v52 }
 0x12a   :  { %20528 = vst [vmem:[#allocation10_spill] sm:$0xff] %v16958_v56  ;;  %v1610_v61 = vrot.slane %v1490_v48, 1  ;;  %v1634_v62 = vrot.slane %v1490_v48, 2  ;;  %v1586_v63 = vmax.f32 %v1430_v41, %v1562_v51  ;;  %13730 = vmatprep.mubr.msk.f32.mxu1 %vm195_vm0, %v16958_v56  ;;  %v16969_v2 = vsel %vm1947_vm7, %v2025_v42, %v2026_v58 }
 0x12b   :  { %v1538_v50 = vmax.f32 %v1429_v43, %v1514_v55  ;;  %v13519_v45 = vpop.f32.mrb[38].mxu0  ;;  %20529 = vst [vmem:[#allocation11_spill] sm:$0xff] %v16969_v2  ;;  %v16972_v5 = vsel %vm1947_vm7, %v2028_v47, %v2029_v60  ;;  %v1658_v6 = vrot.slane %v1490_v48, 3  ;;  %v880_v52 = vadd.f32 %v13516_v44, %v16640_v9 }
 0x12c   :  { %20530 = vst [vmem:[#allocation12_spill] sm:$0xff] %v16972_v5  ;;  %v1875_v7 = vsel %vm1869_vm1, %v1490_v48, %v1610_v61  ;;  %v1802_v12 = vrot.slane %v1586_v63, 1  ;;  %v1826_v16 = vrot.slane %v1586_v63, 2  ;;  %v884_v17 = vpop.f32.mrb[39].mxu0  ;;  %13685 = vmatmul.mubr.msk.f32.vlgmr.msra.gmra.mrb[144].mxu0 %vm195_vm0, %v16953_v53  ;;  %v1850_v22 = vrot.slane %v1586_v63, 3 }
 0x12d   :  { %v1888_v21 = vsel %vm1882_vm2, %v1875_v7, %v1634_v62  ;;  %v1694_v20 = vrot.slane %v1538_v50, 4  ;;  %v1718_v23 = vrot.slane %v1538_v50, 5  ;;  %13687 = vmatprep.mubr.msk.f32.mxu0 %vm195_vm0, %v16965_v49  ;;  %14695 = vmatpush3.bf16.msra.mxu0 %v16587_v57  ;;  %v1742_v31 = vrot.slane %v1538_v50, 6 }
 0x12e   :  { %v1901_v24 = vsel %vm1895_vm3, %v1888_v21, %v1658_v6  ;;  %v1965_v30 = vsel %vm1869_vm1, %v1586_v63, %v1802_v12  ;;  %v890_v32 = vadd.f32 %v13519_v45, %v16640_v9  ;;  %14697 = vmatprep.subr.bf16.mxu0 %v16903_v40  ;;  %v1766_v34 = vrot.slane %v1538_v50, 7 }
 0x12f   :  { %v1977_v33 = vsel %vm1882_vm2, %v1965_v30, %v1826_v16  ;;  %v1914_v38 = vsel %vm1908_vm4, %v1901_v24, %v1694_v20  ;;  %v885_v41 = vadd.f32 %v16640_v9, %v884_v17  ;;  %v13522_v42 = vpop.f32.mrb[40].mxu0 }
 0x130   :  { %v1927_v43 = vsel %vm1921_vm5, %v1914_v38, %v1718_v23  ;;  %v1431_v26 = vmax.f32 %v875_v0, %v890_v32  ;;  %v900_v46 = vadd.f32 %v13522_v42, %v16640_v9  ;;  %v894_v47 = vpop.f32.mrb[41].mxu0  ;;  %13688 = vmatmul.mubr.msk.f32.gmra.mrb[146].mxu0 %vm195_vm0, %v16969_v2  ;;  %v16993_v48 = vsel %vm1895_vm3, %v1977_v33, %v1850_v22 }
 0x131   :  { %v1940_v51 = vsel %vm1934_vm6, %v1927_v43, %v1742_v31  ;;  %v895_v54 = vadd.f32 %v16640_v9, %v894_v47  ;;  %13690 = vmatprep.mubr.msk.f32.mxu0 %vm195_vm0, %v16972_v5  ;;  %14699 = vmatpush3.bf16.msra.mxu0 %v16903_v40  ;;  %v2032_v61 = vrot.slane %v16993_v48, 1  ;;  %v2303_v0 = vrot.slane %v16993_v48, 2 }
 0x132   :  { %v17002_v55 = vsel %vm1947_vm7, %v1940_v51, %v1766_v34  ;;  %v1467_v58 = vrot.slane %v1431_v26, 1  ;;  %v1433_v60 = vmax.f32 %v885_v41, %v900_v46  ;;  %14885 = vmatprep.subr.bf16.mxu0 %v16192_v19 }
 0x133   :  { %20531 = vst [vmem:[#allocation13_spill] sm:$0xff] %v17002_v55  ;;  %v1432_v62 = vmax.f32 %v880_v52, %v895_v54  ;;  %v13525_v63 = vpop.f32.mrb[42].mxu0  ;;  %v2031_v44 = vrot.slane %v17002_v55, 1  ;;  %v2302_v50 = vrot.slane %v17002_v55, 2 }
 0x134   :  { %v1491_v45 = vmax.f32 %v1431_v26, %v1467_v58  ;;  %v1563_v6 = vrot.slane %v1433_v60, 1  ;;  %v904_v7 = vpop.f32.mrb[43].mxu0 }
 0x135   :  { %v1515_v12 = vrot.slane %v1432_v62, 1  ;;  %v17010_v16 = vsel %vm1947_vm7, %v2031_v44, %v2032_v61  ;;  %v17013_v17 = vsel %vm1934_vm6, %v2302_v50, %v2303_v0  ;;  %v905_v24 = vadd.f32 %v16640_v9, %v904_v7 }
 0x136   :  { %20532 = vst [vmem:[#allocation14_spill] sm:$0xff] %v17010_v16  ;;  %20533 = vst [vmem:[#allocation15_spill] sm:$0xff] %v17013_v17  ;;  %v1611_v21 = vrot.slane %v1491_v45, 1  ;;  %v1635_v22 = vrot.slane %v1491_v45, 2  ;;  %v1587_v20 = vmax.f32 %v1433_v60, %v1563_v6  ;;  %13691 = vmatmul.mubr.msk.f32.gmra.mrb[148].mxu0 %vm195_vm0, %v17010_v16  ;;  %13731 = vmatmul.mubr.msk.f32.gmra.mrb[4].mxu1 %vm195_vm0, %v17013_v17  ;;  %v1659_v31 = vrot.slane %v1491_v45, 3 }
 0x137   :  { %v1539_v23 = vmax.f32 %v1432_v62, %v1515_v12  ;;  %v13528_v30 = vpop.f32.mrb[44].mxu0  ;;  %v910_v12 = vadd.f32 %v13525_v63, %v16640_v9  ;;  %v11894_v63 = vld [vmem:[%s20362_s3 + $0x90] sm:$0xff] }
 0x138   :  { %v1876_v32 = vsel %vm1869_vm1, %v1491_v45, %v1611_v21  ;;  %v1803_v33 = vrot.slane %v1587_v20, 1  ;;  %v1827_v34 = vrot.slane %v1587_v20, 2  ;;  %v914_v38 = vpop.f32.mrb[45].mxu0  ;;  %v1851_v42 = vrot.slane %v1587_v20, 3 }
 0x139   :  { %v1889_v41 = vsel %vm1882_vm2, %v1876_v32, %v1635_v22  ;;  %v1695_v43 = vrot.slane %v1539_v23, 4  ;;  %v1719_v26 = vrot.slane %v1539_v23, 5  ;;  %v1743_v51 = vrot.slane %v1539_v23, 6 }
 0x13a   :  { %v1902_v46 = vsel %vm1895_vm3, %v1889_v41, %v1659_v31  ;;  %v1966_v47 = vsel %vm1869_vm1, %v1587_v20, %v1803_v33  ;;  %v920_v52 = vadd.f32 %v13528_v30, %v16640_v9  ;;  %v1767_v58 = vrot.slane %v1539_v23, 7 }
 0x13b   :  { %v1978_v54 = vsel %vm1882_vm2, %v1966_v47, %v1827_v34  ;;  %v1915_v60 = vsel %vm1908_vm4, %v1902_v46, %v1695_v43  ;;  %v915_v61 = vadd.f32 %v16640_v9, %v914_v38  ;;  %v13531_v62 = vpop.f32.mrb[46].mxu0  ;;  %v11895_v38 = vld [vmem:[%s20362_s3 + $0x98] sm:$0xff] }
 0x13c   :  { %v1928_v44 = vsel %vm1921_vm5, %v1915_v60, %v1719_v26  ;;  %v1434_v50 = vmax.f32 %v905_v24, %v920_v52  ;;  %v930_v0 = vadd.f32 %v13531_v62, %v16640_v9  ;;  %v924_v45 = vpop.f32.mrb[47].mxu0  ;;  %v17031_v6 = vsel %vm1895_vm3, %v1978_v54, %v1851_v42 }
 0x13d   :  { %v1941_v7 = vsel %vm1934_vm6, %v1928_v44, %v1743_v51  ;;  %v925_v21 = vadd.f32 %v16640_v9, %v924_v45  ;;  %v2035_v30 = vrot.slane %v17031_v6, 1  ;;  %v2306_v34 = vrot.slane %v17031_v6, 2 }
 0x13e   :  { %v17037_v22 = vsel %vm1947_vm7, %v1941_v7, %v1767_v58  ;;  %v1468_v20 = vrot.slane %v1434_v50, 1  ;;  %v1436_v23 = vmax.f32 %v915_v61, %v930_v0  ;;  %v17059_v58 = vpack.c.bf16 %v11895_v38, %v11894_v63 }
 0x13f   :  { %20534 = vst [vmem:[#allocation16_spill] sm:$0xff] %v17037_v22  ;;  %v1435_v24 = vmax.f32 %v910_v12, %v925_v21  ;;  %v13534_v31 = vpop.f32.mrb[48].mxu0  ;;  %v2034_v32 = vrot.slane %v17037_v22, 1  ;;  %v2305_v33 = vrot.slane %v17037_v22, 2  ;;  %v2445_v44 = vrot.slane %v16710_v18, 3 }
 0x140   :  { %v1492_v41 = vmax.f32 %v1434_v50, %v1468_v20  ;;  %v1564_v42 = vrot.slane %v1436_v23, 1  ;;  %v934_v43 = vpop.f32.mrb[49].mxu0  ;;  %20536 = vst [vmem:[#allocation18_spill] sm:$0xff] %v17059_v58  ;;  %v2446_v50 = vrot.slane %v16700_v10, 3 }
 0x141   :  { %v1516_v26 = vrot.slane %v1435_v24, 1  ;;  %v17050_v46 = vsel %vm1947_vm7, %v2034_v32, %v2035_v30  ;;  %v17053_v47 = vsel %vm1934_vm6, %v2305_v33, %v2306_v34  ;;  %v935_v61 = vadd.f32 %v16640_v9, %v934_v43 }
 0x142   :  { %20535 = vst [vmem:[#allocation17_spill] sm:$0xff] %v17053_v47  ;;  %v1612_v51 = vrot.slane %v1492_v41, 1  ;;  %v1636_v52 = vrot.slane %v1492_v41, 2  ;;  %v1588_v54 = vmax.f32 %v1436_v23, %v1564_v42  ;;  %13693 = vmatprep.mubr.msk.f32.mxu0 %vm195_vm0, %v17050_v46  ;;  %13733 = vmatprep.mubr.msk.f32.mxu1 %vm195_vm0, %v17053_v47  ;;  %v1660_v0 = vrot.slane %v1492_v41, 3 }
 0x143   :  { %v1540_v60 = vmax.f32 %v1435_v24, %v1516_v26  ;;  %v13537_v62 = vpop.f32.mrb[50].mxu0 }
 0x144   :  { %v1877_v45 = vsel %vm1869_vm1, %v1492_v41, %v1612_v51  ;;  %v1804_v7 = vrot.slane %v1588_v54, 1  ;;  %v1828_v12 = vrot.slane %v1588_v54, 2  ;;  %v944_v21 = vpop.f32.mrb[51].mxu0  ;;  %v1852_v23 = vrot.slane %v1588_v54, 3 }
 0x145   :  { %v1890_v20 = vsel %vm1882_vm2, %v1877_v45, %v1636_v52  ;;  %v1696_v30 = vrot.slane %v1540_v60, 4  ;;  %v1720_v32 = vrot.slane %v1540_v60, 5  ;;  %v1744_v34 = vrot.slane %v1540_v60, 6 }
 0x146   :  { %v1903_v24 = vsel %vm1895_vm3, %v1890_v20, %v1660_v0  ;;  %v1967_v33 = vsel %vm1869_vm1, %v1588_v54, %v1804_v7  ;;  %v950_v63 = vadd.f32 %v13537_v62, %v16640_v9  ;;  %v1768_v42 = vrot.slane %v1540_v60, 7 }
 0x147   :  { %v1979_v38 = vsel %vm1882_vm2, %v1967_v33, %v1828_v12  ;;  %v1916_v41 = vsel %vm1908_vm4, %v1903_v24, %v1696_v30  ;;  %v945_v43 = vadd.f32 %v16640_v9, %v944_v21  ;;  %v13540_v26 = vpop.f32.mrb[52].mxu0  ;;  %v940_v62 = vadd.f32 %v13534_v31, %v16640_v9 }
 0x148   :  { %v1929_v51 = vsel %vm1921_vm5, %v1916_v41, %v1720_v32  ;;  %v1437_v52 = vmax.f32 %v935_v61, %v950_v63  ;;  %v960_v45 = vadd.f32 %v13540_v26, %v16640_v9  ;;  %v954_v25 = vpop.f32.mrb[53].mxu0  ;;  %v17075_v0 = vsel %vm1895_vm3, %v1979_v38, %v1852_v23  ;;  %v11904_v38 = vld [vmem:[%s20362_s3 + $0xa0] sm:$0xff] }
 0x149   :  { %v1942_v54 = vsel %vm1934_vm6, %v1929_v51, %v1744_v34  ;;  %v955_v60 = vadd.f32 %v16640_v9, %v954_v25  ;;  %v2448_v7 = vrot.slane %v16764_v14, 3  ;;  %v2038_v61 = vrot.slane %v17075_v0, 1 }
 0x14a   :  { %v17082_v12 = vsel %vm1947_vm7, %v1942_v54, %v1768_v42  ;;  %v1469_v21 = vrot.slane %v1437_v52, 1  ;;  %v17084_v20 = vmax.f32 %v945_v43, %v960_v45  ;;  %v2309_v31 = vrot.slane %v17075_v0, 2  ;;  %v11905_v42 = vld [vmem:[%s20362_s3 + $0xa8] sm:$0xff] }
 0x14b   :  { %20537 = vst [vmem:[#allocation19_spill] sm:$0xff] %v17082_v12  ;;  %v1438_v30 = vmax.f32 %v940_v62, %v955_v60  ;;  %v13543_v32 = vpop.f32.mrb[54].mxu0  ;;  %v2037_v23 = vrot.slane %v17082_v12, 1  ;;  %v2308_v24 = vrot.slane %v17082_v12, 2  ;;  %v2447_v25 = vsel %vm1921_vm5, %v2445_v44, %v2446_v50 }
 0x14c   :  { %v1493_v33 = vmax.f32 %v1437_v52, %v1469_v21  ;;  %v964_v9 = vpop.f32.mrb[55].mxu0  ;;  %v2451_v34 = vrot.slane %v16829_v11, 3  ;;  %v2454_v63 = vrot.slane %v16880_v15, 3  ;;  %v2449_v44 = vrot.slane %v16748_v1, 3 }
 0x14d   :  { %v1517_v41 = vrot.slane %v1438_v30, 1  ;;  %v17100_v43 = vsel %vm1947_vm7, %v2037_v23, %v2038_v61  ;;  %v17103_v26 = vsel %vm1934_vm6, %v2308_v24, %v2309_v31  ;;  %v2452_v52 = vrot.slane %v16818_v3, 3 }
 0x14e   :  { %20538 = vst [vmem:[#allocation20_spill] sm:$0xff] %v17103_v26  ;;  %v1613_v50 = vrot.slane %v1493_v33, 1  ;;  %v1637_v51 = vrot.slane %v1493_v33, 2  ;;  %13694 = vmatmul.mubr.msk.f32.gmra.mrb[150].mxu0 %vm195_vm0, %v17100_v43  ;;  %13734 = vmatmul.mubr.msk.f32.gmra.mrb[6].mxu1 %vm195_vm0, %v17103_v26  ;;  %v2455_v45 = vrot.slane %v16870_v4, 3  ;;  %v17116_v60 = vsel %vm1921_vm5, %v2448_v7, %v2449_v44 }
 0x14f   :  { %v1541_v54 = vmax.f32 %v1438_v30, %v1517_v41  ;;  %v13546_v62 = vpop.f32.mrb[56].mxu0  ;;  %13704 = vmatprep.mubr.msk.f32.mxu0 %vm195_vm0, %v16710_v18  ;;  %13744 = vmatprep.mubr.msk.f32.mxu1 %vm195_vm0, %v2447_v25  ;;  %v2457_v21 = vrot.slane %v16945_v35, 3  ;;  %v17119_v61 = vpack.c.bf16 %v11905_v42, %v11904_v38  ;;  %v1661_v23 = vrot.slane %v1493_v33, 3  ;;  %v17134_v38 = vld [vmem:[%s20361_s2] ss:$0 sm:$0xff] }
 0x150   :  { %v1878_v24 = vsel %vm1869_vm1, %v1493_v33, %v1613_v50  ;;  %v974_v31 = vpop.f32.mrb[57].mxu0  ;;  %v17123_v59 = vsel %vm1921_vm5, %v2451_v34, %v2452_v52  ;;  %v17126_v30 = vsel %vm1921_vm5, %v2454_v63, %v2455_v45  ;;  %v2458_v7 = vrot.slane %v16934_v27, 3 }
 0x151   :  { %20539 = vst [vmem:[#allocation21_spill] sm:$0xff] %v17119_v61  ;;  %20540 = vst [vmem:[#allocation22_spill] sm:$0xff] %v17126_v30  ;;  %v1891_v41 = vsel %vm1882_vm2, %v1878_v24, %v1637_v51  ;;  %v1697_v25 = vrot.slane %v1541_v54, 4  ;;  %v1721_v13 = vrot.slane %v1541_v54, 5  ;;  %v965_v33 = vadd.f32 %v17134_v38, %v964_v9 }
 0x152   :  { %v1904_v44 = vsel %vm1895_vm3, %v1891_v41, %v1661_v23  ;;  %v980_v34 = vadd.f32 %v17134_v38, %v13546_v62  ;;  %13705 = vmatmul.mubr.msk.f32.vlgmr.msra.gmra.mrb[144].mxu0 %vm195_vm0, %v16764_v14  ;;  %13745 = vmatmul.mubr.msk.f32.vlgmr.msra.gmra.mrb[0].mxu1 %vm195_vm0, %v17116_v60  ;;  %v2603_v63 = vrot.slane %v16710_v18, 4  ;;  %v1745_v42 = vrot.slane %v1541_v54, 6 }
 0x153   :  { %v1769_v50 = vrot.slane %v1541_v54, 7  ;;  %v1917_v51 = vsel %vm1908_vm4, %v1904_v44, %v1697_v25  ;;  %v13549_v52 = vpop.f32.mrb[58].mxu0  ;;  %13707 = vmatprep.mubr.msk.f32.mxu0 %vm195_vm0, %v16829_v11  ;;  %13747 = vmatprep.mubr.msk.f32.mxu1 %vm195_vm0, %v17123_v59  ;;  %v17149_v9 = vsel %vm1921_vm5, %v2457_v21, %v2458_v7  ;;  %v975_v23 = vadd.f32 %v17134_v38, %v974_v31  ;;  %v11907_v7 = vld [vmem:[%s20362_s3 + $0xb8] sm:$0xff] }
 0x154   :  { %20541 = vst [vmem:[#allocation23_spill] sm:$0xff] %v17149_v9  ;;  %v1930_v45 = vsel %vm1921_vm5, %v1917_v51, %v1721_v13  ;;  %v1440_v62 = vmax.f32 %v965_v33, %v980_v34  ;;  %v990_v18 = vadd.f32 %v17134_v38, %v13549_v52  ;;  %v984_v54 = vpop.f32.mrb[59].mxu0  ;;  %14719 = vmatpush3.bf16.msra.mxu1 %v16794_v39  ;;  %v2460_v44 = vrot.slane %v17002_v55, 3 }
 0x155   :  { %v1943_v24 = vsel %vm1934_vm6, %v1930_v45, %v1745_v42  ;;  %v970_v41 = vadd.f32 %v17134_v38, %v13543_v32  ;;  %v985_v25 = vadd.f32 %v17134_v38, %v984_v54  ;;  %14721 = vmatprep.subr.bf16.mxu1 %v17059_v58  ;;  %14887 = vmatpush3.bf16.msra.mxu0 %v16192_v19  ;;  %v2463_v31 = vrot.slane %v17037_v22, 3  ;;  %v11906_v32 = vld [vmem:[%s20362_s3 + $0xb0] sm:$0xff] }
 0x156   :  { %v1470_v13 = vrot.slane %v1440_v62, 1  ;;  %v17161_v21 = vmax.f32 %v975_v23, %v990_v18  ;;  %13708 = vmatmul.mubr.msk.f32.gmra.mrb[146].mxu0 %vm195_vm0, %v16880_v15  ;;  %13748 = vmatmul.mubr.msk.f32.gmra.mrb[2].mxu1 %vm195_vm0, %v17126_v30  ;;  %v17175_v19 = vsel %vm1947_vm7, %v1943_v24, %v1769_v50  ;;  %v2461_v42 = vrot.slane %v16993_v48, 3 }
 0x157   :  { %20543 = vst [vmem:[#allocation25_spill] sm:$0xff] %v17175_v19  ;;  %v1441_v33 = vmax.f32 %v970_v41, %v985_v25  ;;  %v13552_v34 = vpop.f32.mrb[60].mxu0  ;;  %13710 = vmatprep.mubr.msk.f32.mxu0 %vm195_vm0, %v16945_v35  ;;  %13750 = vmatprep.mubr.msk.f32.mxu1 %vm195_vm0, %v17149_v9  ;;  %v2464_v45 = vrot.slane %v17031_v6, 3  ;;  %v2604_v23 = vrot.slane %v16700_v10, 4  ;;  %v2466_v54 = vrot.slane %v17082_v12, 3 }
 0x158   :  { %20542 = vst [vmem:[#allocation24_spill] sm:$0xff] %v17161_v21  ;;  %v1494_v51 = vmax.f32 %v1440_v62, %v1470_v13  ;;  %v994_v52 = vpop.f32.mrb[61].mxu0  ;;  %14723 = vmatpush3.bf16.msra.mxu1 %v17059_v58  ;;  %14889 = vmatprep.subr.bf16.mxu0 %v16506_v36  ;;  %v17187_v18 = vsel %vm1921_vm5, %v2460_v44, %v2461_v42 }
 0x159   :  { %v1518_v50 = vrot.slane %v1441_v33, 1  ;;  %20544 = vst [vmem:[#allocation26_spill] sm:$0xff] %v17187_v18  ;;  %14725 = vmatprep.subr.bf16.mxu1 %v17119_v61  ;;  %v17191_v24 = vpack.c.bf16 %v11907_v7, %v11906_v32  ;;  %14891 = vmatpush3.bf16.msra.mxu0 %v16506_v36  ;;  %v17199_v10 = vsel %vm1921_vm5, %v2463_v31, %v2464_v45  ;;  %v2467_v36 = vrot.slane %v17075_v0, 3 }
 0x15a   :  { %v1614_v62 = vrot.slane %v1494_v51, 1  ;;  %v1638_v41 = vrot.slane %v1494_v51, 2  ;;  %13711 = vmatmul.mubr.msk.f32.gmra.mrb[148].mxu0 %vm195_vm0, %v17002_v55  ;;  %13751 = vmatmul.mubr.msk.f32.gmra.mrb[4].mxu1 %vm195_vm0, %v17187_v18  ;;  %20546 = vst [vmem:[#allocation28_spill] sm:$0xff] %v17199_v10  ;;  %v2605_v25 = vsel %vm1908_vm4, %v2603_v63, %v2604_v23  ;;  %v2606_v32 = vrot.slane %v16764_v14, 4 }
 0x15b   :  { %20545 = vst [vmem:[#allocation27_spill] sm:$0xff] %v17191_v24  ;;  %v1542_v44 = vmax.f32 %v1441_v33, %v1518_v50  ;;  %v13555_v13 = vpop.f32.mrb[62].mxu0  ;;  %13713 = vmatprep.mubr.msk.f32.mxu0 %vm195_vm0, %v17037_v22  ;;  %13753 = vmatprep.mubr.msk.f32.mxu1 %vm195_vm0, %v17199_v10  ;;  %v2609_v7 = vrot.slane %v16829_v11, 4  ;;  %v1662_v42 = vrot.slane %v1494_v51, 3  ;;  %v2607_v63 = vrot.slane %v16748_v1, 4 }
 0x15c   :  { %v1879_v31 = vsel %vm1869_vm1, %v1494_v51, %v1614_v62  ;;  %v1004_v45 = vpop.f32.mrb[63].mxu0  ;;  %v2610_v33 = vrot.slane %v16818_v3, 4  ;;  %14893 = vmatprep.subr.bf16.mxu0 %v16587_v57  ;;  %v17215_v39 = vsel %vm1921_vm5, %v2466_v54, %v2467_v36  ;;  %v995_v10 = vadd.f32 %v17134_v38, %v994_v52 }
 0x15d   :  { %v1892_v23 = vsel %vm1882_vm2, %v1879_v31, %v1638_v41  ;;  %v1698_v50 = vrot.slane %v1542_v44, 4  ;;  %v1722_v58 = vrot.slane %v1542_v44, 5  ;;  %20547 = vst [vmem:[#allocation29_spill] sm:$0xff] %v17215_v39  ;;  %v1010_v51 = vadd.f32 %v17134_v38, %v13555_v13 }
 0x15e   :  { %v1905_v21 = vsel %vm1895_vm3, %v1892_v23, %v1662_v42  ;;  %13714 = vmatmul.mubr.msk.f32.gmra.mrb[150].mxu0 %vm195_vm0, %v17082_v12  ;;  %13754 = vmatmul.mubr.msk.f32.gmra.mrb[6].mxu1 %vm195_vm0, %v17215_v39  ;;  %v17227_v54 = vsel %vm1908_vm4, %v2606_v32, %v2607_v63  ;;  %v17230_v62 = vsel %vm1908_vm4, %v2609_v7, %v2610_v33  ;;  %v2612_v52 = vrot.slane %v16880_v15, 4  ;;  %v11916_v32 = vld [vmem:[%s20362_s3 + $0xc0] sm:$0xff]  ;;  %v11917_v7 = vld [vmem:[%s20362_s3 + $0xc8] sm:$0xff] }
 0x15f   :  { %v1918_v1 = vsel %vm1908_vm4, %v1905_v21, %v1698_v50  ;;  %v13558_v3 = vpop.f32.mrb[64].mxu0  ;;  %13764 = vmatprep.mubr.msk.f32.mxu1 %vm195_vm0, %v2605_v25  ;;  %v1746_v41 = vrot.slane %v1542_v44, 6  ;;  %v1443_v13 = vmax.f32 %v995_v10, %v1010_v51  ;;  %v1005_v36 = vadd.f32 %v17134_v38, %v1004_v45 }
 0x160   :  { %v1020_v42 = vadd.f32 %v17134_v38, %v13558_v3  ;;  %v1014_v31 = vpop.f32.mrb[65].mxu0  ;;  %v1770_v23 = vrot.slane %v1542_v44, 7  ;;  %v1000_v21 = vadd.f32 %v17134_v38, %v13552_v34  ;;  %v1931_v10 = vsel %vm1921_vm5, %v1918_v1, %v1722_v58 }
 0x161   :  { %v1015_v25 = vadd.f32 %v17134_v38, %v1014_v31  ;;  %v1471_v63 = vrot.slane %v1443_v13, 1  ;;  %v2615_v34 = vrot.slane %v16945_v35, 4  ;;  %v1944_v44 = vsel %vm1934_vm6, %v1931_v10, %v1746_v41 }
 0x162   :  { %v17244_v45 = vmax.f32 %v1005_v36, %v1020_v42  ;;  %13765 = vmatmul.mubr.msk.f32.vlgmr.msra.gmra.mrb[0].mxu1 %vm195_vm0, %v17227_v54  ;;  %v2613_v51 = vrot.slane %v16870_v4, 4  ;;  %v17255_v58 = vsel %vm1947_vm7, %v1944_v44, %v1770_v23  ;;  %v2616_v36 = vrot.slane %v16934_v27, 4 }
 0x163   :  { %v1444_v33 = vmax.f32 %v1000_v21, %v1015_v25  ;;  %v13561_v50 = vpop.f32.mrb[66].mxu0  ;;  %13767 = vmatprep.mubr.msk.f32.mxu1 %vm195_vm0, %v17230_v62  ;;  %14727 = vmatpush3.bf16.msra.mxu1 %v17119_v61  ;;  %20549 = vst [vmem:[#allocation31_spill] sm:$0xff] %v17255_v58  ;;  %v1495_v1 = vmax.f32 %v1443_v13, %v1471_v63  ;;  %v2618_v21 = vrot.slane %v17002_v55, 4  ;;  %v2621_v4 = vrot.slane %v17037_v22, 4 }
 0x164   :  { %20548 = vst [vmem:[#allocation30_spill] sm:$0xff] %v17244_v45  ;;  %v1024_v3 = vpop.f32.mrb[67].mxu0  ;;  %14729 = vmatprep.subr.bf16.mxu1 %v17191_v24  ;;  %v17259_v42 = vpack.c.bf16 %v11917_v7, %v11916_v32  ;;  %v17262_v31 = vsel %vm1908_vm4, %v2612_v52, %v2613_v51  ;;  %v17269_v13 = vsel %vm1908_vm4, %v2615_v34, %v2616_v36  ;;  %v2619_v52 = vrot.slane %v16993_v48, 4 }
 0x165   :  { %v1519_v41 = vrot.slane %v1444_v33, 1  ;;  %v1615_v25 = vrot.slane %v1495_v1, 1  ;;  %v1639_v10 = vrot.slane %v1495_v1, 2  ;;  %v2622_v32 = vrot.slane %v17031_v6, 4 }
 0x166   :  { %20550 = vst [vmem:[#allocation32_spill] sm:$0xff] %v17259_v42  ;;  %13768 = vmatmul.mubr.msk.f32.gmra.mrb[2].mxu1 %vm195_vm0, %v17262_v31  ;;  %v17279_v44 = vsel %vm1908_vm4, %v2618_v21, %v2619_v52  ;;  %v1025_v6 = vadd.f32 %v17134_v38, %v1024_v3  ;;  %v2625_v21 = vrot.slane %v17075_v0, 4  ;;  %v11919_v0 = vld [vmem:[%s20362_s3 + $0xd8] sm:$0xff] }
 0x167   :  { %v1543_v27 = vmax.f32 %v1444_v33, %v1519_v41  ;;  %v13564_v23 = vpop.f32.mrb[68].mxu0  ;;  %13770 = vmatprep.mubr.msk.f32.mxu1 %vm195_vm0, %v17269_v13  ;;  %14731 = vmatpush3.bf16.msra.mxu1 %v17191_v24  ;;  %v1880_v7 = vsel %vm1869_vm1, %v1495_v1, %v1615_v25  ;;  %v17282_v34 = vsel %vm1908_vm4, %v2621_v4, %v2622_v32  ;;  %v2624_v33 = vrot.slane %v17082_v12, 4  ;;  %v11918_v24 = vld [vmem:[%s20362_s3 + $0xd0] sm:$0xff] }
 0x168   :  { %v1034_v63 = vpop.f32.mrb[69].mxu0  ;;  %14733 = vmatprep.subr.bf16.mxu1 %v17259_v42  ;;  %20551 = vst [vmem:[#allocation33_spill] sm:$0xff] %v17282_v34  ;;  %v1893_v51 = vsel %vm1882_vm2, %v1880_v7, %v1639_v10  ;;  %v1040_v36 = vadd.f32 %v17134_v38, %v13564_v23  ;;  %v1663_v41 = vrot.slane %v1495_v1, 3  ;;  %v1030_v23 = vadd.f32 %v17134_v38, %v13561_v50 }
 0x169   :  { %v1699_v48 = vrot.slane %v1543_v27, 4  ;;  %v1723_v25 = vrot.slane %v1543_v27, 5  ;;  %v1035_v52 = vadd.f32 %v17134_v38, %v1034_v63  ;;  %v17299_v1 = vsel %vm1908_vm4, %v2624_v33, %v2625_v21 }
 0x16a   :  { %13771 = vmatmul.mubr.msk.f32.gmra.mrb[4].mxu1 %vm195_vm0, %v17279_v44  ;;  %v1446_v4 = vmax.f32 %v1025_v6, %v1040_v36  ;;  %v1906_v3 = vsel %vm1895_vm3, %v1893_v51, %v1663_v41  ;;  %20552 = vst [vmem:[#allocation34_spill] sm:$0xff] %v17299_v1  ;;  %v1747_v63 = vrot.slane %v1543_v27, 6  ;;  %v1565_v33 = vrot.slane %v17084_v20, 1 }
 0x16b   :  { %v13567_v45 = vpop.f32.mrb[70].mxu0  ;;  %13773 = vmatprep.mubr.msk.f32.mxu1 %vm195_vm0, %v17282_v34  ;;  %v1919_v50 = vsel %vm1908_vm4, %v1906_v3, %v1699_v48  ;;  %v1771_v51 = vrot.slane %v1543_v27, 7  ;;  %v17316_v58 = vpack.c.bf16 %v11919_v0, %v11918_v24  ;;  %v11928_v48 = vld [vmem:[%s20362_s3 + $0xe0] sm:$0xff]  ;;  %v11929_v27 = vld [vmem:[%s20362_s3 + $0xe8] sm:$0xff] }
 0x16c   :  { %v1050_v10 = vadd.f32 %v17134_v38, %v13567_v45  ;;  %v1044_v32 = vpop.f32.mrb[71].mxu0  ;;  %v1472_v45 = vrot.slane %v1446_v4, 1  ;;  %v1932_v21 = vsel %vm1921_vm5, %v1919_v50, %v1723_v25  ;;  %v17331_v24 = vmax.f32 %v17084_v20, %v1565_v33 }
 0x16d   :  { %v1045_v7 = vadd.f32 %v17134_v38, %v1044_v32  ;;  %20554 = vst [vmem:[#allocation36_spill] sm:$0xff] %v17316_v58 }
 0x16e   :  { %v17307_v6 = vmax.f32 %v1035_v52, %v1050_v10  ;;  %13774 = vmatmul.mubr.msk.f32.gmra.mrb[6].mxu1 %vm195_vm0, %v17299_v1  ;;  %v1496_v32 = vmax.f32 %v1446_v4, %v1472_v45  ;;  %v1945_v52 = vsel %vm1934_vm6, %v1932_v21, %v1747_v63  ;;  %v17338_v63 = vpack.c.bf16 %v11929_v27, %v11928_v48 }
 0x16f   :  { %v1447_v36 = vmax.f32 %v1030_v23, %v1045_v7  ;;  %v13570_v41 = vpop.f32.mrb[72].mxu0  ;;  %13784 = vmatprep.mubr.msk.f32.mxu1 %vm195_vm0, %v16764_v14  ;;  %v17326_v3 = vsel %vm1947_vm7, %v1945_v52, %v1771_v51  ;;  %v1805_v50 = vrot.slane %v17331_v24, 1  ;;  %v11931_v52 = vld [vmem:[%s20362_s3 + $0xf8] sm:$0xff] }
 0x170   :  { %20553 = vst [vmem:[#allocation35_spill] sm:$0xff] %v17307_v6  ;;  %v1054_v61 = vpop.f32.mrb[73].mxu0  ;;  %20555 = vst [vmem:[#allocation37_spill] sm:$0xff] %v17326_v3  ;;  %v1616_v14 = vrot.slane %v1496_v32, 1  ;;  %v1640_v25 = vrot.slane %v1496_v32, 2  ;;  %v1853_v6 = vrot.slane %v17331_v24, 3 }
 0x171   :  { %v1520_v10 = vrot.slane %v1447_v36, 1  ;;  %20556 = vst [vmem:[#allocation38_spill] sm:$0xff] %v17338_v63  ;;  %v1055_v45 = vadd.f32 %v17134_v38, %v1054_v61  ;;  %v11930_v61 = vld [vmem:[%s20362_s3 + $0xf0] sm:$0xff] }
 0x172   :  { %13785 = vmatmul.mubr.msk.f32.vlgmr.msra.gmra.mrb[0].mxu1 %vm195_vm0, %v16829_v11  ;;  %v1881_v7 = vsel %vm1869_vm1, %v1496_v32, %v1616_v14 }
 0x173   :  { %v1544_v4 = vmax.f32 %v1447_v36, %v1520_v10  ;;  %v13573_v23 = vpop.f32.mrb[74].mxu0  ;;  %13787 = vmatprep.mubr.msk.f32.mxu1 %vm195_vm0, %v16880_v15  ;;  %14735 = vmatpush3.bf16.msra.mxu1 %v17259_v42  ;;  %v1894_v33 = vsel %vm1882_vm2, %v1881_v7, %v1640_v25  ;;  %v1664_v10 = vrot.slane %v1496_v32, 3 }
 0x174   :  { %v1064_v0 = vpop.f32.mrb[75].mxu0  ;;  %14737 = vmatprep.subr.bf16.mxu1 %v17316_v58  ;;  %v1070_v20 = vadd.f32 %v17134_v38, %v13573_v23  ;;  %v1060_v23 = vadd.f32 %v17134_v38, %v13570_v41  ;;  %v11940_v41 = vld [vmem:[%s20362_s3 + $0x100] sm:$0xff] }
 0x175   :  { %v1700_v51 = vrot.slane %v1544_v4, 4  ;;  %v1724_v48 = vrot.slane %v1544_v4, 5  ;;  %v1065_v27 = vadd.f32 %v17134_v38, %v1064_v0  ;;  %v1907_v32 = vsel %vm1895_vm3, %v1894_v33, %v1664_v10 }
 0x176   :  { %13788 = vmatmul.mubr.msk.f32.gmra.mrb[2].mxu1 %vm195_vm0, %v16945_v35  ;;  %v5321_v36 = vmax.f32 %v1055_v45, %v1070_v20  ;;  %v1829_v0 = vrot.slane %v17331_v24, 2  ;;  %v1968_v33 = vsel %vm1869_vm1, %v17331_v24, %v1805_v50  ;;  %v1748_v10 = vrot.slane %v1544_v4, 6 }
 0x177   :  { %v13576_v21 = vpop.f32.mrb[76].mxu0  ;;  %13790 = vmatprep.mubr.msk.f32.mxu1 %vm195_vm0, %v17002_v55  ;;  %14739 = vmatpush3.bf16.msra.mxu1 %v17316_v58  ;;  %v17362_v58 = vpack.c.bf16 %v11931_v52, %v11930_v61  ;;  %v1920_v61 = vsel %vm1908_vm4, %v1907_v32, %v1700_v51 }
 0x178   :  { %v1080_v14 = vadd.f32 %v17134_v38, %v13576_v21  ;;  %v1074_v25 = vpop.f32.mrb[77].mxu0  ;;  %14741 = vmatprep.subr.bf16.mxu1 %v17338_v63  ;;  %v5369_v7 = vrot.slane %v5321_v36, 1 }
 0x179   :  { %v1075_v45 = vadd.f32 %v17134_v38, %v1074_v25  ;;  %20557 = vst [vmem:[#allocation39_spill] sm:$0xff] %v17362_v58 }
 0x17a   :  { %v5323_v20 = vmax.f32 %v1065_v27, %v1080_v14  ;;  %13791 = vmatmul.mubr.msk.f32.gmra.mrb[4].mxu1 %vm195_vm0, %v17037_v22  ;;  %v5393_v3 = vmax.f32 %v5321_v36, %v5369_v7  ;;  %v11941_v27 = vld [vmem:[%s20362_s3 + $0x108] sm:$0xff]  ;;  %v1933_v14 = vsel %vm1921_vm5, %v1920_v61, %v1724_v48  ;;  %v1980_v48 = vsel %vm1882_vm2, %v1968_v33, %v1829_v0 }
 0x17b   :  { %v5322_v21 = vmax.f32 %v1060_v23, %v1075_v45  ;;  %v13579_v42 = vpop.f32.mrb[78].mxu0  ;;  %13793 = vmatprep.mubr.msk.f32.mxu1 %vm195_vm0, %v17082_v12  ;;  %v1772_v45 = vrot.slane %v1544_v4, 7  ;;  %v17381_v22 = vpack.c.bf16 %v11941_v27, %v11940_v41  ;;  %v1946_v51 = vsel %vm1934_vm6, %v1933_v14, %v1748_v10 }
 0x17c   :  { %v5465_v52 = vrot.slane %v5323_v20, 1  ;;  %v1084_v36 = vpop.f32.mrb[79].mxu0  ;;  %v5513_v25 = vrot.slane %v5393_v3, 1  ;;  %v5537_v23 = vrot.slane %v5393_v3, 2  ;;  %v5561_v24 = vrot.slane %v5393_v3, 3 }
 0x17d   :  { %v5417_v7 = vrot.slane %v5322_v21, 1  ;;  %20558 = vst [vmem:[#allocation40_spill] sm:$0xff] %v17381_v22  ;;  %v17389_v4 = vsel %vm1947_vm7, %v1946_v51, %v1772_v45 }
 0x17e   :  { %v5489_v12 = vmax.f32 %v5323_v20, %v5465_v52  ;;  %13794 = vmatmul.mubr.msk.f32.gmra.mrb[6].mxu1 %vm195_vm0, %v17175_v19  ;;  %v5777_v50 = vsel %vm1869_vm1, %v5393_v3, %v5513_v25  ;;  %20559 = vst [vmem:[#allocation41_spill] sm:$0xff] %v17389_v4 }
 0x17f   :  { %v5441_v32 = vmax.f32 %v5322_v21, %v5417_v7  ;;  %v13582_v55 = vpop.f32.mrb[80].mxu0  ;;  %13804 = vmatprep.mubr.msk.f32.mxu1 %vm195_vm0, %v16953_v53  ;;  %v5789_v20 = vsel %vm1882_vm2, %v5777_v50, %v5537_v23  ;;  %v1085_v21 = vadd.f32 %v17134_v38, %v1084_v36 }
 0x180   :  { %v5705_v61 = vrot.slane %v5489_v12, 1  ;;  %v5729_v41 = vrot.slane %v5489_v12, 2  ;;  %v1094_v27 = vpop.f32.mrb[81].mxu0  ;;  %v5753_v52 = vrot.slane %v5489_v12, 3  ;;  %v5801_v25 = vsel %vm1895_vm3, %v5789_v20, %v5561_v24 }
 0x181   :  { %v5597_v10 = vrot.slane %v5441_v32, 4  ;;  %v5621_v14 = vrot.slane %v5441_v32, 5  ;;  %v5645_v7 = vrot.slane %v5441_v32, 6  ;;  %v1100_v0 = vadd.f32 %v17134_v38, %v13582_v55 }
 0x182   :  { %v5861_v53 = vsel %vm1869_vm1, %v5489_v12, %v5705_v61  ;;  %13805 = vmatmul.mubr.msk.f32.vlgmr.msra.gmra.mrb[0].mxu1 %vm195_vm0, %v16965_v49  ;;  %v5669_v3 = vrot.slane %v5441_v32, 7  ;;  %v1095_v23 = vadd.f32 %v17134_v38, %v1094_v27  ;;  %v1090_v24 = vadd.f32 %v17134_v38, %v13579_v42 }
 0x183   :  { %v5813_v33 = vsel %vm1908_vm4, %v5801_v25, %v5597_v10  ;;  %v13585_v45 = vpop.f32.mrb[82].mxu0  ;;  %13807 = vmatprep.mubr.msk.f32.mxu1 %vm195_vm0, %v16969_v2  ;;  %v5873_v36 = vsel %vm1882_vm2, %v5861_v53, %v5729_v41  ;;  %14743 = vmatpush3.bf16.msra.mxu1 %v17338_v63  ;;  %v5324_v51 = vmax.f32 %v1085_v21, %v1100_v0  ;;  %v2883_v53 = vrot.slane %v17175_v19, 1 }
 0x184   :  { %v5825_v12 = vsel %vm1921_vm5, %v5813_v33, %v5621_v14  ;;  %v1110_v55 = vadd.f32 %v17134_v38, %v13585_v45  ;;  %v1104_v50 = vpop.f32.mrb[83].mxu0  ;;  %v17407_v32 = vsel %vm1895_vm3, %v5873_v36, %v5753_v52  ;;  %14745 = vmatprep.subr.bf16.mxu1 %v17362_v58  ;;  %v17419_v14 = vsel %vm1895_vm3, %v1980_v48, %v1853_v6  ;;  %v11942_v6 = vld [vmem:[%s20362_s3 + $0x110] sm:$0xff]  ;;  %v11943_v48 = vld [vmem:[%s20362_s3 + $0x118] sm:$0xff] }
 0x185   :  { %20560 = vst [vmem:[#allocation42_spill] sm:$0xff] %v17407_v32  ;;  %v1105_v20 = vadd.f32 %v17134_v38, %v1104_v50  ;;  %v5837_v61 = vsel %vm1934_vm6, %v5825_v12, %v5645_v7  ;;  %v5370_v41 = vrot.slane %v5324_v51, 1  ;;  %v5914_v25 = vrot.slane %v17407_v32, 1 }
 0x186   :  { %v5326_v27 = vmax.f32 %v1095_v23, %v1110_v55  ;;  %13808 = vmatmul.mubr.msk.f32.gmra.mrb[2].mxu1 %vm195_vm0, %v16972_v5  ;;  %v17416_v10 = vsel %vm1947_vm7, %v5837_v61, %v5669_v3  ;;  %v2884_v45 = vrot.slane %v17419_v14, 1  ;;  %v17445_v61 = vpack.c.bf16 %v11943_v48, %v11942_v6 }
 0x187   :  { %v5325_v52 = vmax.f32 %v1090_v24, %v1105_v20  ;;  %v13588_v21 = vpop.f32.mrb[84].mxu0  ;;  %13810 = vmatprep.mubr.msk.f32.mxu1 %vm195_vm0, %v17010_v16  ;;  %v5913_v42 = vrot.slane %v17416_v10, 1  ;;  %14747 = vmatpush3.bf16.msra.mxu1 %v17362_v58  ;;  %v5394_v7 = vmax.f32 %v5324_v51, %v5370_v41 }
 0x188   :  { %v5466_v0 = vrot.slane %v5326_v27, 1  ;;  %v1114_v3 = vpop.f32.mrb[85].mxu0  ;;  %14749 = vmatprep.subr.bf16.mxu1 %v17381_v22  ;;  %v17443_v20 = vsel %vm1947_vm7, %v2883_v53, %v2884_v45  ;;  %20561 = vst [vmem:[#allocation43_spill] sm:$0xff] %v17445_v61 }
 0x189   :  { %v5418_v33 = vrot.slane %v5325_v52, 1  ;;  %v5915_v23 = vsel %vm1947_vm7, %v5913_v42, %v5914_v25  ;;  %v5514_v36 = vrot.slane %v5394_v7, 1  ;;  %v5538_v12 = vrot.slane %v5394_v7, 2 }
 0x18a   :  { %v5490_v51 = vmax.f32 %v5326_v27, %v5466_v0  ;;  %13811 = vmatmul.mubr.msk.f32.gmra.mrb[4].mxu1 %vm195_vm0, %v17050_v46  ;;  %14184 = vmatprep.mubr.msk.f32.mxu0 %vm195_vm0, %v5915_v23  ;;  %v1115_v50 = vadd.f32 %v17134_v38, %v1114_v3  ;;  %v5562_v41 = vrot.slane %v5394_v7, 3 }
 0x18b   :  { %v5442_v55 = vmax.f32 %v5325_v52, %v5418_v33  ;;  %v13591_v24 = vpop.f32.mrb[86].mxu0  ;;  %13813 = vmatprep.mubr.msk.f32.mxu1 %vm195_vm0, %v17100_v43  ;;  %v5778_v27 = vsel %vm1869_vm1, %v5394_v7, %v5514_v36 }
 0x18c   :  { %v5706_v42 = vrot.slane %v5490_v51, 1  ;;  %v5730_v25 = vrot.slane %v5490_v51, 2  ;;  %v1124_v0 = vpop.f32.mrb[87].mxu0  ;;  %v5790_v23 = vsel %vm1882_vm2, %v5778_v27, %v5538_v12  ;;  %v5754_v52 = vrot.slane %v5490_v51, 3 }
 0x18d   :  { %v5598_v33 = vrot.slane %v5442_v55, 4  ;;  %v5622_v3 = vrot.slane %v5442_v55, 5  ;;  %v5802_v58 = vsel %vm1895_vm3, %v5790_v23, %v5562_v41  ;;  %v5646_v32 = vrot.slane %v5442_v55, 6 }
 0x18e   :  { %v5862_v63 = vsel %vm1869_vm1, %v5490_v51, %v5706_v42  ;;  %v1130_v53 = vadd.f32 %v17134_v38, %v13591_v24  ;;  %13814 = vmatmul.mubr.msk.f32.gmra.mrb[6].mxu1 %vm195_vm0, %v17443_v20  ;;  %v5670_v6 = vrot.slane %v5442_v55, 7  ;;  %v1125_v45 = vadd.f32 %v17134_v38, %v1124_v0  ;;  %v11952_v42 = vld [vmem:[%s20362_s3 + $0x120] sm:$0xff] }
 0x18f   :  { %v5874_v7 = vsel %vm1882_vm2, %v5862_v63, %v5730_v25  ;;  %v5814_v48 = vsel %vm1908_vm4, %v5802_v58, %v5598_v33  ;;  %v13594_v36 = vpop.f32.mrb[88].mxu0  ;;  %13824 = vmatprep.mubr.msk.f32.mxu1 %vm195_vm0, %v16781_v29  ;;  %v1120_v55 = vadd.f32 %v17134_v38, %v13588_v21  ;;  %v11953_v29 = vld [vmem:[%s20362_s3 + $0x128] sm:$0xff] }
 0x190   :  { %v5826_v12 = vsel %vm1921_vm5, %v5814_v48, %v5622_v3  ;;  %v5327_v51 = vmax.f32 %v1115_v50, %v1130_v53  ;;  %v1140_v41 = vadd.f32 %v17134_v38, %v13594_v36  ;;  %v1134_v24 = vpop.f32.mrb[89].mxu0  ;;  %v17462_v27 = vsel %vm1895_vm3, %v5874_v7, %v5754_v52 }
 0x191   :  { %v5838_v63 = vsel %vm1934_vm6, %v5826_v12, %v5646_v32  ;;  %v1135_v58 = vadd.f32 %v17134_v38, %v1134_v24  ;;  %v5917_v52 = vrot.slane %v17462_v27, 1  ;;  %v17484_v7 = vpack.c.bf16 %v11953_v29, %v11952_v42 }
 0x192   :  { %v17474_v50 = vsel %vm1947_vm7, %v5838_v63, %v5670_v6  ;;  %v5371_v25 = vrot.slane %v5327_v51, 1  ;;  %v5329_v0 = vmax.f32 %v1125_v45, %v1140_v41  ;;  %13825 = vmatmul.mubr.msk.f32.vlgmr.msra.gmra.mrb[0].mxu1 %vm195_vm0, %v16838_v28  ;;  %v3006_v63 = vrot.slane %v17175_v19, 2 }
 0x193   :  { %v5328_v32 = vmax.f32 %v1120_v55, %v1135_v58  ;;  %v13597_v21 = vpop.f32.mrb[90].mxu0  ;;  %13827 = vmatprep.mubr.msk.f32.mxu1 %vm195_vm0, %v16897_v37  ;;  %v5916_v23 = vrot.slane %v17474_v50, 1  ;;  %14751 = vmatpush3.bf16.msra.mxu1 %v17381_v22  ;;  %20562 = vst [vmem:[#allocation44_spill] sm:$0xff] %v17484_v7  ;;  %v3007_v55 = vrot.slane %v17419_v14, 2 }
 0x194   :  { %v5395_v33 = vmax.f32 %v5327_v51, %v5371_v25  ;;  %v5467_v3 = vrot.slane %v5329_v0, 1  ;;  %v1144_v53 = vpop.f32.mrb[91].mxu0  ;;  %14753 = vmatprep.subr.bf16.mxu1 %v17445_v61 }
 0x195   :  { %v5419_v6 = vrot.slane %v5328_v32, 1  ;;  %v17487_v48 = vsel %vm1947_vm7, %v5916_v23, %v5917_v52  ;;  %v1145_v41 = vadd.f32 %v17134_v38, %v1144_v53 }
 0x196   :  { %20563 = vst [vmem:[#allocation45_spill] sm:$0xff] %v17487_v48  ;;  %v5515_v45 = vrot.slane %v5395_v33, 1  ;;  %v5539_v36 = vrot.slane %v5395_v33, 2  ;;  %v5491_v12 = vmax.f32 %v5329_v0, %v5467_v3  ;;  %13828 = vmatmul.mubr.msk.f32.gmra.mrb[2].mxu1 %vm195_vm0, %v16958_v56  ;;  %14185 = vmatmul.mubr.msk.f32.vlgmr.msra.gmra.mrb[152].mxu0 %vm195_vm0, %v17487_v48  ;;  %v5563_v58 = vrot.slane %v5395_v33, 3 }
 0x197   :  { %v5443_v51 = vmax.f32 %v5328_v32, %v5419_v6  ;;  %v13600_v24 = vpop.f32.mrb[92].mxu0  ;;  %13830 = vmatprep.mubr.msk.f32.mxu1 %vm195_vm0, %v17013_v17  ;;  %14755 = vmatpush3.bf16.msra.mxu1 %v17445_v61 }
 0x198   :  { %v5779_v42 = vsel %vm1869_vm1, %v5395_v33, %v5515_v45  ;;  %v5707_v29 = vrot.slane %v5491_v12, 1  ;;  %v5731_v25 = vrot.slane %v5491_v12, 2  ;;  %v1154_v0 = vpop.f32.mrb[93].mxu0  ;;  %14757 = vmatprep.subr.bf16.mxu1 %v17484_v7  ;;  %14895 = vmatpush3.bf16.msra.mxu0 %v16587_v57  ;;  %v5755_v23 = vrot.slane %v5491_v12, 3 }
 0x199   :  { %v5791_v32 = vsel %vm1882_vm2, %v5779_v42, %v5539_v36  ;;  %v5599_v52 = vrot.slane %v5443_v51, 4  ;;  %v5623_v3 = vrot.slane %v5443_v51, 5  ;;  %14897 = vmatprep.subr.bf16.mxu0 %v16903_v40  ;;  %v5647_v61 = vrot.slane %v5443_v51, 6 }
 0x19a   :  { %v5803_v53 = vsel %vm1895_vm3, %v5791_v32, %v5563_v58  ;;  %v5863_v6 = vsel %vm1869_vm1, %v5491_v12, %v5707_v29  ;;  %v1160_v33 = vadd.f32 %v17134_v38, %v13600_v24  ;;  %13831 = vmatmul.mubr.msk.f32.gmra.mrb[4].mxu1 %vm195_vm0, %v17053_v47  ;;  %v5671_v45 = vrot.slane %v5443_v51, 7 }
 0x19b   :  { %v5815_v57 = vsel %vm1908_vm4, %v5803_v53, %v5599_v52  ;;  %v1155_v36 = vadd.f32 %v17134_v38, %v1154_v0  ;;  %v13603_v42 = vpop.f32.mrb[94].mxu0  ;;  %13833 = vmatprep.mubr.msk.f32.mxu1 %vm195_vm0, %v17103_v26  ;;  %v5875_v22 = vsel %vm1882_vm2, %v5863_v6, %v5731_v25  ;;  %v1150_v0 = vadd.f32 %v17134_v38, %v13597_v21 }
 0x19c   :  { %v5827_v58 = vsel %vm1921_vm5, %v5815_v57, %v5623_v3  ;;  %v5330_v12 = vmax.f32 %v1145_v41, %v1160_v33  ;;  %v1170_v29 = vadd.f32 %v17134_v38, %v13603_v42  ;;  %v1164_v24 = vpop.f32.mrb[95].mxu0  ;;  %v17517_v32 = vsel %vm1895_vm3, %v5875_v22, %v5755_v23  ;;  %14899 = vmatpush3.bf16.msra.mxu0 %v16903_v40  ;;  %v11954_v41 = vld [vmem:[%s20362_s3 + $0x130] sm:$0xff]  ;;  %v11955_v22 = vld [vmem:[%s20362_s3 + $0x138] sm:$0xff] }
 0x19d   :  { %v5839_v51 = vsel %vm1934_vm6, %v5827_v58, %v5647_v61  ;;  %v1165_v52 = vadd.f32 %v17134_v38, %v1164_v24  ;;  %v17524_v53 = vsel %vm1934_vm6, %v3006_v63, %v3007_v55  ;;  %14901 = vmatprep.subr.bf16.mxu0 %v16402_v8  ;;  %v5920_v23 = vrot.slane %v17517_v32, 1 }
 0x19e   :  { %20564 = vst [vmem:[#allocation46_spill] sm:$0xff] %v17524_v53  ;;  %v17534_v40 = vsel %vm1947_vm7, %v5839_v51, %v5671_v45  ;;  %v5372_v61 = vrot.slane %v5330_v12, 1  ;;  %v5332_v21 = vmax.f32 %v1155_v36, %v1170_v29  ;;  %13834 = vmatmul.mubr.msk.f32.gmra.mrb[6].mxu1 %vm195_vm0, %v17524_v53  ;;  %v17542_v57 = vpack.c.bf16 %v11955_v22, %v11954_v41  ;;  %v11964_v45 = vld [vmem:[%s20362_s3 + $0x140] sm:$0xff]  ;;  %v11965_v36 = vld [vmem:[%s20362_s3 + $0x148] sm:$0xff] }
 0x19f   :  { %v5331_v63 = vmax.f32 %v1150_v0, %v1165_v52  ;;  %v13606_v55 = vpop.f32.mrb[96].mxu0  ;;  %13844 = vmatprep.mubr.msk.f32.mxu1 %vm195_vm0, %v17116_v60  ;;  %v5919_v25 = vrot.slane %v17534_v40, 1  ;;  %v17561_v52 = vpack.c.bf16 %v11965_v36, %v11964_v45 }
 0x1a0   :  { %v5396_v3 = vmax.f32 %v5330_v12, %v5372_v61  ;;  %v5468_v6 = vrot.slane %v5332_v21, 1  ;;  %v1174_v33 = vpop.f32.mrb[97].mxu0  ;;  %20565 = vst [vmem:[#allocation47_spill] sm:$0xff] %v17542_v57 }
 0x1a1   :  { %v5420_v42 = vrot.slane %v5331_v63, 1  ;;  %v17551_v60 = vsel %vm1947_vm7, %v5919_v25, %v5920_v23  ;;  %v1175_v51 = vadd.f32 %v17134_v38, %v1174_v33  ;;  %20567 = vst [vmem:[#allocation49_spill] sm:$0xff] %v17561_v52 }
 0x1a2   :  { %20566 = vst [vmem:[#allocation48_spill] sm:$0xff] %v17551_v60  ;;  %v5516_v58 = vrot.slane %v5396_v3, 1  ;;  %v5540_v29 = vrot.slane %v5396_v3, 2  ;;  %v5492_v24 = vmax.f32 %v5332_v21, %v5468_v6  ;;  %13845 = vmatmul.mubr.msk.f32.vlgmr.msra.gmra.mrb[0].mxu1 %vm195_vm0, %v17123_v59  ;;  %14187 = vmatprep.mubr.msk.f32.mxu0 %vm195_vm0, %v17551_v60  ;;  %v5564_v41 = vrot.slane %v5396_v3, 3 }
 0x1a3   :  { %v5444_v12 = vmax.f32 %v5331_v63, %v5420_v42  ;;  %v13609_v0 = vpop.f32.mrb[98].mxu0  ;;  %13847 = vmatprep.mubr.msk.f32.mxu1 %vm195_vm0, %v17126_v30  ;;  %14759 = vmatpush3.bf16.msra.mxu1 %v17484_v7 }
 0x1a4   :  { %v5780_v22 = vsel %vm1869_vm1, %v5396_v3, %v5516_v58  ;;  %v5708_v61 = vrot.slane %v5492_v24, 1  ;;  %v5732_v21 = vrot.slane %v5492_v24, 2  ;;  %v1184_v25 = vpop.f32.mrb[99].mxu0  ;;  %14761 = vmatprep.subr.bf16.mxu1 %v17542_v57  ;;  %v5756_v23 = vrot.slane %v5492_v24, 3 }
 0x1a5   :  { %v5792_v63 = vsel %vm1882_vm2, %v5780_v22, %v5540_v29  ;;  %v5600_v6 = vrot.slane %v5444_v12, 4  ;;  %v5624_v33 = vrot.slane %v5444_v12, 5  ;;  %v5648_v7 = vrot.slane %v5444_v12, 6 }
 0x1a6   :  { %v5804_v42 = vsel %vm1895_vm3, %v5792_v63, %v5564_v41  ;;  %v5864_v60 = vsel %vm1869_vm1, %v5492_v24, %v5708_v61  ;;  %v1190_v45 = vadd.f32 %v17134_v38, %v13609_v0  ;;  %13848 = vmatmul.mubr.msk.f32.gmra.mrb[2].mxu1 %vm195_vm0, %v17149_v9  ;;  %v5672_v3 = vrot.slane %v5444_v12, 7 }
 0x1a7   :  { %v5816_v36 = vsel %vm1908_vm4, %v5804_v42, %v5600_v6  ;;  %v1185_v58 = vadd.f32 %v17134_v38, %v1184_v25  ;;  %v13612_v48 = vpop.f32.mrb[100].mxu0  ;;  %13850 = vmatprep.mubr.msk.f32.mxu1 %vm195_vm0, %v17187_v18  ;;  %v5876_v29 = vsel %vm1882_vm2, %v5864_v60, %v5732_v21  ;;  %14763 = vmatpush3.bf16.msra.mxu1 %v17542_v57  ;;  %v3129_v60 = vrot.slane %v17175_v19, 3 }
 0x1a8   :  { %v5828_v24 = vsel %vm1921_vm5, %v5816_v36, %v5624_v33  ;;  %v5333_v41 = vmax.f32 %v1175_v51, %v1190_v45  ;;  %v1200_v0 = vadd.f32 %v17134_v38, %v13612_v48  ;;  %v1194_v22 = vpop.f32.mrb[101].mxu0  ;;  %v17580_v12 = vsel %vm1895_vm3, %v5876_v29, %v5756_v23  ;;  %14765 = vmatprep.subr.bf16.mxu1 %v17561_v52  ;;  %v20569_v48 = vld [vmem:[#allocation28_spill] sm:$0xff]  ;;  %v11966_v45 = vld [vmem:[%s20362_s3 + $0x150] sm:$0xff] }
 0x1a9   :  { %v5840_v61 = vsel %vm1934_vm6, %v5828_v24, %v5648_v7  ;;  %v1180_v25 = vadd.f32 %v17134_v38, %v13606_v55  ;;  %v1195_v63 = vadd.f32 %v17134_v38, %v1194_v22  ;;  %v3130_v7 = vrot.slane %v17419_v14, 3  ;;  %v11967_v29 = vld [vmem:[%s20362_s3 + $0x158] sm:$0xff]  ;;  %v11976_v24 = vld [vmem:[%s20362_s3 + $0x160] sm:$0xff] }
 0x1aa   :  { %v17588_v21 = vsel %vm1947_vm7, %v5840_v61, %v5672_v3  ;;  %v5373_v51 = vrot.slane %v5333_v41, 1  ;;  %v5335_v6 = vmax.f32 %v1185_v58, %v1200_v0  ;;  %13851 = vmatmul.mubr.msk.f32.gmra.mrb[4].mxu1 %vm195_vm0, %v20569_v48  ;;  %v5923_v42 = vrot.slane %v17580_v12, 1  ;;  %v11977_v0 = vld [vmem:[%s20362_s3 + $0x168] sm:$0xff] }
 0x1ab   :  { %20568 = vst [vmem:[#allocation50_spill] sm:$0xff] %v17588_v21  ;;  %v5334_v23 = vmax.f32 %v1180_v25, %v1195_v63  ;;  %v13615_v33 = vpop.f32.mrb[102].mxu0  ;;  %13853 = vmatprep.mubr.msk.f32.mxu1 %vm195_vm0, %v17215_v39  ;;  %v5922_v55 = vrot.slane %v17588_v21, 1  ;;  %v17610_v61 = vsel %vm1921_vm5, %v3129_v60, %v3130_v7  ;;  %v17622_v60 = vpack.c.bf16 %v11967_v29, %v11966_v45 }
 0x1ac   :  { %v5397_v3 = vmax.f32 %v5333_v41, %v5373_v51  ;;  %v5469_v36 = vrot.slane %v5335_v6, 1  ;;  %v1204_v58 = vpop.f32.mrb[103].mxu0  ;;  %20570 = vst [vmem:[#allocation51_spill] sm:$0xff] %v17610_v61  ;;  %v17624_v7 = vpack.c.bf16 %v11977_v0, %v11976_v24 }
 0x1ad   :  { %v5421_v22 = vrot.slane %v5334_v23, 1  ;;  %v17613_v41 = vsel %vm1947_vm7, %v5922_v55, %v5923_v42  ;;  %v1205_v39 = vadd.f32 %v17134_v38, %v1204_v58  ;;  %20572 = vst [vmem:[#allocation53_spill] sm:$0xff] %v17622_v60 }
 0x1ae   :  { %20571 = vst [vmem:[#allocation52_spill] sm:$0xff] %v17613_v41  ;;  %v5517_v25 = vrot.slane %v5397_v3, 1  ;;  %v5541_v63 = vrot.slane %v5397_v3, 2  ;;  %v5493_v51 = vmax.f32 %v5335_v6, %v5469_v36  ;;  %13854 = vmatmul.mubr.msk.f32.gmra.mrb[6].mxu1 %vm195_vm0, %v17610_v61  ;;  %14188 = vmatmul.mubr.msk.f32.gmra.mrb[154].mxu0 %vm195_vm0, %v17613_v41  ;;  %20573 = vst [vmem:[#allocation54_spill] sm:$0xff] %v17624_v7  ;;  %v5565_v55 = vrot.slane %v5397_v3, 3 }
 0x1af   :  { %v5445_v57 = vmax.f32 %v5334_v23, %v5421_v22  ;;  %v13618_v48 = vpop.f32.mrb[104].mxu0  ;;  %13864 = vmatprep.mubr.msk.f32.mxu1 %vm195_vm0, %v17227_v54 }
 0x1b0   :  { %v5781_v6 = vsel %vm1869_vm1, %v5397_v3, %v5517_v25  ;;  %v5709_v42 = vrot.slane %v5493_v51, 1  ;;  %v5733_v36 = vrot.slane %v5493_v51, 2  ;;  %v1214_v61 = vpop.f32.mrb[105].mxu0  ;;  %v5757_v41 = vrot.slane %v5493_v51, 3 }
 0x1b1   :  { %v5793_v18 = vsel %vm1882_vm2, %v5781_v6, %v5541_v63  ;;  %v5601_v23 = vrot.slane %v5445_v57, 4  ;;  %v5625_v22 = vrot.slane %v5445_v57, 5  ;;  %v5649_v54 = vrot.slane %v5445_v57, 6  ;;  %v20574_v6 = vld [vmem:[#allocation24_spill] sm:$0xff] }
 0x1b2   :  { %v5805_v58 = vsel %vm1895_vm3, %v5793_v18, %v5565_v55  ;;  %v5865_v9 = vsel %vm1869_vm1, %v5493_v51, %v5709_v42  ;;  %v1220_v45 = vadd.f32 %v17134_v38, %v13618_v48  ;;  %13865 = vmatmul.mubr.msk.f32.vlgmr.msra.gmra.mrb[0].mxu1 %vm195_vm0, %v17230_v62  ;;  %v5673_v29 = vrot.slane %v5445_v57, 7 }
 0x1b3   :  { %v5877_v3 = vsel %vm1882_vm2, %v5865_v9, %v5733_v36  ;;  %v5817_v24 = vsel %vm1908_vm4, %v5805_v58, %v5601_v23  ;;  %v1215_v0 = vadd.f32 %v17134_v38, %v1214_v61  ;;  %v13621_v25 = vpop.f32.mrb[106].mxu0  ;;  %13867 = vmatprep.mubr.msk.f32.mxu1 %vm195_vm0, %v17262_v31  ;;  %14767 = vmatpush3.bf16.msra.mxu1 %v17561_v52  ;;  %v1566_v42 = vrot.slane %v20574_v6, 1 }
 0x1b4   :  { %v5829_v18 = vsel %vm1921_vm5, %v5817_v24, %v5625_v22  ;;  %v5336_v63 = vmax.f32 %v1205_v39, %v1220_v45  ;;  %v1230_v48 = vadd.f32 %v17134_v38, %v13621_v25  ;;  %v1224_v51 = vpop.f32.mrb[107].mxu0  ;;  %v17642_v55 = vsel %vm1895_vm3, %v5877_v3, %v5757_v41  ;;  %14769 = vmatprep.subr.bf16.mxu1 %v17622_v60  ;;  %v11979_v24 = vld [vmem:[%s20362_s3 + $0x178] sm:$0xff] }
 0x1b5   :  { %v5841_v9 = vsel %vm1934_vm6, %v5829_v18, %v5649_v54  ;;  %v1210_v57 = vadd.f32 %v17134_v38, %v13615_v33  ;;  %v1225_v61 = vadd.f32 %v17134_v38, %v1224_v51  ;;  %v5926_v33 = vrot.slane %v17642_v55, 1 }
 0x1b6   :  { %v17650_v36 = vsel %vm1947_vm7, %v5841_v9, %v5673_v29  ;;  %v5374_v39 = vrot.slane %v5336_v63, 1  ;;  %v5338_v23 = vmax.f32 %v1215_v0, %v1230_v48  ;;  %13868 = vmatmul.mubr.msk.f32.gmra.mrb[2].mxu1 %vm195_vm0, %v17269_v13  ;;  %v3252_v38 = vrot.slane %v17175_v19, 4  ;;  %v11978_v29 = vld [vmem:[%s20362_s3 + $0x170] sm:$0xff] }
 0x1b7   :  { %v5337_v41 = vmax.f32 %v1210_v57, %v1225_v61  ;;  %v13624_v22 = vpop.f32.mrb[108].mxu0  ;;  %13870 = vmatprep.mubr.msk.f32.mxu1 %vm195_vm0, %v17279_v44  ;;  %v5925_v58 = vrot.slane %v17650_v36, 1  ;;  %14771 = vmatpush3.bf16.msra.mxu1 %v17622_v60  ;;  %v3253_v18 = vrot.slane %v17419_v14, 4  ;;  %v17681_v61 = vld [vmem:[%s20361_s2] ss:$0 sm:$0xff] }
 0x1b8   :  { %v5398_v54 = vmax.f32 %v5336_v63, %v5374_v39  ;;  %v5470_v45 = vrot.slane %v5338_v23, 1  ;;  %v1234_v3 = vpop.f32.mrb[109].mxu0  ;;  %14773 = vmatprep.subr.bf16.mxu1 %v17624_v7  ;;  %v17672_v63 = vmax.f32 %v20574_v6, %v1566_v42  ;;  %v17689_v42 = vpack.c.bf16 %v11979_v24, %v11978_v29 }
 0x1b9   :  { %v5422_v0 = vrot.slane %v5337_v41, 1  ;;  %v17668_v25 = vsel %vm1947_vm7, %v5925_v58, %v5926_v33  ;;  %v1235_v14 = vadd.f32 %v17681_v61, %v1234_v3  ;;  %v17687_v6 = vsel %vm1908_vm4, %v3252_v38, %v3253_v18 }
 0x1ba   :  { %20575 = vst [vmem:[#allocation24_spill] sm:$0xff] %v17668_v25  ;;  %v5518_v48 = vrot.slane %v5398_v54, 1  ;;  %v5542_v51 = vrot.slane %v5398_v54, 2  ;;  %v5494_v9 = vmax.f32 %v5338_v23, %v5470_v45  ;;  %13871 = vmatmul.mubr.msk.f32.gmra.mrb[4].mxu1 %vm195_vm0, %v17282_v34  ;;  %14190 = vmatprep.mubr.msk.f32.mxu0 %vm195_vm0, %v17668_v25  ;;  %20576 = vst [vmem:[#allocation55_spill] sm:$0xff] %v17689_v42  ;;  %v5566_v23 = vrot.slane %v5398_v54, 3 }
 0x1bb   :  { %v5446_v57 = vmax.f32 %v5337_v41, %v5422_v0  ;;  %v13627_v39 = vpop.f32.mrb[110].mxu0  ;;  %13873 = vmatprep.mubr.msk.f32.mxu1 %vm195_vm0, %v17299_v1 }
 0x1bc   :  { %v5782_v58 = vsel %vm1869_vm1, %v5398_v54, %v5518_v48  ;;  %v5710_v41 = vrot.slane %v5494_v9, 1  ;;  %v5734_v33 = vrot.slane %v5494_v9, 2  ;;  %v1244_v45 = vpop.f32.mrb[111].mxu0  ;;  %v5758_v60 = vrot.slane %v5494_v9, 3 }
 0x1bd   :  { %v5794_v0 = vsel %vm1882_vm2, %v5782_v58, %v5542_v51  ;;  %v5602_v52 = vrot.slane %v5446_v57, 4  ;;  %v5626_v3 = vrot.slane %v5446_v57, 5  ;;  %v5650_v34 = vrot.slane %v5446_v57, 6 }
 0x1be   :  { %v5806_v25 = vsel %vm1895_vm3, %v5794_v0, %v5566_v23  ;;  %v5866_v1 = vsel %vm1869_vm1, %v5494_v9, %v5710_v41  ;;  %v1250_v38 = vadd.f32 %v17681_v61, %v13627_v39  ;;  %13874 = vmatmul.mubr.msk.f32.gmra.mrb[6].mxu1 %vm195_vm0, %v17687_v6  ;;  %v5674_v29 = vrot.slane %v5446_v57, 7 }
 0x1bf   :  { %v5878_v54 = vsel %vm1882_vm2, %v5866_v1, %v5734_v33  ;;  %v5818_v24 = vsel %vm1908_vm4, %v5806_v25, %v5602_v52  ;;  %v1245_v18 = vadd.f32 %v17681_v61, %v1244_v45  ;;  %v13630_v48 = vpop.f32.mrb[112].mxu0  ;;  %13884 = vmatprep.mubr.msk.f32.mxu1 %vm195_vm0, %v16829_v11  ;;  %v1240_v57 = vadd.f32 %v17681_v61, %v13624_v22  ;;  %v11988_v25 = vld [vmem:[%s20362_s3 + $0x180] sm:$0xff]  ;;  %v11989_v11 = vld [vmem:[%s20362_s3 + $0x188] sm:$0xff] }
 0x1c0   :  { %v5830_v51 = vsel %vm1921_vm5, %v5818_v24, %v5626_v3  ;;  %v5339_v9 = vmax.f32 %v1235_v14, %v1250_v38  ;;  %v1260_v23 = vadd.f32 %v17681_v61, %v13630_v48  ;;  %v1254_v39 = vpop.f32.mrb[113].mxu0  ;;  %v17706_v58 = vsel %vm1895_vm3, %v5878_v54, %v5758_v60 }
 0x1c1   :  { %v5842_v1 = vsel %vm1934_vm6, %v5830_v51, %v5650_v34  ;;  %v1255_v52 = vadd.f32 %v17681_v61, %v1254_v39  ;;  %v1806_v34 = vrot.slane %v17672_v63, 1  ;;  %v5929_v0 = vrot.slane %v17706_v58, 1  ;;  %v20579_v39 = vld [vmem:[#allocation13_spill] sm:$0xff] }
 0x1c2   :  { %v17718_v14 = vsel %vm1947_vm7, %v5842_v1, %v5674_v29  ;;  %v5375_v41 = vrot.slane %v5339_v9, 1  ;;  %v5341_v60 = vmax.f32 %v1245_v18, %v1260_v23  ;;  %13885 = vmatmul.mubr.msk.f32.vlgmr.msra.gmra.mrb[0].mxu1 %vm195_vm0, %v16880_v15  ;;  %v17729_v29 = vpack.c.bf16 %v11989_v11, %v11988_v25  ;;  %v20580_v11 = vld [vmem:[#allocation16_spill] sm:$0xff] }
 0x1c3   :  { %v5340_v22 = vmax.f32 %v1240_v57, %v1255_v52  ;;  %v13633_v33 = vpop.f32.mrb[114].mxu0  ;;  %13887 = vmatprep.mubr.msk.f32.mxu1 %vm195_vm0, %v16945_v35  ;;  %v5928_v45 = vrot.slane %v17718_v14, 1  ;;  %14775 = vmatpush3.bf16.msra.mxu1 %v17624_v7  ;;  %v1969_v1 = vsel %vm1869_vm1, %v17672_v63, %v1806_v34 }
 0x1c4   :  { %v5399_v3 = vmax.f32 %v5339_v9, %v5375_v41  ;;  %v5471_v38 = vrot.slane %v5341_v60, 1  ;;  %v1264_v54 = vpop.f32.mrb[115].mxu0  ;;  %14777 = vmatprep.subr.bf16.mxu1 %v17689_v42  ;;  %20577 = vst [vmem:[#allocation56_spill] sm:$0xff] %v17729_v29  ;;  %v1830_v9 = vrot.slane %v17672_v63, 2 }
 0x1c5   :  { %v5423_v24 = vrot.slane %v5340_v22, 1  ;;  %v17732_v18 = vsel %vm1947_vm7, %v5928_v45, %v5929_v0  ;;  %v1265_v52 = vadd.f32 %v17681_v61, %v1264_v54 }
 0x1c6   :  { %20578 = vst [vmem:[#allocation57_spill] sm:$0xff] %v17732_v18  ;;  %v5519_v48 = vrot.slane %v5399_v3, 1  ;;  %v5543_v51 = vrot.slane %v5399_v3, 2  ;;  %v5495_v23 = vmax.f32 %v5341_v60, %v5471_v38  ;;  %13888 = vmatmul.mubr.msk.f32.gmra.mrb[2].mxu1 %vm195_vm0, %v20579_v39  ;;  %14191 = vmatmul.mubr.msk.f32.gmra.mrb[156].mxu0 %vm195_vm0, %v17732_v18  ;;  %v5567_v41 = vrot.slane %v5399_v3, 3  ;;  %v20581_v39 = vld [vmem:[#allocation19_spill] sm:$0xff] }
 0x1c7   :  { %v5447_v57 = vmax.f32 %v5340_v22, %v5423_v24  ;;  %v13636_v25 = vpop.f32.mrb[116].mxu0  ;;  %13890 = vmatprep.mubr.msk.f32.mxu1 %vm195_vm0, %v20580_v11  ;;  %14779 = vmatpush3.bf16.msra.mxu1 %v17689_v42 }
 0x1c8   :  { %v5783_v60 = vsel %vm1869_vm1, %v5399_v3, %v5519_v48  ;;  %v5711_v45 = vrot.slane %v5495_v23, 1  ;;  %v5735_v0 = vrot.slane %v5495_v23, 2  ;;  %v1274_v38 = vpop.f32.mrb[117].mxu0  ;;  %14781 = vmatprep.subr.bf16.mxu1 %v17729_v29  ;;  %v5759_v34 = vrot.slane %v5495_v23, 3 }
 0x1c9   :  { %v5795_v7 = vsel %vm1882_vm2, %v5783_v60, %v5543_v51  ;;  %v5603_v22 = vrot.slane %v5447_v57, 4  ;;  %v5627_v24 = vrot.slane %v5447_v57, 5  ;;  %v5651_v11 = vrot.slane %v5447_v57, 6 }
 0x1ca   :  { %v5807_v54 = vsel %vm1895_vm3, %v5795_v7, %v5567_v41  ;;  %v5867_v18 = vsel %vm1869_vm1, %v5495_v23, %v5711_v45  ;;  %v1280_v42 = vadd.f32 %v17681_v61, %v13636_v25  ;;  %13891 = vmatmul.mubr.msk.f32.gmra.mrb[4].mxu1 %vm195_vm0, %v20581_v39  ;;  %v5675_v48 = vrot.slane %v5447_v57, 7 }
 0x1cb   :  { %v5879_v3 = vsel %vm1882_vm2, %v5867_v18, %v5735_v0  ;;  %v5819_v35 = vsel %vm1908_vm4, %v5807_v54, %v5603_v22  ;;  %v1275_v51 = vadd.f32 %v17681_v61, %v1274_v38  ;;  %v13639_v60 = vpop.f32.mrb[118].mxu0  ;;  %13893 = vmatprep.mubr.msk.f32.mxu1 %vm195_vm0, %v17175_v19  ;;  %v1270_v57 = vadd.f32 %v17681_v61, %v13633_v33  ;;  %v11990_v38 = vld [vmem:[%s20362_s3 + $0x190] sm:$0xff] }
 0x1cc   :  { %v5831_v7 = vsel %vm1921_vm5, %v5819_v35, %v5627_v24  ;;  %v5342_v23 = vmax.f32 %v1265_v52, %v1280_v42  ;;  %v1290_v41 = vadd.f32 %v17681_v61, %v13639_v60  ;;  %v1284_v25 = vpop.f32.mrb[119].mxu0  ;;  %v17761_v45 = vsel %vm1895_vm3, %v5879_v3, %v5759_v34  ;;  %v11991_v35 = vld [vmem:[%s20362_s3 + $0x198] sm:$0xff] }
 0x1cd   :  { %v5843_v18 = vsel %vm1934_vm6, %v5831_v7, %v5651_v11  ;;  %v1285_v0 = vadd.f32 %v17681_v61, %v1284_v25  ;;  %v20582_v22 = vld [vmem:[#allocation31_spill] sm:$0xff]  ;;  %v1981_v33 = vsel %vm1882_vm2, %v1969_v1, %v1830_v9  ;;  %v1854_v11 = vrot.slane %v17672_v63, 3 }
 0x1ce   :  { %v17773_v42 = vsel %vm1947_vm7, %v5843_v18, %v5675_v48  ;;  %v5376_v52 = vrot.slane %v5342_v23, 1  ;;  %v5344_v34 = vmax.f32 %v1275_v51, %v1290_v41  ;;  %13894 = vmatmul.mubr.msk.f32.gmra.mrb[6].mxu1 %vm195_vm0, %v20582_v22  ;;  %v5932_v3 = vrot.slane %v17761_v45, 1  ;;  %v12000_v48 = vld [vmem:[%s20362_s3 + $0x1a0] sm:$0xff]  ;;  %v12001_v51 = vld [vmem:[%s20362_s3 + $0x1a8] sm:$0xff] }
 0x1cf   :  { %v5343_v24 = vmax.f32 %v1270_v57, %v1285_v0  ;;  %13904 = vmatprep.mubr.msk.f32.mxu1 %vm195_vm0, %v16965_v49  ;;  %v5931_v54 = vrot.slane %v17773_v42, 1  ;;  %v13642_v60 = vpop.f32.mrb[120].mxu0  ;;  %v17789_v63 = vpack.c.bf16 %v11991_v35, %v11990_v38  ;;  %v17795_v25 = vsel %vm1895_vm3, %v1981_v33, %v1854_v11  ;;  %v20586_v38 = vld [vmem:[#allocation35_spill] sm:$0xff] }
 0x1d0   :  { %v5400_v9 = vmax.f32 %v5342_v23, %v5376_v52  ;;  %v5472_v1 = vrot.slane %v5344_v34, 1  ;;  %v1294_v7 = vpop.f32.mrb[121].mxu0  ;;  %v17801_v23 = vpack.c.bf16 %v12001_v51, %v12000_v48  ;;  %v1568_v35 = vrot.slane %v20586_v38, 1 }
 0x1d1   :  { %20583 = vst [vmem:[#allocation19_spill] sm:$0xff] %v17789_v63  ;;  %v5424_v41 = vrot.slane %v5343_v24, 1  ;;  %v17792_v49 = vsel %vm1947_vm7, %v5931_v54, %v5932_v3  ;;  %v1300_v33 = vadd.f32 %v17681_v61, %v13642_v60  ;;  %v1295_v48 = vadd.f32 %v17681_v61, %v1294_v7 }
 0x1d2   :  { %20584 = vst [vmem:[#allocation31_spill] sm:$0xff] %v17792_v49  ;;  %v5520_v18 = vrot.slane %v5400_v9, 1  ;;  %v5544_v57 = vrot.slane %v5400_v9, 2  ;;  %v5496_v0 = vmax.f32 %v5344_v34, %v5472_v1  ;;  %13905 = vmatmul.mubr.msk.f32.vlgmr.msra.gmra.mrb[0].mxu1 %vm195_vm0, %v16969_v2  ;;  %14193 = vmatprep.mubr.msk.f32.mxu0 %vm195_vm0, %v17792_v49  ;;  %20585 = vst [vmem:[#allocation58_spill] sm:$0xff] %v17801_v23  ;;  %v5568_v52 = vrot.slane %v5400_v9, 3 }
 0x1d3   :  { %v5448_v19 = vmax.f32 %v5343_v24, %v5424_v41  ;;  %13907 = vmatprep.mubr.msk.f32.mxu1 %vm195_vm0, %v16972_v5  ;;  %14783 = vmatpush3.bf16.msra.mxu1 %v17729_v29  ;;  %v13645_v34 = vpop.f32.mrb[122].mxu0 }
 0x1d4   :  { %v5784_v11 = vsel %vm1869_vm1, %v5400_v9, %v5520_v18  ;;  %v5712_v54 = vrot.slane %v5496_v0, 1  ;;  %v5736_v3 = vrot.slane %v5496_v0, 2  ;;  %14785 = vmatprep.subr.bf16.mxu1 %v17789_v63  ;;  %v1304_v51 = vpop.f32.mrb[123].mxu0  ;;  %v5760_v24 = vrot.slane %v5496_v0, 3 }
 0x1d5   :  { %v5796_v1 = vsel %vm1882_vm2, %v5784_v11, %v5544_v57  ;;  %v5604_v41 = vrot.slane %v5448_v19, 4  ;;  %v5628_v49 = vrot.slane %v5448_v19, 5  ;;  %v5652_v60 = vrot.slane %v5448_v19, 6 }
 0x1d6   :  { %v5808_v5 = vsel %vm1895_vm3, %v5796_v1, %v5568_v52  ;;  %v5868_v29 = vsel %vm1869_vm1, %v5496_v0, %v5712_v54  ;;  %13908 = vmatmul.mubr.msk.f32.gmra.mrb[2].mxu1 %vm195_vm0, %v17010_v16  ;;  %v1310_v9 = vadd.f32 %v17681_v61, %v13645_v34  ;;  %v5676_v2 = vrot.slane %v5448_v19, 7 }
 0x1d7   :  { %v5880_v18 = vsel %vm1882_vm2, %v5868_v29, %v5736_v3  ;;  %v5820_v7 = vsel %vm1908_vm4, %v5808_v5, %v5604_v41  ;;  %13910 = vmatprep.mubr.msk.f32.mxu1 %vm195_vm0, %v17050_v46  ;;  %14787 = vmatpush3.bf16.msra.mxu1 %v17789_v63  ;;  %v1305_v57 = vadd.f32 %v17681_v61, %v1304_v51  ;;  %v13648_v52 = vpop.f32.mrb[124].mxu0  ;;  %v3497_v3 = vrot.slane %v20582_v22, 1 }
 0x1d8   :  { %v5832_v0 = vsel %vm1921_vm5, %v5820_v7, %v5628_v49  ;;  %v17825_v11 = vsel %vm1895_vm3, %v5880_v18, %v5760_v24  ;;  %14789 = vmatprep.subr.bf16.mxu1 %v17801_v23  ;;  %v5345_v34 = vmax.f32 %v1295_v48, %v1310_v9  ;;  %v1320_v19 = vadd.f32 %v17681_v61, %v13648_v52  ;;  %v1314_v29 = vpop.f32.mrb[125].mxu0 }
 0x1d9   :  { %v17830_v5 = vmax.f32 %v20586_v38, %v1568_v35  ;;  %v5844_v54 = vsel %vm1934_vm6, %v5832_v0, %v5652_v60  ;;  %v1315_v48 = vadd.f32 %v17681_v61, %v1314_v29  ;;  %v3498_v38 = vrot.slane %v17795_v25, 1 }
 0x1da   :  { %v17835_v51 = vsel %vm1947_vm7, %v5844_v54, %v5676_v2  ;;  %13911 = vmatmul.mubr.msk.f32.gmra.mrb[4].mxu1 %vm195_vm0, %v17100_v43  ;;  %v5377_v49 = vrot.slane %v5345_v34, 1  ;;  %v17839_v1 = vmax.f32 %v1305_v57, %v1320_v19  ;;  %v5935_v24 = vrot.slane %v17825_v11, 1 }
 0x1db   :  { %13913 = vmatprep.mubr.msk.f32.mxu1 %vm195_vm0, %v17443_v20  ;;  %v5934_v35 = vrot.slane %v17835_v51, 1  ;;  %v13651_v41 = vpop.f32.mrb[126].mxu0  ;;  %v5346_v60 = vmax.f32 %v1300_v33, %v1315_v48  ;;  %v17848_v18 = vsel %vm1947_vm7, %v3497_v3, %v3498_v38  ;;  %v1808_v57 = vrot.slane %v17830_v5, 1  ;;  %v12003_v48 = vld [vmem:[%s20362_s3 + $0x1b8] sm:$0xff] }
 0x1dc   :  { %v5401_v2 = vmax.f32 %v5345_v34, %v5377_v49  ;;  %v1324_v9 = vpop.f32.mrb[127].mxu0  ;;  %v12002_v49 = vld [vmem:[%s20362_s3 + $0x1b0] sm:$0xff] }
 0x1dd   :  { %v17851_v7 = vsel %vm1947_vm7, %v5934_v35, %v5935_v24  ;;  %v5425_v33 = vrot.slane %v5346_v60, 1  ;;  %v1325_v54 = vadd.f32 %v17681_v61, %v1324_v9  ;;  %v1832_v24 = vrot.slane %v17830_v5, 2 }
 0x1de   :  { %20587 = vst [vmem:[#allocation35_spill] sm:$0xff] %v17851_v7  ;;  %13914 = vmatmul.mubr.msk.f32.gmra.mrb[6].mxu1 %vm195_vm0, %v17848_v18  ;;  %14194 = vmatmul.mubr.msk.f32.gmra.mrb[158].mxu0 %vm195_vm0, %v17851_v7  ;;  %v5521_v52 = vrot.slane %v5401_v2, 1  ;;  %v5545_v0 = vrot.slane %v5401_v2, 2  ;;  %v5569_v19 = vrot.slane %v5401_v2, 3  ;;  %v17888_v63 = vpack.c.bf16 %v12003_v48, %v12002_v49  ;;  %v12012_v7 = vld [vmem:[%s20362_s3 + $0x1c0] sm:$0xff] }
 0x1df   :  { %13924 = vmatprep.mubr.msk.f32.mxu1 %vm195_vm0, %v16838_v28  ;;  %14204 = vmatprep.mubr.msk.f32.mxu0 %vm195_vm0, %v17416_v10  ;;  %v13654_v34 = vpop.f32.mrb[128].mxu0  ;;  %v5449_v38 = vmax.f32 %v5346_v60, %v5425_v33 }
 0x1e0   :  { %v5785_v29 = vsel %vm1869_vm1, %v5401_v2, %v5521_v52  ;;  %v1334_v3 = vpop.f32.mrb[129].mxu0  ;;  %v1340_v35 = vadd.f32 %v17681_v61, %v13654_v34  ;;  %v1971_v2 = vsel %vm1869_vm1, %v17830_v5, %v1808_v57  ;;  %v1330_v57 = vadd.f32 %v17681_v61, %v13651_v41  ;;  %v12013_v41 = vld [vmem:[%s20362_s3 + $0x1c8] sm:$0xff] }
 0x1e1   :  { %v5797_v28 = vsel %vm1882_vm2, %v5785_v29, %v5545_v0  ;;  %v1335_v52 = vadd.f32 %v17681_v61, %v1334_v3  ;;  %v5605_v60 = vrot.slane %v5449_v38, 4  ;;  %v5629_v0 = vrot.slane %v5449_v38, 5  ;;  %v20588_v29 = vld [vmem:[#allocation5_spill] sm:$0xff] }
 0x1e2   :  { %13925 = vmatmul.mubr.msk.f32.vlgmr.msra.gmra.mrb[0].mxu1 %vm195_vm0, %v16897_v37  ;;  %14205 = vmatmul.mubr.msk.f32.vlgmr.msra.gmra.mrb[152].mxu0 %vm195_vm0, %v17474_v50  ;;  %v5809_v9 = vsel %vm1895_vm3, %v5797_v28, %v5569_v19  ;;  %v5653_v33 = vrot.slane %v5449_v38, 6  ;;  %20589 = vst [vmem:[#allocation5_spill] sm:$0xff] %v17888_v63  ;;  %v5677_v19 = vrot.slane %v5449_v38, 7  ;;  %v5348_v3 = vmax.f32 %v1325_v54, %v1340_v35 }
 0x1e3   :  { %14903 = vmatpush3.bf16.msra.mxu0 %v16402_v8  ;;  %13927 = vmatprep.mubr.msk.f32.mxu1 %vm195_vm0, %v16958_v56  ;;  %v13657_v34 = vpop.f32.mrb[130].mxu0  ;;  %v5821_v56 = vsel %vm1908_vm4, %v5809_v9, %v5605_v60  ;;  %v1983_v35 = vsel %vm1882_vm2, %v1971_v2, %v1832_v24  ;;  %v3620_v9 = vrot.slane %v20582_v22, 2 }
 0x1e4   :  { %14207 = vmatprep.mubr.msk.f32.mxu0 %vm195_vm0, %v17534_v40  ;;  %14905 = vmatprep.subr.bf16.mxu0 %v20588_v29  ;;  %v1350_v8 = vadd.f32 %v17681_v61, %v13657_v34  ;;  %v1344_v28 = vpop.f32.mrb[131].mxu0  ;;  %v5833_v54 = vsel %vm1921_vm5, %v5821_v56, %v5629_v0  ;;  %v5378_v48 = vrot.slane %v5348_v3, 1  ;;  %v1856_v34 = vrot.slane %v17830_v5, 3  ;;  %v20592_v0 = vld [vmem:[#allocation6_spill] sm:$0xff] }
 0x1e5   :  { %14791 = vmatpush3.bf16.msra.mxu1 %v17801_v23  ;;  %v1345_v49 = vadd.f32 %v17681_v61, %v1344_v28  ;;  %v5845_v60 = vsel %vm1934_vm6, %v5833_v54, %v5653_v33  ;;  %v17917_v56 = vpack.c.bf16 %v12013_v41, %v12012_v7  ;;  %v6179_v7 = vrot.slane %v17416_v10, 2 }
 0x1e6   :  { %13928 = vmatmul.mubr.msk.f32.gmra.mrb[2].mxu1 %vm195_vm0, %v17013_v17  ;;  %14208 = vmatmul.mubr.msk.f32.gmra.mrb[154].mxu0 %vm195_vm0, %v17588_v21  ;;  %v17905_v38 = vmax.f32 %v1335_v52, %v1350_v8  ;;  %v5402_v24 = vmax.f32 %v5348_v3, %v5378_v48  ;;  %v17920_v2 = vsel %vm1947_vm7, %v5845_v60, %v5677_v19  ;;  %v3621_v52 = vrot.slane %v17795_v25, 2  ;;  %v20594_v48 = vld [vmem:[#allocation42_spill] sm:$0xff] }
 0x1e7   :  { %13930 = vmatprep.mubr.msk.f32.mxu1 %vm195_vm0, %v17053_v47  ;;  %14210 = vmatprep.mubr.msk.f32.mxu0 %vm195_vm0, %v17650_v36  ;;  %v5349_v28 = vmax.f32 %v1330_v57, %v1345_v49  ;;  %v13660_v23 = vpop.f32.mrb[132].mxu0  ;;  %20591 = vst [vmem:[#allocation60_spill] sm:$0xff] %v17917_v56  ;;  %v17926_v57 = vsel %vm1895_vm3, %v1983_v35, %v1856_v34  ;;  %v4725_v54 = vrot.slane %v17389_v4, 1  ;;  %v6180_v35 = vrot.slane %v20594_v48, 2 }
 0x1e8   :  { %20590 = vst [vmem:[#allocation59_spill] sm:$0xff] %v17905_v38  ;;  %14907 = vmatpush3.bf16.msra.mxu0 %v20588_v29  ;;  %14793 = vmatprep.subr.bf16.mxu1 %v17888_v63  ;;  %v1354_v5 = vpop.f32.mrb[133].mxu0  ;;  %v5522_v29 = vrot.slane %v5402_v24, 1  ;;  %v5546_v19 = vrot.slane %v5402_v24, 2  ;;  %v5570_v3 = vrot.slane %v5402_v24, 3  ;;  %v17938_v8 = vsel %vm1934_vm6, %v3620_v9, %v3621_v52 }
 0x1e9   :  { %14795 = vmatpush3.bf16.msra.mxu1 %v17888_v63  ;;  %14909 = vmatprep.subr.bf16.mxu0 %v20592_v0  ;;  %v5426_v33 = vrot.slane %v5349_v28, 1  ;;  %20593 = vst [vmem:[#allocation6_spill] sm:$0xff] %v17938_v8  ;;  %v6182_v34 = vrot.slane %v17474_v50, 2  ;;  %v1355_v63 = vadd.f32 %v17681_v61, %v1354_v5  ;;  %v4726_v52 = vrot.slane %v17926_v57, 1 }
 0x1ea   :  { %13931 = vmatmul.mubr.msk.f32.gmra.mrb[4].mxu1 %vm195_vm0, %v17103_v26  ;;  %14211 = vmatmul.mubr.msk.f32.gmra.mrb[156].mxu0 %vm195_vm0, %v17718_v14  ;;  %v5786_v60 = vsel %vm1869_vm1, %v5402_v24, %v5522_v29  ;;  %v6183_v24 = vrot.slane %v17462_v27, 2  ;;  %v5094_v47 = vrot.slane %v17389_v4, 4 }
 0x1eb   :  { %13933 = vmatprep.mubr.msk.f32.mxu1 %vm195_vm0, %v17524_v53  ;;  %14213 = vmatprep.mubr.msk.f32.mxu0 %vm195_vm0, %v17773_v42  ;;  %v17940_v41 = vmax.f32 %v5349_v28, %v5426_v33  ;;  %v13663_v49 = vpop.f32.mrb[134].mxu0  ;;  %v6185_v53 = vrot.slane %v17534_v40, 2  ;;  %v5798_v9 = vsel %vm1882_vm2, %v5786_v60, %v5546_v19  ;;  %v6181_v33 = vsel %vm1934_vm6, %v6179_v7, %v6180_v35 }
 0x1ec   :  { %14797 = vmatprep.subr.bf16.mxu1 %v17917_v56  ;;  %v1364_v38 = vpop.f32.mrb[135].mxu0  ;;  %v5810_v5 = vsel %vm1895_vm3, %v5798_v9, %v5570_v3  ;;  %v1370_v29 = vadd.f32 %v17681_v61, %v13663_v49  ;;  %v6186_v19 = vrot.slane %v17517_v32, 2  ;;  %v17970_v26 = vsel %vm1934_vm6, %v6182_v34, %v6183_v24 }
 0x1ed   :  { %v5606_v28 = vrot.slane %v17940_v41, 4  ;;  %v1365_v7 = vadd.f32 %v17681_v61, %v1364_v38  ;;  %20595 = vst [vmem:[#allocation42_spill] sm:$0xff] %v17970_v26  ;;  %v6188_v3 = vrot.slane %v17588_v21, 2  ;;  %v12015_v38 = vld [vmem:[%s20362_s3 + $0x1d8] sm:$0xff]  ;;  %v6191_v24 = vrot.slane %v17650_v36, 2 }
 0x1ee   :  { %13934 = vmatmul.mubr.msk.f32.gmra.mrb[6].mxu1 %vm195_vm0, %v17938_v8  ;;  %14214 = vmatmul.mubr.msk.f32.gmra.mrb[158].mxu0 %vm195_vm0, %v17835_v51  ;;  %v1360_v8 = vadd.f32 %v17681_v61, %v13660_v23  ;;  %v17973_v49 = vmax.f32 %v1355_v63, %v1370_v29  ;;  %v12014_v23 = vld [vmem:[%s20362_s3 + $0x1d0] sm:$0xff]  ;;  %v4971_v63 = vrot.slane %v17389_v4, 3  ;;  %v4849_v29 = vrot.slane %v17926_v57, 2 }
 0x1ef   :  { %13944 = vmatprep.mubr.msk.f32.mxu1 %vm195_vm0, %v17123_v59  ;;  %14224 = vmatprep.mubr.msk.f32.mxu0 %vm195_vm0, %v6181_v33  ;;  %v17965_v60 = vsel %vm1908_vm4, %v5810_v5, %v5606_v28  ;;  %v13666_v35 = vpop.f32.mrb[136].mxu0  ;;  %v17977_v33 = vsel %vm1934_vm6, %v6185_v53, %v6186_v19  ;;  %v4848_v28 = vrot.slane %v17389_v4, 2  ;;  %v6189_v53 = vrot.slane %v17580_v12, 2  ;;  %v20598_v19 = vld [vmem:[#allocation23_spill] sm:$0xff]  ;;  %v20607_v4 = vld [vmem:[#allocation28_spill] sm:$0xff] }
 0x1f0   :  { %v1380_v59 = vadd.f32 %v17681_v61, %v13666_v35  ;;  %v1374_v9 = vpop.f32.mrb[137].mxu0  ;;  %20596 = vst [vmem:[#allocation61_spill] sm:$0xff] %v17977_v33 }
 0x1f1   :  { %v1375_v34 = vadd.f32 %v17681_v61, %v1374_v9 }
 0x1f2   :  { %13945 = vmatmul.mubr.msk.f32.vlgmr.msra.gmra.mrb[0].mxu1 %vm195_vm0, %v17126_v30  ;;  %14225 = vmatmul.mubr.msk.f32.vlgmr.msra.gmra.mrb[152].mxu0 %vm195_vm0, %v17970_v26  ;;  %v17994_v5 = vmax.f32 %v1365_v7, %v1380_v59  ;;  %v18003_v30 = vsel %vm1947_vm7, %v4725_v54, %v4726_v52  ;;  %v4972_v26 = vrot.slane %v17926_v57, 3  ;;  %v18010_v7 = vsel %vm1934_vm6, %v6188_v3, %v6189_v53  ;;  %v20601_v59 = vld [vmem:[#allocation7_spill] sm:$0xff]  ;;  %v12024_v52 = vld [vmem:[%s20362_s3 + $0x1e0] sm:$0xff]  ;;  %v12025_v3 = vld [vmem:[%s20362_s3 + $0x1e8] sm:$0xff] }
 0x1f3   :  { %14911 = vmatpush3.bf16.msra.mxu0 %v20592_v0  ;;  %13947 = vmatprep.mubr.msk.f32.mxu1 %vm195_vm0, %v20598_v19  ;;  %v18000_v35 = vmax.f32 %v1360_v8, %v1375_v34  ;;  %v13669_v9 = vpop.f32.mrb[138].mxu0  ;;  %20599 = vst [vmem:[#allocation63_spill] sm:$0xff] %v18003_v30  ;;  %20600 = vst [vmem:[#allocation64_spill] sm:$0xff] %v18010_v7  ;;  %v6192_v0 = vrot.slane %v17642_v55, 2  ;;  %v18014_v8 = vpack.c.bf16 %v12015_v38, %v12014_v23  ;;  %v20605_v38 = vld [vmem:[#allocation26_spill] sm:$0xff] }
 0x1f4   :  { %20597 = vst [vmem:[#allocation62_spill] sm:$0xff] %v17994_v5  ;;  %14227 = vmatprep.mubr.msk.f32.mxu0 %vm195_vm0, %v17977_v33  ;;  %14913 = vmatprep.subr.bf16.mxu0 %v20601_v59  ;;  %v1384_v34 = vpop.f32.mrb[139].mxu0  ;;  %v6194_v54 = vrot.slane %v17718_v14, 2  ;;  %v18025_v53 = vsel %vm1934_vm6, %v4848_v28, %v4849_v29  ;;  %v18028_v5 = vsel %vm1921_vm5, %v4971_v63, %v4972_v26  ;;  %v5095_v23 = vrot.slane %v17926_v57, 4 }
 0x1f5   :  { %20602 = vst [vmem:[#allocation7_spill] sm:$0xff] %v18014_v8  ;;  %14799 = vmatpush3.bf16.msra.mxu1 %v17917_v56  ;;  %20603 = vst [vmem:[#allocation65_spill] sm:$0xff] %v18025_v53  ;;  %v18036_v56 = vsel %vm1934_vm6, %v6191_v24, %v6192_v0  ;;  %v6197_v30 = vrot.slane %v17773_v42, 2  ;;  %v6195_v26 = vrot.slane %v17706_v58, 2  ;;  %v6198_v63 = vrot.slane %v17761_v45, 2 }
 0x1f6   :  { %20604 = vst [vmem:[#allocation66_spill] sm:$0xff] %v18028_v5  ;;  %13948 = vmatmul.mubr.msk.f32.gmra.mrb[2].mxu1 %vm195_vm0, %v20605_v38  ;;  %14228 = vmatmul.mubr.msk.f32.gmra.mrb[154].mxu0 %vm195_vm0, %v18010_v7  ;;  %20606 = vst [vmem:[#allocation67_spill] sm:$0xff] %v18036_v56  ;;  %v18045_v28 = vsel %vm1908_vm4, %v5094_v47, %v5095_v23  ;;  %v18050_v24 = vpack.c.bf16 %v12025_v3, %v12024_v52  ;;  %v3743_v53 = vrot.slane %v20582_v22, 3  ;;  %v20612_v23 = vld [vmem:[#allocation29_spill] sm:$0xff] }
 0x1f7   :  { %13950 = vmatprep.mubr.msk.f32.mxu1 %vm195_vm0, %v20607_v4  ;;  %14230 = vmatprep.mubr.msk.f32.mxu0 %vm195_vm0, %v18036_v56  ;;  %v13672_v57 = vpop.f32.mrb[140].mxu0  ;;  %20608 = vst [vmem:[#allocation68_spill] sm:$0xff] %v18045_v28  ;;  %v1385_v29 = vadd.f32 %v17681_v61, %v1384_v34  ;;  %v18054_v5 = vsel %vm1934_vm6, %v6194_v54, %v6195_v26  ;;  %v3744_v56 = vrot.slane %v17795_v25, 3  ;;  %v6200_v47 = vrot.slane %v17835_v51, 2  ;;  %v20614_v26 = vld [vmem:[#allocation51_spill] sm:$0xff] }
 0x1f8   :  { %14915 = vmatpush3.bf16.msra.mxu0 %v20601_v59  ;;  %14801 = vmatprep.subr.bf16.mxu1 %v18014_v8  ;;  %20609 = vst [vmem:[#allocation69_spill] sm:$0xff] %v18050_v24  ;;  %v1394_v0 = vpop.f32.mrb[141].mxu0  ;;  %20610 = vst [vmem:[#allocation70_spill] sm:$0xff] %v18054_v5  ;;  %v20611_v59 = vld [vmem:[#allocation8_spill] sm:$0xff]  ;;  %v18066_v34 = vsel %vm1934_vm6, %v6197_v30, %v6198_v63  ;;  %v6332_v54 = vrot.slane %v17416_v10, 3  ;;  %v5630_v52 = vrot.slane %v17940_v41, 5 }
 0x1f9   :  { %14803 = vmatpush3.bf16.msra.mxu1 %v18014_v8  ;;  %14917 = vmatprep.subr.bf16.mxu0 %v20611_v59  ;;  %20613 = vst [vmem:[#allocation8_spill] sm:$0xff] %v18066_v34  ;;  %v1400_v3 = vadd.f32 %v17681_v61, %v13672_v57  ;;  %v6201_v28 = vrot.slane %v17825_v11, 2  ;;  %v5654_v8 = vrot.slane %v17940_v41, 6  ;;  %v1395_v30 = vadd.f32 %v17681_v61, %v1394_v0 }
 0x1fa   :  { %13951 = vmatmul.mubr.msk.f32.gmra.mrb[4].mxu1 %vm195_vm0, %v20612_v23  ;;  %14231 = vmatmul.mubr.msk.f32.gmra.mrb[156].mxu0 %vm195_vm0, %v18054_v5  ;;  %v1390_v5 = vadd.f32 %v17681_v61, %v13669_v9  ;;  %v6333_v23 = vrot.slane %v20594_v48, 3  ;;  %v5678_v57 = vrot.slane %v17940_v41, 7  ;;  %v18086_v7 = vsel %vm1921_vm5, %v3743_v53, %v3744_v56 }
 0x1fb   :  { %13953 = vmatprep.mubr.msk.f32.mxu1 %vm195_vm0, %v20614_v26  ;;  %14233 = vmatprep.mubr.msk.f32.mxu0 %vm195_vm0, %v18066_v34  ;;  %v13675_v63 = vpop.f32.mrb[142].mxu0  ;;  %v18082_v4 = vmax.f32 %v1385_v29, %v1400_v3  ;;  %v18089_v38 = vsel %vm1934_vm6, %v6200_v47, %v6201_v28  ;;  %v6335_v9 = vrot.slane %v17474_v50, 3  ;;  %v5834_v56 = vsel %vm1921_vm5, %v17965_v60, %v5630_v52 }
 0x1fc   :  { %14805 = vmatprep.subr.bf16.mxu1 %v18050_v24  ;;  %v1410_v26 = vadd.f32 %v17681_v61, %v13675_v63  ;;  %v1404_v34 = vpop.f32.mrb[143].mxu0  ;;  %v6334_v41 = vsel %vm1921_vm5, %v6332_v54, %v6333_v23  ;;  %v6338_v53 = vrot.slane %v17534_v40, 3  ;;  %v5846_v47 = vsel %vm1934_vm6, %v5834_v56, %v5654_v8  ;;  %v12026_v54 = vld [vmem:[%s20362_s3 + $0x1f0] sm:$0xff] }
 0x1fd   :  { %v1405_v0 = vadd.f32 %v17681_v61, %v1404_v34  ;;  %v6336_v61 = vrot.slane %v17462_v27, 3  ;;  %v18111_v23 = vsel %vm1947_vm7, %v5846_v47, %v5678_v57  ;;  %v6339_v60 = vrot.slane %v17517_v32, 3 }
 0x1fe   :  { %13954 = vmatmul.mubr.msk.f32.gmra.mrb[6].mxu1 %vm195_vm0, %v18086_v7  ;;  %14234 = vmatmul.mubr.msk.f32.gmra.mrb[158].mxu0 %vm195_vm0, %v18089_v38  ;;  %v18098_v29 = vmax.f32 %v1395_v30, %v1410_v26  ;;  %20617 = vst [vmem:[#allocation73_spill] sm:$0xff] %v18111_v23  ;;  %v6344_v8 = vrot.slane %v17650_v36, 3  ;;  %v6342_v3 = vrot.slane %v17580_v12, 3  ;;  %v6345_v26 = vrot.slane %v17642_v55, 3  ;;  %v20618_v30 = vld [vmem:[#allocation18_spill] sm:$0xff]  ;;  %v20629_v23 = vld [vmem:[#allocation16_spill] sm:$0xff] }
 0x1ff   :  { %13964 = vmatprep.mubr.msk.f32.mxu1 %vm195_vm0, %v17230_v62  ;;  %14244 = vmatprep.mubr.msk.f32.mxu0 %vm195_vm0, %v6334_v41  ;;  %v18107_v28 = vmax.f32 %v1390_v5, %v1405_v0  ;;  %v18114_v34 = vsel %vm1921_vm5, %v6335_v9, %v6336_v61  ;;  %v6341_v62 = vrot.slane %v17588_v21, 3  ;;  %v12027_v5 = vld [vmem:[%s20362_s3 + $0x1f8] sm:$0xff]  ;;  %v18133_v52 = vsel %vm1921_vm5, %v6338_v53, %v6339_v60  ;;  %v12036_v9 = vld [vmem:[%s20362_s3 + $0x200] sm:$0xff]  ;;  %v12037_v0 = vld [vmem:[%s20362_s3 + $0x208] sm:$0xff] }
 0x200   :  { %20615 = vst [vmem:[#allocation71_spill] sm:$0xff] %v18098_v29  ;;  %v18140_v63 = vpack.c.bf16 %v12027_v5, %v12026_v54  ;;  %v18158_v41 = vsel %vm1921_vm5, %v6344_v8, %v6345_v26  ;;  %v6350_v56 = vrot.slane %v17773_v42, 3  ;;  %v20620_v61 = vld [vmem:[#allocation33_spill] sm:$0xff]  ;;  %v6348_v53 = vrot.slane %v17706_v58, 3 }
 0x201   :  { %20616 = vst [vmem:[#allocation72_spill] sm:$0xff] %v18107_v28  ;;  %v18143_v57 = vsel %vm1921_vm5, %v6341_v62, %v6342_v3  ;;  %v6351_v47 = vrot.slane %v17761_v45, 3  ;;  %v18169_v60 = vpack.c.bf16 %v12037_v0, %v12036_v9  ;;  %v3866_v54 = vrot.slane %v20582_v22, 4  ;;  %v20622_v8 = vld [vmem:[#allocation21_spill] sm:$0xff]  ;;  %v20623_v3 = vld [vmem:[#allocation34_spill] sm:$0xff]  ;;  %v20631_v28 = vld [vmem:[#allocation32_spill] sm:$0xff] }
 0x202   :  { %13965 = vmatmul.mubr.msk.f32.vlgmr.msra.gmra.mrb[0].mxu1 %vm195_vm0, %v17262_v31  ;;  %14245 = vmatmul.mubr.msk.f32.vlgmr.msra.gmra.mrb[152].mxu0 %vm195_vm0, %v18114_v34  ;;  %20619 = vst [vmem:[#allocation18_spill] sm:$0xff] %v18140_v63  ;;  %v6353_v5 = vrot.slane %v17835_v51, 3  ;;  %v6354_v9 = vrot.slane %v17825_v11, 3  ;;  %v6486_v0 = vrot.slane %v20594_v48, 4  ;;  %v6489_v48 = vrot.slane %v17462_v27, 4 }
 0x203   :  { %14919 = vmatpush3.bf16.msra.mxu0 %v20611_v59  ;;  %13967 = vmatprep.mubr.msk.f32.mxu1 %vm195_vm0, %v17269_v13  ;;  %v6347_v59 = vrot.slane %v17718_v14, 3  ;;  %20621 = vst [vmem:[#allocation33_spill] sm:$0xff] %v18169_v60  ;;  %v18183_v26 = vsel %vm1921_vm5, %v6350_v56, %v6351_v47  ;;  %v6491_v47 = vrot.slane %v17534_v40, 4  ;;  %v6497_v27 = vrot.slane %v17650_v36, 4 }
 0x204   :  { %14247 = vmatprep.mubr.msk.f32.mxu0 %vm195_vm0, %v18133_v52  ;;  %14921 = vmatprep.subr.bf16.mxu0 %v20618_v30  ;;  %v18198_v56 = vsel %vm1921_vm5, %v6353_v5, %v6354_v9  ;;  %v6492_v5 = vrot.slane %v17517_v32, 4  ;;  %v20624_v9 = vld [vmem:[#allocation9_spill] sm:$0xff] }
 0x205   :  { %14807 = vmatpush3.bf16.msra.mxu1 %v18050_v24  ;;  %v18172_v62 = vsel %vm1921_vm5, %v6347_v59, %v6348_v53  ;;  %v3867_v59 = vrot.slane %v17795_v25, 4  ;;  %v20625_v32 = vld [vmem:[#allocation13_spill] sm:$0xff] }
 0x206   :  { %13968 = vmatmul.mubr.msk.f32.gmra.mrb[2].mxu1 %vm195_vm0, %v17279_v44  ;;  %14248 = vmatmul.mubr.msk.f32.gmra.mrb[154].mxu0 %vm195_vm0, %v18143_v57 }
 0x207   :  { %13970 = vmatprep.mubr.msk.f32.mxu1 %vm195_vm0, %v20620_v61  ;;  %14250 = vmatprep.mubr.msk.f32.mxu0 %vm195_vm0, %v18158_v41  ;;  %v18195_v53 = vsel %vm1908_vm4, %v3866_v54, %v3867_v59  ;;  %v6494_v59 = vrot.slane %v17588_v21, 4 }
 0x208   :  { %14923 = vmatpush3.bf16.msra.mxu0 %v20618_v30  ;;  %14809 = vmatprep.subr.bf16.mxu1 %v18140_v63  ;;  %v6485_v30 = vrot.slane %v17416_v10, 4  ;;  %v6488_v10 = vrot.slane %v17474_v50, 4 }
 0x209   :  { %14811 = vmatpush3.bf16.msra.mxu1 %v18140_v63  ;;  %14925 = vmatprep.subr.bf16.mxu0 %v20622_v8 }
 0x20a   :  { %13971 = vmatmul.mubr.msk.f32.gmra.mrb[4].mxu1 %vm195_vm0, %v20623_v3  ;;  %14251 = vmatmul.mubr.msk.f32.gmra.mrb[156].mxu0 %vm195_vm0, %v18172_v62  ;;  %v6487_v25 = vsel %vm1908_vm4, %v6485_v30, %v6486_v0  ;;  %v18212_v54 = vsel %vm1908_vm4, %v6488_v10, %v6489_v48  ;;  %v12038_v30 = vld [vmem:[%s20362_s3 + $0x210] sm:$0xff]  ;;  %v18231_v0 = vsel %vm1908_vm4, %v6491_v47, %v6492_v5  ;;  %v6495_v10 = vrot.slane %v17580_v12, 4  ;;  %v12048_v12 = vld [vmem:[%s20362_s3 + $0x220] sm:$0xff]  ;;  %v12049_v47 = vld [vmem:[%s20362_s3 + $0x228] sm:$0xff] }
 0x20b   :  { %13973 = vmatprep.mubr.msk.f32.mxu1 %vm195_vm0, %v17687_v6  ;;  %14253 = vmatprep.mubr.msk.f32.mxu0 %vm195_vm0, %v18183_v26  ;;  %v20626_v48 = vld [vmem:[#allocation27_spill] sm:$0xff] }
 0x20c   :  { %14813 = vmatprep.subr.bf16.mxu1 %v18169_v60  ;;  %v18241_v24 = vsel %vm1908_vm4, %v6494_v59, %v6495_v10  ;;  %v6504_v10 = vrot.slane %v17761_v45, 4 }
 0x20e   :  { %13974 = vmatmul.mubr.msk.f32.gmra.mrb[6].mxu1 %vm195_vm0, %v18195_v53  ;;  %14254 = vmatmul.mubr.msk.f32.gmra.mrb[158].mxu0 %vm195_vm0, %v18198_v56 }
 0x20f   :  { %13984 = vmatprep.mubr.msk.f32.mxu1 %vm195_vm0, %v16880_v15  ;;  %14264 = vmatprep.mubr.msk.f32.mxu0 %vm195_vm0, %v6487_v25  ;;  %v12039_v15 = vld [vmem:[%s20362_s3 + $0x218] sm:$0xff]  ;;  %v6498_v25 = vrot.slane %v17642_v55, 4  ;;  %v20628_v55 = vld [vmem:[#allocation30_spill] sm:$0xff] }
 0x210   :  { %v18238_v63 = vpack.c.bf16 %v12039_v15, %v12038_v30  ;;  %v1567_v5 = vrot.slane %v20628_v55, 1  ;;  %v6503_v30 = vrot.slane %v17773_v42, 4  ;;  %v6501_v15 = vrot.slane %v17706_v58, 4  ;;  %v20632_v58 = vld [vmem:[#allocation25_spill] sm:$0xff] }
 0x211   :  { %v18257_v59 = vsel %vm1908_vm4, %v6497_v27, %v6498_v25  ;;  %v6506_v25 = vrot.slane %v17835_v51, 4 }
 0x212   :  { %13985 = vmatmul.mubr.msk.f32.vlgmr.msra.gmra.mrb[0].mxu1 %vm195_vm0, %v20624_v9  ;;  %14265 = vmatmul.mubr.msk.f32.vlgmr.msra.gmra.mrb[152].mxu0 %vm195_vm0, %v18212_v54  ;;  %20627 = vst [vmem:[#allocation21_spill] sm:$0xff] %v18238_v63  ;;  %v1591_v29 = vmax.f32 %v20628_v55, %v1567_v5  ;;  %v18282_v45 = vsel %vm1908_vm4, %v6503_v30, %v6504_v10  ;;  %v20634_v55 = vld [vmem:[#allocation11_spill] sm:$0xff]  ;;  %v20635_v10 = vld [vmem:[#allocation12_spill] sm:$0xff] }
 0x213   :  { %14927 = vmatpush3.bf16.msra.mxu0 %v20622_v8  ;;  %13987 = vmatprep.mubr.msk.f32.mxu1 %vm195_vm0, %v20625_v32  ;;  %v6500_v8 = vrot.slane %v17718_v14, 4  ;;  %v12051_v30 = vld [vmem:[%s20362_s3 + $0x238] sm:$0xff] }
 0x214   :  { %14267 = vmatprep.mubr.msk.f32.mxu0 %vm195_vm0, %v18231_v0  ;;  %14929 = vmatprep.subr.bf16.mxu0 %v20626_v48  ;;  %v1831_v5 = vrot.slane %v1591_v29, 2 }
 0x215   :  { %14815 = vmatpush3.bf16.msra.mxu1 %v18169_v60  ;;  %v18268_v60 = vpack.c.bf16 %v12049_v47, %v12048_v12  ;;  %v18271_v27 = vsel %vm1908_vm4, %v6500_v8, %v6501_v15  ;;  %v1807_v12 = vrot.slane %v1591_v29, 1  ;;  %v20633_v47 = vld [vmem:[#allocation37_spill] sm:$0xff] }
 0x216   :  { %13988 = vmatmul.mubr.msk.f32.gmra.mrb[2].mxu1 %vm195_vm0, %v20629_v23  ;;  %14268 = vmatmul.mubr.msk.f32.gmra.mrb[154].mxu0 %vm195_vm0, %v18241_v24 }
 0x217   :  { %13990 = vmatprep.mubr.msk.f32.mxu1 %vm195_vm0, %v20581_v39  ;;  %14270 = vmatprep.mubr.msk.f32.mxu0 %vm195_vm0, %v18257_v59  ;;  %20630 = vst [vmem:[#allocation34_spill] sm:$0xff] %v18268_v60  ;;  %v1970_v15 = vsel %vm1869_vm1, %v1591_v29, %v1807_v12 }
 0x218   :  { %14931 = vmatpush3.bf16.msra.mxu0 %v20626_v48  ;;  %14817 = vmatprep.subr.bf16.mxu1 %v18238_v63  ;;  %v6507_v48 = vrot.slane %v17825_v11, 4  ;;  %v12050_v11 = vld [vmem:[%s20362_s3 + $0x230] sm:$0xff] }
 0x219   :  { %14819 = vmatpush3.bf16.msra.mxu1 %v18238_v63  ;;  %14933 = vmatprep.subr.bf16.mxu0 %v20631_v28  ;;  %v12061_v63 = vld [vmem:[%s20362_s3 + $0x248] sm:$0xff] }
 0x21a   :  { %13991 = vmatmul.mubr.msk.f32.gmra.mrb[4].mxu1 %vm195_vm0, %v20632_v58  ;;  %14271 = vmatmul.mubr.msk.f32.gmra.mrb[156].mxu0 %vm195_vm0, %v18271_v27  ;;  %v18291_v8 = vsel %vm1908_vm4, %v6506_v25, %v6507_v48  ;;  %v20636_v25 = vld [vmem:[#allocation36_spill] sm:$0xff]  ;;  %v18319_v48 = vpack.c.bf16 %v12051_v30, %v12050_v11 }
 0x21b   :  { %13993 = vmatprep.mubr.msk.f32.mxu1 %vm195_vm0, %v20582_v22  ;;  %14273 = vmatprep.mubr.msk.f32.mxu0 %vm195_vm0, %v18282_v45 }
 0x21c   :  { %14821 = vmatprep.subr.bf16.mxu1 %v18268_v60  ;;  %20637 = vst [vmem:[#allocation9_spill] sm:$0xff] %v18319_v48 }
 0x21e   :  { %13994 = vmatmul.mubr.msk.f32.gmra.mrb[6].mxu1 %vm195_vm0, %v20633_v47  ;;  %14274 = vmatmul.mubr.msk.f32.gmra.mrb[158].mxu0 %vm195_vm0, %v18291_v8 }
 0x21f   :  { %14004 = vmatprep.mubr.msk.f32.mxu1 %vm195_vm0, %v20634_v55  ;;  %14284 = vmatprep.mubr.msk.f32.mxu0 %vm195_vm0, %v17474_v50  ;;  %v5473_v50 = vrot.slane %v17839_v1, 1  ;;  %v1982_v55 = vsel %vm1882_vm2, %v1970_v15, %v1831_v5  ;;  %v4111_v15 = vrot.slane %v20633_v47, 1 }
 0x221   :  { %v5497_v5 = vmax.f32 %v17839_v1, %v5473_v50 }
 0x222   :  { %14005 = vmatmul.mubr.msk.f32.vlgmr.msra.gmra.mrb[0].mxu1 %vm195_vm0, %v20635_v10  ;;  %14285 = vmatmul.mubr.msk.f32.vlgmr.msra.gmra.mrb[152].mxu0 %vm195_vm0, %v17534_v40 }
 0x223   :  { %14935 = vmatpush3.bf16.msra.mxu0 %v20631_v28  ;;  %14007 = vmatprep.mubr.msk.f32.mxu1 %vm195_vm0, %v17010_v16  ;;  %v12060_v28 = vld [vmem:[%s20362_s3 + $0x240] sm:$0xff]  ;;  %v1855_v16 = vrot.slane %v1591_v29, 3  ;;  %v5713_v1 = vrot.slane %v5497_v5, 1 }
 0x224   :  { %14287 = vmatprep.mubr.msk.f32.mxu0 %vm195_vm0, %v17588_v21  ;;  %14937 = vmatprep.subr.bf16.mxu0 %v20636_v25  ;;  %v18347_v11 = vpack.c.bf16 %v12061_v63, %v12060_v28  ;;  %v20646_v28 = vld [vmem:[#allocation45_spill] sm:$0xff] }
 0x225   :  { %v18321_v12 = vpop.f32.mrb[144].mxu0  ;;  %14823 = vmatpush3.bf16.msra.mxu1 %v18268_v60  ;;  %v18344_v29 = vsel %vm1895_vm3, %v1982_v55, %v1855_v16  ;;  %v5737_v55 = vrot.slane %v5497_v5, 2  ;;  %v5379_v60 = vrot.slane %v17973_v49, 1 }
 0x226   :  { %20638 = vst [vmem:[#allocation13_spill] sm:$0xff] %v18321_v12  ;;  %v18331_v21 = vpop.f32.mrb[145].mxu0  ;;  %14008 = vmatmul.mubr.msk.f32.gmra.mrb[2].mxu1 %vm195_vm0, %v17050_v46  ;;  %14288 = vmatmul.mubr.msk.f32.gmra.mrb[154].mxu0 %vm195_vm0, %v17650_v36  ;;  %20640 = vst [vmem:[#allocation30_spill] sm:$0xff] %v18347_v11  ;;  %v4112_v16 = vrot.slane %v18344_v29, 1 }
 0x227   :  { %20639 = vst [vmem:[#allocation27_spill] sm:$0xff] %v18331_v21  ;;  %14010 = vmatprep.mubr.msk.f32.mxu1 %vm195_vm0, %v17100_v43  ;;  %14290 = vmatprep.mubr.msk.f32.mxu0 %vm195_vm0, %v17718_v14  ;;  %v20642_v21 = vld [vmem:[#allocation38_spill] sm:$0xff] }
 0x228   :  { %14939 = vmatpush3.bf16.msra.mxu0 %v20636_v25  ;;  %14825 = vmatprep.subr.bf16.mxu1 %v18319_v48  ;;  %v18369_v50 = vsel %vm1947_vm7, %v4111_v15, %v4112_v16  ;;  %v12062_v15 = vld [vmem:[%s20362_s3 + $0x250] sm:$0xff]  ;;  %v12063_v16 = vld [vmem:[%s20362_s3 + $0x258] sm:$0xff] }
 0x229   :  { %v18349_v30 = vpop.f32.mrb[146].mxu0  ;;  %14827 = vmatpush3.bf16.msra.mxu1 %v18319_v48  ;;  %14941 = vmatprep.subr.bf16.mxu0 %v20642_v21  ;;  %v20649_v48 = vld [vmem:[#allocation10_spill] sm:$0xff] }
 0x22a   :  { %20641 = vst [vmem:[#allocation16_spill] sm:$0xff] %v18349_v30  ;;  %v18354_v12 = vpop.f32.mrb[147].mxu0  ;;  %14011 = vmatmul.mubr.msk.f32.gmra.mrb[4].mxu1 %vm195_vm0, %v17443_v20  ;;  %14291 = vmatmul.mubr.msk.f32.gmra.mrb[156].mxu0 %vm195_vm0, %v17773_v42 }
 0x22b   :  { %20643 = vst [vmem:[#allocation32_spill] sm:$0xff] %v18354_v12  ;;  %14013 = vmatprep.mubr.msk.f32.mxu1 %vm195_vm0, %v17848_v18  ;;  %14293 = vmatprep.mubr.msk.f32.mxu0 %vm195_vm0, %v17835_v51 }
 0x22c   :  { %14829 = vmatprep.subr.bf16.mxu1 %v18347_v11 }
 0x22d   :  { %v18366_v63 = vpop.f32.mrb[148].mxu0 }
 0x22e   :  { %20644 = vst [vmem:[#allocation25_spill] sm:$0xff] %v18366_v63  ;;  %v18371_v25 = vpop.f32.mrb[149].mxu0  ;;  %14014 = vmatmul.mubr.msk.f32.gmra.mrb[6].mxu1 %vm195_vm0, %v18369_v50  ;;  %14294 = vmatmul.mubr.msk.f32.gmra.mrb[158].mxu0 %vm195_vm0, %v17920_v2  ;;  %v5869_v63 = vsel %vm1869_vm1, %v5497_v5, %v5713_v1 }
 0x22f   :  { %20645 = vst [vmem:[#allocation37_spill] sm:$0xff] %v18371_v25  ;;  %14024 = vmatprep.mubr.msk.f32.mxu1 %vm195_vm0, %v16897_v37  ;;  %14304 = vmatprep.mubr.msk.f32.mxu0 %vm195_vm0, %v20646_v28  ;;  %v5761_v25 = vrot.slane %v5497_v5, 3  ;;  %v20650_v37 = vld [vmem:[#allocation48_spill] sm:$0xff]  ;;  %v5881_v1 = vsel %vm1882_vm2, %v5869_v63, %v5737_v55  ;;  %v18403_v5 = vpack.c.bf16 %v12063_v16, %v12062_v15  ;;  %v20654_v63 = vld [vmem:[#allocation17_spill] sm:$0xff] }
 0x230   :  { %v20651_v28 = vld [vmem:[#allocation52_spill] sm:$0xff] }
 0x231   :  { %v18382_v12 = vpop.f32.mrb[150].mxu0  ;;  %20653 = vst [vmem:[#allocation36_spill] sm:$0xff] %v18403_v5  ;;  %v20655_v55 = vld [vmem:[#allocation24_spill] sm:$0xff]  ;;  %v18418_v15 = vsel %vm1895_vm3, %v5881_v1, %v5761_v25  ;;  %v5403_v1 = vmax.f32 %v17973_v49, %v5379_v60 }
 0x232   :  { %20647 = vst [vmem:[#allocation11_spill] sm:$0xff] %v18382_v12  ;;  %v18390_v30 = vpop.f32.mrb[151].mxu0  ;;  %14025 = vmatmul.mubr.msk.f32.vlgmr.msra.gmra.mrb[0].mxu1 %vm195_vm0, %v20649_v48  ;;  %14305 = vmatmul.mubr.msk.f32.vlgmr.msra.gmra.mrb[152].mxu0 %vm195_vm0, %v20650_v37  ;;  %v20652_v12 = vld [vmem:[#allocation39_spill] sm:$0xff]  ;;  %v20656_v16 = vld [vmem:[#allocation20_spill] sm:$0xff] }
 0x233   :  { %20648 = vst [vmem:[#allocation12_spill] sm:$0xff] %v18390_v30  ;;  %14943 = vmatpush3.bf16.msra.mxu0 %v20642_v21  ;;  %14027 = vmatprep.mubr.msk.f32.mxu1 %vm195_vm0, %v17013_v17  ;;  %v12072_v30 = vld [vmem:[%s20362_s3 + $0x260] sm:$0xff]  ;;  %v12073_v21 = vld [vmem:[%s20362_s3 + $0x268] sm:$0xff]  ;;  %v6755_v17 = vrot.slane %v17920_v2, 1  ;;  %v5523_v60 = vrot.slane %v5403_v1, 1 }
 0x234   :  { %14307 = vmatprep.mubr.msk.f32.mxu0 %vm195_vm0, %v20651_v28  ;;  %14945 = vmatprep.subr.bf16.mxu0 %v20652_v12  ;;  %v18426_v28 = vpack.c.bf16 %v12073_v21, %v12072_v30  ;;  %v20659_v25 = vld [vmem:[#allocation40_spill] sm:$0xff]  ;;  %v20662_v30 = vld [vmem:[#allocation6_spill] sm:$0xff]  ;;  %v20663_v21 = vld [vmem:[#allocation35_spill] sm:$0xff] }
 0x235   :  { %14831 = vmatpush3.bf16.msra.mxu1 %v18347_v11  ;;  %v20657_v11 = vld [vmem:[#allocation57_spill] sm:$0xff] }
 0x236   :  { %14028 = vmatmul.mubr.msk.f32.gmra.mrb[2].mxu1 %vm195_vm0, %v20654_v63  ;;  %14308 = vmatmul.mubr.msk.f32.gmra.mrb[154].mxu0 %vm195_vm0, %v20655_v55  ;;  %20658 = vst [vmem:[#allocation38_spill] sm:$0xff] %v18426_v28  ;;  %v4234_v63 = vrot.slane %v20633_v47, 2  ;;  %v6756_v55 = vrot.slane %v18418_v15, 1 }
 0x237   :  { %14030 = vmatprep.mubr.msk.f32.mxu1 %vm195_vm0, %v20656_v16  ;;  %14310 = vmatprep.mubr.msk.f32.mxu0 %vm195_vm0, %v20657_v11  ;;  %v20660_v16 = vld [vmem:[#allocation46_spill] sm:$0xff]  ;;  %v4235_v11 = vrot.slane %v18344_v29, 2 }
 0x238   :  { %14947 = vmatpush3.bf16.msra.mxu0 %v20652_v12  ;;  %14833 = vmatprep.subr.bf16.mxu1 %v18403_v5  ;;  %v20661_v12 = vld [vmem:[#allocation31_spill] sm:$0xff]  ;;  %v18448_v49 = vsel %vm1947_vm7, %v6755_v17, %v6756_v55  ;;  %v5787_v55 = vsel %vm1869_vm1, %v5403_v1, %v5523_v60 }
 0x239   :  { %14835 = vmatpush3.bf16.msra.mxu1 %v18403_v5  ;;  %14949 = vmatprep.subr.bf16.mxu0 %v20659_v25  ;;  %v18445_v5 = vsel %vm1934_vm6, %v4234_v63, %v4235_v11  ;;  %20665 = vst [vmem:[#allocation10_spill] sm:$0xff] %v18448_v49  ;;  %v5547_v11 = vrot.slane %v5403_v1, 2  ;;  %v12074_v17 = vld [vmem:[%s20362_s3 + $0x270] sm:$0xff]  ;;  %v12075_v63 = vld [vmem:[%s20362_s3 + $0x278] sm:$0xff] }
 0x23a   :  { %14031 = vmatmul.mubr.msk.f32.gmra.mrb[4].mxu1 %vm195_vm0, %v20660_v16  ;;  %14311 = vmatmul.mubr.msk.f32.gmra.mrb[156].mxu0 %vm195_vm0, %v20661_v12  ;;  %20664 = vst [vmem:[#allocation45_spill] sm:$0xff] %v18445_v5  ;;  %v20667_v12 = vld [vmem:[#allocation42_spill] sm:$0xff]  ;;  %v20670_v16 = vld [vmem:[#allocation43_spill] sm:$0xff]  ;;  %v18477_v60 = vpack.c.bf16 %v12075_v63, %v12074_v17  ;;  %v20674_v63 = vld [vmem:[#allocation29_spill] sm:$0xff] }
 0x23b   :  { %14033 = vmatprep.mubr.msk.f32.mxu1 %vm195_vm0, %v20662_v30  ;;  %14313 = vmatprep.mubr.msk.f32.mxu0 %vm195_vm0, %v20663_v21  ;;  %v5427_v30 = vrot.slane %v18000_v35, 1  ;;  %v20666_v21 = vld [vmem:[#allocation22_spill] sm:$0xff] }
 0x23c   :  { %14837 = vmatprep.subr.bf16.mxu1 %v18426_v28  ;;  %20671 = vst [vmem:[#allocation48_spill] sm:$0xff] %v18477_v60 }
 0x23e   :  { %14034 = vmatmul.mubr.msk.f32.gmra.mrb[6].mxu1 %vm195_vm0, %v18445_v5  ;;  %14314 = vmatmul.mubr.msk.f32.gmra.mrb[158].mxu0 %vm195_vm0, %v18448_v49  ;;  %v5571_v49 = vrot.slane %v5403_v1, 3  ;;  %v20669_v5 = vld [vmem:[#allocation64_spill] sm:$0xff] }
 0x23f   :  { %14044 = vmatprep.mubr.msk.f32.mxu1 %vm195_vm0, %v20666_v21  ;;  %14324 = vmatprep.mubr.msk.f32.mxu0 %vm195_vm0, %v20667_v12  ;;  %v5451_v21 = vmax.f32 %v18000_v35, %v5427_v30  ;;  %v20668_v12 = vld [vmem:[#allocation26_spill] sm:$0xff]  ;;  %v12084_v35 = vld [vmem:[%s20362_s3 + $0x280] sm:$0xff]  ;;  %v20673_v30 = vld [vmem:[#allocation67_spill] sm:$0xff] }
 0x240   :  { %v20672_v1 = vld [vmem:[#allocation28_spill] sm:$0xff] }
 0x241   :  { %v5607_v17 = vrot.slane %v5451_v21, 4 }
 0x242   :  { %14045 = vmatmul.mubr.msk.f32.vlgmr.msra.gmra.mrb[0].mxu1 %vm195_vm0, %v20598_v19  ;;  %14325 = vmatmul.mubr.msk.f32.vlgmr.msra.gmra.mrb[152].mxu0 %vm195_vm0, %v17977_v33  ;;  %v5799_v19 = vsel %vm1882_vm2, %v5787_v55, %v5547_v11  ;;  %v20675_v11 = vld [vmem:[#allocation70_spill] sm:$0xff]  ;;  %v6874_v33 = vrot.slane %v18418_v15, 2 }
 0x243   :  { %14951 = vmatpush3.bf16.msra.mxu0 %v20659_v25  ;;  %14047 = vmatprep.mubr.msk.f32.mxu1 %vm195_vm0, %v20668_v12  ;;  %v12085_v25 = vld [vmem:[%s20362_s3 + $0x288] sm:$0xff]  ;;  %v5811_v55 = vsel %vm1895_vm3, %v5799_v19, %v5571_v49  ;;  %v4357_v12 = vrot.slane %v20633_v47, 3  ;;  %v20677_v19 = vld [vmem:[#allocation51_spill] sm:$0xff]  ;;  %v4358_v49 = vrot.slane %v18344_v29, 3 }
 0x244   :  { %14327 = vmatprep.mubr.msk.f32.mxu0 %vm195_vm0, %v20669_v5  ;;  %14953 = vmatprep.subr.bf16.mxu0 %v20670_v16  ;;  %v18498_v5 = vpack.c.bf16 %v12085_v25, %v12084_v35  ;;  %v5823_v35 = vsel %vm1908_vm4, %v5811_v55, %v5607_v17  ;;  %v6992_v55 = vrot.slane %v18418_v15, 3 }
 0x245   :  { %14839 = vmatpush3.bf16.msra.mxu1 %v18426_v28  ;;  %v5631_v28 = vrot.slane %v5451_v21, 5  ;;  %v18518_v25 = vsel %vm1921_vm5, %v4357_v12, %v4358_v49  ;;  %v12096_v12 = vld [vmem:[%s20362_s3 + $0x2a0] sm:$0xff]  ;;  %v4481_v49 = vrot.slane %v18344_v29, 4  ;;  %v12098_v29 = vld [vmem:[%s20362_s3 + $0x2b0] sm:$0xff] }
 0x246   :  { %14048 = vmatmul.mubr.msk.f32.gmra.mrb[2].mxu1 %vm195_vm0, %v20672_v1  ;;  %14328 = vmatmul.mubr.msk.f32.gmra.mrb[154].mxu0 %vm195_vm0, %v20673_v30  ;;  %v5655_v1 = vrot.slane %v5451_v21, 6  ;;  %v6873_v30 = vrot.slane %v17920_v2, 2 }
 0x247   :  { %14050 = vmatprep.mubr.msk.f32.mxu1 %vm195_vm0, %v20674_v63  ;;  %14330 = vmatprep.mubr.msk.f32.mxu0 %vm195_vm0, %v20675_v11  ;;  %v20676_v63 = vld [vmem:[#allocation44_spill] sm:$0xff]  ;;  %v5679_v11 = vrot.slane %v5451_v21, 7  ;;  %v5835_v21 = vsel %vm1921_vm5, %v5823_v35, %v5631_v28 }
 0x248   :  { %14955 = vmatpush3.bf16.msra.mxu0 %v20670_v16  ;;  %14841 = vmatprep.subr.bf16.mxu1 %v18477_v60  ;;  %v20678_v16 = vld [vmem:[#allocation8_spill] sm:$0xff] }
 0x249   :  { %14843 = vmatpush3.bf16.msra.mxu1 %v18477_v60  ;;  %14957 = vmatprep.subr.bf16.mxu0 %v20676_v63  ;;  %v18521_v60 = vsel %vm1934_vm6, %v6873_v30, %v6874_v33  ;;  %v12086_v33 = vld [vmem:[%s20362_s3 + $0x290] sm:$0xff]  ;;  %v12087_v28 = vld [vmem:[%s20362_s3 + $0x298] sm:$0xff] }
 0x24a   :  { %14051 = vmatmul.mubr.msk.f32.gmra.mrb[4].mxu1 %vm195_vm0, %v20677_v19  ;;  %14331 = vmatmul.mubr.msk.f32.gmra.mrb[156].mxu0 %vm195_vm0, %v20678_v16  ;;  %v5847_v16 = vsel %vm1934_vm6, %v5835_v21, %v5655_v1  ;;  %v12097_v1 = vld [vmem:[%s20362_s3 + $0x2a8] sm:$0xff] }
 0x24b   :  { %14053 = vmatprep.mubr.msk.f32.mxu1 %vm195_vm0, %v18086_v7  ;;  %14333 = vmatprep.mubr.msk.f32.mxu0 %vm195_vm0, %v18089_v38  ;;  %v18529_v17 = vsel %vm1947_vm7, %v5847_v16, %v5679_v11  ;;  %v18570_v30 = vpack.c.bf16 %v12097_v1, %v12096_v12  ;;  %v6991_v11 = vrot.slane %v17920_v2, 3  ;;  %v20680_v16 = vld [vmem:[#allocation49_spill] sm:$0xff]  ;;  %v7109_v12 = vrot.slane %v17920_v2, 4 }
 0x24c   :  { %14845 = vmatprep.subr.bf16.mxu1 %v18498_v5  ;;  %v7110_v1 = vrot.slane %v18418_v15, 4 }
 0x24d   :  { %v18591_v21 = vsel %vm1921_vm5, %v6991_v11, %v6992_v55  ;;  %v20684_v11 = vld [vmem:[#allocation72_spill] sm:$0xff] }
 0x24e   :  { %14054 = vmatmul.mubr.msk.f32.gmra.mrb[6].mxu1 %vm195_vm0, %v18518_v25  ;;  %14334 = vmatmul.mubr.msk.f32.gmra.mrb[158].mxu0 %vm195_vm0, %v18521_v60  ;;  %v5428_v55 = vrot.slane %v20684_v11, 1 }
 0x24f   :  { %14064 = vmatprep.mubr.msk.f32.mxu1 %vm195_vm0, %v17262_v31  ;;  %14344 = vmatprep.mubr.msk.f32.mxu0 %vm195_vm0, %v18114_v34  ;;  %v20679_v31 = vld [vmem:[#allocation47_spill] sm:$0xff]  ;;  %v18551_v34 = vpack.c.bf16 %v12087_v28, %v12086_v33  ;;  %v12109_v28 = vld [vmem:[%s20362_s3 + $0x2c8] sm:$0xff] }
 0x250   :  { %v12099_v33 = vld [vmem:[%s20362_s3 + $0x2b8] sm:$0xff] }
 0x252   :  { %14065 = vmatmul.mubr.msk.f32.vlgmr.msra.gmra.mrb[0].mxu1 %vm195_vm0, %v17269_v13  ;;  %14345 = vmatmul.mubr.msk.f32.vlgmr.msra.gmra.mrb[152].mxu0 %vm195_vm0, %v18133_v52 }
 0x253   :  { %14959 = vmatpush3.bf16.msra.mxu0 %v20676_v63  ;;  %14067 = vmatprep.mubr.msk.f32.mxu1 %vm195_vm0, %v17279_v44  ;;  %v4480_v63 = vrot.slane %v20633_v47, 4 }
 0x254   :  { %14347 = vmatprep.mubr.msk.f32.mxu0 %vm195_vm0, %v18143_v57  ;;  %14961 = vmatprep.subr.bf16.mxu0 %v20679_v31 }
 0x255   :  { %14847 = vmatpush3.bf16.msra.mxu1 %v18498_v5  ;;  %v18588_v35 = vsel %vm1908_vm4, %v4480_v63, %v4481_v49 }
 0x256   :  { %14068 = vmatmul.mubr.msk.f32.gmra.mrb[2].mxu1 %vm195_vm0, %v20620_v61  ;;  %14348 = vmatmul.mubr.msk.f32.gmra.mrb[154].mxu0 %vm195_vm0, %v18158_v41 }
 0x257   :  { %14070 = vmatprep.mubr.msk.f32.mxu1 %vm195_vm0, %v20623_v3  ;;  %14350 = vmatprep.mubr.msk.f32.mxu0 %vm195_vm0, %v18172_v62 }
 0x258   :  { %14963 = vmatpush3.bf16.msra.mxu0 %v20679_v31  ;;  %14849 = vmatprep.subr.bf16.mxu1 %v18551_v34  ;;  %v5380_v31 = vrot.slane %v18082_v4, 1 }
 0x259   :  { %14851 = vmatpush3.bf16.msra.mxu1 %v18551_v34  ;;  %14965 = vmatprep.subr.bf16.mxu0 %v20680_v16 }
 0x25a   :  { %14071 = vmatmul.mubr.msk.f32.gmra.mrb[4].mxu1 %vm195_vm0, %v17687_v6  ;;  %14351 = vmatmul.mubr.msk.f32.gmra.mrb[156].mxu0 %vm195_vm0, %v18183_v26  ;;  %v5404_v63 = vmax.f32 %v18082_v4, %v5380_v31  ;;  %v18656_v4 = vsel %vm1908_vm4, %v7109_v12, %v7110_v1 }
 0x25b   :  { %14073 = vmatprep.mubr.msk.f32.mxu1 %vm195_vm0, %v18195_v53  ;;  %14353 = vmatprep.mubr.msk.f32.mxu0 %vm195_vm0, %v18198_v56 }
 0x25c   :  { %14853 = vmatprep.subr.bf16.mxu1 %v18570_v30  ;;  %v5548_v49 = vrot.slane %v5404_v63, 2  ;;  %v5572_v12 = vrot.slane %v5404_v63, 3 }
 0x25e   :  { %14074 = vmatmul.mubr.msk.f32.gmra.mrb[6].mxu1 %vm195_vm0, %v18588_v35  ;;  %14354 = vmatmul.mubr.msk.f32.gmra.mrb[158].mxu0 %vm195_vm0, %v18591_v21 }
 0x25f   :  { %14084 = vmatprep.mubr.msk.f32.mxu1 %vm195_vm0, %v20624_v9  ;;  %14364 = vmatprep.mubr.msk.f32.mxu0 %vm195_vm0, %v18212_v54  ;;  %v20681_v54 = vld [vmem:[#allocation53_spill] sm:$0xff]  ;;  %v18617_v9 = vpack.c.bf16 %v12099_v33, %v12098_v29  ;;  %v5452_v29 = vmax.f32 %v20684_v11, %v5428_v55  ;;  %v12110_v33 = vld [vmem:[%s20362_s3 + $0x2d0] sm:$0xff] }
 0x261   :  { %v5608_v55 = vrot.slane %v5452_v29, 4 }
 0x262   :  { %14085 = vmatmul.mubr.msk.f32.vlgmr.msra.gmra.mrb[0].mxu1 %vm195_vm0, %v20625_v32  ;;  %14365 = vmatmul.mubr.msk.f32.vlgmr.msra.gmra.mrb[152].mxu0 %vm195_vm0, %v18231_v0  ;;  %v12108_v32 = vld [vmem:[%s20362_s3 + $0x2c0] sm:$0xff] }
 0x263   :  { %14967 = vmatpush3.bf16.msra.mxu0 %v20680_v16  ;;  %14087 = vmatprep.mubr.msk.f32.mxu1 %vm195_vm0, %v20629_v23  ;;  %v18637_v23 = vpack.c.bf16 %v12109_v28, %v12108_v32  ;;  %v5524_v16 = vrot.slane %v5404_v63, 1  ;;  %v20686_v28 = vld [vmem:[#allocation14_spill] sm:$0xff] }
 0x264   :  { %14367 = vmatprep.mubr.msk.f32.mxu0 %vm195_vm0, %v18241_v24  ;;  %14969 = vmatprep.subr.bf16.mxu0 %v20681_v54 }
 0x265   :  { %14855 = vmatpush3.bf16.msra.mxu1 %v18570_v30  ;;  %v5788_v32 = vsel %vm1869_vm1, %v5404_v63, %v5524_v16  ;;  %v5632_v63 = vrot.slane %v5452_v29, 5 }
 0x266   :  { %14088 = vmatmul.mubr.msk.f32.gmra.mrb[2].mxu1 %vm195_vm0, %v20581_v39  ;;  %14368 = vmatmul.mubr.msk.f32.gmra.mrb[154].mxu0 %vm195_vm0, %v18257_v59  ;;  %v20682_v39 = vld [vmem:[#allocation54_spill] sm:$0xff]  ;;  %v5800_v11 = vsel %vm1882_vm2, %v5788_v32, %v5548_v49  ;;  %v20690_v32 = vld [vmem:[#allocation56_spill] sm:$0xff] }
 0x267   :  { %14090 = vmatprep.mubr.msk.f32.mxu1 %vm195_vm0, %v20632_v58  ;;  %14370 = vmatprep.mubr.msk.f32.mxu0 %vm195_vm0, %v18271_v27  ;;  %v20683_v58 = vld [vmem:[#allocation71_spill] sm:$0xff] }
 0x268   :  { %14971 = vmatpush3.bf16.msra.mxu0 %v20681_v54  ;;  %14857 = vmatprep.subr.bf16.mxu1 %v18617_v9  ;;  %v5476_v15 = vrot.slane %v20683_v58, 1  ;;  %v12111_v54 = vld [vmem:[%s20362_s3 + $0x2d8] sm:$0xff] }
 0x269   :  { %14859 = vmatpush3.bf16.msra.mxu1 %v18617_v9  ;;  %14973 = vmatprep.subr.bf16.mxu0 %v20682_v39 }
 0x26a   :  { %14091 = vmatmul.mubr.msk.f32.gmra.mrb[4].mxu1 %vm195_vm0, %v20582_v22  ;;  %14371 = vmatmul.mubr.msk.f32.gmra.mrb[156].mxu0 %vm195_vm0, %v18282_v45  ;;  %v20685_v22 = vld [vmem:[#allocation41_spill] sm:$0xff] }
 0x26b   :  { %14093 = vmatprep.mubr.msk.f32.mxu1 %vm195_vm0, %v20633_v47  ;;  %14373 = vmatprep.mubr.msk.f32.mxu0 %vm195_vm0, %v18291_v8  ;;  %v5500_v47 = vmax.f32 %v20683_v58, %v5476_v15  ;;  %v20689_v58 = vld [vmem:[#allocation55_spill] sm:$0xff]  ;;  %v18686_v15 = vpack.c.bf16 %v12111_v54, %v12110_v33  ;;  %v5812_v54 = vsel %vm1895_vm3, %v5800_v11, %v5572_v12 }
 0x26c   :  { %14861 = vmatprep.subr.bf16.mxu1 %v18637_v23 }
 0x26d   :  { %v5716_v1 = vrot.slane %v5500_v47, 1  ;;  %v5764_v49 = vrot.slane %v5500_v47, 3 }
 0x26e   :  { %14094 = vmatmul.mubr.msk.f32.gmra.mrb[6].mxu1 %vm195_vm0, %v20685_v22  ;;  %14374 = vmatmul.mubr.msk.f32.gmra.mrb[158].mxu0 %vm195_vm0, %v18656_v4  ;;  %v5740_v22 = vrot.slane %v5500_v47, 2 }
 0x26f   :  { %14104 = vmatprep.mubr.msk.f32.mxu1 %vm195_vm0, %v20635_v10  ;;  %14384 = vmatprep.mubr.msk.f32.mxu0 %vm195_vm0, %v17534_v40  ;;  %v20687_v10 = vld [vmem:[#allocation50_spill] sm:$0xff]  ;;  %v20688_v40 = vld [vmem:[#allocation59_spill] sm:$0xff]  ;;  %v5872_v33 = vsel %vm1869_vm1, %v5500_v47, %v5716_v1  ;;  %v5680_v47 = vrot.slane %v5452_v29, 7 }
 0x270   :  { %v5474_v31 = vrot.slane %v20688_v40, 1  ;;  %v5884_v12 = vsel %vm1882_vm2, %v5872_v33, %v5740_v22 }
 0x272   :  { %14105 = vmatmul.mubr.msk.f32.vlgmr.msra.gmra.mrb[0].mxu1 %vm195_vm0, %v20686_v28  ;;  %14385 = vmatmul.mubr.msk.f32.vlgmr.msra.gmra.mrb[152].mxu0 %vm195_vm0, %v20687_v10  ;;  %v5498_v16 = vmax.f32 %v20688_v40, %v5474_v31  ;;  %v5656_v28 = vrot.slane %v5452_v29, 6  ;;  %v5896_v29 = vsel %vm1895_vm3, %v5884_v12, %v5764_v49 }
 0x273   :  { %14975 = vmatpush3.bf16.msra.mxu0 %v20682_v39  ;;  %14107 = vmatprep.mubr.msk.f32.mxu1 %vm195_vm0, %v17050_v46  ;;  %v12120_v39 = vld [vmem:[%s20362_s3 + $0x2e0] sm:$0xff]  ;;  %v12121_v46 = vld [vmem:[%s20362_s3 + $0x2e8] sm:$0xff]  ;;  %v8523_v11 = vrot.slane %v5896_v29, 1  ;;  %v8759_v22 = vrot.slane %v5896_v29, 3 }
 0x274   :  { %14387 = vmatprep.mubr.msk.f32.mxu0 %vm195_vm0, %v17650_v36  ;;  %14977 = vmatprep.subr.bf16.mxu0 %v20689_v58  ;;  %v5714_v1 = vrot.slane %v5498_v16, 1  ;;  %v5762_v12 = vrot.slane %v5498_v16, 3 }
 0x275   :  { %14863 = vmatpush3.bf16.msra.mxu1 %v18637_v23 }
 0x276   :  { %14108 = vmatmul.mubr.msk.f32.gmra.mrb[2].mxu1 %vm195_vm0, %v17100_v43  ;;  %14388 = vmatmul.mubr.msk.f32.gmra.mrb[154].mxu0 %vm195_vm0, %v17718_v14  ;;  %v18708_v43 = vpack.c.bf16 %v12121_v46, %v12120_v39  ;;  %v20691_v39 = vld [vmem:[#allocation63_spill] sm:$0xff]  ;;  %v20692_v46 = vld [vmem:[#allocation73_spill] sm:$0xff] }
 0x277   :  { %14110 = vmatprep.mubr.msk.f32.mxu1 %vm195_vm0, %v17443_v20  ;;  %14390 = vmatprep.mubr.msk.f32.mxu0 %vm195_vm0, %v17773_v42  ;;  %v5824_v20 = vsel %vm1908_vm4, %v5812_v54, %v5608_v55  ;;  %v8641_v55 = vrot.slane %v5896_v29, 2  ;;  %v8877_v54 = vrot.slane %v5896_v29, 4  ;;  %v20695_v29 = vld [vmem:[#allocation15_spill] sm:$0xff] }
 0x278   :  { %14979 = vmatpush3.bf16.msra.mxu0 %v20689_v58  ;;  %14865 = vmatprep.subr.bf16.mxu1 %v18686_v15  ;;  %v5836_v40 = vsel %vm1921_vm5, %v5824_v20, %v5632_v63 }
 0x279   :  { %14867 = vmatpush3.bf16.msra.mxu1 %v18686_v15  ;;  %14981 = vmatprep.subr.bf16.mxu0 %v20690_v32  ;;  %v5848_v31 = vsel %vm1934_vm6, %v5836_v40, %v5656_v28  ;;  %v5738_v28 = vrot.slane %v5498_v16, 2 }
 0x27a   :  { %14111 = vmatmul.mubr.msk.f32.gmra.mrb[4].mxu1 %vm195_vm0, %v17848_v18  ;;  %14391 = vmatmul.mubr.msk.f32.gmra.mrb[156].mxu0 %vm195_vm0, %v17835_v51  ;;  %v18727_v18 = vsel %vm1947_vm7, %v5848_v31, %v5680_v47  ;;  %v5870_v47 = vsel %vm1869_vm1, %v5498_v16, %v5714_v1  ;;  %v20697_v1 = vld [vmem:[#allocation17_spill] sm:$0xff] }
 0x27b   :  { %14113 = vmatprep.mubr.msk.f32.mxu1 %vm195_vm0, %v18369_v50  ;;  %14393 = vmatprep.mubr.msk.f32.mxu0 %vm195_vm0, %v17920_v2  ;;  %v8522_v58 = vrot.slane %v18727_v18, 1  ;;  %v8640_v50 = vrot.slane %v18727_v18, 2  ;;  %v8758_v63 = vrot.slane %v18727_v18, 3  ;;  %v8876_v33 = vrot.slane %v18727_v18, 4  ;;  %v12132_v16 = vld [vmem:[%s20362_s3 + $0x300] sm:$0xff] }
 0x27c   :  { %14869 = vmatprep.subr.bf16.mxu1 %v18708_v43 }
 0x27d   :  { %v18743_v49 = vsel %vm1947_vm7, %v8522_v58, %v8523_v11  ;;  %v18746_v20 = vsel %vm1934_vm6, %v8640_v50, %v8641_v55  ;;  %v18750_v40 = vsel %vm1921_vm5, %v8758_v63, %v8759_v22  ;;  %v18753_v31 = vsel %vm1908_vm4, %v8876_v33, %v8877_v54  ;;  %v20696_v58 = vld [vmem:[#allocation52_spill] sm:$0xff]  ;;  %v20699_v55 = vld [vmem:[#allocation19_spill] sm:$0xff]  ;;  %v20701_v22 = vld [vmem:[#allocation57_spill] sm:$0xff] }
 0x27e   :  { %14114 = vmatmul.mubr.msk.f32.gmra.mrb[6].mxu1 %vm195_vm0, %v20691_v39  ;;  %14394 = vmatmul.mubr.msk.f32.gmra.mrb[158].mxu0 %vm195_vm0, %v20692_v46  ;;  %20693 = vst [vmem:[#allocation39_spill] sm:$0xff] %v18750_v40  ;;  %20694 = vst [vmem:[#allocation40_spill] sm:$0xff] %v18753_v31  ;;  %v5882_v11 = vsel %vm1882_vm2, %v5870_v47, %v5738_v28  ;;  %v20698_v50 = vld [vmem:[#allocation24_spill] sm:$0xff]  ;;  %v20702_v54 = vld [vmem:[#allocation46_spill] sm:$0xff] }
 0x27f   :  { %14124 = vmatprep.mubr.msk.f32.mxu1 %vm195_vm0, %v20649_v48  ;;  %14404 = vmatprep.mubr.msk.f32.mxu0 %vm195_vm0, %v20650_v37  ;;  %v12122_v48 = vld [vmem:[%s20362_s3 + $0x2f0] sm:$0xff]  ;;  %v12123_v37 = vld [vmem:[%s20362_s3 + $0x2f8] sm:$0xff]  ;;  %v18786_v33 = vsel %vm1895_vm3, %v5882_v11, %v5762_v12  ;;  %v20707_v11 = vld [vmem:[#allocation45_spill] sm:$0xff] }
 0x280   :  { %v18772_v39 = vpack.c.bf16 %v12123_v37, %v12122_v48  ;;  %v20700_v63 = vld [vmem:[#allocation20_spill] sm:$0xff]  ;;  %v20703_v28 = vld [vmem:[#allocation31_spill] sm:$0xff]  ;;  %v7344_v48 = vrot.slane %v20692_v46, 1  ;;  %v7345_v37 = vrot.slane %v18786_v33, 1  ;;  %v20704_v12 = vld [vmem:[#allocation58_spill] sm:$0xff] }
 0x281   :  { %v20717_v40 = vld [vmem:[#allocation29_spill] sm:$0xff] }
 0x282   :  { %14125 = vmatmul.mubr.msk.f32.vlgmr.msra.gmra.mrb[0].mxu1 %vm195_vm0, %v20695_v29  ;;  %14405 = vmatmul.mubr.msk.f32.vlgmr.msra.gmra.mrb[152].mxu0 %vm195_vm0, %v20696_v58  ;;  %v20705_v29 = vld [vmem:[#allocation6_spill] sm:$0xff] }
 0x283   :  { %14983 = vmatpush3.bf16.msra.mxu0 %v20690_v32  ;;  %14127 = vmatprep.mubr.msk.f32.mxu1 %vm195_vm0, %v20697_v1  ;;  %v12133_v32 = vld [vmem:[%s20362_s3 + $0x308] sm:$0xff]  ;;  %v20706_v1 = vld [vmem:[#allocation35_spill] sm:$0xff] }
 0x284   :  { %14407 = vmatprep.mubr.msk.f32.mxu0 %vm195_vm0, %v20698_v50  ;;  %14985 = vmatprep.subr.bf16.mxu0 %v20699_v55  ;;  %v18794_v47 = vpack.c.bf16 %v12133_v32, %v12132_v16  ;;  %v18810_v16 = vsel %vm1947_vm7, %v7344_v48, %v7345_v37  ;;  %v20709_v32 = vld [vmem:[#allocation65_spill] sm:$0xff]  ;;  %v12135_v48 = vld [vmem:[%s20362_s3 + $0x318] sm:$0xff]  ;;  %v20712_v37 = vld [vmem:[#allocation26_spill] sm:$0xff] }
 0x285   :  { %14871 = vmatpush3.bf16.msra.mxu1 %v18708_v43 }
 0x286   :  { %14128 = vmatmul.mubr.msk.f32.gmra.mrb[2].mxu1 %vm195_vm0, %v20700_v63  ;;  %14408 = vmatmul.mubr.msk.f32.gmra.mrb[154].mxu0 %vm195_vm0, %v20701_v22  ;;  %v20710_v63 = vld [vmem:[#allocation23_spill] sm:$0xff] }
 0x287   :  { %14130 = vmatprep.mubr.msk.f32.mxu1 %vm195_vm0, %v20702_v54  ;;  %14410 = vmatprep.mubr.msk.f32.mxu0 %vm195_vm0, %v20703_v28  ;;  %v20711_v54 = vld [vmem:[#allocation61_spill] sm:$0xff] }
 0x288   :  { %14987 = vmatpush3.bf16.msra.mxu0 %v20699_v55  ;;  %14873 = vmatprep.subr.bf16.mxu1 %v18772_v39  ;;  %v20708_v55 = vld [vmem:[#allocation10_spill] sm:$0xff] }
 0x289   :  { %14875 = vmatpush3.bf16.msra.mxu1 %v18772_v39  ;;  %14989 = vmatprep.subr.bf16.mxu0 %v20704_v12 }
 0x28a   :  { %14131 = vmatmul.mubr.msk.f32.gmra.mrb[4].mxu1 %vm195_vm0, %v20705_v29  ;;  %14411 = vmatmul.mubr.msk.f32.gmra.mrb[156].mxu0 %vm195_vm0, %v20706_v1  ;;  %v12134_v29 = vld [vmem:[%s20362_s3 + $0x310] sm:$0xff] }
 0x28b   :  { %14133 = vmatprep.mubr.msk.f32.mxu1 %vm195_vm0, %v20707_v11  ;;  %14413 = vmatprep.mubr.msk.f32.mxu0 %vm195_vm0, %v20708_v55  ;;  %v20713_v11 = vld [vmem:[#allocation64_spill] sm:$0xff]  ;;  %v18836_v31 = vpack.c.bf16 %v12135_v48, %v12134_v29  ;;  %v7462_v29 = vrot.slane %v20692_v46, 2  ;;  %v7463_v48 = vrot.slane %v18786_v33, 2 }
 0x28c   :  { %14877 = vmatprep.subr.bf16.mxu1 %v18794_v47 }
 0x28e   :  { %14134 = vmatmul.mubr.msk.f32.gmra.mrb[6].mxu1 %vm195_vm0, %v20709_v32  ;;  %14414 = vmatmul.mubr.msk.f32.gmra.mrb[158].mxu0 %vm195_vm0, %v18810_v16  ;;  %v20714_v32 = vld [vmem:[#allocation28_spill] sm:$0xff] }
 0x28f   :  { %14144 = vmatprep.mubr.msk.f32.mxu1 %vm195_vm0, %v20710_v63  ;;  %14424 = vmatprep.mubr.msk.f32.mxu0 %vm195_vm0, %v20711_v54  ;;  %v20715_v63 = vld [vmem:[#allocation67_spill] sm:$0xff]  ;;  %v20716_v54 = vld [vmem:[#allocation5_spill] sm:$0xff] }
 0x292   :  { %14145 = vmatmul.mubr.msk.f32.vlgmr.msra.gmra.mrb[0].mxu1 %vm195_vm0, %v20712_v37  ;;  %14425 = vmatmul.mubr.msk.f32.vlgmr.msra.gmra.mrb[152].mxu0 %vm195_vm0, %v20713_v11  ;;  %v20718_v37 = vld [vmem:[#allocation70_spill] sm:$0xff] }
 0x293   :  { %14991 = vmatpush3.bf16.msra.mxu0 %v20704_v12  ;;  %14147 = vmatprep.mubr.msk.f32.mxu1 %vm195_vm0, %v20714_v32  ;;  %v20719_v12 = vld [vmem:[#allocation8_spill] sm:$0xff]  ;;  %v20721_v32 = vld [vmem:[#allocation66_spill] sm:$0xff] }
 0x294   :  { %14427 = vmatprep.mubr.msk.f32.mxu0 %vm195_vm0, %v20715_v63  ;;  %14993 = vmatprep.subr.bf16.mxu0 %v20716_v54 }
 0x295   :  { %14879 = vmatpush3.bf16.msra.mxu1 %v18794_v47 }
 0x296   :  { %14148 = vmatmul.mubr.msk.f32.gmra.mrb[2].mxu1 %vm195_vm0, %v20717_v40  ;;  %14428 = vmatmul.mubr.msk.f32.gmra.mrb[154].mxu0 %vm195_vm0, %v20718_v37  ;;  %v20720_v40 = vld [vmem:[#allocation60_spill] sm:$0xff] }
 0x297   :  { %14150 = vmatprep.mubr.msk.f32.mxu1 %vm195_vm0, %v20677_v19  ;;  %14430 = vmatprep.mubr.msk.f32.mxu0 %vm195_vm0, %v20719_v12  ;;  %v18862_v19 = vsel %vm1934_vm6, %v7462_v29, %v7463_v48  ;;  %v20728_v29 = vld [vmem:[#allocation21_spill] sm:$0xff]  ;;  %v20729_v48 = vld [vmem:[#allocation34_spill] sm:$0xff] }
 0x298   :  { %14995 = vmatpush3.bf16.msra.mxu0 %v20716_v54  ;;  %14881 = vmatprep.subr.bf16.mxu1 %v18836_v31 }
 0x299   :  { %14883 = vmatpush3.bf16.msra.mxu1 %v18836_v31  ;;  %14997 = vmatprep.subr.bf16.mxu0 %v20720_v40 }
 0x29a   :  { %14151 = vmatmul.mubr.msk.f32.gmra.mrb[4].mxu1 %vm195_vm0, %v18086_v7  ;;  %14431 = vmatmul.mubr.msk.f32.gmra.mrb[156].mxu0 %vm195_vm0, %v18089_v38  ;;  %v20722_v7 = vld [vmem:[#allocation7_spill] sm:$0xff] }
 0x29b   :  { %14153 = vmatprep.mubr.msk.f32.mxu1 %vm195_vm0, %v18518_v25  ;;  %14433 = vmatprep.mubr.msk.f32.mxu0 %vm195_vm0, %v18521_v60  ;;  %v7699_v25 = vrot.slane %v18786_v33, 4 }
 0x29e   :  { %14154 = vmatmul.mubr.msk.f32.gmra.mrb[6].mxu1 %vm195_vm0, %v20721_v32  ;;  %14434 = vmatmul.mubr.msk.f32.gmra.mrb[158].mxu0 %vm195_vm0, %v18862_v19 }
 0x29f   :  { %14164 = vmatprep.mubr.msk.f32.mxu1 %vm195_vm0, %v17269_v13  ;;  %14444 = vmatprep.mubr.msk.f32.mxu0 %vm195_vm0, %v18133_v52  ;;  %v7580_v13 = vrot.slane %v20692_v46, 3  ;;  %v20723_v52 = vld [vmem:[#allocation69_spill] sm:$0xff] }
 0x2a2   :  { %14165 = vmatmul.mubr.msk.f32.vlgmr.msra.gmra.mrb[0].mxu1 %vm195_vm0, %v17279_v44  ;;  %14445 = vmatmul.mubr.msk.f32.vlgmr.msra.gmra.mrb[152].mxu0 %vm195_vm0, %v18143_v57  ;;  %v7581_v44 = vrot.slane %v18786_v33, 3  ;;  %v20727_v33 = vld [vmem:[#allocation62_spill] sm:$0xff] }
 0x2a3   :  { %14999 = vmatpush3.bf16.msra.mxu0 %v20720_v40  ;;  %14167 = vmatprep.mubr.msk.f32.mxu1 %vm195_vm0, %v20620_v61  ;;  %v20724_v61 = vld [vmem:[#allocation68_spill] sm:$0xff]  ;;  %v5475_v54 = vrot.slane %v20727_v33, 1 }
 0x2a4   :  { %14447 = vmatprep.mubr.msk.f32.mxu0 %vm195_vm0, %v18158_v41  ;;  %15001 = vmatprep.subr.bf16.mxu0 %v20722_v7 }
 0x2a6   :  { %14168 = vmatmul.mubr.msk.f32.gmra.mrb[2].mxu1 %vm195_vm0, %v20623_v3  ;;  %14448 = vmatmul.mubr.msk.f32.gmra.mrb[154].mxu0 %vm195_vm0, %v18172_v62  ;;  %v20725_v3 = vld [vmem:[#allocation18_spill] sm:$0xff] }
 0x2a7   :  { %14170 = vmatprep.mubr.msk.f32.mxu1 %vm195_vm0, %v17687_v6  ;;  %14450 = vmatprep.mubr.msk.f32.mxu0 %vm195_vm0, %v18183_v26  ;;  %v18903_v6 = vsel %vm1921_vm5, %v7580_v13, %v7581_v44 }
 0x2a8   :  { %15003 = vmatpush3.bf16.msra.mxu0 %v20722_v7 }
 0x2a9   :  { %15005 = vmatprep.subr.bf16.mxu0 %v20723_v52 }
 0x2aa   :  { %14171 = vmatmul.mubr.msk.f32.gmra.mrb[4].mxu1 %vm195_vm0, %v18195_v53  ;;  %14451 = vmatmul.mubr.msk.f32.gmra.mrb[156].mxu0 %vm195_vm0, %v18198_v56  ;;  %v20726_v53 = vld [vmem:[#allocation33_spill] sm:$0xff] }
 0x2ab   :  { %14173 = vmatprep.mubr.msk.f32.mxu1 %vm195_vm0, %v18588_v35  ;;  %14453 = vmatprep.mubr.msk.f32.mxu0 %vm195_vm0, %v18591_v21 }
 0x2ae   :  { %14174 = vmatmul.mubr.msk.f32.gmra.mrb[6].mxu1 %vm195_vm0, %v20724_v61  ;;  %14454 = vmatmul.mubr.msk.f32.gmra.mrb[158].mxu0 %vm195_vm0, %v18903_v6  ;;  %v20731_v61 = vld [vmem:[#allocation30_spill] sm:$0xff] }
 0x2af   :  { %14464 = vmatprep.mubr.msk.f32.mxu0 %vm195_vm0, %v18231_v0  ;;  %v7698_v0 = vrot.slane %v20692_v46, 4 }
 0x2b1   :  { %v18930_v35 = vsel %vm1908_vm4, %v7698_v0, %v7699_v25  ;;  %v20732_v25 = vld [vmem:[#allocation36_spill] sm:$0xff] }
 0x2b2   :  { %14465 = vmatmul.mubr.msk.f32.vlgmr.msra.gmra.mrb[152].mxu0 %vm195_vm0, %v18241_v24 }
 0x2b3   :  { %15007 = vmatpush3.bf16.msra.mxu0 %v20723_v52  ;;  %14467 = vmatprep.mubr.msk.f32.mxu0 %vm195_vm0, %v18257_v59  ;;  %v20730_v52 = vld [vmem:[#allocation9_spill] sm:$0xff] }
 0x2b4   :  { %15009 = vmatprep.subr.bf16.mxu0 %v20725_v3 }
 0x2b6   :  { %14468 = vmatmul.mubr.msk.f32.gmra.mrb[154].mxu0 %vm195_vm0, %v18271_v27 }
 0x2b7   :  { %14470 = vmatprep.mubr.msk.f32.mxu0 %vm195_vm0, %v18282_v45  ;;  %15011 = vmatpush3.bf16.msra.mxu0 %v20725_v3  ;;  %v7933_v3 = vrot.slane %v18529_v17, 1 }
 0x2b8   :  { %15013 = vmatprep.subr.bf16.mxu0 %v20726_v53 }
 0x2ba   :  { %14471 = vmatmul.mubr.msk.f32.gmra.mrb[156].mxu0 %vm195_vm0, %v18291_v8 }
 0x2bb   :  { %14473 = vmatprep.mubr.msk.f32.mxu0 %vm195_vm0, %v18656_v4 }
 0x2be   :  { %14474 = vmatmul.mubr.msk.f32.gmra.mrb[158].mxu0 %vm195_vm0, %v18930_v35 }
 0x2bf   :  { %14484 = vmatprep.mubr.msk.f32.mxu0 %vm195_vm0, %v20687_v10  ;;  %v5499_v10 = vmax.f32 %v20727_v33, %v5475_v54  ;;  %v20733_v33 = vld [vmem:[#allocation38_spill] sm:$0xff] }
 0x2c1   :  { %v5715_v40 = vrot.slane %v5499_v10, 1  ;;  %v5739_v32 = vrot.slane %v5499_v10, 2  ;;  %v5763_v13 = vrot.slane %v5499_v10, 3 }
 0x2c2   :  { %14485 = vmatmul.mubr.msk.f32.vlgmr.msra.gmra.mrb[152].mxu0 %vm195_vm0, %v17650_v36 }
 0x2c3   :  { %15015 = vmatpush3.bf16.msra.mxu0 %v20726_v53  ;;  %14487 = vmatprep.mubr.msk.f32.mxu0 %vm195_vm0, %v17718_v14  ;;  %v5871_v7 = vsel %vm1869_vm1, %v5499_v10, %v5715_v40  ;;  %v20734_v10 = vld [vmem:[#allocation48_spill] sm:$0xff] }
 0x2c4   :  { %15017 = vmatprep.subr.bf16.mxu0 %v20728_v29  ;;  %v5883_v44 = vsel %vm1882_vm2, %v5871_v7, %v5739_v32  ;;  %v20744_v7 = vld [vmem:[#allocation12_spill] sm:$0xff] }
 0x2c6   :  { %14488 = vmatmul.mubr.msk.f32.gmra.mrb[154].mxu0 %vm195_vm0, %v17773_v42 }
 0x2c7   :  { %14490 = vmatprep.mubr.msk.f32.mxu0 %vm195_vm0, %v17835_v51  ;;  %15019 = vmatpush3.bf16.msra.mxu0 %v20728_v29 }
 0x2c8   :  { %15021 = vmatprep.subr.bf16.mxu0 %v20729_v48 }
 0x2ca   :  { %14491 = vmatmul.mubr.msk.f32.gmra.mrb[156].mxu0 %vm195_vm0, %v17920_v2 }
 0x2cb   :  { %14493 = vmatprep.mubr.msk.f32.mxu0 %vm195_vm0, %v20692_v46 }
 0x2ce   :  { %14494 = vmatmul.mubr.msk.f32.gmra.mrb[158].mxu0 %vm195_vm0, %v18529_v17 }
 0x2cf   :  { %14504 = vmatprep.mubr.msk.f32.mxu0 %vm195_vm0, %v20696_v58  ;;  %v5895_v58 = vsel %vm1895_vm3, %v5883_v44, %v5763_v13 }
 0x2d0   :  { %v7934_v53 = vrot.slane %v5895_v58, 1  ;;  %v8052_v54 = vrot.slane %v5895_v58, 2  ;;  %v8288_v32 = vrot.slane %v5895_v58, 4 }
 0x2d2   :  { %14505 = vmatmul.mubr.msk.f32.vlgmr.msra.gmra.mrb[152].mxu0 %vm195_vm0, %v20698_v50  ;;  %v18979_v0 = vsel %vm1947_vm7, %v7933_v3, %v7934_v53 }
 0x2d3   :  { %15023 = vmatpush3.bf16.msra.mxu0 %v20729_v48  ;;  %14507 = vmatprep.mubr.msk.f32.mxu0 %vm195_vm0, %v20701_v22  ;;  %v8170_v48 = vrot.slane %v5895_v58, 3 }
 0x2d4   :  { %15025 = vmatprep.subr.bf16.mxu0 %v20730_v52 }
 0x2d6   :  { %14508 = vmatmul.mubr.msk.f32.gmra.mrb[154].mxu0 %vm195_vm0, %v20703_v28 }
 0x2d7   :  { %14510 = vmatprep.mubr.msk.f32.mxu0 %vm195_vm0, %v20706_v1  ;;  %15027 = vmatpush3.bf16.msra.mxu0 %v20730_v52 }
 0x2d8   :  { %15029 = vmatprep.subr.bf16.mxu0 %v20731_v61 }
 0x2da   :  { %14511 = vmatmul.mubr.msk.f32.gmra.mrb[156].mxu0 %vm195_vm0, %v20708_v55 }
 0x2db   :  { %14513 = vmatprep.mubr.msk.f32.mxu0 %vm195_vm0, %v18810_v16 }
 0x2de   :  { %14514 = vmatmul.mubr.msk.f32.gmra.mrb[158].mxu0 %vm195_vm0, %v18979_v0 }
 0x2df   :  { %14524 = vmatprep.mubr.msk.f32.mxu0 %vm195_vm0, %v20713_v11  ;;  %v8051_v11 = vrot.slane %v18529_v17, 2 }
 0x2e1   :  { %v19003_v29 = vsel %vm1934_vm6, %v8051_v11, %v8052_v54  ;;  %v15544_v54 = vld [vmem:[%s20364_s5] ss:$16 sps:$4 sm:$0xff]  }
 0x2e2   :  { %14525 = vmatmul.mubr.msk.f32.vlgmr.msra.gmra.mrb[152].mxu0 %vm195_vm0, %v20715_v63 }
 0x2e3   :  { %15031 = vmatpush3.bf16.msra.mxu0 %v20731_v61  ;;  %14527 = vmatprep.mubr.msk.f32.mxu0 %vm195_vm0, %v20718_v37 }
 0x2e4   :  { %15033 = vmatprep.subr.bf16.mxu0 %v20732_v25 }
 0x2e6   :  { %14528 = vmatmul.mubr.msk.f32.gmra.mrb[154].mxu0 %vm195_vm0, %v20719_v12 }
 0x2e7   :  { %14530 = vmatprep.mubr.msk.f32.mxu0 %vm195_vm0, %v18089_v38  ;;  %15035 = vmatpush3.bf16.msra.mxu0 %v20732_v25 }
 0x2e8   :  { %15037 = vmatprep.subr.bf16.mxu0 %v20733_v33 }
 0x2ea   :  { %14531 = vmatmul.mubr.msk.f32.gmra.mrb[156].mxu0 %vm195_vm0, %v18521_v60 }
 0x2eb   :  { %14533 = vmatprep.mubr.msk.f32.mxu0 %vm195_vm0, %v18862_v19 }
 0x2ee   :  { %14534 = vmatmul.mubr.msk.f32.gmra.mrb[158].mxu0 %vm195_vm0, %v19003_v29 }
 0x2ef   :  { %14544 = vmatprep.mubr.msk.f32.mxu0 %vm195_vm0, %v18143_v57  ;;  %v8169_v57 = vrot.slane %v18529_v17, 3 }
 0x2f1   :  { %v8171_v40 = vsel %vm1921_vm5, %v8169_v57, %v8170_v48  ;;  %v15547_v57 = vld [vmem:[%s20364_s5 + $0x20] ss:$16 sps:$4 sm:$0xff]   ;;  %v15552_v48 = vld [vmem:[%s20364_s5 + $0x44] ss:$16 sps:$4 sm:$0xff]  }
 0x2f2   :  { %14545 = vmatmul.mubr.msk.f32.vlgmr.msra.gmra.mrb[152].mxu0 %vm195_vm0, %v18158_v41 }
 0x2f3   :  { %15039 = vmatpush3.bf16.msra.mxu0 %v20733_v33  ;;  %14547 = vmatprep.mubr.msk.f32.mxu0 %vm195_vm0, %v18172_v62 }
 0x2f4   :  { %15041 = vmatprep.subr.bf16.mxu0 %v20734_v10 }
 0x2f6   :  { %14548 = vmatmul.mubr.msk.f32.gmra.mrb[154].mxu0 %vm195_vm0, %v18183_v26 }
 0x2f7   :  { %14550 = vmatprep.mubr.msk.f32.mxu0 %vm195_vm0, %v18198_v56  ;;  %15043 = vmatpush3.bf16.msra.mxu0 %v20734_v10  ;;  %v15549_v10 = vld [vmem:[%s20364_s5 + $0x24] ss:$16 sps:$4 sm:$0xff]  }
 0x2f8   :  { %15045 = vmatprep.subr.bf16.mxu0 %v18498_v5 }
 0x2fa   :  { %14551 = vmatmul.mubr.msk.f32.gmra.mrb[156].mxu0 %vm195_vm0, %v18591_v21 }
 0x2fb   :  { %14553 = vmatprep.mubr.msk.f32.mxu0 %vm195_vm0, %v18903_v6 }
 0x2fe   :  { %14554 = vmatmul.mubr.msk.f32.gmra.mrb[158].mxu0 %vm195_vm0, %v8171_v40 }
 0x2ff   :  { %14564 = vmatprep.mubr.msk.f32.mxu0 %vm195_vm0, %v18241_v24  ;;  %v8287_v24 = vrot.slane %v18529_v17, 4 }
 0x302   :  { %14565 = vmatmul.mubr.msk.f32.vlgmr.msra.gmra.mrb[152].mxu0 %vm195_vm0, %v18257_v59 }
 0x303   :  { %15047 = vmatpush3.bf16.msra.mxu0 %v18498_v5  ;;  %14567 = vmatprep.mubr.msk.f32.mxu0 %vm195_vm0, %v18271_v27  ;;  %v8289_v5 = vsel %vm1908_vm4, %v8287_v24, %v8288_v32  ;;  %v15555_v24 = vld [vmem:[%s20364_s5 + $0x64] ss:$16 sps:$4 sm:$0xff]   ;;  %v15553_v32 = vld [vmem:[%s20364_s5 + $0x60] ss:$16 sps:$4 sm:$0xff]  }
 0x304   :  { %15049 = vmatprep.subr.bf16.mxu0 %v18551_v34 }
 0x306   :  { %14568 = vmatmul.mubr.msk.f32.gmra.mrb[154].mxu0 %vm195_vm0, %v18282_v45 }
 0x307   :  { %14570 = vmatprep.mubr.msk.f32.mxu0 %vm195_vm0, %v18291_v8  ;;  %15051 = vmatpush3.bf16.msra.mxu0 %v18551_v34 }
 0x308   :  { %15053 = vmatprep.subr.bf16.mxu0 %v18570_v30 }
 0x30a   :  { %14571 = vmatmul.mubr.msk.f32.gmra.mrb[156].mxu0 %vm195_vm0, %v18656_v4 }
 0x30b   :  { %14573 = vmatprep.mubr.msk.f32.mxu0 %vm195_vm0, %v18930_v35 }
 0x30e   :  { %14574 = vmatmul.mubr.msk.f32.gmra.mrb[158].mxu0 %vm195_vm0, %v8289_v5 }
 0x30f   :  { %14584 = vmatprep.mubr.msk.f32.mxu0 %vm195_vm0, %v17650_v36  ;;  %v20735_v36 = vld [vmem:[#allocation39_spill] sm:$0xff] }
 0x312   :  { %14585 = vmatmul.mubr.msk.f32.vlgmr.msra.gmra.mrb[152].mxu0 %vm195_vm0, %v17718_v14  ;;  %v20736_v14 = vld [vmem:[#allocation40_spill] sm:$0xff] }
 0x313   :  { %15055 = vmatpush3.bf16.msra.mxu0 %v18570_v30  ;;  %14587 = vmatprep.mubr.msk.f32.mxu0 %vm195_vm0, %v17773_v42  ;;  %v20740_v30 = vld [vmem:[#allocation32_spill] sm:$0xff] }
 0x314   :  { %15057 = vmatprep.subr.bf16.mxu0 %v18617_v9 }
 0x316   :  { %14588 = vmatmul.mubr.msk.f32.gmra.mrb[154].mxu0 %vm195_vm0, %v17835_v51  ;;  %v19145_v51 = vld [vmem:[%s20363_s4] ss:$0 sm:$0xff] }
 0x317   :  { %14590 = vmatprep.mubr.msk.f32.mxu0 %vm195_vm0, %v17920_v2  ;;  %15059 = vmatpush3.bf16.msra.mxu0 %v18617_v9  ;;  %v20737_v2 = vld [vmem:[#allocation13_spill] sm:$0xff] }
 0x318   :  { %15061 = vmatprep.subr.bf16.mxu0 %v18637_v23 }
 0x31a   :  { %14591 = vmatmul.mubr.msk.f32.gmra.mrb[156].mxu0 %vm195_vm0, %v20692_v46  ;;  %v20741_v46 = vld [vmem:[#allocation25_spill] sm:$0xff] }
 0x31b   :  { %14593 = vmatprep.mubr.msk.f32.mxu0 %vm195_vm0, %v18529_v17 }
 0x31e   :  { %14594 = vmatmul.mubr.msk.f32.gmra.mrb[158].mxu0 %vm195_vm0, %v18727_v18 }
 0x31f   :  { %14604 = vmatprep.mubr.msk.f32.mxu0 %vm195_vm0, %v20698_v50 }
 0x322   :  { %14605 = vmatmul.mubr.msk.f32.vlgmr.msra.gmra.mrb[152].mxu0 %vm195_vm0, %v20701_v22 }
 0x323   :  { %15063 = vmatpush3.bf16.msra.mxu0 %v18637_v23  ;;  %14607 = vmatprep.mubr.msk.f32.mxu0 %vm195_vm0, %v20703_v28 }
 0x324   :  { %15065 = vmatprep.subr.bf16.mxu0 %v18686_v15 }
 0x326   :  { %14608 = vmatmul.mubr.msk.f32.gmra.mrb[154].mxu0 %vm195_vm0, %v20706_v1 }
 0x327   :  { %14610 = vmatprep.mubr.msk.f32.mxu0 %vm195_vm0, %v20708_v55  ;;  %15067 = vmatpush3.bf16.msra.mxu0 %v18686_v15 }
 0x328   :  { %15069 = vmatprep.subr.bf16.mxu0 %v18708_v43 }
 0x32a   :  { %14611 = vmatmul.mubr.msk.f32.gmra.mrb[156].mxu0 %vm195_vm0, %v18810_v16 }
 0x32b   :  { %14613 = vmatprep.mubr.msk.f32.mxu0 %vm195_vm0, %v18979_v0 }
 0x32e   :  { %14614 = vmatmul.mubr.msk.f32.gmra.mrb[158].mxu0 %vm195_vm0, %v18743_v49 }
 0x32f   :  { %14624 = vmatprep.mubr.msk.f32.mxu0 %vm195_vm0, %v20715_v63 }
 0x332   :  { %14625 = vmatmul.mubr.msk.f32.vlgmr.msra.gmra.mrb[152].mxu0 %vm195_vm0, %v20718_v37  ;;  %v20743_v37 = vld [vmem:[#allocation11_spill] sm:$0xff] }
 0x333   :  { %15071 = vmatpush3.bf16.msra.mxu0 %v18708_v43  ;;  %14627 = vmatprep.mubr.msk.f32.mxu0 %vm195_vm0, %v20719_v12 }
 0x334   :  { %15073 = vmatprep.subr.bf16.mxu0 %v18772_v39 }
 0x336   :  { %14628 = vmatmul.mubr.msk.f32.gmra.mrb[154].mxu0 %vm195_vm0, %v18089_v38 }
 0x337   :  { %14630 = vmatprep.mubr.msk.f32.mxu0 %vm195_vm0, %v18521_v60  ;;  %15075 = vmatpush3.bf16.msra.mxu0 %v18772_v39  ;;  %v20742_v39 = vld [vmem:[#allocation37_spill] sm:$0xff] }
 0x338   :  { %15077 = vmatprep.subr.bf16.mxu0 %v18794_v47 }
 0x33a   :  { %14631 = vmatmul.mubr.msk.f32.gmra.mrb[156].mxu0 %vm195_vm0, %v18862_v19 }
 0x33b   :  { %14633 = vmatprep.mubr.msk.f32.mxu0 %vm195_vm0, %v19003_v29  ;;  %v15546_v29 = vld [vmem:[%s20364_s5 + $0x4] ss:$16 sps:$4 sm:$0xff]  }
 0x33c   :  { %10688 = vmatprep.subr.bf16.mxu1 %v15546_v29 }
 0x33d   :  { %10689 = vmatpush1.bf16.msra.mxu1 %v15544_v54 }
 0x33e   :  { %14634 = vmatmul.mubr.msk.f32.gmra.mrb[158].mxu0 %vm195_vm0, %v18746_v20  ;;  %10690 = vmatprep.subr.bf16.mxu1 %v15549_v10 }
 0x33f   :  { %14644 = vmatprep.mubr.msk.f32.mxu0 %vm195_vm0, %v18158_v41 }
 0x341   :  { %10691 = vmatpush1.bf16.msra.mxu1 %v15547_v57 }
 0x342   :  { %14645 = vmatmul.mubr.msk.f32.vlgmr.msra.gmra.mrb[152].mxu0 %vm195_vm0, %v18172_v62  ;;  %v20738_v62 = vld [vmem:[#allocation27_spill] sm:$0xff]  ;;  %10692 = vmatprep.subr.bf16.mxu1 %v15552_v48 }
 0x343   :  { %15079 = vmatpush3.bf16.msra.mxu0 %v18794_v47  ;;  %14647 = vmatprep.mubr.msk.f32.mxu0 %vm195_vm0, %v18183_v26 }
 0x344   :  { %15081 = vmatprep.subr.bf16.mxu0 %v18836_v31 }
 0x346   :  { %14648 = vmatmul.mubr.msk.f32.gmra.mrb[154].mxu0 %vm195_vm0, %v18198_v56 }
 0x347   :  { %14650 = vmatprep.mubr.msk.f32.mxu0 %vm195_vm0, %v18591_v21  ;;  %15083 = vmatpush3.bf16.msra.mxu0 %v18836_v31 }
 0x34a   :  { %14651 = vmatmul.mubr.msk.f32.gmra.mrb[156].mxu0 %vm195_vm0, %v18903_v6 }
 0x34b   :  { %14653 = vmatprep.mubr.msk.f32.mxu0 %vm195_vm0, %v8171_v40  ;;  %v15550_v40 = vld [vmem:[%s20364_s5 + $0x40] ss:$16 sps:$4 sm:$0xff]  }
 0x34c   :  { %10693 = vmatpush1.bf16.msra.mxu1 %v15550_v40 }
 0x34d   :  { %10694 = vmatprep.subr.bf16.mxu1 %v15555_v24  ;;  %v15594_v24 = vld [vmem:[%s20364_s5 + $0x204] ss:$16 sps:$4 sm:$0xff]  }
 0x34e   :  { %14654 = vmatmul.mubr.msk.f32.gmra.mrb[158].mxu0 %vm195_vm0, %v20735_v36  ;;  %v15556_v36 = vld [vmem:[%s20364_s5 + $0x80] ss:$16 sps:$4 sm:$0xff]  }
 0x34f   :  { %14664 = vmatprep.mubr.msk.f32.mxu0 %vm195_vm0, %v18257_v59 }
 0x350   :  { %10695 = vmatpush1.bf16.msra.mxu1 %v15553_v32 }
 0x352   :  { %14665 = vmatmul.mubr.msk.f32.vlgmr.msra.gmra.mrb[152].mxu0 %vm195_vm0, %v18271_v27 }
 0x353   :  { %14667 = vmatprep.mubr.msk.f32.mxu0 %vm195_vm0, %v18282_v45 }
 0x356   :  { %14668 = vmatmul.mubr.msk.f32.gmra.mrb[154].mxu0 %vm195_vm0, %v18291_v8  ;;  %v20739_v8 = vld [vmem:[#allocation16_spill] sm:$0xff] }
 0x357   :  { %14670 = vmatprep.mubr.msk.f32.mxu0 %vm195_vm0, %v18656_v4 }
 0x35a   :  { %14671 = vmatmul.mubr.msk.f32.gmra.mrb[156].mxu0 %vm195_vm0, %v18930_v35 }
 0x35b   :  { %14673 = vmatprep.mubr.msk.f32.mxu0 %vm195_vm0, %v8289_v5  ;;  %v15558_v5 = vld [vmem:[%s20364_s5 + $0x84] ss:$16 sps:$4 sm:$0xff]  }
 0x35c   :  { %10696 = vmatprep.subr.bf16.mxu1 %v15558_v5 }
 0x35d   :  { %10697 = vmatpush1.bf16.msra.mxu1 %v15556_v36 }
 0x35e   :  { %14674 = vmatmul.mubr.msk.f32.gmra.mrb[158].mxu0 %vm195_vm0, %v20736_v14  ;;  %v15561_v14 = vld [vmem:[%s20364_s5 + $0xa4] ss:$16 sps:$4 sm:$0xff]  }
 0x35f   :  { %10698 = vmatprep.subr.bf16.mxu1 %v15561_v14 }
 0x375   :  { %v14166_v42 = vpop.f32.mrb[0].mxu1 }
 0x376   :  { %v15084_v38 = vadd.f32 %v14166_v42, %v20737_v2  ;;  %v5170_v41 = vpop.f32.mrb[1].mxu1  ;;  %v15559_v42 = vld [vmem:[%s20364_s5 + $0xa0] ss:$16 sps:$4 sm:$0xff]   ;;  %v15564_v2 = vld [vmem:[%s20364_s5 + $0xc4] ss:$16 sps:$4 sm:$0xff]  }
 0x377   :  { %v15085_v26 = vadd.f32 %v5170_v41, %v20738_v62  ;;  %10699 = vmatpush1.bf16.msra.mxu1 %v15559_v42  ;;  %v15567_v41 = vld [vmem:[%s20364_s5 + $0xe4] ss:$16 sps:$4 sm:$0xff]   ;;  %v15565_v62 = vld [vmem:[%s20364_s5 + $0xe0] ss:$16 sps:$4 sm:$0xff]  }
 0x378   :  { %v5225_v56 = vadd.f32 %v15084_v38, %v19145_v51  ;;  %v15562_v38 = vld [vmem:[%s20364_s5 + $0xc0] ss:$16 sps:$4 sm:$0xff]   ;;  %10700 = vmatprep.subr.bf16.mxu1 %v15564_v2 }
 0x379   :  { %v5224_v59 = vadd.f32 %v15085_v26, %v19145_v51  ;;  %v14169_v27 = vpop.f32.mrb[2].mxu1  ;;  %v15570_v26 = vld [vmem:[%s20364_s5 + $0x104] ss:$16 sps:$4 sm:$0xff]  }
 0x37a   :  { %v5237_v45 = vrot.slane %v5225_v56, 1  ;;  %v15086_v60 = vadd.f32 %v14169_v27, %v20739_v8  ;;  %v5180_v17 = vpop.f32.mrb[3].mxu1  ;;  %v15571_v27 = vld [vmem:[%s20364_s5 + $0x120] ss:$16 sps:$4 sm:$0xff]  }
 0x37b   :  { %v5233_v34 = vrot.slane %v5224_v59, 1  ;;  %v15087_v21 = vadd.f32 %v5180_v17, %v20740_v30  ;;  %10701 = vmatpush1.bf16.msra.mxu1 %v15562_v38  ;;  %v15574_v8 = vld [vmem:[%s20364_s5 + $0x140] ss:$16 sps:$4 sm:$0xff]  }
 0x37c   :  { %v5239_v9 = vmax.f32 %v5225_v56, %v5237_v45  ;;  %v5227_v23 = vadd.f32 %v15086_v60, %v19145_v51  ;;  %10702 = vmatprep.subr.bf16.mxu1 %v15567_v41  ;;  %v15568_v56 = vld [vmem:[%s20364_s5 + $0x100] ss:$16 sps:$4 sm:$0xff]   ;;  %v15576_v45 = vld [vmem:[%s20364_s5 + $0x144] ss:$16 sps:$4 sm:$0xff]  }
 0x37d   :  { %v5235_v4 = vmax.f32 %v5224_v59, %v5233_v34  ;;  %v5226_v15 = vadd.f32 %v15087_v21, %v19145_v51  ;;  %v14172_v43 = vpop.f32.mrb[4].mxu1  ;;  %v15573_v59 = vld [vmem:[%s20364_s5 + $0x124] ss:$16 sps:$4 sm:$0xff]   ;;  %v15577_v17 = vld [vmem:[%s20364_s5 + $0x160] ss:$16 sps:$4 sm:$0xff]  }
 0x37e   :  { %v5246_v18 = vrot.slane %v5227_v23, 1  ;;  %v15088_v49 = vadd.f32 %v14172_v43, %v20741_v46  ;;  %v5190_v20 = vpop.f32.mrb[5].mxu1  ;;  %v15579_v60 = vld [vmem:[%s20364_s5 + $0x164] ss:$16 sps:$4 sm:$0xff]   ;;  %v15580_v30 = vld [vmem:[%s20364_s5 + $0x180] ss:$16 sps:$4 sm:$0xff]  }
 0x37f   :  { %v19156_v31 = vmax.f32 %v5235_v4, %v5239_v9  ;;  %v5242_v50 = vrot.slane %v5226_v15, 1  ;;  %v15089_v22 = vadd.f32 %v5190_v20, %v20742_v39  ;;  %10703 = vmatpush1.bf16.msra.mxu1 %v15565_v62  ;;  %v15582_v34 = vld [vmem:[%s20364_s5 + $0x184] ss:$16 sps:$4 sm:$0xff]   ;;  %v15583_v9 = vld [vmem:[%s20364_s5 + $0x1a0] ss:$16 sps:$4 sm:$0xff]  }
 0x380   :  { %v5248_v28 = vmax.f32 %v5227_v23, %v5246_v18  ;;  %v5229_v47 = vadd.f32 %v15088_v49, %v19145_v51  ;;  %10704 = vmatprep.subr.bf16.mxu1 %v15570_v26  ;;  %v15585_v21 = vld [vmem:[%s20364_s5 + $0x1a4] ss:$16 sps:$4 sm:$0xff]   ;;  %v15586_v20 = vld [vmem:[%s20364_s5 + $0x1c0] ss:$16 sps:$4 sm:$0xff]  }
 0x381   :  { %v5244_v1 = vmax.f32 %v5226_v15, %v5242_v50  ;;  %v5228_v55 = vadd.f32 %v15089_v22, %v19145_v51  ;;  %v14175_v16 = vpop.f32.mrb[6].mxu1  ;;  %v15588_v50 = vld [vmem:[%s20364_s5 + $0x1c4] ss:$16 sps:$4 sm:$0xff]   ;;  %v5275_v10 = vrot.slane %v19156_v31, 6 }
 0x382   :  { %v5255_v63 = vrot.slane %v5229_v47, 1  ;;  %v15090_v12 = vadd.f32 %v14175_v16, %v20743_v37  ;;  %v5200_v19 = vpop.f32.mrb[7].mxu1 }
 0x383   :  { %v19162_v6 = vmax.f32 %v5244_v1, %v5248_v28  ;;  %v5251_v35 = vrot.slane %v5228_v55, 1  ;;  %v15091_v13 = vadd.f32 %v5200_v19, %v20744_v7  ;;  %10705 = vmatpush1.bf16.msra.mxu1 %v15568_v56  ;;  %v15589_v7 = vld [vmem:[%s20364_s5 + $0x1e0] ss:$16 sps:$4 sm:$0xff]  }
 0x384   :  { %v5257_v44 = vmax.f32 %v5229_v47, %v5255_v63  ;;  %v5231_v52 = vadd.f32 %v15090_v12, %v19145_v51  ;;  %10706 = vmatprep.subr.bf16.mxu1 %v15573_v59 }
 0x385   :  { %v5253_v58 = vmax.f32 %v5228_v55, %v5251_v35  ;;  %v5230_v61 = vadd.f32 %v15091_v13, %v19145_v51  ;;  %v15591_v13 = vld [vmem:[%s20364_s5 + $0x1e4] ss:$16 sps:$4 sm:$0xff]   ;;  %v5280_v2 = vrot.slane %v19162_v6, 2  ;;  %v5286_v38 = vrot.slane %v19162_v6, 6 }
 0x386   :  { %v5264_v3 = vrot.slane %v5231_v52, 1 }
 0x387   :  { %v19167_v53 = vmax.f32 %v5253_v58, %v5257_v44  ;;  %v5260_v0 = vrot.slane %v5230_v61, 1  ;;  %10707 = vmatpush1.bf16.msra.mxu1 %v15571_v27 }
 0x388   :  { %v5266_v25 = vmax.f32 %v5231_v52, %v5264_v3  ;;  %10708 = vmatprep.subr.bf16.mxu1 %v15576_v45 }
 0x389   :  { %v5262_v33 = vmax.f32 %v5230_v61, %v5260_v0  ;;  %v5269_v0 = vrot.slane %v19156_v31, 2 }
 0x38b   :  { %v19169_v11 = vmax.f32 %v5262_v33, %v5266_v25  ;;  %10709 = vmatpush1.bf16.msra.mxu1 %v15574_v8  ;;  %v15509_v26 = vpack.i.bf16 %v5269_v0, %v5275_v10  ;;  %v15519_v8 = vpack.i.bf16 %v5280_v2, %v5286_v38  ;;  %v15597_v10 = vld [vmem:[%s20364_s5 + $0x224] ss:$16 sps:$4 sm:$0xff]   ;;  %v15607_v38 = vld [vmem:[%s20364_s5 + $0x2a0] ss:$16 sps:$4 sm:$0xff]  }
 0x38c   :  { %10710 = vmatprep.subr.bf16.mxu1 %v15579_v60  ;;  %v15609_v2 = vld [vmem:[%s20364_s5 + $0x2a4] ss:$16 sps:$4 sm:$0xff]  }
 0x38f   :  { %10711 = vmatpush1.bf16.msra.mxu1 %v15577_v17 }
 0x390   :  { %10712 = vmatprep.subr.bf16.mxu1 %v15582_v34  ;;  %v5291_v34 = vrot.slane %v19167_v53, 2 }
 0x393   :  { %10713 = vmatpush1.bf16.msra.mxu1 %v15580_v30  ;;  %v5297_v30 = vrot.slane %v19167_v53, 6 }
 0x394   :  { %10714 = vmatprep.subr.bf16.mxu1 %v15585_v21 }
 0x397   :  { %10715 = vmatpush1.bf16.msra.mxu1 %v15583_v9 }
 0x398   :  { %10716 = vmatprep.subr.bf16.mxu1 %v15588_v50 }
 0x39b   :  { %10717 = vmatpush1.bf16.msra.mxu1 %v15586_v20 }
 0x39c   :  { %10718 = vmatprep.subr.bf16.mxu1 %v15591_v13 }
 0x39f   :  { %10719 = vmatpush1.bf16.msra.mxu1 %v15589_v7 }
 0x3a0   :  { %10729 = vmatprep.subr.bf16.mxu1 %v15594_v24  ;;  %v15600_v24 = vld [vmem:[%s20364_s5 + $0x244] ss:$16 sps:$4 sm:$0xff]  }
 0x425   :  { %v14666_v23 = vpop.f32.mrb[152].mxu0 }
 0x426   :  { %v8995_v4 = vadd.f32 %v14666_v23, %v19145_v51  ;;  %v8947_v15 = vpop.f32.mrb[153].mxu0  ;;  %v15529_v23 = vpack.i.bf16 %v5291_v34, %v5297_v30  ;;  %v15622_v34 = vld [vmem:[%s20364_s5 + $0x340] ss:$16 sps:$4 sm:$0xff]   ;;  %v15627_v30 = vld [vmem:[%s20364_s5 + $0x364] ss:$16 sps:$4 sm:$0xff]  }
 0x427   :  { %v8994_v43 = vadd.f32 %v19145_v51, %v8947_v15  ;;  %v5302_v15 = vrot.slane %v19169_v11, 2 }
 0x428   :  { %v9007_v18 = vrot.slane %v8995_v4, 1 }
 0x429   :  { %v9003_v46 = vrot.slane %v8994_v43, 1  ;;  %v14669_v49 = vpop.f32.mrb[154].mxu0 }
 0x42a   :  { %v9009_v39 = vmax.f32 %v8995_v4, %v9007_v18  ;;  %v8997_v22 = vadd.f32 %v14669_v49, %v19145_v51  ;;  %v8957_v28 = vpop.f32.mrb[155].mxu0 }
 0x42b   :  { %v9005_v47 = vmax.f32 %v8994_v43, %v9003_v46  ;;  %v8996_v1 = vadd.f32 %v19145_v51, %v8957_v28  ;;  %v5308_v43 = vrot.slane %v19169_v11, 6  ;;  %v5273_v28 = vrot.slane %v19156_v31, 4 }
 0x42c   :  { %v9016_v55 = vrot.slane %v8997_v22, 1 }
 0x42d   :  { %v19265_v16 = vmax.f32 %v9005_v47, %v9009_v39  ;;  %v9012_v63 = vrot.slane %v8996_v1, 1  ;;  %v14672_v37 = vpop.f32.mrb[156].mxu0  ;;  %v15539_v18 = vpack.i.bf16 %v5302_v15, %v5308_v43  ;;  %v15631_v43 = vld [vmem:[%s20364_s5 + $0x3a0] ss:$16 sps:$4 sm:$0xff]  }
 0x42e   :  { %v9018_v12 = vmax.f32 %v8997_v22, %v9016_v55  ;;  %v8999_v19 = vadd.f32 %v14672_v37, %v19145_v51  ;;  %v8967_v35 = vpop.f32.mrb[157].mxu0 }
 0x42f   :  { %v9014_v44 = vmax.f32 %v8996_v1, %v9012_v63  ;;  %v8998_v52 = vadd.f32 %v19145_v51, %v8967_v35  ;;  %v9039_v58 = vrot.slane %v19265_v16, 2  ;;  %v9045_v61 = vrot.slane %v19265_v16, 6 }
 0x430   :  { %v9025_v3 = vrot.slane %v8999_v19, 1  ;;  %v9043_v49 = vrot.slane %v19265_v16, 4 }
 0x431   :  { %v19278_v25 = vmax.f32 %v9014_v44, %v9018_v12  ;;  %v9021_v33 = vrot.slane %v8998_v52, 1  ;;  %v14675_v54 = vpop.f32.mrb[158].mxu0  ;;  %v15504_v29 = vpack.i.bf16 %v9039_v58, %v9045_v61 }
 0x432   :  { %v9027_v57 = vmax.f32 %v8999_v19, %v9025_v3  ;;  %v9001_v48 = vadd.f32 %v14675_v54, %v19145_v51  ;;  %v8977_v40 = vpop.f32.mrb[159].mxu0  ;;  %v5284_v3 = vrot.slane %v19162_v6, 4 }
 0x433   :  { %v9023_v32 = vmax.f32 %v8998_v52, %v9021_v33  ;;  %v9000_v5 = vadd.f32 %v19145_v51, %v8977_v40  ;;  %15505 = vrot.lane.b32.xlu0 %v15504_v29, %s16070_s22  ;;  %v9050_v36 = vrot.slane %v19278_v25, 2  ;;  %v9056_v14 = vrot.slane %v19278_v25, 6 }
 0x434   :  { %v9034_v42 = vrot.slane %v9001_v48, 1  ;;  %v9054_v37 = vrot.slane %v19278_v25, 4 }
 0x435   :  { %v19291_v41 = vmax.f32 %v9023_v32, %v9027_v57  ;;  %v9030_v62 = vrot.slane %v9000_v5, 1  ;;  %v15514_v56 = vpack.i.bf16 %v9050_v36, %v9056_v14  ;;  %v15598_v32 = vld [vmem:[%s20364_s5 + $0x240] ss:$16 sps:$4 sm:$0xff]   ;;  %v15606_v14 = vld [vmem:[%s20364_s5 + $0x284] ss:$16 sps:$4 sm:$0xff]  }
 0x436   :  { %v9036_v59 = vmax.f32 %v9001_v48, %v9034_v42  ;;  %v15595_v48 = vld [vmem:[%s20364_s5 + $0x220] ss:$16 sps:$4 sm:$0xff]  }
 0x437   :  { %v9032_v51 = vmax.f32 %v9000_v5, %v9030_v62  ;;  %15510 = vrot.lane.b32.xlu0 %v15509_v26, %s16070_s22  ;;  %15515 = vrot.lane.b32.xlu1 %v15514_v56, %s16070_s22  ;;  %v9061_v27 = vrot.slane %v19291_v41, 2  ;;  %v9067_v45 = vrot.slane %v19291_v41, 6  ;;  %v15603_v5 = vld [vmem:[%s20364_s5 + $0x264] ss:$16 sps:$4 sm:$0xff]   ;;  %v15601_v36 = vld [vmem:[%s20364_s5 + $0x260] ss:$16 sps:$4 sm:$0xff]  }
 0x438   :  { %v15604_v42 = vld [vmem:[%s20364_s5 + $0x280] ss:$16 sps:$4 sm:$0xff]   ;;  %v15612_v62 = vld [vmem:[%s20364_s5 + $0x2c4] ss:$16 sps:$4 sm:$0xff]  }
 0x439   :  { %v19297_v60 = vmax.f32 %v9032_v51, %v9036_v59  ;;  %v15524_v17 = vpack.i.bf16 %v9061_v27, %v9067_v45  ;;  %v15610_v26 = vld [vmem:[%s20364_s5 + $0x2c0] ss:$16 sps:$4 sm:$0xff]   ;;  %v15615_v56 = vld [vmem:[%s20364_s5 + $0x2e4] ss:$16 sps:$4 sm:$0xff]  }
 0x43a   :  { %v15613_v59 = vld [vmem:[%s20364_s5 + $0x2e0] ss:$16 sps:$4 sm:$0xff]   ;;  %v15618_v51 = vld [vmem:[%s20364_s5 + $0x304] ss:$16 sps:$4 sm:$0xff]  }
 0x43b   :  { %15520 = vrot.lane.b32.xlu1 %v15519_v8, %s16070_s22  ;;  %15525 = vrot.lane.b32.xlu0 %v15524_v17, %s16070_s22  ;;  %v9072_v21 = vrot.slane %v19297_v60, 2  ;;  %v9078_v9 = vrot.slane %v19297_v60, 6  ;;  %v15616_v27 = vld [vmem:[%s20364_s5 + $0x300] ss:$16 sps:$4 sm:$0xff]   ;;  %v15621_v45 = vld [vmem:[%s20364_s5 + $0x324] ss:$16 sps:$4 sm:$0xff]  }
 0x43c   :  { %v15619_v8 = vld [vmem:[%s20364_s5 + $0x320] ss:$16 sps:$4 sm:$0xff]   ;;  %v15624_v17 = vld [vmem:[%s20364_s5 + $0x344] ss:$16 sps:$4 sm:$0xff]  }
 0x43d   :  { %v15534_v4 = vpack.i.bf16 %v9072_v21, %v9078_v9  ;;  %v15625_v21 = vld [vmem:[%s20364_s5 + $0x360] ss:$16 sps:$4 sm:$0xff]   ;;  %v15630_v9 = vld [vmem:[%s20364_s5 + $0x384] ss:$16 sps:$4 sm:$0xff]  }
 0x43f   :  { %15530 = vrot.lane.b32.xlu1 %v15529_v23, %s16070_s22  ;;  %15535 = vrot.lane.b32.xlu0 %v15534_v4, %s16070_s22  ;;  %v15628_v23 = vld [vmem:[%s20364_s5 + $0x380] ss:$16 sps:$4 sm:$0xff]   ;;  %v15633_v4 = vld [vmem:[%s20364_s5 + $0x3a4] ss:$16 sps:$4 sm:$0xff]  }
 0x443   :  { %15540 = vrot.lane.b32.xlu1 %v15539_v18, %s16070_s22 }
 0x4a5   :  { %v15506_v46 = vpop.permute.xlu0 %15505 }
 0x4a6   :  { %v15508_v20 = vunpack.i.h.bf16 %v15506_v46  ;;  %v15507_v50 = vunpack.i.l.bf16 %v15506_v46 }
 0x4a8   :  { %v9082_v39 = vsel %vm5312_vm8, %v19265_v16, %v15508_v20  ;;  %v9083_v22 = vsel %vm5312_vm8, %v9043_v49, %v15507_v50  ;;  %v15636_v49 = vld [vmem:[%s20364_s5 + $0x3c4] ss:$16 sps:$4 sm:$0xff]  }
 0x4a9   :  { %v15511_v47 = vpop.permute.xlu0 %15510  ;;  %v19315_v1 = vpop.permute.xlu1 %15515  ;;  %v9098_v19 = vrot.slane %v9082_v39, 7  ;;  %v9099_v35 = vrot.slane %v9083_v22, 7  ;;  %v9065_v39 = vrot.slane %v19291_v41, 4 }
 0x4aa   :  { %v15513_v55 = vunpack.i.h.bf16 %v15511_v47  ;;  %v15512_v63 = vunpack.i.l.bf16 %v15511_v47  ;;  %v15517_v12 = vunpack.i.l.bf16 %v19315_v1  ;;  %v15518_v18 = vunpack.i.h.bf16 %v19315_v1  ;;  %v15639_v1 = vld [vmem:[%s20364_s5 + $0x3e4] ss:$16 sps:$4 sm:$0xff]  }
 0x4ac   :  { %v5313_v7 = vsel %vm5312_vm8, %v19156_v31, %v15513_v55  ;;  %v5314_v16 = vsel %vm5312_vm8, %v5273_v28, %v15512_v63  ;;  %v9085_v13 = vsel %vm5312_vm8, %v9054_v37, %v15517_v12  ;;  %v15592_v31 = vld [vmem:[%s20364_s5 + $0x200] ss:$16 sps:$4 sm:$0xff]   ;;  %v9084_v47 = vsel %vm5312_vm8, %v19278_v25, %v15518_v18 }
 0x4ad   :  { %v9114_v44 = vsel %vm1869_vm1, %v5313_v7, %v9098_v19  ;;  %v19324_v52 = vpop.permute.xlu1 %15520  ;;  %v9115_v58 = vsel %vm1869_vm1, %v5314_v16, %v9099_v35  ;;  %v9101_v33 = vrot.slane %v9085_v13, 7  ;;  %v19418_v15 = vpop.permute.xlu0 %15525  ;;  %v15634_v28 = vld [vmem:[%s20364_s5 + $0x3c0] ss:$16 sps:$4 sm:$0xff]   ;;  %v5295_v63 = vrot.slane %v19167_v53, 4  ;;  %v15642_v7 = vld [vmem:[%s20364_s5 + $0x404] ss:$16 sps:$4 sm:$0xff]  }
 0x4ae   :  { %v19327_v61 = vpack.c.bf16 %v9114_v44, %v9114_v44  ;;  %v15522_v0 = vunpack.i.l.bf16 %v19324_v52  ;;  %v19331_v54 = vpack.c.bf16 %v9115_v58, %v9115_v58  ;;  %v15527_v20 = vunpack.i.l.bf16 %v19418_v15  ;;  %v15637_v25 = vld [vmem:[%s20364_s5 + $0x3e0] ss:$16 sps:$4 sm:$0xff]  }
 0x4af   :  { %v15523_v50 = vunpack.i.h.bf16 %v19324_v52  ;;  %v9100_v12 = vrot.slane %v9084_v47, 7  ;;  %v15645_v52 = vld [vmem:[%s20364_s5 + $0x424] ss:$16 sps:$4 sm:$0xff]  }
 0x4b0   :  { %v5316_v29 = vsel %vm5312_vm8, %v5284_v3, %v15522_v0  ;;  %10720 = vmatprep.mubr.bf16.mxu1 %v19331_v54  ;;  %v9087_v55 = vsel %vm5312_vm8, %v9065_v39, %v15527_v20  ;;  %v15643_v3 = vld [vmem:[%s20364_s5 + $0x420] ss:$16 sps:$4 sm:$0xff]   ;;  %v15648_v0 = vld [vmem:[%s20364_s5 + $0x444] ss:$16 sps:$4 sm:$0xff]  }
 0x4b1   :  { %v9117_v57 = vsel %vm1869_vm1, %v5316_v29, %v9101_v33  ;;  %10721 = vmatmul.mubr.bf16.vlgmr.msra.gmra.mrb[8].mxu1 %v19327_v61  ;;  %v19424_v46 = vpop.permute.xlu1 %15530  ;;  %v5315_v37 = vsel %vm5312_vm8, %v19162_v6, %v15523_v50  ;;  %v9103_v35 = vrot.slane %v9087_v55, 7  ;;  %v15640_v6 = vld [vmem:[%s20364_s5 + $0x400] ss:$16 sps:$4 sm:$0xff]   ;;  %v15687_v20 = vld [vmem:[%s20364_s5 + $0x5e4] ss:$16 sps:$4 sm:$0xff]  }
 0x4b2   :  { %10730 = vmatpush1.bf16.msra.mxu1 %v15592_v31  ;;  %v19346_v40 = vpack.c.bf16 %v9117_v57, %v9117_v57  ;;  %v15532_v22 = vunpack.i.l.bf16 %v19424_v46  ;;  %v9116_v16 = vsel %vm1869_vm1, %v5315_v37, %v9100_v12  ;;  %v15646_v33 = vld [vmem:[%s20364_s5 + $0x440] ss:$16 sps:$4 sm:$0xff]   ;;  %v15651_v31 = vld [vmem:[%s20364_s5 + $0x464] ss:$16 sps:$4 sm:$0xff]  }
 0x4b3   :  { %10731 = vmatprep.subr.bf16.mxu1 %v15597_v10  ;;  %v19457_v44 = vpack.c.bf16 %v9116_v16, %v9116_v16  ;;  %v15649_v29 = vld [vmem:[%s20364_s5 + $0x460] ss:$16 sps:$4 sm:$0xff]   ;;  %v15654_v10 = vld [vmem:[%s20364_s5 + $0x484] ss:$16 sps:$4 sm:$0xff]  }
 0x4b4   :  { %10761 = vmatprep.mubr.bf16.mxu1 %v19346_v40  ;;  %v5318_v19 = vsel %vm5312_vm8, %v5295_v63, %v15532_v22  ;;  %v15652_v57 = vld [vmem:[%s20364_s5 + $0x480] ss:$16 sps:$4 sm:$0xff]   ;;  %v15693_v12 = vld [vmem:[%s20364_s5 + $0x624] ss:$16 sps:$4 sm:$0xff]  }
 0x4b5   :  { %v9119_v13 = vsel %vm1869_vm1, %v5318_v19, %v9103_v35  ;;  %v15696_v35 = vld [vmem:[%s20364_s5 + $0x644] ss:$16 sps:$4 sm:$0xff]  }
 0x4b6   :  { %10732 = vmatpush1.bf16.msra.mxu1 %v15595_v48  ;;  %v19462_v58 = vpack.c.bf16 %v9119_v13, %v9119_v13  ;;  %v15657_v48 = vld [vmem:[%s20364_s5 + $0x4a4] ss:$16 sps:$4 sm:$0xff]   ;;  %v15697_v13 = vld [vmem:[%s20364_s5 + $0x660] ss:$16 sps:$4 sm:$0xff]  }
 0x4b7   :  { %10733 = vmatprep.subr.bf16.mxu1 %v15600_v24  ;;  %v15655_v24 = vld [vmem:[%s20364_s5 + $0x4a0] ss:$16 sps:$4 sm:$0xff]   ;;  %v15699_v16 = vld [vmem:[%s20364_s5 + $0x664] ss:$16 sps:$4 sm:$0xff]  }
 0x4ba   :  { %10734 = vmatpush1.bf16.msra.mxu1 %v15598_v32  ;;  %v15660_v32 = vld [vmem:[%s20364_s5 + $0x4c4] ss:$16 sps:$4 sm:$0xff]  }
 0x4bb   :  { %10735 = vmatprep.subr.bf16.mxu1 %v15603_v5  ;;  %v15658_v5 = vld [vmem:[%s20364_s5 + $0x4c0] ss:$16 sps:$4 sm:$0xff]  }
 0x4be   :  { %10736 = vmatpush1.bf16.msra.mxu1 %v15601_v36  ;;  %v15663_v36 = vld [vmem:[%s20364_s5 + $0x4e4] ss:$16 sps:$4 sm:$0xff]  }
 0x4bf   :  { %10737 = vmatprep.subr.bf16.mxu1 %v15606_v14  ;;  %v15661_v14 = vld [vmem:[%s20364_s5 + $0x4e0] ss:$16 sps:$4 sm:$0xff]  }
 0x4c2   :  { %10738 = vmatpush1.bf16.msra.mxu1 %v15604_v42  ;;  %v15666_v42 = vld [vmem:[%s20364_s5 + $0x504] ss:$16 sps:$4 sm:$0xff]  }
 0x4c3   :  { %10739 = vmatprep.subr.bf16.mxu1 %v15609_v2  ;;  %v15664_v2 = vld [vmem:[%s20364_s5 + $0x500] ss:$16 sps:$4 sm:$0xff]  }
 0x4c6   :  { %10740 = vmatpush1.bf16.msra.mxu1 %v15607_v38  ;;  %v15669_v38 = vld [vmem:[%s20364_s5 + $0x524] ss:$16 sps:$4 sm:$0xff]  }
 0x4c7   :  { %10741 = vmatprep.subr.bf16.mxu1 %v15612_v62  ;;  %v15667_v62 = vld [vmem:[%s20364_s5 + $0x520] ss:$16 sps:$4 sm:$0xff]  }
 0x4ca   :  { %10742 = vmatpush1.bf16.msra.mxu1 %v15610_v26  ;;  %v15672_v26 = vld [vmem:[%s20364_s5 + $0x544] ss:$16 sps:$4 sm:$0xff]  }
 0x4cb   :  { %10743 = vmatprep.subr.bf16.mxu1 %v15615_v56  ;;  %v15670_v56 = vld [vmem:[%s20364_s5 + $0x540] ss:$16 sps:$4 sm:$0xff]  }
 0x4ce   :  { %10744 = vmatpush1.bf16.msra.mxu1 %v15613_v59  ;;  %v15675_v59 = vld [vmem:[%s20364_s5 + $0x564] ss:$16 sps:$4 sm:$0xff]  }
 0x4cf   :  { %10745 = vmatprep.subr.bf16.mxu1 %v15618_v51  ;;  %v15673_v51 = vld [vmem:[%s20364_s5 + $0x560] ss:$16 sps:$4 sm:$0xff]  }
 0x4d2   :  { %10746 = vmatpush1.bf16.msra.mxu1 %v15616_v27  ;;  %v15678_v27 = vld [vmem:[%s20364_s5 + $0x584] ss:$16 sps:$4 sm:$0xff]  }
 0x4d3   :  { %10747 = vmatprep.subr.bf16.mxu1 %v15621_v45  ;;  %v15676_v45 = vld [vmem:[%s20364_s5 + $0x580] ss:$16 sps:$4 sm:$0xff]  }
 0x4d6   :  { %10748 = vmatpush1.bf16.msra.mxu1 %v15619_v8  ;;  %v15681_v8 = vld [vmem:[%s20364_s5 + $0x5a4] ss:$16 sps:$4 sm:$0xff]  }
 0x4d7   :  { %10749 = vmatprep.subr.bf16.mxu1 %v15624_v17  ;;  %v19538_v17 = vpop.permute.xlu0 %15535 }
 0x4da   :  { %10750 = vmatpush1.bf16.msra.mxu1 %v15622_v34  ;;  %v15679_v34 = vld [vmem:[%s20364_s5 + $0x5a0] ss:$16 sps:$4 sm:$0xff]  }
 0x4db   :  { %10751 = vmatprep.subr.bf16.mxu1 %v15627_v30  ;;  %v15528_v30 = vunpack.i.h.bf16 %v19418_v15  ;;  %v15682_v15 = vld [vmem:[%s20364_s5 + $0x5c0] ss:$16 sps:$4 sm:$0xff]  }
 0x4de   :  { %10752 = vmatpush1.bf16.msra.mxu1 %v15625_v21  ;;  %v19544_v21 = vpop.permute.xlu1 %15540 }
 0x4df   :  { %10753 = vmatprep.subr.bf16.mxu1 %v15630_v9  ;;  %v15684_v9 = vld [vmem:[%s20364_s5 + $0x5c4] ss:$16 sps:$4 sm:$0xff]   ;;  %v15542_v18 = vunpack.i.l.bf16 %v19544_v21 }
 0x4e2   :  { %10754 = vmatpush1.bf16.msra.mxu1 %v15628_v23  ;;  %v15537_v23 = vunpack.i.l.bf16 %v19538_v17 }
 0x4e3   :  { %10755 = vmatprep.subr.bf16.mxu1 %v15633_v4  ;;  %v15533_v4 = vunpack.i.h.bf16 %v19424_v46  ;;  %v5306_v46 = vrot.slane %v19169_v11, 4 }
 0x4e5   :  { %v5317_v39 = vsel %vm5312_vm8, %v19167_v53, %v15533_v4  ;;  %v15688_v53 = vld [vmem:[%s20364_s5 + $0x600] ss:$16 sps:$4 sm:$0xff]   ;;  %v15739_v4 = vld [vmem:[%s20364_s5 + $0x28] ss:$16 sps:$4 sm:$0xff]  }
 0x4e6   :  { %10756 = vmatpush1.bf16.msra.mxu1 %v15631_v43  ;;  %v9076_v43 = vrot.slane %v19297_v60, 4 }
 0x4e7   :  { %10757 = vmatprep.subr.bf16.mxu1 %v15636_v49  ;;  %v9086_v49 = vsel %vm5312_vm8, %v19291_v41, %v15528_v30  ;;  %v15685_v41 = vld [vmem:[%s20364_s5 + $0x5e0] ss:$16 sps:$4 sm:$0xff]  }
 0x4e8   :  { %v9089_v50 = vsel %vm5312_vm8, %v9076_v43, %v15537_v23  ;;  %v9102_v22 = vrot.slane %v9086_v49, 7  ;;  %v15733_v30 = vld [vmem:[%s20364_s5 + $0x7e0] ss:$16 sps:$4 sm:$0xff]   ;;  %v15744_v43 = vld [vmem:[%s20364_s5 + $0x4c] ss:$16 sps:$4 sm:$0xff]  }
 0x4e9   :  { %v9105_v47 = vrot.slane %v9089_v50, 7  ;;  %v15750_v49 = vld [vmem:[%s20364_s5 + $0x8c] ss:$16 sps:$4 sm:$0xff]  }
 0x4ea   :  { %10758 = vmatpush1.bf16.msra.mxu1 %v15634_v28  ;;  %v5320_v28 = vsel %vm5312_vm8, %v5306_v46, %v15542_v18  ;;  %v9118_v55 = vsel %vm1869_vm1, %v5317_v39, %v9102_v22  ;;  %v15742_v18 = vld [vmem:[%s20364_s5 + $0x48] ss:$16 sps:$4 sm:$0xff]   ;;  %v15753_v50 = vld [vmem:[%s20364_s5 + $0xac] ss:$16 sps:$4 sm:$0xff]  }
 0x4eb   :  { %10759 = vmatprep.subr.bf16.mxu1 %v15639_v1  ;;  %v15690_v1 = vld [vmem:[%s20364_s5 + $0x604] ss:$16 sps:$4 sm:$0xff]   ;;  %v9121_v63 = vsel %vm1869_vm1, %v5320_v28, %v9105_v47  ;;  %v19577_v37 = vpack.c.bf16 %v9118_v55, %v9118_v55  ;;  %v15751_v46 = vld [vmem:[%s20364_s5 + $0xa8] ss:$16 sps:$4 sm:$0xff]   ;;  %v15756_v39 = vld [vmem:[%s20364_s5 + $0xcc] ss:$16 sps:$4 sm:$0xff]  }
 0x4ec   :  { %v19582_v19 = vpack.c.bf16 %v9121_v63, %v9121_v63  ;;  %v15754_v22 = vld [vmem:[%s20364_s5 + $0xc8] ss:$16 sps:$4 sm:$0xff]   ;;  %v15759_v28 = vld [vmem:[%s20364_s5 + $0xec] ss:$16 sps:$4 sm:$0xff]  }
 0x4ed   :  { %v15853_v47 = vld [vmem:[%s20366_s7] ss:$8 sps:$4 sm:$0xff]   ;;  %v15762_v55 = vld [vmem:[%s20364_s5 + $0x10c] ss:$16 sps:$4 sm:$0xff]  }
 0x4ee   :  { %10760 = vmatpush1.bf16.msra.mxu1 %v15637_v25  ;;  %v15691_v25 = vld [vmem:[%s20364_s5 + $0x620] ss:$16 sps:$4 sm:$0xff]   ;;  %v15760_v63 = vld [vmem:[%s20364_s5 + $0x108] ss:$16 sps:$4 sm:$0xff]  }
 0x4ef   :  { %10770 = vmatprep.subr.bf16.mxu1 %v15642_v7  ;;  %v15694_v7 = vld [vmem:[%s20364_s5 + $0x640] ss:$16 sps:$4 sm:$0xff]  }
 0x4f1   :  { %10762 = vmatmul.mubr.bf16.vlgmr.msra.gmra.mrb[8].mxu1 %v19457_v44 }
 0x4f2   :  { %10771 = vmatpush1.bf16.msra.mxu1 %v15640_v6  ;;  %10802 = vmatprep.mubr.bf16.mxu1 %v19462_v58  ;;  %v15702_v6 = vld [vmem:[%s20364_s5 + $0x684] ss:$16 sps:$4 sm:$0xff]  }
 0x4f3   :  { %10772 = vmatprep.subr.bf16.mxu1 %v15645_v52  ;;  %v15700_v52 = vld [vmem:[%s20364_s5 + $0x680] ss:$16 sps:$4 sm:$0xff]  }
 0x4f6   :  { %10773 = vmatpush1.bf16.msra.mxu1 %v15643_v3  ;;  %v15705_v3 = vld [vmem:[%s20364_s5 + $0x6a4] ss:$16 sps:$4 sm:$0xff]  }
 0x4f7   :  { %10774 = vmatprep.subr.bf16.mxu1 %v15648_v0  ;;  %v15703_v0 = vld [vmem:[%s20364_s5 + $0x6a0] ss:$16 sps:$4 sm:$0xff]  }
 0x4fa   :  { %10775 = vmatpush1.bf16.msra.mxu1 %v15646_v33  ;;  %v15708_v33 = vld [vmem:[%s20364_s5 + $0x6c4] ss:$16 sps:$4 sm:$0xff]  }
 0x4fb   :  { %10776 = vmatprep.subr.bf16.mxu1 %v15651_v31  ;;  %v15706_v31 = vld [vmem:[%s20364_s5 + $0x6c0] ss:$16 sps:$4 sm:$0xff]  }
 0x4fe   :  { %10777 = vmatpush1.bf16.msra.mxu1 %v15649_v29  ;;  %v15711_v29 = vld [vmem:[%s20364_s5 + $0x6e4] ss:$16 sps:$4 sm:$0xff]  }
 0x4ff   :  { %10778 = vmatprep.subr.bf16.mxu1 %v15654_v10  ;;  %v15709_v10 = vld [vmem:[%s20364_s5 + $0x6e0] ss:$16 sps:$4 sm:$0xff]  }
 0x502   :  { %10779 = vmatpush1.bf16.msra.mxu1 %v15652_v57  ;;  %v15714_v57 = vld [vmem:[%s20364_s5 + $0x704] ss:$16 sps:$4 sm:$0xff]  }
 0x503   :  { %10780 = vmatprep.subr.bf16.mxu1 %v15657_v48  ;;  %v15712_v48 = vld [vmem:[%s20364_s5 + $0x700] ss:$16 sps:$4 sm:$0xff]  }
 0x506   :  { %10781 = vmatpush1.bf16.msra.mxu1 %v15655_v24  ;;  %v15717_v24 = vld [vmem:[%s20364_s5 + $0x724] ss:$16 sps:$4 sm:$0xff]  }
 0x507   :  { %10782 = vmatprep.subr.bf16.mxu1 %v15660_v32  ;;  %v15715_v32 = vld [vmem:[%s20364_s5 + $0x720] ss:$16 sps:$4 sm:$0xff]  }
 0x50a   :  { %10783 = vmatpush1.bf16.msra.mxu1 %v15658_v5  ;;  %v15720_v5 = vld [vmem:[%s20364_s5 + $0x744] ss:$16 sps:$4 sm:$0xff]  }
 0x50b   :  { %10784 = vmatprep.subr.bf16.mxu1 %v15663_v36  ;;  %v15718_v36 = vld [vmem:[%s20364_s5 + $0x740] ss:$16 sps:$4 sm:$0xff]  }
 0x50e   :  { %10785 = vmatpush1.bf16.msra.mxu1 %v15661_v14  ;;  %v15723_v14 = vld [vmem:[%s20364_s5 + $0x764] ss:$16 sps:$4 sm:$0xff]  }
 0x50f   :  { %10786 = vmatprep.subr.bf16.mxu1 %v15666_v42  ;;  %v15721_v42 = vld [vmem:[%s20364_s5 + $0x760] ss:$16 sps:$4 sm:$0xff]  }
 0x512   :  { %10787 = vmatpush1.bf16.msra.mxu1 %v15664_v2  ;;  %v15726_v2 = vld [vmem:[%s20364_s5 + $0x784] ss:$16 sps:$4 sm:$0xff]  }
 0x513   :  { %10788 = vmatprep.subr.bf16.mxu1 %v15669_v38  ;;  %v15724_v38 = vld [vmem:[%s20364_s5 + $0x780] ss:$16 sps:$4 sm:$0xff]  }
 0x516   :  { %10789 = vmatpush1.bf16.msra.mxu1 %v15667_v62  ;;  %v15729_v62 = vld [vmem:[%s20364_s5 + $0x7a4] ss:$16 sps:$4 sm:$0xff]  }
 0x517   :  { %10790 = vmatprep.subr.bf16.mxu1 %v15672_v26  ;;  %v15727_v26 = vld [vmem:[%s20364_s5 + $0x7a0] ss:$16 sps:$4 sm:$0xff]  }
 0x51a   :  { %10791 = vmatpush1.bf16.msra.mxu1 %v15670_v56  ;;  %v15538_v56 = vunpack.i.h.bf16 %v19538_v17 }
 0x51b   :  { %10792 = vmatprep.subr.bf16.mxu1 %v15675_v59  ;;  %v15732_v59 = vld [vmem:[%s20364_s5 + $0x7c4] ss:$16 sps:$4 sm:$0xff]  }
 0x51e   :  { %10793 = vmatpush1.bf16.msra.mxu1 %v15673_v51  ;;  %v15543_v51 = vunpack.i.h.bf16 %v19544_v21  ;;  %v15738_v21 = vld [vmem:[%s20364_s5 + $0xc] ss:$16 sps:$4 sm:$0xff]  }
 0x51f   :  { %10794 = vmatprep.subr.bf16.mxu1 %v15678_v27  ;;  %v15730_v27 = vld [vmem:[%s20364_s5 + $0x7c0] ss:$16 sps:$4 sm:$0xff]  }
 0x520   :  { %v5319_v17 = vsel %vm5312_vm8, %v19169_v11, %v15543_v51  ;;  %v15741_v11 = vld [vmem:[%s20364_s5 + $0x2c] ss:$16 sps:$4 sm:$0xff]  }
 0x521   :  { %v15903_v51 = vld [vmem:[%s20366_s7 + $0x84] ss:$8 sps:$4 sm:$0xff]  }
 0x522   :  { %10795 = vmatpush1.bf16.msra.mxu1 %v15676_v45  ;;  %v9088_v45 = vsel %vm5312_vm8, %v19297_v60, %v15538_v56  ;;  %v15781_v56 = vld [vmem:[%s20364_s5 + $0x1e8] ss:$16 sps:$4 sm:$0xff]  }
 0x523   :  { %10796 = vmatprep.subr.bf16.mxu1 %v15681_v8  ;;  %v15735_v8 = vld [vmem:[%s20364_s5 + $0x7e4] ss:$16 sps:$4 sm:$0xff]  }
 0x526   :  { %10797 = vmatpush1.bf16.msra.mxu1 %v15679_v34  ;;  %v9104_v34 = vrot.slane %v9088_v45, 7  ;;  %v15784_v45 = vld [vmem:[%s20364_s5 + $0x208] ss:$16 sps:$4 sm:$0xff]  }
 0x527   :  { %10798 = vmatprep.subr.bf16.mxu1 %v15684_v9  ;;  %v15736_v9 = vld [vmem:[%s20364_s5 + $0x8] ss:$16 sps:$4 sm:$0xff]  }
 0x528   :  { %v9120_v60 = vsel %vm1869_vm1, %v5319_v17, %v9104_v34  ;;  %v15909_v17 = vld [vmem:[%s20366_s7 + $0x94] ss:$8 sps:$4 sm:$0xff]  }
 0x529   :  { %v19686_v23 = vpack.c.bf16 %v9120_v60, %v9120_v60  ;;  %v15789_v34 = vld [vmem:[%s20364_s5 + $0x22c] ss:$16 sps:$4 sm:$0xff]  }
 0x52a   :  { %10799 = vmatpush1.bf16.msra.mxu1 %v15682_v15  ;;  %v15747_v15 = vld [vmem:[%s20364_s5 + $0x6c] ss:$16 sps:$4 sm:$0xff]  }
 0x52b   :  { %10800 = vmatprep.subr.bf16.mxu1 %v15687_v20  ;;  %v15748_v20 = vld [vmem:[%s20364_s5 + $0x88] ss:$16 sps:$4 sm:$0xff]   ;;  %v15915_v60 = vld [vmem:[%s20366_s7 + $0xa4] ss:$8 sps:$4 sm:$0xff]  }
 0x52e   :  { %10801 = vmatpush1.bf16.msra.mxu1 %v15685_v41  ;;  %v15757_v41 = vld [vmem:[%s20364_s5 + $0xe8] ss:$16 sps:$4 sm:$0xff]  }
 0x52f   :  { %10811 = vmatprep.subr.bf16.mxu1 %v15690_v1  ;;  %v15855_v1 = vld [vmem:[%s20366_s7 + $0x4] ss:$8 sps:$4 sm:$0xff]  }
 0x530   :  { %11416 = vmatprep.subr.bf16.mxu0 %v15855_v1  ;;  %v15807_v1 = vld [vmem:[%s20364_s5 + $0x2ec] ss:$16 sps:$4 sm:$0xff]  }
 0x531   :  { %10803 = vmatmul.mubr.bf16.vlgmr.msra.gmra.mrb[8].mxu1 %v19577_v37  ;;  %11417 = vmatpush1.bf16.msra.mxu0 %v15853_v47  ;;  %v15802_v47 = vld [vmem:[%s20364_s5 + $0x2c8] ss:$16 sps:$4 sm:$0xff]  }
 0x532   :  { %10812 = vmatpush1.bf16.msra.mxu1 %v15688_v53  ;;  %10843 = vmatprep.mubr.bf16.mxu1 %v19582_v19  ;;  %v15859_v53 = vld [vmem:[%s20366_s7 + $0x10] ss:$8 sps:$4 sm:$0xff]  }
 0x533   :  { %10813 = vmatprep.subr.bf16.mxu1 %v15693_v12  ;;  %v15861_v12 = vld [vmem:[%s20366_s7 + $0x14] ss:$8 sps:$4 sm:$0xff]  }
 0x534   :  { %11418 = vmatprep.subr.bf16.mxu0 %v15861_v12  ;;  %v15810_v12 = vld [vmem:[%s20364_s5 + $0x30c] ss:$16 sps:$4 sm:$0xff]  }
 0x535   :  { %11419 = vmatpush1.bf16.msra.mxu0 %v15859_v53  ;;  %v15805_v53 = vld [vmem:[%s20364_s5 + $0x2e8] ss:$16 sps:$4 sm:$0xff]  }
 0x536   :  { %10814 = vmatpush1.bf16.msra.mxu1 %v15691_v25  ;;  %v15765_v25 = vld [vmem:[%s20364_s5 + $0x12c] ss:$16 sps:$4 sm:$0xff]  }
 0x537   :  { %10815 = vmatprep.subr.bf16.mxu1 %v15696_v35  ;;  %v15763_v35 = vld [vmem:[%s20364_s5 + $0x128] ss:$16 sps:$4 sm:$0xff]  }
 0x53a   :  { %10816 = vmatpush1.bf16.msra.mxu1 %v15694_v7  ;;  %v15865_v7 = vld [vmem:[%s20366_s7 + $0x20] ss:$8 sps:$4 sm:$0xff]  }
 0x53b   :  { %10817 = vmatprep.subr.bf16.mxu1 %v15699_v16  ;;  %v15867_v16 = vld [vmem:[%s20366_s7 + $0x24] ss:$8 sps:$4 sm:$0xff]  }
 0x53c   :  { %11420 = vmatprep.subr.bf16.mxu0 %v15867_v16  ;;  %v15816_v16 = vld [vmem:[%s20364_s5 + $0x34c] ss:$16 sps:$4 sm:$0xff]  }
 0x53d   :  { %11421 = vmatpush1.bf16.msra.mxu0 %v15865_v7  ;;  %v15811_v7 = vld [vmem:[%s20364_s5 + $0x328] ss:$16 sps:$4 sm:$0xff]  }
 0x53e   :  { %10818 = vmatpush1.bf16.msra.mxu1 %v15697_v13  ;;  %v15768_v13 = vld [vmem:[%s20364_s5 + $0x14c] ss:$16 sps:$4 sm:$0xff]  }
 0x53f   :  { %10819 = vmatprep.subr.bf16.mxu1 %v15702_v6  ;;  %v15766_v6 = vld [vmem:[%s20364_s5 + $0x148] ss:$16 sps:$4 sm:$0xff]  }
 0x542   :  { %10820 = vmatpush1.bf16.msra.mxu1 %v15700_v52  ;;  %v15871_v52 = vld [vmem:[%s20366_s7 + $0x30] ss:$8 sps:$4 sm:$0xff]  }
 0x543   :  { %10821 = vmatprep.subr.bf16.mxu1 %v15705_v3  ;;  %v15873_v3 = vld [vmem:[%s20366_s7 + $0x34] ss:$8 sps:$4 sm:$0xff]  }
 0x544   :  { %11422 = vmatprep.subr.bf16.mxu0 %v15873_v3  ;;  %v15822_v3 = vld [vmem:[%s20364_s5 + $0x38c] ss:$16 sps:$4 sm:$0xff]  }
 0x545   :  { %11423 = vmatpush1.bf16.msra.mxu0 %v15871_v52  ;;  %v15817_v52 = vld [vmem:[%s20364_s5 + $0x368] ss:$16 sps:$4 sm:$0xff]  }
 0x546   :  { %10822 = vmatpush1.bf16.msra.mxu1 %v15703_v0  ;;  %v15771_v0 = vld [vmem:[%s20364_s5 + $0x16c] ss:$16 sps:$4 sm:$0xff]  }
 0x547   :  { %10823 = vmatprep.subr.bf16.mxu1 %v15708_v33  ;;  %v15769_v33 = vld [vmem:[%s20364_s5 + $0x168] ss:$16 sps:$4 sm:$0xff]  }
 0x54a   :  { %10824 = vmatpush1.bf16.msra.mxu1 %v15706_v31  ;;  %v15877_v31 = vld [vmem:[%s20366_s7 + $0x40] ss:$8 sps:$4 sm:$0xff]  }
 0x54b   :  { %10825 = vmatprep.subr.bf16.mxu1 %v15711_v29  ;;  %v15879_v29 = vld [vmem:[%s20366_s7 + $0x44] ss:$8 sps:$4 sm:$0xff]  }
 0x54c   :  { %11424 = vmatprep.subr.bf16.mxu0 %v15879_v29  ;;  %v15828_v29 = vld [vmem:[%s20364_s5 + $0x3cc] ss:$16 sps:$4 sm:$0xff]  }
 0x54d   :  { %11425 = vmatpush1.bf16.msra.mxu0 %v15877_v31  ;;  %v15823_v31 = vld [vmem:[%s20364_s5 + $0x3a8] ss:$16 sps:$4 sm:$0xff]  }
 0x54e   :  { %10826 = vmatpush1.bf16.msra.mxu1 %v15709_v10  ;;  %v15774_v10 = vld [vmem:[%s20364_s5 + $0x18c] ss:$16 sps:$4 sm:$0xff]  }
 0x54f   :  { %10827 = vmatprep.subr.bf16.mxu1 %v15714_v57  ;;  %v15772_v57 = vld [vmem:[%s20364_s5 + $0x188] ss:$16 sps:$4 sm:$0xff]  }
 0x552   :  { %10828 = vmatpush1.bf16.msra.mxu1 %v15712_v48  ;;  %v15883_v48 = vld [vmem:[%s20366_s7 + $0x50] ss:$8 sps:$4 sm:$0xff]  }
 0x553   :  { %10829 = vmatprep.subr.bf16.mxu1 %v15717_v24  ;;  %v15885_v24 = vld [vmem:[%s20366_s7 + $0x54] ss:$8 sps:$4 sm:$0xff]  }
 0x554   :  { %11426 = vmatprep.subr.bf16.mxu0 %v15885_v24  ;;  %v15834_v24 = vld [vmem:[%s20364_s5 + $0x40c] ss:$16 sps:$4 sm:$0xff]  }
 0x555   :  { %11427 = vmatpush1.bf16.msra.mxu0 %v15883_v48  ;;  %v15829_v48 = vld [vmem:[%s20364_s5 + $0x3e8] ss:$16 sps:$4 sm:$0xff]  }
 0x556   :  { %10830 = vmatpush1.bf16.msra.mxu1 %v15715_v32  ;;  %v15777_v32 = vld [vmem:[%s20364_s5 + $0x1ac] ss:$16 sps:$4 sm:$0xff]  }
 0x557   :  { %10831 = vmatprep.subr.bf16.mxu1 %v15720_v5  ;;  %v15775_v5 = vld [vmem:[%s20364_s5 + $0x1a8] ss:$16 sps:$4 sm:$0xff]  }
 0x55a   :  { %10832 = vmatpush1.bf16.msra.mxu1 %v15718_v36  ;;  %v15889_v36 = vld [vmem:[%s20366_s7 + $0x60] ss:$8 sps:$4 sm:$0xff]  }
 0x55b   :  { %10833 = vmatprep.subr.bf16.mxu1 %v15723_v14  ;;  %v15891_v14 = vld [vmem:[%s20366_s7 + $0x64] ss:$8 sps:$4 sm:$0xff]  }
 0x55c   :  { %11428 = vmatprep.subr.bf16.mxu0 %v15891_v14  ;;  %v15835_v14 = vld [vmem:[%s20364_s5 + $0x428] ss:$16 sps:$4 sm:$0xff]  }
 0x55d   :  { %11429 = vmatpush1.bf16.msra.mxu0 %v15889_v36  ;;  %v15978_v36 = vld [vmem:[%s20366_s7 + $0x104] ss:$8 sps:$4 sm:$0xff]  }
 0x55e   :  { %10834 = vmatpush1.bf16.msra.mxu1 %v15721_v42  ;;  %v15780_v42 = vld [vmem:[%s20364_s5 + $0x1cc] ss:$16 sps:$4 sm:$0xff]  }
 0x55f   :  { %10835 = vmatprep.subr.bf16.mxu1 %v15726_v2  ;;  %v15778_v2 = vld [vmem:[%s20364_s5 + $0x1c8] ss:$16 sps:$4 sm:$0xff]  }
 0x562   :  { %10836 = vmatpush1.bf16.msra.mxu1 %v15724_v38  ;;  %v15895_v38 = vld [vmem:[%s20366_s7 + $0x70] ss:$8 sps:$4 sm:$0xff]  }
 0x563   :  { %10837 = vmatprep.subr.bf16.mxu1 %v15729_v62  ;;  %v15897_v62 = vld [vmem:[%s20366_s7 + $0x74] ss:$8 sps:$4 sm:$0xff]  }
 0x564   :  { %11430 = vmatprep.subr.bf16.mxu0 %v15897_v62  ;;  %v15844_v62 = vld [vmem:[%s20364_s5 + $0x488] ss:$16 sps:$4 sm:$0xff]  }
 0x565   :  { %11431 = vmatpush1.bf16.msra.mxu0 %v15895_v38  ;;  %v15846_v38 = vld [vmem:[%s20364_s5 + $0x48c] ss:$16 sps:$4 sm:$0xff]  }
 0x566   :  { %10838 = vmatpush1.bf16.msra.mxu1 %v15727_v26  ;;  %v15783_v26 = vld [vmem:[%s20364_s5 + $0x1ec] ss:$16 sps:$4 sm:$0xff]   ;;  %11432 = vmatprep.subr.bf16.mxu0 %v15903_v51  ;;  %v15850_v51 = vld [vmem:[%s20364_s5 + $0x4c8] ss:$16 sps:$4 sm:$0xff]  }
 0x567   :  { %10839 = vmatprep.subr.bf16.mxu1 %v15732_v59  ;;  %v15901_v59 = vld [vmem:[%s20366_s7 + $0x80] ss:$8 sps:$4 sm:$0xff]  }
 0x569   :  { %11433 = vmatpush1.bf16.msra.mxu0 %v15901_v59  ;;  %v15852_v59 = vld [vmem:[%s20364_s5 + $0x4cc] ss:$16 sps:$4 sm:$0xff]  }
 0x56a   :  { %10840 = vmatpush1.bf16.msra.mxu1 %v15730_v27  ;;  %v15786_v27 = vld [vmem:[%s20364_s5 + $0x20c] ss:$16 sps:$4 sm:$0xff]   ;;  %11434 = vmatprep.subr.bf16.mxu0 %v15909_v17  ;;  %v15862_v17 = vld [vmem:[%s20364_s5 + $0x508] ss:$16 sps:$4 sm:$0xff]  }
 0x56b   :  { %10841 = vmatprep.subr.bf16.mxu1 %v15735_v8  ;;  %v15907_v8 = vld [vmem:[%s20366_s7 + $0x90] ss:$8 sps:$4 sm:$0xff]  }
 0x56d   :  { %11435 = vmatpush1.bf16.msra.mxu0 %v15907_v8  ;;  %v15864_v8 = vld [vmem:[%s20364_s5 + $0x50c] ss:$16 sps:$4 sm:$0xff]  }
 0x56e   :  { %10842 = vmatpush1.bf16.msra.mxu1 %v15733_v30  ;;  %v15787_v30 = vld [vmem:[%s20364_s5 + $0x228] ss:$16 sps:$4 sm:$0xff]   ;;  %11436 = vmatprep.subr.bf16.mxu0 %v15915_v60 }
 0x56f   :  { %10852 = vmatprep.subr.bf16.mxu1 %v15738_v21  ;;  %v15913_v21 = vld [vmem:[%s20366_s7 + $0xa0] ss:$8 sps:$4 sm:$0xff]  }
 0x570   :  { %v15874_v60 = vld [vmem:[%s20364_s5 + $0x548] ss:$16 sps:$4 sm:$0xff]  }
 0x571   :  { %10844 = vmatmul.mubr.bf16.vlgmr.msra.gmra.mrb[8].mxu1 %v19686_v23  ;;  %11437 = vmatpush1.bf16.msra.mxu0 %v15913_v21  ;;  %v15876_v21 = vld [vmem:[%s20364_s5 + $0x54c] ss:$16 sps:$4 sm:$0xff]  }
 0x572   :  { %10853 = vmatpush1.bf16.msra.mxu1 %v15736_v9  ;;  %10884 = vmatprep.mubr.bf16.mxu1 %v19331_v54  ;;  %v15745_v54 = vld [vmem:[%s20364_s5 + $0x68] ss:$16 sps:$4 sm:$0xff]  }
 0x573   :  { %10854 = vmatprep.subr.bf16.mxu1 %v15741_v11  ;;  %v15919_v9 = vld [vmem:[%s20366_s7 + $0xb0] ss:$8 sps:$4 sm:$0xff]   ;;  %v15921_v11 = vld [vmem:[%s20366_s7 + $0xb4] ss:$8 sps:$4 sm:$0xff]  }
 0x574   :  { %11438 = vmatprep.subr.bf16.mxu0 %v15921_v11  ;;  %v15886_v11 = vld [vmem:[%s20364_s5 + $0x588] ss:$16 sps:$4 sm:$0xff]  }
 0x575   :  { %11439 = vmatpush1.bf16.msra.mxu0 %v15919_v9  ;;  %v15888_v9 = vld [vmem:[%s20364_s5 + $0x58c] ss:$16 sps:$4 sm:$0xff]  }
 0x576   :  { %10855 = vmatpush1.bf16.msra.mxu1 %v15739_v4  ;;  %v15795_v4 = vld [vmem:[%s20364_s5 + $0x26c] ss:$16 sps:$4 sm:$0xff]  }
 0x577   :  { %10856 = vmatprep.subr.bf16.mxu1 %v15744_v43  ;;  %v15793_v43 = vld [vmem:[%s20364_s5 + $0x268] ss:$16 sps:$4 sm:$0xff]  }
 0x57a   :  { %10857 = vmatpush1.bf16.msra.mxu1 %v15742_v18  ;;  %v15925_v18 = vld [vmem:[%s20366_s7 + $0xc0] ss:$8 sps:$4 sm:$0xff]  }
 0x57b   :  { %10858 = vmatprep.subr.bf16.mxu1 %v15747_v15  ;;  %v15927_v15 = vld [vmem:[%s20366_s7 + $0xc4] ss:$8 sps:$4 sm:$0xff]  }
 0x57c   :  { %11440 = vmatprep.subr.bf16.mxu0 %v15927_v15  ;;  %v15898_v15 = vld [vmem:[%s20364_s5 + $0x5c8] ss:$16 sps:$4 sm:$0xff]  }
 0x57d   :  { %11441 = vmatpush1.bf16.msra.mxu0 %v15925_v18  ;;  %v15900_v18 = vld [vmem:[%s20364_s5 + $0x5cc] ss:$16 sps:$4 sm:$0xff]  }
 0x57e   :  { %10859 = vmatpush1.bf16.msra.mxu1 %v15745_v54  ;;  %v15798_v54 = vld [vmem:[%s20364_s5 + $0x28c] ss:$16 sps:$4 sm:$0xff]  }
 0x57f   :  { %10860 = vmatprep.subr.bf16.mxu1 %v15750_v49  ;;  %v15796_v49 = vld [vmem:[%s20364_s5 + $0x288] ss:$16 sps:$4 sm:$0xff]  }
 0x582   :  { %10861 = vmatpush1.bf16.msra.mxu1 %v15748_v20  ;;  %v15931_v20 = vld [vmem:[%s20366_s7 + $0xd0] ss:$8 sps:$4 sm:$0xff]  }
 0x583   :  { %10862 = vmatprep.subr.bf16.mxu1 %v15753_v50  ;;  %v15933_v50 = vld [vmem:[%s20366_s7 + $0xd4] ss:$8 sps:$4 sm:$0xff]  }
 0x584   :  { %11442 = vmatprep.subr.bf16.mxu0 %v15933_v50  ;;  %v15910_v50 = vld [vmem:[%s20364_s5 + $0x608] ss:$16 sps:$4 sm:$0xff]  }
 0x585   :  { %11443 = vmatpush1.bf16.msra.mxu0 %v15931_v20  ;;  %v15912_v20 = vld [vmem:[%s20364_s5 + $0x60c] ss:$16 sps:$4 sm:$0xff]  }
 0x586   :  { %10863 = vmatpush1.bf16.msra.mxu1 %v15751_v46  ;;  %v15801_v46 = vld [vmem:[%s20364_s5 + $0x2ac] ss:$16 sps:$4 sm:$0xff]  }
 0x587   :  { %10864 = vmatprep.subr.bf16.mxu1 %v15756_v39  ;;  %v15799_v39 = vld [vmem:[%s20364_s5 + $0x2a8] ss:$16 sps:$4 sm:$0xff]  }
 0x58a   :  { %10865 = vmatpush1.bf16.msra.mxu1 %v15754_v22  ;;  %v15937_v22 = vld [vmem:[%s20366_s7 + $0xe0] ss:$8 sps:$4 sm:$0xff]  }
 0x58b   :  { %10866 = vmatprep.subr.bf16.mxu1 %v15759_v28  ;;  %v15939_v28 = vld [vmem:[%s20366_s7 + $0xe4] ss:$8 sps:$4 sm:$0xff]  }
 0x58c   :  { %11444 = vmatprep.subr.bf16.mxu0 %v15939_v28  ;;  %v9388_v28 = vlaneseq }
 0x58d   :  { %11445 = vmatpush1.bf16.msra.mxu0 %v15937_v22  ;;  %v15924_v22 = vld [vmem:[%s20364_s5 + $0x64c] ss:$16 sps:$4 sm:$0xff]  }
 0x58e   :  { %10867 = vmatpush1.bf16.msra.mxu1 %v15757_v41  ;;  %v15804_v41 = vld [vmem:[%s20364_s5 + $0x2cc] ss:$16 sps:$4 sm:$0xff]  }
 0x58f   :  { %10868 = vmatprep.subr.bf16.mxu1 %v15762_v55  ;;  %v15943_v55 = vld [vmem:[%s20366_s7 + $0xf0] ss:$8 sps:$4 sm:$0xff]  }
 0x592   :  { %10869 = vmatpush1.bf16.msra.mxu1 %v15760_v63  ;;  %v15945_v63 = vld [vmem:[%s20366_s7 + $0xf4] ss:$8 sps:$4 sm:$0xff]  }
 0x593   :  { %10870 = vmatprep.subr.bf16.mxu1 %v15765_v25  ;;  %11446 = vmatprep.subr.bf16.mxu0 %v15945_v63  ;;  %v15808_v25 = vld [vmem:[%s20364_s5 + $0x308] ss:$16 sps:$4 sm:$0xff]  }
 0x594   :  { %11447 = vmatpush1.bf16.msra.mxu0 %v15943_v55  ;;  %v15934_v63 = vld [vmem:[%s20364_s5 + $0x688] ss:$16 sps:$4 sm:$0xff]  }
 0x595   :  { %11457 = vmatprep.subr.bf16.mxu0 %v15978_v36  ;;  %v15954_v36 = vld [vmem:[%s20364_s5 + $0x70c] ss:$16 sps:$4 sm:$0xff]  }
 0x596   :  { %10871 = vmatpush1.bf16.msra.mxu1 %v15763_v35  ;;  %v15813_v35 = vld [vmem:[%s20364_s5 + $0x32c] ss:$16 sps:$4 sm:$0xff]  }
 0x597   :  { %10872 = vmatprep.subr.bf16.mxu1 %v15768_v13  ;;  %v15814_v13 = vld [vmem:[%s20364_s5 + $0x348] ss:$16 sps:$4 sm:$0xff]  }
 0x59a   :  { %10873 = vmatpush1.bf16.msra.mxu1 %v15766_v6  ;;  %v15819_v6 = vld [vmem:[%s20364_s5 + $0x36c] ss:$16 sps:$4 sm:$0xff]  }
 0x59b   :  { %10874 = vmatprep.subr.bf16.mxu1 %v15771_v0  ;;  %v15820_v0 = vld [vmem:[%s20364_s5 + $0x388] ss:$16 sps:$4 sm:$0xff]  }
 0x59e   :  { %10875 = vmatpush1.bf16.msra.mxu1 %v15769_v33  ;;  %v15825_v33 = vld [vmem:[%s20364_s5 + $0x3ac] ss:$16 sps:$4 sm:$0xff]  }
 0x59f   :  { %10876 = vmatprep.subr.bf16.mxu1 %v15774_v10  ;;  %v15826_v10 = vld [vmem:[%s20364_s5 + $0x3c8] ss:$16 sps:$4 sm:$0xff]  }
 0x5a2   :  { %10877 = vmatpush1.bf16.msra.mxu1 %v15772_v57  ;;  %v15831_v57 = vld [vmem:[%s20364_s5 + $0x3ec] ss:$16 sps:$4 sm:$0xff]  }
 0x5a3   :  { %10878 = vmatprep.subr.bf16.mxu1 %v15777_v32  ;;  %v15832_v32 = vld [vmem:[%s20364_s5 + $0x408] ss:$16 sps:$4 sm:$0xff]  }
 0x5a6   :  { %10879 = vmatpush1.bf16.msra.mxu1 %v15775_v5  ;;  %v15837_v5 = vld [vmem:[%s20364_s5 + $0x42c] ss:$16 sps:$4 sm:$0xff]  }
 0x5a7   :  { %10880 = vmatprep.subr.bf16.mxu1 %v15780_v42  ;;  %v15840_v42 = vld [vmem:[%s20364_s5 + $0x44c] ss:$16 sps:$4 sm:$0xff]  }
 0x5aa   :  { %10881 = vmatpush1.bf16.msra.mxu1 %v15778_v2  ;;  %v15841_v2 = vld [vmem:[%s20364_s5 + $0x468] ss:$16 sps:$4 sm:$0xff]  }
 0x5ab   :  { %10882 = vmatprep.subr.bf16.mxu1 %v15783_v26  ;;  %v15849_v26 = vld [vmem:[%s20364_s5 + $0x4ac] ss:$16 sps:$4 sm:$0xff]  }
 0x5ae   :  { %10883 = vmatpush1.bf16.msra.mxu1 %v15781_v56  ;;  %v15847_v56 = vld [vmem:[%s20364_s5 + $0x4a8] ss:$16 sps:$4 sm:$0xff]  }
 0x5af   :  { %10893 = vmatprep.subr.bf16.mxu1 %v15786_v27  ;;  %v15858_v27 = vld [vmem:[%s20364_s5 + $0x4ec] ss:$16 sps:$4 sm:$0xff]  }
 0x5b1   :  { %10885 = vmatmul.mubr.bf16.vlgmr.msra.gmra.mrb[12].mxu1 %v19327_v61  ;;  %v15792_v61 = vld [vmem:[%s20364_s5 + $0x24c] ss:$16 sps:$4 sm:$0xff]  }
 0x5b2   :  { %10894 = vmatpush1.bf16.msra.mxu1 %v15784_v45  ;;  %10925 = vmatprep.mubr.bf16.mxu1 %v19346_v40  ;;  %v15790_v40 = vld [vmem:[%s20364_s5 + $0x248] ss:$16 sps:$4 sm:$0xff]  }
 0x5b3   :  { %10895 = vmatprep.subr.bf16.mxu1 %v15789_v34  ;;  %v15856_v45 = vld [vmem:[%s20364_s5 + $0x4e8] ss:$16 sps:$4 sm:$0xff]   ;;  %v15870_v34 = vld [vmem:[%s20364_s5 + $0x52c] ss:$16 sps:$4 sm:$0xff]  }
 0x5b6   :  { %10896 = vmatpush1.bf16.msra.mxu1 %v15787_v30  ;;  %v15868_v30 = vld [vmem:[%s20364_s5 + $0x528] ss:$16 sps:$4 sm:$0xff]  }
 0x5b7   :  { %10897 = vmatprep.subr.bf16.mxu1 %v15792_v61  ;;  %v15882_v61 = vld [vmem:[%s20364_s5 + $0x56c] ss:$16 sps:$4 sm:$0xff]  }
 0x5ba   :  { %10898 = vmatpush1.bf16.msra.mxu1 %v15790_v40  ;;  %v15880_v40 = vld [vmem:[%s20364_s5 + $0x568] ss:$16 sps:$4 sm:$0xff]  }
 0x5bb   :  { %10899 = vmatprep.subr.bf16.mxu1 %v15795_v4  ;;  %v15894_v4 = vld [vmem:[%s20364_s5 + $0x5ac] ss:$16 sps:$4 sm:$0xff]  }
 0x5be   :  { %10900 = vmatpush1.bf16.msra.mxu1 %v15793_v43  ;;  %v15892_v43 = vld [vmem:[%s20364_s5 + $0x5a8] ss:$16 sps:$4 sm:$0xff]  }
 0x5bf   :  { %10901 = vmatprep.subr.bf16.mxu1 %v15798_v54  ;;  %v15906_v54 = vld [vmem:[%s20364_s5 + $0x5ec] ss:$16 sps:$4 sm:$0xff]  }
 0x5c2   :  { %10902 = vmatpush1.bf16.msra.mxu1 %v15796_v49  ;;  %v15904_v49 = vld [vmem:[%s20364_s5 + $0x5e8] ss:$16 sps:$4 sm:$0xff]  }
 0x5c3   :  { %10903 = vmatprep.subr.bf16.mxu1 %v15801_v46  ;;  %v15918_v46 = vld [vmem:[%s20364_s5 + $0x62c] ss:$16 sps:$4 sm:$0xff]  }
 0x5c6   :  { %10904 = vmatpush1.bf16.msra.mxu1 %v15799_v39  ;;  %v15916_v39 = vld [vmem:[%s20364_s5 + $0x628] ss:$16 sps:$4 sm:$0xff]  }
 0x5c7   :  { %10905 = vmatprep.subr.bf16.mxu1 %v15804_v41  ;;  %v15922_v41 = vld [vmem:[%s20364_s5 + $0x648] ss:$16 sps:$4 sm:$0xff]  }
 0x5ca   :  { %10906 = vmatpush1.bf16.msra.mxu1 %v15802_v47  ;;  %v15928_v47 = vld [vmem:[%s20364_s5 + $0x668] ss:$16 sps:$4 sm:$0xff]  }
 0x5cb   :  { %10907 = vmatprep.subr.bf16.mxu1 %v15807_v1  ;;  %v15936_v1 = vld [vmem:[%s20364_s5 + $0x68c] ss:$16 sps:$4 sm:$0xff]  }
 0x5ce   :  { %10908 = vmatpush1.bf16.msra.mxu1 %v15805_v53  ;;  %v20113_v53 = vld [vmem:[%s20365_s6] sm:$0xf] }
 0x5cf   :  { %10909 = vmatprep.subr.bf16.mxu1 %v15810_v12 }
 0x5d2   :  { %10910 = vmatpush1.bf16.msra.mxu1 %v15808_v25  ;;  %v15942_v25 = vld [vmem:[%s20364_s5 + $0x6ac] ss:$16 sps:$4 sm:$0xff]  }
 0x5d3   :  { %10911 = vmatprep.subr.bf16.mxu1 %v15813_v35 }
 0x5d6   :  { %10912 = vmatpush1.bf16.msra.mxu1 %v15811_v7 }
 0x5d7   :  { %10913 = vmatprep.subr.bf16.mxu1 %v15816_v16  ;;  %v15940_v16 = vld [vmem:[%s20364_s5 + $0x6a8] ss:$16 sps:$4 sm:$0xff]  }
 0x5da   :  { %10914 = vmatpush1.bf16.msra.mxu1 %v15814_v13  ;;  %v15948_v13 = vld [vmem:[%s20364_s5 + $0x6cc] ss:$16 sps:$4 sm:$0xff]  }
 0x5db   :  { %10915 = vmatprep.subr.bf16.mxu1 %v15819_v6 }
 0x5de   :  { %10916 = vmatpush1.bf16.msra.mxu1 %v15817_v52 }
 0x5df   :  { %10917 = vmatprep.subr.bf16.mxu1 %v15822_v3 }
 0x5e2   :  { %10918 = vmatpush1.bf16.msra.mxu1 %v15820_v0 }
 0x5e3   :  { %10919 = vmatprep.subr.bf16.mxu1 %v15825_v33 }
 0x5e6   :  { %10920 = vmatpush1.bf16.msra.mxu1 %v15823_v31  ;;  %v15946_v31 = vld [vmem:[%s20364_s5 + $0x6c8] ss:$16 sps:$4 sm:$0xff]  }
 0x5e7   :  { %10921 = vmatprep.subr.bf16.mxu1 %v15828_v29 }
 0x5ea   :  { %10922 = vmatpush1.bf16.msra.mxu1 %v15826_v10  ;;  %v15951_v10 = vld [vmem:[%s20364_s5 + $0x6ec] ss:$16 sps:$4 sm:$0xff]  }
 0x5eb   :  { %10923 = vmatprep.subr.bf16.mxu1 %v15831_v57 }
 0x5ee   :  { %10924 = vmatpush1.bf16.msra.mxu1 %v15829_v48  ;;  %v15976_v48 = vld [vmem:[%s20366_s7 + $0x100] ss:$8 sps:$4 sm:$0xff]  }
 0x5ef   :  { %10934 = vmatprep.subr.bf16.mxu1 %v15834_v24 }
 0x5f1   :  { %10926 = vmatmul.mubr.bf16.vlgmr.msra.gmra.mrb[12].mxu1 %v19457_v44  ;;  %v15838_v44 = vld [vmem:[%s20364_s5 + $0x448] ss:$16 sps:$4 sm:$0xff]  }
 0x5f2   :  { %10935 = vmatpush1.bf16.msra.mxu1 %v15832_v32  ;;  %10966 = vmatprep.mubr.bf16.mxu1 %v19462_v58  ;;  %v15843_v58 = vld [vmem:[%s20364_s5 + $0x46c] ss:$16 sps:$4 sm:$0xff]  }
 0x5f3   :  { %10936 = vmatprep.subr.bf16.mxu1 %v15837_v5  ;;  %v15981_v32 = vld [vmem:[%s20366_s7 + $0x114] ss:$8 sps:$4 sm:$0xff]   ;;  %v15949_v5 = vld [vmem:[%s20364_s5 + $0x6e8] ss:$16 sps:$4 sm:$0xff]  }
 0x5f6   :  { %10937 = vmatpush1.bf16.msra.mxu1 %v15835_v14  ;;  %v15979_v14 = vld [vmem:[%s20366_s7 + $0x110] ss:$8 sps:$4 sm:$0xff]  }
 0x5f7   :  { %10938 = vmatprep.subr.bf16.mxu1 %v15840_v42  ;;  %v15984_v42 = vld [vmem:[%s20366_s7 + $0x124] ss:$8 sps:$4 sm:$0xff]  }
 0x5fa   :  { %10939 = vmatpush1.bf16.msra.mxu1 %v15838_v44  ;;  %v15952_v44 = vld [vmem:[%s20364_s5 + $0x708] ss:$16 sps:$4 sm:$0xff]  }
 0x5fb   :  { %10940 = vmatprep.subr.bf16.mxu1 %v15843_v58  ;;  %v15957_v58 = vld [vmem:[%s20364_s5 + $0x72c] ss:$16 sps:$4 sm:$0xff]  }
 0x5fe   :  { %10941 = vmatpush1.bf16.msra.mxu1 %v15841_v2  ;;  %v15982_v2 = vld [vmem:[%s20366_s7 + $0x120] ss:$8 sps:$4 sm:$0xff]  }
 0x5ff   :  { %10942 = vmatprep.subr.bf16.mxu1 %v15846_v38  ;;  %v15987_v38 = vld [vmem:[%s20366_s7 + $0x134] ss:$8 sps:$4 sm:$0xff]  }
 0x602   :  { %10943 = vmatpush1.bf16.msra.mxu1 %v15844_v62  ;;  %v15955_v62 = vld [vmem:[%s20364_s5 + $0x728] ss:$16 sps:$4 sm:$0xff]  }
 0x603   :  { %10944 = vmatprep.subr.bf16.mxu1 %v15849_v26  ;;  %v15960_v26 = vld [vmem:[%s20364_s5 + $0x74c] ss:$16 sps:$4 sm:$0xff]  }
 0x606   :  { %10945 = vmatpush1.bf16.msra.mxu1 %v15847_v56  ;;  %v15985_v56 = vld [vmem:[%s20366_s7 + $0x130] ss:$8 sps:$4 sm:$0xff]  }
 0x607   :  { %10946 = vmatprep.subr.bf16.mxu1 %v15852_v59  ;;  %v15990_v59 = vld [vmem:[%s20366_s7 + $0x144] ss:$8 sps:$4 sm:$0xff]  }
 0x60a   :  { %10947 = vmatpush1.bf16.msra.mxu1 %v15850_v51  ;;  %v15958_v51 = vld [vmem:[%s20364_s5 + $0x748] ss:$16 sps:$4 sm:$0xff]  }
 0x60b   :  { %10948 = vmatprep.subr.bf16.mxu1 %v15858_v27  ;;  %v15963_v27 = vld [vmem:[%s20364_s5 + $0x76c] ss:$16 sps:$4 sm:$0xff]  }
 0x60e   :  { %10949 = vmatpush1.bf16.msra.mxu1 %v15856_v45  ;;  %v15988_v45 = vld [vmem:[%s20366_s7 + $0x140] ss:$8 sps:$4 sm:$0xff]  }
 0x60f   :  { %10950 = vmatprep.subr.bf16.mxu1 %v15864_v8  ;;  %v15993_v8 = vld [vmem:[%s20366_s7 + $0x154] ss:$8 sps:$4 sm:$0xff]  }
 0x612   :  { %10951 = vmatpush1.bf16.msra.mxu1 %v15862_v17  ;;  %v15961_v17 = vld [vmem:[%s20364_s5 + $0x768] ss:$16 sps:$4 sm:$0xff]  }
 0x613   :  { %10952 = vmatprep.subr.bf16.mxu1 %v15870_v34  ;;  %v15966_v34 = vld [vmem:[%s20364_s5 + $0x78c] ss:$16 sps:$4 sm:$0xff]  }
 0x616   :  { %10953 = vmatpush1.bf16.msra.mxu1 %v15868_v30  ;;  %v15991_v30 = vld [vmem:[%s20366_s7 + $0x150] ss:$8 sps:$4 sm:$0xff]  }
 0x617   :  { %10954 = vmatprep.subr.bf16.mxu1 %v15876_v21  ;;  %v15996_v21 = vld [vmem:[%s20366_s7 + $0x164] ss:$8 sps:$4 sm:$0xff]  }
 0x61a   :  { %10955 = vmatpush1.bf16.msra.mxu1 %v15874_v60  ;;  %v15964_v60 = vld [vmem:[%s20364_s5 + $0x788] ss:$16 sps:$4 sm:$0xff]  }
 0x61b   :  { %10956 = vmatprep.subr.bf16.mxu1 %v15882_v61  ;;  %v15969_v61 = vld [vmem:[%s20364_s5 + $0x7ac] ss:$16 sps:$4 sm:$0xff]  }
 0x61e   :  { %10957 = vmatpush1.bf16.msra.mxu1 %v15880_v40  ;;  %v15994_v40 = vld [vmem:[%s20366_s7 + $0x160] ss:$8 sps:$4 sm:$0xff]  }
 0x61f   :  { %10958 = vmatprep.subr.bf16.mxu1 %v15888_v9  ;;  %v15999_v9 = vld [vmem:[%s20366_s7 + $0x174] ss:$8 sps:$4 sm:$0xff]  }
 0x622   :  { %10959 = vmatpush1.bf16.msra.mxu1 %v15886_v11  ;;  %v15967_v11 = vld [vmem:[%s20364_s5 + $0x7a8] ss:$16 sps:$4 sm:$0xff]  }
 0x623   :  { %10960 = vmatprep.subr.bf16.mxu1 %v15894_v4  ;;  %v15972_v4 = vld [vmem:[%s20364_s5 + $0x7cc] ss:$16 sps:$4 sm:$0xff]  }
 0x626   :  { %10961 = vmatpush1.bf16.msra.mxu1 %v15892_v43  ;;  %v15997_v43 = vld [vmem:[%s20366_s7 + $0x170] ss:$8 sps:$4 sm:$0xff]  }
 0x627   :  { %10962 = vmatprep.subr.bf16.mxu1 %v15900_v18  ;;  %v16002_v18 = vld [vmem:[%s20366_s7 + $0x184] ss:$8 sps:$4 sm:$0xff]  }
 0x62a   :  { %10963 = vmatpush1.bf16.msra.mxu1 %v15898_v15  ;;  %v15970_v15 = vld [vmem:[%s20364_s5 + $0x7c8] ss:$16 sps:$4 sm:$0xff]  }
 0x62b   :  { %10964 = vmatprep.subr.bf16.mxu1 %v15906_v54  ;;  %v15975_v54 = vld [vmem:[%s20364_s5 + $0x7ec] ss:$16 sps:$4 sm:$0xff]  }
 0x62e   :  { %10965 = vmatpush1.bf16.msra.mxu1 %v15904_v49  ;;  %v16000_v49 = vld [vmem:[%s20366_s7 + $0x180] ss:$8 sps:$4 sm:$0xff]  }
 0x62f   :  { %10975 = vmatprep.subr.bf16.mxu1 %v15912_v20  ;;  %v16005_v20 = vld [vmem:[%s20366_s7 + $0x194] ss:$8 sps:$4 sm:$0xff]  }
 0x631   :  { %10967 = vmatmul.mubr.bf16.vlgmr.msra.gmra.mrb[12].mxu1 %v19577_v37  ;;  %v15930_v37 = vld [vmem:[%s20364_s5 + $0x66c] ss:$16 sps:$4 sm:$0xff]  }
 0x632   :  { %10976 = vmatpush1.bf16.msra.mxu1 %v15910_v50  ;;  %11007 = vmatprep.mubr.bf16.mxu1 %v19582_v19  ;;  %v20098_v19 = vshrl.u32 %v9388_v28, 7  ;;  %v15973_v50 = vld [vmem:[%s20364_s5 + $0x7e8] ss:$16 sps:$4 sm:$0xff]   ;;  %v16011_v28 = vld [vmem:[%s20366_s7 + $0x1b4] ss:$8 sps:$4 sm:$0xff]  }
 0x633   :  { %10977 = vmatprep.subr.bf16.mxu1 %v15918_v46  ;;  %v16003_v46 = vld [vmem:[%s20366_s7 + $0x190] ss:$8 sps:$4 sm:$0xff]  }
 0x634   :  { %v9390_v55 = vsub.s32 0, %v20098_v19  ;;  %v9394_v12 = vsub.s32 1, %v20098_v19 }
 0x636   :  { %10978 = vmatpush1.bf16.msra.mxu1 %v15916_v39  ;;  %v9391_v35 = vrot.slane %v20113_v53, %v9390_v55  ;;  %v9395_v7 = vrot.slane %v20113_v53, %v9394_v12  ;;  %v16008_v39 = vld [vmem:[%s20366_s7 + $0x1a4] ss:$8 sps:$4 sm:$0xff]  }
 0x637   :  { %10979 = vmatprep.subr.bf16.mxu1 %v15924_v22  ;;  %v16006_v22 = vld [vmem:[%s20366_s7 + $0x1a0] ss:$8 sps:$4 sm:$0xff]  }
 0x63a   :  { %10980 = vmatpush1.bf16.msra.mxu1 %v15922_v41  ;;  %v16009_v41 = vld [vmem:[%s20366_s7 + $0x1b0] ss:$8 sps:$4 sm:$0xff]  }
 0x63b   :  { %10981 = vmatprep.subr.bf16.mxu1 %v15930_v37  ;;  %v16014_v37 = vld [vmem:[%s20366_s7 + $0x1c4] ss:$8 sps:$4 sm:$0xff]  }
 0x63e   :  { %10982 = vmatpush1.bf16.msra.mxu1 %v15928_v47  ;;  %v16017_v47 = vld [vmem:[%s20366_s7 + $0x1d4] ss:$8 sps:$4 sm:$0xff]  }
 0x63f   :  { %10983 = vmatprep.subr.bf16.mxu1 %v15936_v1  ;;  %v16015_v1 = vld [vmem:[%s20366_s7 + $0x1d0] ss:$8 sps:$4 sm:$0xff]  }
 0x642   :  { %10984 = vmatpush1.bf16.msra.mxu1 %v15934_v63  ;;  %v16020_v63 = vld [vmem:[%s20366_s7 + $0x1e4] ss:$8 sps:$4 sm:$0xff]  }
 0x643   :  { %10985 = vmatprep.subr.bf16.mxu1 %v15942_v25  ;;  %v16018_v25 = vld [vmem:[%s20366_s7 + $0x1e0] ss:$8 sps:$4 sm:$0xff]  }
 0x644   :  { %v10845_v6 = vpop.f32.mrb[8].mxu1 }
 0x645   :  { %v15092_v52 = vadd.f32 %v10845_v6, %v9391_v35  ;;  %v10847_v3 = vpop.f32.mrb[9].mxu1  ;;  %v16021_v35 = vld [vmem:[%s20366_s7 + $0x1f0] ss:$8 sps:$4 sm:$0xff]   ;;  %v9402_v6 = vsub.s32 3, %v20098_v19 }
 0x646   :  { %v15093_v0 = vadd.f32 %v10847_v3, %v9395_v7  ;;  %v10849_v33 = vpop.f32.mrb[10].mxu1  ;;  %10986 = vmatpush1.bf16.msra.mxu1 %v15940_v16  ;;  %v16023_v7 = vld [vmem:[%s20366_s7 + $0x1f4] ss:$8 sps:$4 sm:$0xff]   ;;  %v16024_v16 = vld [vmem:[%s20368_s9 + $0x40] sm:$0xff]  }
 0x647   :  { %v10850_v29 = vpop.f32.mrb[11].mxu1  ;;  %10987 = vmatprep.subr.bf16.mxu1 %v15948_v13  ;;  %v11016_v24 = vpack.c.bf16 %v15092_v52, %v15092_v52  ;;  %v9398_v13 = vsub.s32 2, %v20098_v19  ;;  %v9403_v3 = vrot.slane %v20113_v53, %v9402_v6 }
 0x648   :  { %v11017_v57 = vpack.c.bf16 %v15093_v0, %v15093_v0 }
 0x649   :  { %v9399_v52 = vrot.slane %v20113_v53, %v9398_v13  ;;  %v16027_v53 = vld [vmem:[%s20368_s9 + $0x8] sm:$0xff]  }
 0x64a   :  { %10988 = vmatpush1.bf16.msra.mxu1 %v15946_v31  ;;  %11448 = vmatprep.mubr.bf16.mxu0 %v11017_v57 }
 0x64b   :  { %11449 = vmatmul.mubr.bf16.vlgmr.msra.gmra.mrb[160].mxu0 %v11016_v24  ;;  %10989 = vmatprep.subr.bf16.mxu1 %v15951_v10  ;;  %v16025_v24 = vld [vmem:[%s20368_s9] sm:$0xff]  }
 0x64c   :  { %11458 = vmatpush1.bf16.msra.mxu0 %v15976_v48 }
 0x64d   :  { %11459 = vmatprep.subr.bf16.mxu0 %v15981_v32 }
 0x64e   :  { %10990 = vmatpush1.bf16.msra.mxu1 %v15949_v5  ;;  %v16026_v5 = vld [vmem:[%s20368_s9 + $0x48] sm:$0xff]  }
 0x64f   :  { %10991 = vmatprep.subr.bf16.mxu1 %v15954_v36  ;;  %v16028_v36 = vld [vmem:[%s20368_s9 + $0x50] sm:$0xff]  }
 0x650   :  { %11460 = vmatpush1.bf16.msra.mxu0 %v15979_v14  ;;  %v16029_v14 = vld [vmem:[%s20368_s9 + $0x10] sm:$0xff]  }
 0x651   :  { %11461 = vmatprep.subr.bf16.mxu0 %v15984_v42  ;;  %v16030_v42 = vld [vmem:[%s20368_s9 + $0x58] sm:$0xff]  }
 0x652   :  { %10992 = vmatpush1.bf16.msra.mxu1 %v15952_v44  ;;  %v16031_v44 = vld [vmem:[%s20368_s9 + $0x18] sm:$0xff]  }
 0x653   :  { %10993 = vmatprep.subr.bf16.mxu1 %v15957_v58  ;;  %v16032_v58 = vld [vmem:[%s20368_s9 + $0x60] sm:$0xff]  }
 0x654   :  { %11462 = vmatpush1.bf16.msra.mxu0 %v15982_v2  ;;  %v16033_v2 = vld [vmem:[%s20368_s9 + $0x20] sm:$0xff]  }
 0x655   :  { %11463 = vmatprep.subr.bf16.mxu0 %v15987_v38  ;;  %v16034_v38 = vld [vmem:[%s20368_s9 + $0x68] sm:$0xff]  }
 0x656   :  { %10994 = vmatpush1.bf16.msra.mxu1 %v15955_v62  ;;  %v16035_v62 = vld [vmem:[%s20368_s9 + $0x28] sm:$0xff]  }
 0x657   :  { %10995 = vmatprep.subr.bf16.mxu1 %v15960_v26  ;;  %v16036_v26 = vld [vmem:[%s20368_s9 + $0x70] sm:$0xff]  }
 0x658   :  { %11464 = vmatpush1.bf16.msra.mxu0 %v15985_v56  ;;  %v16037_v56 = vld [vmem:[%s20368_s9 + $0x30] sm:$0xff]  }
 0x659   :  { %11465 = vmatprep.subr.bf16.mxu0 %v15990_v59  ;;  %v16038_v59 = vld [vmem:[%s20368_s9 + $0x78] sm:$0xff]  }
 0x65a   :  { %10996 = vmatpush1.bf16.msra.mxu1 %v15958_v51  ;;  %v16039_v51 = vld [vmem:[%s20368_s9 + $0x38] sm:$0xff]  }
 0x65b   :  { %10997 = vmatprep.subr.bf16.mxu1 %v15963_v27  ;;  %v11084_v27 = vld [vmem:[%s20367_s8] sm:$0x3] }
 0x65c   :  { %11466 = vmatpush1.bf16.msra.mxu0 %v15988_v45  ;;  %v11089_v45 = vrot.slane %v11084_v27, %v9390_v55 }
 0x65d   :  { %11467 = vmatprep.subr.bf16.mxu0 %v15993_v8  ;;  %v11093_v8 = vrot.slane %v11084_v27, %v9394_v12 }
 0x65e   :  { %10998 = vmatpush1.bf16.msra.mxu1 %v15961_v17 }
 0x65f   :  { %10999 = vmatprep.subr.bf16.mxu1 %v15966_v34 }
 0x660   :  { %11468 = vmatpush1.bf16.msra.mxu0 %v15991_v30 }
 0x661   :  { %11469 = vmatprep.subr.bf16.mxu0 %v15996_v21 }
 0x662   :  { %11000 = vmatpush1.bf16.msra.mxu1 %v15964_v60 }
 0x663   :  { %11001 = vmatprep.subr.bf16.mxu1 %v15969_v61 }
 0x664   :  { %11470 = vmatpush1.bf16.msra.mxu0 %v15994_v40 }
 0x665   :  { %11471 = vmatprep.subr.bf16.mxu0 %v15999_v9 }
 0x666   :  { %11002 = vmatpush1.bf16.msra.mxu1 %v15967_v11 }
 0x667   :  { %11003 = vmatprep.subr.bf16.mxu1 %v15972_v4 }
 0x668   :  { %11472 = vmatpush1.bf16.msra.mxu0 %v15997_v43  ;;  %v12665_v43 = vld [vmem:[%s20369_s10] ss:$0 sm:$0xff]  ;;  %s16071_s10 = smov [#allocation2]  }
 0x669   :  { %11473 = vmatprep.subr.bf16.mxu0 %v16002_v18  ;;  %s11695_s5 = sshll.u32 %s16071_s10, 4  ;;  %s11696_s5 = int_to_ptr.vmem [resolvable:$true] %s11695_s5 }
 0x66a   :  { %11004 = vmatpush1.bf16.msra.mxu1 %v15970_v15  ;;  %s16046_s23 = scalar_lea.vmem %s11696_s5, 32  ;;  %p16051_p1 = scmp.lt.s32.totalorder %s11696_s5, %s11696_s5 }
 0x66b   :  { %11005 = vmatprep.subr.bf16.mxu1 %v15975_v54  ;;  %p16047_p0 = scmp.ne.s32.totalorder %s11696_s5, %s16046_s23  ;;  %p16052_p2 = scmp.lt.s32.totalorder %s16046_s23, %s16046_s23 }
 0x66c   :  { %11474 = vmatpush1.bf16.msra.mxu0 %v16000_v49 }
 0x66d   :  { %11475 = vmatprep.subr.bf16.mxu0 %v16005_v20  ;;  %p16053_p3 = por %p16052_p2, %p16051_p1 }
 0x66e   :  { %11006 = vmatpush1.bf16.msra.mxu1 %v15973_v50 }
 0x66f   :  { %p16054_p4 = pnand %p16053_p3, %p16047_p0 }
 0x670   :  { %11476 = vmatpush1.bf16.msra.mxu0 %v16003_v46 }
 0x671   :  { %11008 = vmatmul.mubr.bf16.vlgmr.msra.gmra.mrb[12].mxu1 %v19686_v23  ;;  %11477 = vmatprep.subr.bf16.mxu0 %v16008_v39  ;;  %v16012_v23 = vld [vmem:[%s20366_s7 + $0x1c0] ss:$8 sps:$4 sm:$0xff]  }
 0x674   :  { %11478 = vmatpush1.bf16.msra.mxu0 %v16006_v22 }
 0x675   :  { %11479 = vmatprep.subr.bf16.mxu0 %v16011_v28 }
 0x678   :  { %11480 = vmatpush1.bf16.msra.mxu0 %v16009_v41 }
 0x679   :  { %11481 = vmatprep.subr.bf16.mxu0 %v16014_v37 }
 0x67c   :  { %11482 = vmatpush1.bf16.msra.mxu0 %v16012_v23 }
 0x67d   :  { %11483 = vmatprep.subr.bf16.mxu0 %v16017_v47 }
 0x680   :  { %11484 = vmatpush1.bf16.msra.mxu0 %v16015_v1 }
 0x681   :  { %11485 = vmatprep.subr.bf16.mxu0 %v16020_v63 }
 0x684   :  { %11486 = vmatpush1.bf16.msra.mxu0 %v16018_v25 }
 0x685   :  { %11487 = vmatprep.subr.bf16.mxu0 %v16023_v7 }
 0x688   :  { %11488 = vmatpush1.bf16.msra.mxu0 %v16021_v35 }
 0x689   :  { %13430 = vmatprep.subr.bf16.mxu0 %v16024_v16 }
 0x744   :  { %v11009_v0 = vpop.f32.mrb[12].mxu1 }
 0x745   :  { %v15094_v33 = vadd.f32 %v11009_v0, %v9399_v52  ;;  %v11011_v31 = vpop.f32.mrb[13].mxu1 }
 0x746   :  { %v15095_v29 = vadd.f32 %v11011_v31, %v9403_v3  ;;  %v11013_v10 = vpop.f32.mrb[14].mxu1 }
 0x747   :  { %v11014_v57 = vpop.f32.mrb[15].mxu1  ;;  %v11018_v32 = vpack.c.bf16 %v15094_v33, %v15094_v33 }
 0x748   :  { %v11019_v48 = vpack.c.bf16 %v15095_v29, %v15095_v29 }
 0x74a   :  { %11489 = vmatprep.mubr.bf16.mxu0 %v11019_v48 }
 0x74b   :  { %11490 = vmatmul.mubr.bf16.vlgmr.msra.gmra.mrb[160].mxu0 %v11018_v32 }
 0x74c   :  { %13431 = vmatpush3.bf16.msra.mxu0 %v16025_v24 }
 0x74d   :  { %13432 = vmatprep.subr.bf16.mxu0 %v16026_v5 }
 0x750   :  { %13433 = vmatpush3.bf16.msra.mxu0 %v16027_v53 }
 0x751   :  { %13434 = vmatprep.subr.bf16.mxu0 %v16028_v36 }
 0x754   :  { %13435 = vmatpush3.bf16.msra.mxu0 %v16029_v14 }
 0x755   :  { %13436 = vmatprep.subr.bf16.mxu0 %v16030_v42 }
 0x758   :  { %13437 = vmatpush3.bf16.msra.mxu0 %v16031_v44 }
 0x759   :  { %13438 = vmatprep.subr.bf16.mxu0 %v16032_v58 }
 0x75c   :  { %13439 = vmatpush3.bf16.msra.mxu0 %v16033_v2 }
 0x75d   :  { %13440 = vmatprep.subr.bf16.mxu0 %v16034_v38 }
 0x760   :  { %13441 = vmatpush3.bf16.msra.mxu0 %v16035_v62 }
 0x761   :  { %13442 = vmatprep.subr.bf16.mxu0 %v16036_v26 }
 0x764   :  { %13443 = vmatpush3.bf16.msra.mxu0 %v16037_v56 }
 0x765   :  { %13444 = vmatprep.subr.bf16.mxu0 %v16038_v59 }
 0x768   :  { %13445 = vmatpush3.bf16.msra.mxu0 %v16039_v51 }
 0x81e   :  { %v11491_v17 = vpop.f32.mrb[160].mxu0 }
 0x81f   :  { %v15096_v34 = vadd.f32 %v11491_v17, %v11089_v45  ;;  %v11493_v30 = vpop.f32.mrb[161].mxu0 }
 0x820   :  { %v15097_v21 = vadd.f32 %v11493_v30, %v11093_v8  ;;  %v11495_v60 = vpop.f32.mrb[162].mxu0 }
 0x821   :  { %v11496_v61 = vpop.f32.mrb[163].mxu0  ;;  %v11498_v9 = vpack.c.bf16 %v15096_v34, %v15096_v34 }
 0x822   :  { %v11499_v40 = vpack.c.bf16 %v15097_v21, %v15097_v21 }
 0x824   :  { %11667 = vmatprep.mubr.bf16.mxu0 %v11499_v40 }
 0x825   :  { %11668 = vmatmul.mubr.bf16.vlgmr.msra.gmra.mrb[164].mxu0 %v11498_v9 }
 0x8f8   :  { %v13446_v11 = vpop.f32.mrb[164].mxu0 }
 0x8f9   :  { %v13447_v4 = vpop.f32.mrb[165].mxu0 }
 0x8fa   :  { %v13448_v55 = vadd.f32 %v13447_v4, %v13446_v11  ;;  %v13449_v18 = vpop.f32.mrb[166].mxu0 }
 0x8fb   :  { %v13450_v19 = vpop.f32.mrb[167].mxu0 }
 0x8fc   :  { %v11670_v12 = vadd.f32 %v13448_v55, %v12665_v43 }
 0x8fe   :  { %v11676_v15 = vsel %vm11675_vm9, %v11670_v12, -inf }
 0x8ff   :  { %11677 = vmax.xlane.f32.xlu0 %v11676_v15 }
 0x98c   :  { %v11678_v54 = vpop.xlane.xlu0 %11677 }
 0x98d   :  { %v11679_v49 = vsub.f32 %v11670_v12, %v11678_v54 }
 0x98f   :  { %v11680_v20 = vmul.f32 1.442695, %v11679_v49 }
 0x991   :  { %16040 = vpow2.f32 %v11680_v20 }
 0x99b   :  { %v16041_v50 = vpop.eup %16040 }
 0x99c   :  { %v11682_v46 = vsel %vm11675_vm9, %v16041_v50, 0.0 }
 0x99d   :  { %11683 = vadd.xlane.f32.xlu1 %v11682_v46 }
 0xa2a   :  { %v11684_v39 = vpop.xlane.xlu1 %11683 }
 0xa2b   :  { %16042 = vlog2.f32 %v11684_v39 }
 0xa35   :  { %v16043_v22 = vpop.eup %16042 }
 0xa36   :  { %v11686_v28 = vmul.f32 0.6931472, %v16043_v22 }
 0xa38   :  { %v11687_v41 = vsub.f32 %v11679_v49, %v11686_v28 }
 0xa3a   :  { %11688 = vst.msk [vmem:[#allocation2] sm:$0x3] %vm11675_vm9, %v11687_v41 }
 0xa3b   :  { %16057 = shalt.err (!%p16054_p4)
}
 0xa3c   :  { %s16058_s3 = scalar_lea.hbm %s20370_s11, 32 }
 0xa3d   :  { %p16059_p5 = scmp.ne.s32.totalorder %s20370_s11, %s16058_s3  ;;  %p16062_p6 = scmp.lt.u32.totalorder %s16058_s3, %s20370_s11 }
 0xa3f   :  { %p16064_p7 = pnand %p16062_p6, %p16059_p5 }
 0xa41   :  { %16067 = shalt.err (!%p16064_p7)
}
 0xa42   :  { %11698 = dma.vmem_to_hbm [thread:$0]  %s11696_s5, 32, %s20370_s11, [#allocation3]  }
 0xa43   :  { %16068 = dma.done.wait [#allocation3], 32  }
 0xa44   :  { %16069 = vsyncadd [#allocation3], 4294967264 }
 0xa45   :  { %11702 = vsyncpa [#allocation3], 1 }

</bundles_post_ra>
